<compile_context>
chip_gen: v7x
topology: tpu7x:2x2x1
jax: 0.10.0
libtpu: 0.0.40
codegen_flags: <defaults>
</compile_context>

<pallas_src>
import functools

import jax
import jax.numpy as jnp
from jax.experimental import pallas as pl
from jax.experimental.pallas import tpu as pltpu


_VMEM_BUDGET = 40 * 2**20   # tile-choice budget; well under v7x's 64 MiB physical


# ----------------------------------------------------------------------------
# Pallas kernel: TB windows per grid step.
# ----------------------------------------------------------------------------
def _window_attention_kernel(x_ref, wqkv_ref, bqkv_ref, relb_ref, mask_ref,
                             wproj_ref, bproj_ref, o_ref, *, num_heads, has_mask):
    TB, N, C = x_ref.shape
    H = num_heads
    D = C // H

    # Fused QKV projection over all TB windows at once: (TB*N, C) @ (C, 3C).
    # Leading-dim collapse is layout preserving; cast to bf16 happens in VMEM.
    xm = x_ref[...].reshape(TB * N, C).astype(jnp.bfloat16)
    qkv = jnp.dot(xm, wqkv_ref[...],
                  preferred_element_type=jnp.float32) + bqkv_ref[0]   # (TB*N, 3C) f32

    wp = wproj_ref[...]                        # (C, C) bf16, resident, loaded once
    if has_mask:
        mask = mask_ref[...]                   # (nW, N, N) bf16, resident
        nW = mask.shape[0]

    # Accumulate the output projection head-by-head — no concatenate needed.
    # Static unroll over heads (H is small here).
    # TODO(synk): for very large H, switch to a fori_loop / batched-head chain.
    y = jnp.zeros((TB * N, C), jnp.float32)
    for h in range(H):
        # Head-major column layout: one contiguous (3D)-lane strip per head.
        strip = qkv[:, h * 3 * D:(h + 1) * 3 * D]                     # (TB*N, 3D)
        qh = strip[:, :D].reshape(TB, N, D).astype(jnp.bfloat16)      # scale pre-folded
        kh = strip[:, D:2 * D].reshape(TB, N, D).astype(jnp.bfloat16)
        vh = strip[:, 2 * D:3 * D].reshape(TB, N, D).astype(jnp.bfloat16)

        # Window-batched scores for this head: (TB, N, N), f32 accumulation.
        s = jnp.einsum('bnd,bmd->bnm', qh, kh,
                       preferred_element_type=jnp.float32)
        s = s + relb_ref[h]                    # (N, N) bf16 bias, broadcast over TB
        if has_mask:
            # Window b uses mask[b % nW]; TB is a multiple of nW, so a cheap
            # leading-dim split + broadcast covers the whole block.
            s = (s.reshape(TB // nW, nW, N, N) + mask[None]).reshape(TB, N, N)

        # Softmax strictly in f32 (v5e-safe); divide goes to the EUP.
        s = s - jnp.max(s, axis=-1, keepdims=True)
        p = jnp.exp(s)
        p = p * pl.reciprocal(jnp.sum(p, axis=-1, keepdims=True), approx=True)

        ctx = jnp.einsum('bnm,bmd->bnd', p.astype(jnp.bfloat16), vh,
                         preferred_element_type=jnp.float32)          # (TB, N, D)

        # Fold this head's contribution straight into the output projection.
        y = y + jnp.dot(ctx.reshape(TB * N, D).astype(jnp.bfloat16),
                        wp[h * D:(h + 1) * D, :],
                        preferred_element_type=jnp.float32)

    y = y + bproj_ref[0]
    o_ref[...] = y.reshape(TB, N, C).astype(o_ref.dtype)


# ----------------------------------------------------------------------------
# Glue: relative position index (matches the PyTorch buffer construction).
# ----------------------------------------------------------------------------
def _relative_position_index(window_size):
    wh, ww = window_size
    coords_h = jnp.arange(wh)
    coords_w = jnp.arange(ww)
    coords = jnp.stack(jnp.meshgrid(coords_h, coords_w, indexing="ij"))  # (2,Wh,Ww)
    coords_flatten = coords.reshape(2, -1)                               # (2,N)
    rel = coords_flatten[:, :, None] - coords_flatten[:, None, :]        # (2,N,N)
    rel = rel.transpose(1, 2, 0)                                         # (N,N,2)
    rc0 = (rel[..., 0] + wh - 1) * (2 * ww - 1)
    rc1 = rel[..., 1] + ww - 1
    return rc0 + rc1                                                     # (N,N)


def _vmem_bytes(tb, n, c, itemsize, resident):
    """Rough per-step VMEM footprint: streamed blocks (double-buffered) +
    f32 in-kernel temporaries (qkv, y accumulator, score/prob) + residents."""
    io = 2 * 2 * tb * n * c * itemsize
    temps = tb * n * 4 * c * 4 + 3 * tb * n * n * 4
    return io + temps + resident


def _choose_tile(total, step, target, fits):
    """Pick TB: a multiple of `step` dividing `total`, within the VMEM `fits`
    predicate, preferring (a) an even grid length >= 2 (v7x megacore),
    (b) a grid length >= 2, then the largest candidate <= target."""
    cands = [t for t in range(step, total + 1, step)
             if total % t == 0 and fits(t)]
    if not cands:
        cands = [step]
    for pred in (lambda t: (total // t) >= 2 and (total // t) % 2 == 0,
                 lambda t: (total // t) >= 2,
                 lambda t: True):
        sub = [t for t in cands if pred(t)]
        if sub:
            within = [t for t in sub if t <= target]
            return max(within) if within else min(sub)
    return step


# ----------------------------------------------------------------------------
# Wrapper: builds the pallas_call for WindowAttention.forward(x, mask)
# ----------------------------------------------------------------------------
def window_attention(x, params, window_size, num_heads, mask=None,
                     tile_windows=64):
    B_, N, C = x.shape
    assert N == window_size[0] * window_size[1]
    H = num_heads
    D = C // H
    scale = D ** (-0.5)
    itemsize = jnp.dtype(x.dtype).itemsize

    # Relative position bias: (H, N, N), resident in bf16 (independent of TB).
    rel_idx = _relative_position_index(window_size).reshape(-1)
    rel_bias = params["rel_table"][rel_idx].reshape(N, N, H)
    rel_bias = rel_bias.transpose(2, 0, 1).astype(jnp.bfloat16)

    has_mask = mask is not None
    nW = int(mask.shape[0]) if has_mask else 1
    if has_mask:
        assert B_ % nW == 0, "num windows must be a multiple of mask windows"
        mask_in = mask.astype(jnp.bfloat16)                    # (nW, N, N) resident
    else:
        mask_in = jnp.zeros((1, N, N), jnp.bfloat16)           # unused placeholder

    # Resident bytes (TB-independent): bf16 weights + f32 biases + bias/mask.
    resident = 2 * ((3 * C * C + C * C) * 2 + 4 * C * 4 + (H + nW) * N * N * 2)

    step = nW if has_mask else 1
    TB = _choose_tile(B_, step, tile_windows,
                      lambda t: _vmem_bytes(t, N, C, itemsize, resident)
                      <= _VMEM_BUDGET)
    assert B_ % TB == 0 and TB % step == 0

    # qk scale folded into the Q weight/bias; columns reordered head-major
    # (q_h | k_h | v_h contiguous per head) so per-head slices are one lane strip.
    wq = params["wqkv"][:C] * scale
    wk = params["wqkv"][C:2 * C]
    wv = params["wqkv"][2 * C:]
    bq = params["bqkv"][:C] * scale
    bk = params["bqkv"][C:2 * C]
    bv = params["bqkv"][2 * C:]
    w_stack = jnp.concatenate([wq.reshape(H, D, C), wk.reshape(H, D, C),
                               wv.reshape(H, D, C)], axis=1).reshape(3 * C, C)
    wqkv_t = w_stack.T.astype(jnp.bfloat16)                    # (C, 3C), head-major cols
    bqkv = jnp.concatenate([bq.reshape(H, D), bk.reshape(H, D),
                            bv.reshape(H, D)], axis=1).reshape(1, 3 * C)
    bqkv = bqkv.astype(jnp.float32)
    wproj_t = params["wproj"].T.astype(jnp.bfloat16)           # (C, C)
    bproj = params["bproj"].reshape(1, C).astype(jnp.float32)

    kernel = functools.partial(_window_attention_kernel,
                               num_heads=H, has_mask=has_mask)

    # Derived VMEM budget with headroom, clamped well under v7x's 64 MiB.
    vmem_est = _vmem_bytes(TB, N, C, itemsize, resident)
    vmem_limit = int(min(max(int(1.5 * vmem_est), 32 * 2**20), 48 * 2**20))

    # Weight / bias / mask blocks use constant index_maps -> kept resident
    # rather than re-DMA'd each grid step.
    grid_spec = pltpu.PrefetchScalarGridSpec(
        num_scalar_prefetch=0,
        grid=(B_ // TB,),
        in_specs=[
            pl.BlockSpec((TB, N, C), lambda b: (b, 0, 0)),                 # x (native dtype)
            pl.BlockSpec((C, 3 * C), lambda b: (0, 0)),                    # Wqkv^T
            pl.BlockSpec((1, 3 * C), lambda b: (0, 0)),                    # bqkv
            pl.BlockSpec((H, N, N), lambda b: (0, 0, 0)),                  # rel-pos bias
            pl.BlockSpec((mask_in.shape[0], N, N), lambda b: (0, 0, 0)),   # mask
            pl.BlockSpec((C, C), lambda b: (0, 0)),                        # Wproj^T
            pl.BlockSpec((1, C), lambda b: (0, 0)),                        # bproj
        ],
        out_specs=pl.BlockSpec((TB, N, C), lambda b: (b, 0, 0)),
    )

    return pl.pallas_call(
        kernel,
        out_shape=jax.ShapeDtypeStruct((B_, N, C), x.dtype),
        grid_spec=grid_spec,
        compiler_params=pltpu.CompilerParams(
            dimension_semantics=("parallel",),
            vmem_limit_bytes=vmem_limit),
    )(x, wqkv_t, bqkv, rel_bias, mask_in, wproj_t, bproj)


# ----------------------------------------------------------------------------
# Pure-JAX reference (mirrors the PyTorch forward) for validation.
# ----------------------------------------------------------------------------
def window_attention_ref(x, params, window_size, num_heads, mask=None):
    B_, N, C = x.shape
    D = C // num_heads
    scale = D ** (-0.5)

    qkv = x @ params["wqkv"].T + params["bqkv"]
    qkv = qkv.reshape(B_, N, 3, num_heads, D).transpose(2, 0, 3, 1, 4)
    q, k, v = qkv[0], qkv[1], qkv[2]
    q = q * scale
    attn = q @ k.transpose(0, 1, 3, 2)                        # (B_, H, N, N)

    rel_idx = _relative_position_index(window_size).reshape(-1)
    rel_bias = params["rel_table"][rel_idx].reshape(N, N, num_heads)
    rel_bias = rel_bias.transpose(2, 0, 1)
    attn = attn + rel_bias[None]

    if mask is not None:
        nW = mask.shape[0]
        attn = attn.reshape(B_ // nW, nW, num_heads, N, N) + mask[None, :, None]
        attn = attn.reshape(B_, num_heads, N, N)

    attn = jax.nn.softmax(attn, axis=-1)
    out = (attn @ v).transpose(0, 2, 1, 3).reshape(B_, N, C)
    out = out @ params["wproj"].T + params["bproj"]
    return out


# ----------------------------------------------------------------------------
# Main
# ----------------------------------------------------------------------------
if __name__ == "__main__":
    key = jax.random.PRNGKey(0)

    dim = 32
    num_heads = 4
    window_size = (4, 4)
    N = window_size[0] * window_size[1]
    B = 8          # image batch
    nW = 4         # windows per image
    B_ = B * nW    # 32 windows -> TB=16 per step, grid of 2 (even; v7x-friendly)

    k_x, k_t, k_wq, k_bq, k_wp, k_bp, k_m = jax.random.split(key, 7)

    # Deterministic synthetic parameters (module __init__ shapes).
    num_rel = (2 * window_size[0] - 1) * (2 * window_size[1] - 1)
    params = {
        "rel_table": 0.02 * jax.random.normal(k_t, (num_rel, num_heads),
                                              dtype=jnp.float32),
        "wqkv": 0.05 * jax.random.normal(k_wq, (3 * dim, dim), dtype=jnp.float32),
        "bqkv": 0.01 * jax.random.normal(k_bq, (3 * dim,), dtype=jnp.float32),
        "wproj": 0.05 * jax.random.normal(k_wp, (dim, dim), dtype=jnp.float32),
        "bproj": 0.01 * jax.random.normal(k_bp, (dim,), dtype=jnp.float32),
    }

    x = jax.random.normal(k_x, (B_, N, dim), dtype=jnp.float32)

    # A shifted-window style mask: (nW, N, N) of 0 / -100 values.
    raw = jax.random.bernoulli(k_m, 0.2, (nW, N, N)).astype(jnp.float32)
    mask = raw * (-100.0)

    # bf16 matmul operands (f32 accumulation) + approx reciprocal -> loosened tol.
    TOL = dict(atol=2e-2, rtol=2e-2)

    # no-mask path
    out0 = window_attention(x, params, window_size, num_heads, mask=None)
    jax.block_until_ready(out0)
    ref0 = window_attention_ref(x, params, window_size, num_heads, mask=None)
    assert jnp.allclose(out0, ref0, **TOL), "mismatch (no mask)"

    # masked path
    out1 = window_attention(x, params, window_size, num_heads, mask=mask)
    jax.block_until_ready(out1)
    ref1 = window_attention_ref(x, params, window_size, num_heads, mask=mask)
    assert jnp.allclose(out1, ref1, **TOL), "mismatch (mask)"

    print("KERNEL_OK")
</pallas_src>

<mosaic_0001>
module attributes {stable_mosaic.version = 11 : i64} {
  func.func @_window_attention_kernel(%arg0: i32, %arg1: memref<16x16x32xf32, #tpu.memory_space<vmem>>, %arg2: memref<32x96xbf16, #tpu.memory_space<vmem>>, %arg3: memref<1x96xf32, #tpu.memory_space<vmem>>, %arg4: memref<4x16x16xbf16, #tpu.memory_space<vmem>>, %arg5: memref<1x16x16xbf16, #tpu.memory_space<vmem>>, %arg6: memref<32x32xbf16, #tpu.memory_space<vmem>>, %arg7: memref<1x32xf32, #tpu.memory_space<vmem>>, %arg8: memref<16x16x32xf32, #tpu.memory_space<vmem>>) attributes {dimension_semantics = [#tpu.dimension_semantics<parallel>], iteration_bounds = array<i64: 2>, scalar_prefetch = 0 : i64, scratch_operands = 0 : i64, tpu.core_type = #tpu.core_type<tc>, window_params = [{transform_indices = @transform_0, window_bounds = array<i64: 16, 16, 32>}, {pipeline_mode = #tpu.pipeline_mode<synchronous>, transform_indices = @transform_1, window_bounds = array<i64: 32, 96>}, {pipeline_mode = #tpu.pipeline_mode<synchronous>, transform_indices = @transform_2, window_bounds = array<i64: 1, 96>}, {pipeline_mode = #tpu.pipeline_mode<synchronous>, transform_indices = @transform_3, window_bounds = array<i64: 4, 16, 16>}, {pipeline_mode = #tpu.pipeline_mode<synchronous>, transform_indices = @transform_4, window_bounds = array<i64: 1, 16, 16>}, {pipeline_mode = #tpu.pipeline_mode<synchronous>, transform_indices = @transform_5, window_bounds = array<i64: 32, 32>}, {pipeline_mode = #tpu.pipeline_mode<synchronous>, transform_indices = @transform_6, window_bounds = array<i64: 1, 32>}, {transform_indices = @transform_7, window_bounds = array<i64: 16, 16, 32>}]} {
    %c0 = arith.constant 0 : index
    %c0_0 = arith.constant 0 : index
    %c0_1 = arith.constant 0 : index
    %0 = vector.load %arg1[%c0, %c0_0, %c0_1] : memref<16x16x32xf32, #tpu.memory_space<vmem>>, vector<16x16x32xf32>
    %1 = vector.shape_cast %0 : vector<16x16x32xf32> to vector<256x32xf32>
    %2 = arith.truncf %1 : vector<256x32xf32> to vector<256x32xbf16>
    %c0_2 = arith.constant 0 : index
    %c0_3 = arith.constant 0 : index
    %3 = vector.load %arg2[%c0_2, %c0_3] : memref<32x96xbf16, #tpu.memory_space<vmem>>, vector<32x96xbf16>
    %cst = arith.constant dense<0.000000e+00> : vector<256x96xf32>
    %4 = tpu.matmul %2, %3, %cst {dimension_numbers = #tpu.dot_dimension_numbers<[1], [0], [0], [1], [0, 0, 1, 1], [], []>} : vector<256x32xbf16>, vector<32x96xbf16>, vector<256x96xf32> -> vector<256x96xf32>
    %c0_4 = arith.constant 0 : index
    %c0_5 = arith.constant 0 : index
    %5 = vector.load %arg3[%c0_4, %c0_5] : memref<1x96xf32, #tpu.memory_space<vmem>>, vector<1x96xf32>
    %6 = vector.shape_cast %5 : vector<1x96xf32> to vector<96xf32>
    %7 = vector.shape_cast %6 : vector<96xf32> to vector<1x96xf32>
    %8 = vector.broadcast %7 : vector<1x96xf32> to vector<256x96xf32>
    %9 = arith.addf %4, %8 : vector<256x96xf32>
    %c0_6 = arith.constant 0 : index
    %c0_7 = arith.constant 0 : index
    %10 = vector.load %arg6[%c0_6, %c0_7] : memref<32x32xbf16, #tpu.memory_space<vmem>>, vector<32x32xbf16>
    %cst_8 = arith.constant 0.000000e+00 : f32
    %11 = vector.broadcast %cst_8 : f32 to vector<256x32xf32>
    %12 = vector.extract_strided_slice %9 {offsets = [0, 0], sizes = [256, 24], strides = [1, 1]} : vector<256x96xf32> to vector<256x24xf32>
    %13 = vector.extract_strided_slice %12 {offsets = [0, 0], sizes = [256, 8], strides = [1, 1]} : vector<256x24xf32> to vector<256x8xf32>
    %14 = vector.shape_cast %13 : vector<256x8xf32> to vector<16x16x8xf32>
    %15 = arith.truncf %14 : vector<16x16x8xf32> to vector<16x16x8xbf16>
    %16 = vector.extract_strided_slice %12 {offsets = [0, 8], sizes = [256, 8], strides = [1, 1]} : vector<256x24xf32> to vector<256x8xf32>
    %17 = vector.shape_cast %16 : vector<256x8xf32> to vector<16x16x8xf32>
    %18 = arith.truncf %17 : vector<16x16x8xf32> to vector<16x16x8xbf16>
    %19 = vector.extract_strided_slice %12 {offsets = [0, 16], sizes = [256, 8], strides = [1, 1]} : vector<256x24xf32> to vector<256x8xf32>
    %20 = vector.shape_cast %19 : vector<256x8xf32> to vector<16x16x8xf32>
    %21 = arith.truncf %20 : vector<16x16x8xf32> to vector<16x16x8xbf16>
    "tpu.trace_start"() <{level = 10 : i32, message = "bnd,bmd->bnm"}> : () -> ()
    %cst_9 = arith.constant dense<0.000000e+00> : vector<16x16x16xf32>
    %22 = tpu.matmul %15, %18, %cst_9 {dimension_numbers = #tpu.dot_dimension_numbers<[2], [2], [1], [1], [0, 0, 0, 1, 1, 1], [0], [0]>} : vector<16x16x8xbf16>, vector<16x16x8xbf16>, vector<16x16x16xf32> -> vector<16x16x16xf32>
    "tpu.trace_stop"() : () -> ()
    %c0_10 = arith.constant 0 : index
    %c0_11 = arith.constant 0 : index
    %c0_12 = arith.constant 0 : index
    %23 = vector.load %arg4[%c0_10, %c0_11, %c0_12] : memref<4x16x16xbf16, #tpu.memory_space<vmem>>, vector<1x16x16xbf16>
    %24 = vector.shape_cast %23 : vector<1x16x16xbf16> to vector<16x16xbf16>
    %25 = arith.extf %24 : vector<16x16xbf16> to vector<16x16xf32>
    %26 = vector.shape_cast %25 : vector<16x16xf32> to vector<1x16x16xf32>
    %27 = vector.broadcast %26 : vector<1x16x16xf32> to vector<16x16x16xf32>
    %28 = arith.addf %22, %27 : vector<16x16x16xf32>
    %cst_13 = arith.constant dense<0xFF800000> : vector<16x16xf32>
    %29 = vector.multi_reduction <maximumf>, %28, %cst_13 [2] : vector<16x16x16xf32> to vector<16x16xf32>
    %30 = vector.shape_cast %29 : vector<16x16xf32> to vector<16x16x1xf32>
    %31 = vector.broadcast %30 : vector<16x16x1xf32> to vector<16x16x16xf32>
    %32 = arith.subf %28, %31 : vector<16x16x16xf32>
    %33 = math.exp %32 : vector<16x16x16xf32>
    %cst_14 = arith.constant dense<0.000000e+00> : vector<16x16xf32>
    %34 = vector.multi_reduction <add>, %33, %cst_14 [2] : vector<16x16x16xf32> to vector<16x16xf32>
    %35 = vector.shape_cast %34 : vector<16x16xf32> to vector<16x16x1xf32>
    %36 = tpu.reciprocal %35 {approx = true} : vector<16x16x1xf32> -> vector<16x16x1xf32>
    %37 = vector.broadcast %36 : vector<16x16x1xf32> to vector<16x16x16xf32>
    %38 = arith.mulf %33, %37 : vector<16x16x16xf32>
    %39 = arith.truncf %38 : vector<16x16x16xf32> to vector<16x16x16xbf16>
    "tpu.trace_start"() <{level = 10 : i32, message = "bnm,bmd->bnd"}> : () -> ()
    %cst_15 = arith.constant dense<0.000000e+00> : vector<16x16x8xf32>
    %40 = tpu.matmul %39, %21, %cst_15 {dimension_numbers = #tpu.dot_dimension_numbers<[2], [1], [1], [2], [0, 0, 0, 1, 1, 2], [0], [0]>} : vector<16x16x16xbf16>, vector<16x16x8xbf16>, vector<16x16x8xf32> -> vector<16x16x8xf32>
    "tpu.trace_stop"() : () -> ()
    %41 = vector.shape_cast %40 : vector<16x16x8xf32> to vector<256x8xf32>
    %42 = arith.truncf %41 : vector<256x8xf32> to vector<256x8xbf16>
    %43 = vector.extract_strided_slice %10 {offsets = [0, 0], sizes = [8, 32], strides = [1, 1]} : vector<32x32xbf16> to vector<8x32xbf16>
    %cst_16 = arith.constant dense<0.000000e+00> : vector<256x32xf32>
    %44 = tpu.matmul %42, %43, %cst_16 {dimension_numbers = #tpu.dot_dimension_numbers<[1], [0], [0], [1], [0, 0, 1, 1], [], []>} : vector<256x8xbf16>, vector<8x32xbf16>, vector<256x32xf32> -> vector<256x32xf32>
    %45 = arith.addf %11, %44 : vector<256x32xf32>
    %46 = vector.extract_strided_slice %9 {offsets = [0, 24], sizes = [256, 24], strides = [1, 1]} : vector<256x96xf32> to vector<256x24xf32>
    %47 = vector.extract_strided_slice %46 {offsets = [0, 0], sizes = [256, 8], strides = [1, 1]} : vector<256x24xf32> to vector<256x8xf32>
    %48 = vector.shape_cast %47 : vector<256x8xf32> to vector<16x16x8xf32>
    %49 = arith.truncf %48 : vector<16x16x8xf32> to vector<16x16x8xbf16>
    %50 = vector.extract_strided_slice %46 {offsets = [0, 8], sizes = [256, 8], strides = [1, 1]} : vector<256x24xf32> to vector<256x8xf32>
    %51 = vector.shape_cast %50 : vector<256x8xf32> to vector<16x16x8xf32>
    %52 = arith.truncf %51 : vector<16x16x8xf32> to vector<16x16x8xbf16>
    %53 = vector.extract_strided_slice %46 {offsets = [0, 16], sizes = [256, 8], strides = [1, 1]} : vector<256x24xf32> to vector<256x8xf32>
    %54 = vector.shape_cast %53 : vector<256x8xf32> to vector<16x16x8xf32>
    %55 = arith.truncf %54 : vector<16x16x8xf32> to vector<16x16x8xbf16>
    "tpu.trace_start"() <{level = 10 : i32, message = "bnd,bmd->bnm"}> : () -> ()
    %cst_17 = arith.constant dense<0.000000e+00> : vector<16x16x16xf32>
    %56 = tpu.matmul %49, %52, %cst_17 {dimension_numbers = #tpu.dot_dimension_numbers<[2], [2], [1], [1], [0, 0, 0, 1, 1, 1], [0], [0]>} : vector<16x16x8xbf16>, vector<16x16x8xbf16>, vector<16x16x16xf32> -> vector<16x16x16xf32>
    "tpu.trace_stop"() : () -> ()
    %c1 = arith.constant 1 : index
    %c0_18 = arith.constant 0 : index
    %c0_19 = arith.constant 0 : index
    %57 = vector.load %arg4[%c1, %c0_18, %c0_19] : memref<4x16x16xbf16, #tpu.memory_space<vmem>>, vector<1x16x16xbf16>
    %58 = vector.shape_cast %57 : vector<1x16x16xbf16> to vector<16x16xbf16>
    %59 = arith.extf %58 : vector<16x16xbf16> to vector<16x16xf32>
    %60 = vector.shape_cast %59 : vector<16x16xf32> to vector<1x16x16xf32>
    %61 = vector.broadcast %60 : vector<1x16x16xf32> to vector<16x16x16xf32>
    %62 = arith.addf %56, %61 : vector<16x16x16xf32>
    %cst_20 = arith.constant dense<0xFF800000> : vector<16x16xf32>
    %63 = vector.multi_reduction <maximumf>, %62, %cst_20 [2] : vector<16x16x16xf32> to vector<16x16xf32>
    %64 = vector.shape_cast %63 : vector<16x16xf32> to vector<16x16x1xf32>
    %65 = vector.broadcast %64 : vector<16x16x1xf32> to vector<16x16x16xf32>
    %66 = arith.subf %62, %65 : vector<16x16x16xf32>
    %67 = math.exp %66 : vector<16x16x16xf32>
    %cst_21 = arith.constant dense<0.000000e+00> : vector<16x16xf32>
    %68 = vector.multi_reduction <add>, %67, %cst_21 [2] : vector<16x16x16xf32> to vector<16x16xf32>
    %69 = vector.shape_cast %68 : vector<16x16xf32> to vector<16x16x1xf32>
    %70 = tpu.reciprocal %69 {approx = true} : vector<16x16x1xf32> -> vector<16x16x1xf32>
    %71 = vector.broadcast %70 : vector<16x16x1xf32> to vector<16x16x16xf32>
    %72 = arith.mulf %67, %71 : vector<16x16x16xf32>
    %73 = arith.truncf %72 : vector<16x16x16xf32> to vector<16x16x16xbf16>
    "tpu.trace_start"() <{level = 10 : i32, message = "bnm,bmd->bnd"}> : () -> ()
    %cst_22 = arith.constant dense<0.000000e+00> : vector<16x16x8xf32>
    %74 = tpu.matmul %73, %55, %cst_22 {dimension_numbers = #tpu.dot_dimension_numbers<[2], [1], [1], [2], [0, 0, 0, 1, 1, 2], [0], [0]>} : vector<16x16x16xbf16>, vector<16x16x8xbf16>, vector<16x16x8xf32> -> vector<16x16x8xf32>
    "tpu.trace_stop"() : () -> ()
    %75 = vector.shape_cast %74 : vector<16x16x8xf32> to vector<256x8xf32>
    %76 = arith.truncf %75 : vector<256x8xf32> to vector<256x8xbf16>
    %77 = vector.extract_strided_slice %10 {offsets = [8, 0], sizes = [8, 32], strides = [1, 1]} : vector<32x32xbf16> to vector<8x32xbf16>
    %cst_23 = arith.constant dense<0.000000e+00> : vector<256x32xf32>
    %78 = tpu.matmul %76, %77, %cst_23 {dimension_numbers = #tpu.dot_dimension_numbers<[1], [0], [0], [1], [0, 0, 1, 1], [], []>} : vector<256x8xbf16>, vector<8x32xbf16>, vector<256x32xf32> -> vector<256x32xf32>
    %79 = arith.addf %45, %78 : vector<256x32xf32>
    %80 = vector.extract_strided_slice %9 {offsets = [0, 48], sizes = [256, 24], strides = [1, 1]} : vector<256x96xf32> to vector<256x24xf32>
    %81 = vector.extract_strided_slice %80 {offsets = [0, 0], sizes = [256, 8], strides = [1, 1]} : vector<256x24xf32> to vector<256x8xf32>
    %82 = vector.shape_cast %81 : vector<256x8xf32> to vector<16x16x8xf32>
    %83 = arith.truncf %82 : vector<16x16x8xf32> to vector<16x16x8xbf16>
    %84 = vector.extract_strided_slice %80 {offsets = [0, 8], sizes = [256, 8], strides = [1, 1]} : vector<256x24xf32> to vector<256x8xf32>
    %85 = vector.shape_cast %84 : vector<256x8xf32> to vector<16x16x8xf32>
    %86 = arith.truncf %85 : vector<16x16x8xf32> to vector<16x16x8xbf16>
    %87 = vector.extract_strided_slice %80 {offsets = [0, 16], sizes = [256, 8], strides = [1, 1]} : vector<256x24xf32> to vector<256x8xf32>
    %88 = vector.shape_cast %87 : vector<256x8xf32> to vector<16x16x8xf32>
    %89 = arith.truncf %88 : vector<16x16x8xf32> to vector<16x16x8xbf16>
    "tpu.trace_start"() <{level = 10 : i32, message = "bnd,bmd->bnm"}> : () -> ()
    %cst_24 = arith.constant dense<0.000000e+00> : vector<16x16x16xf32>
    %90 = tpu.matmul %83, %86, %cst_24 {dimension_numbers = #tpu.dot_dimension_numbers<[2], [2], [1], [1], [0, 0, 0, 1, 1, 1], [0], [0]>} : vector<16x16x8xbf16>, vector<16x16x8xbf16>, vector<16x16x16xf32> -> vector<16x16x16xf32>
    "tpu.trace_stop"() : () -> ()
    %c2 = arith.constant 2 : index
    %c0_25 = arith.constant 0 : index
    %c0_26 = arith.constant 0 : index
    %91 = vector.load %arg4[%c2, %c0_25, %c0_26] : memref<4x16x16xbf16, #tpu.memory_space<vmem>>, vector<1x16x16xbf16>
    %92 = vector.shape_cast %91 : vector<1x16x16xbf16> to vector<16x16xbf16>
    %93 = arith.extf %92 : vector<16x16xbf16> to vector<16x16xf32>
    %94 = vector.shape_cast %93 : vector<16x16xf32> to vector<1x16x16xf32>
    %95 = vector.broadcast %94 : vector<1x16x16xf32> to vector<16x16x16xf32>
    %96 = arith.addf %90, %95 : vector<16x16x16xf32>
    %cst_27 = arith.constant dense<0xFF800000> : vector<16x16xf32>
    %97 = vector.multi_reduction <maximumf>, %96, %cst_27 [2] : vector<16x16x16xf32> to vector<16x16xf32>
    %98 = vector.shape_cast %97 : vector<16x16xf32> to vector<16x16x1xf32>
    %99 = vector.broadcast %98 : vector<16x16x1xf32> to vector<16x16x16xf32>
    %100 = arith.subf %96, %99 : vector<16x16x16xf32>
    %101 = math.exp %100 : vector<16x16x16xf32>
    %cst_28 = arith.constant dense<0.000000e+00> : vector<16x16xf32>
    %102 = vector.multi_reduction <add>, %101, %cst_28 [2] : vector<16x16x16xf32> to vector<16x16xf32>
    %103 = vector.shape_cast %102 : vector<16x16xf32> to vector<16x16x1xf32>
    %104 = tpu.reciprocal %103 {approx = true} : vector<16x16x1xf32> -> vector<16x16x1xf32>
    %105 = vector.broadcast %104 : vector<16x16x1xf32> to vector<16x16x16xf32>
    %106 = arith.mulf %101, %105 : vector<16x16x16xf32>
    %107 = arith.truncf %106 : vector<16x16x16xf32> to vector<16x16x16xbf16>
    "tpu.trace_start"() <{level = 10 : i32, message = "bnm,bmd->bnd"}> : () -> ()
    %cst_29 = arith.constant dense<0.000000e+00> : vector<16x16x8xf32>
    %108 = tpu.matmul %107, %89, %cst_29 {dimension_numbers = #tpu.dot_dimension_numbers<[2], [1], [1], [2], [0, 0, 0, 1, 1, 2], [0], [0]>} : vector<16x16x16xbf16>, vector<16x16x8xbf16>, vector<16x16x8xf32> -> vector<16x16x8xf32>
    "tpu.trace_stop"() : () -> ()
    %109 = vector.shape_cast %108 : vector<16x16x8xf32> to vector<256x8xf32>
    %110 = arith.truncf %109 : vector<256x8xf32> to vector<256x8xbf16>
    %111 = vector.extract_strided_slice %10 {offsets = [16, 0], sizes = [8, 32], strides = [1, 1]} : vector<32x32xbf16> to vector<8x32xbf16>
    %cst_30 = arith.constant dense<0.000000e+00> : vector<256x32xf32>
    %112 = tpu.matmul %110, %111, %cst_30 {dimension_numbers = #tpu.dot_dimension_numbers<[1], [0], [0], [1], [0, 0, 1, 1], [], []>} : vector<256x8xbf16>, vector<8x32xbf16>, vector<256x32xf32> -> vector<256x32xf32>
    %113 = arith.addf %79, %112 : vector<256x32xf32>
    %114 = vector.extract_strided_slice %9 {offsets = [0, 72], sizes = [256, 24], strides = [1, 1]} : vector<256x96xf32> to vector<256x24xf32>
    %115 = vector.extract_strided_slice %114 {offsets = [0, 0], sizes = [256, 8], strides = [1, 1]} : vector<256x24xf32> to vector<256x8xf32>
    %116 = vector.shape_cast %115 : vector<256x8xf32> to vector<16x16x8xf32>
    %117 = arith.truncf %116 : vector<16x16x8xf32> to vector<16x16x8xbf16>
    %118 = vector.extract_strided_slice %114 {offsets = [0, 8], sizes = [256, 8], strides = [1, 1]} : vector<256x24xf32> to vector<256x8xf32>
    %119 = vector.shape_cast %118 : vector<256x8xf32> to vector<16x16x8xf32>
    %120 = arith.truncf %119 : vector<16x16x8xf32> to vector<16x16x8xbf16>
    %121 = vector.extract_strided_slice %114 {offsets = [0, 16], sizes = [256, 8], strides = [1, 1]} : vector<256x24xf32> to vector<256x8xf32>
    %122 = vector.shape_cast %121 : vector<256x8xf32> to vector<16x16x8xf32>
    %123 = arith.truncf %122 : vector<16x16x8xf32> to vector<16x16x8xbf16>
    "tpu.trace_start"() <{level = 10 : i32, message = "bnd,bmd->bnm"}> : () -> ()
    %cst_31 = arith.constant dense<0.000000e+00> : vector<16x16x16xf32>
    %124 = tpu.matmul %117, %120, %cst_31 {dimension_numbers = #tpu.dot_dimension_numbers<[2], [2], [1], [1], [0, 0, 0, 1, 1, 1], [0], [0]>} : vector<16x16x8xbf16>, vector<16x16x8xbf16>, vector<16x16x16xf32> -> vector<16x16x16xf32>
    "tpu.trace_stop"() : () -> ()
    %c3 = arith.constant 3 : index
    %c0_32 = arith.constant 0 : index
    %c0_33 = arith.constant 0 : index
    %125 = vector.load %arg4[%c3, %c0_32, %c0_33] : memref<4x16x16xbf16, #tpu.memory_space<vmem>>, vector<1x16x16xbf16>
    %126 = vector.shape_cast %125 : vector<1x16x16xbf16> to vector<16x16xbf16>
    %127 = arith.extf %126 : vector<16x16xbf16> to vector<16x16xf32>
    %128 = vector.shape_cast %127 : vector<16x16xf32> to vector<1x16x16xf32>
    %129 = vector.broadcast %128 : vector<1x16x16xf32> to vector<16x16x16xf32>
    %130 = arith.addf %124, %129 : vector<16x16x16xf32>
    %cst_34 = arith.constant dense<0xFF800000> : vector<16x16xf32>
    %131 = vector.multi_reduction <maximumf>, %130, %cst_34 [2] : vector<16x16x16xf32> to vector<16x16xf32>
    %132 = vector.shape_cast %131 : vector<16x16xf32> to vector<16x16x1xf32>
    %133 = vector.broadcast %132 : vector<16x16x1xf32> to vector<16x16x16xf32>
    %134 = arith.subf %130, %133 : vector<16x16x16xf32>
    %135 = math.exp %134 : vector<16x16x16xf32>
    %cst_35 = arith.constant dense<0.000000e+00> : vector<16x16xf32>
    %136 = vector.multi_reduction <add>, %135, %cst_35 [2] : vector<16x16x16xf32> to vector<16x16xf32>
    %137 = vector.shape_cast %136 : vector<16x16xf32> to vector<16x16x1xf32>
    %138 = tpu.reciprocal %137 {approx = true} : vector<16x16x1xf32> -> vector<16x16x1xf32>
    %139 = vector.broadcast %138 : vector<16x16x1xf32> to vector<16x16x16xf32>
    %140 = arith.mulf %135, %139 : vector<16x16x16xf32>
    %141 = arith.truncf %140 : vector<16x16x16xf32> to vector<16x16x16xbf16>
    "tpu.trace_start"() <{level = 10 : i32, message = "bnm,bmd->bnd"}> : () -> ()
    %cst_36 = arith.constant dense<0.000000e+00> : vector<16x16x8xf32>
    %142 = tpu.matmul %141, %123, %cst_36 {dimension_numbers = #tpu.dot_dimension_numbers<[2], [1], [1], [2], [0, 0, 0, 1, 1, 2], [0], [0]>} : vector<16x16x16xbf16>, vector<16x16x8xbf16>, vector<16x16x8xf32> -> vector<16x16x8xf32>
    "tpu.trace_stop"() : () -> ()
    %143 = vector.shape_cast %142 : vector<16x16x8xf32> to vector<256x8xf32>
    %144 = arith.truncf %143 : vector<256x8xf32> to vector<256x8xbf16>
    %145 = vector.extract_strided_slice %10 {offsets = [24, 0], sizes = [8, 32], strides = [1, 1]} : vector<32x32xbf16> to vector<8x32xbf16>
    %cst_37 = arith.constant dense<0.000000e+00> : vector<256x32xf32>
    %146 = tpu.matmul %144, %145, %cst_37 {dimension_numbers = #tpu.dot_dimension_numbers<[1], [0], [0], [1], [0, 0, 1, 1], [], []>} : vector<256x8xbf16>, vector<8x32xbf16>, vector<256x32xf32> -> vector<256x32xf32>
    %147 = arith.addf %113, %146 : vector<256x32xf32>
    %c0_38 = arith.constant 0 : index
    %c0_39 = arith.constant 0 : index
    %148 = vector.load %arg7[%c0_38, %c0_39] : memref<1x32xf32, #tpu.memory_space<vmem>>, vector<1x32xf32>
    %149 = vector.shape_cast %148 : vector<1x32xf32> to vector<32xf32>
    %150 = vector.shape_cast %149 : vector<32xf32> to vector<1x32xf32>
    %151 = vector.broadcast %150 : vector<1x32xf32> to vector<256x32xf32>
    %152 = arith.addf %147, %151 : vector<256x32xf32>
    %153 = vector.shape_cast %152 : vector<256x32xf32> to vector<16x16x32xf32>
    %c0_40 = arith.constant 0 : index
    %c0_41 = arith.constant 0 : index
    %c0_42 = arith.constant 0 : index
    %154 = vector.load %arg8[%c0_40, %c0_41, %c0_42] : memref<16x16x32xf32, #tpu.memory_space<vmem>>, vector<16x16x32xf32>
    tpu.vector_store %arg8[%c0_40, %c0_41, %c0_42], %153 {strides = array<i32>} : memref<16x16x32xf32, #tpu.memory_space<vmem>>, vector<16x16x32xf32>,
    return
  }
  func.func @transform_0(%arg0: i32) -> (i32, i32, i32) {
    %c0_i32 = arith.constant 0 : i32
    %c0_i32_0 = arith.constant 0 : i32
    %c0_i32_1 = arith.constant 0 : i32
    return %arg0, %c0_i32, %c0_i32_0 : i32, i32, i32
  }
  func.func @transform_1(%arg0: i32) -> (i32, i32) {
    %c0_i32 = arith.constant 0 : i32
    %c0_i32_0 = arith.constant 0 : i32
    %c0_i32_1 = arith.constant 0 : i32
    return %c0_i32, %c0_i32_0 : i32, i32
  }
  func.func @transform_2(%arg0: i32) -> (i32, i32) {
    %c0_i32 = arith.constant 0 : i32
    %c0_i32_0 = arith.constant 0 : i32
    %c0_i32_1 = arith.constant 0 : i32
    return %c0_i32, %c0_i32_0 : i32, i32
  }
  func.func @transform_3(%arg0: i32) -> (i32, i32, i32) {
    %c0_i32 = arith.constant 0 : i32
    %c0_i32_0 = arith.constant 0 : i32
    %c0_i32_1 = arith.constant 0 : i32
    %c0_i32_2 = arith.constant 0 : i32
    return %c0_i32, %c0_i32_0, %c0_i32_1 : i32, i32, i32
  }
  func.func @transform_4(%arg0: i32) -> (i32, i32, i32) {
    %c0_i32 = arith.constant 0 : i32
    %c0_i32_0 = arith.constant 0 : i32
    %c0_i32_1 = arith.constant 0 : i32
    %c0_i32_2 = arith.constant 0 : i32
    return %c0_i32, %c0_i32_0, %c0_i32_1 : i32, i32, i32
  }
  func.func @transform_5(%arg0: i32) -> (i32, i32) {
    %c0_i32 = arith.constant 0 : i32
    %c0_i32_0 = arith.constant 0 : i32
    %c0_i32_1 = arith.constant 0 : i32
    return %c0_i32, %c0_i32_0 : i32, i32
  }
  func.func @transform_6(%arg0: i32) -> (i32, i32) {
    %c0_i32 = arith.constant 0 : i32
    %c0_i32_0 = arith.constant 0 : i32
    %c0_i32_1 = arith.constant 0 : i32
    return %c0_i32, %c0_i32_0 : i32, i32
  }
  func.func @transform_7(%arg0: i32) -> (i32, i32, i32) {
    %c0_i32 = arith.constant 0 : i32
    %c0_i32_0 = arith.constant 0 : i32
    %c0_i32_1 = arith.constant 0 : i32
    return %arg0, %c0_i32, %c0_i32_0 : i32, i32, i32
  }
}

</mosaic_0001>

<bundles_post_ra>
// kernel: tpu_custom_call.1
= control target key start
LH: loop header
LB: loop body
LE: loop exit
PB: predicated region body
PF: predicated region fallthrough
CT: control target
= control target key end

     0   :  { %12 = vsyncpa [#allocation3], 0  ;;  %s15764_s0 = inlined_call_operand.hbm [shape: f32[32,16,32], index: 0, kind: input, shape index: {}]   ;;  %s15765_s1 = inlined_call_operand.hbm [shape: bf16[32,96], index: 1, kind: input, shape index: {}]   ;;  %s15766_s2 = inlined_call_operand.vmem [shape: f32[1,96], index: 2, kind: input, shape index: {}]   ;;  %s15767_s3 = inlined_call_operand.hbm [shape: bf16[4,16,16], index: 3, kind: input, shape index: {}]   ;;  %s15768_s4 = inlined_call_operand.hbm [shape: bf16[1,16,16], index: 4, kind: input, shape index: {}]   ;;  %s15769_s5 = inlined_call_operand.vmem [shape: bf16[32,32], index: 5, kind: input, shape index: {}]   ;;  %s15770_s6 = inlined_call_operand.vmem [shape: f32[1,32], index: 6, kind: input, shape index: {}]   ;;  %s15771_s7 = inlined_call_operand.hbm [shape: f32[32,16,32], index: 7, kind: output, shape index: {}]  }
   0x1   :  { %14 = vsyncpa [#allocation3 + $0x1], 0 }
   0x2   :  { %15 = vsyncpa [#allocation6], 0 }
   0x3   :  { %16 = vsyncpa [#allocation9], 0 }
   0x4   :  { %17 = vsyncpa [#allocation4], 0 }
   0x5   :  { %19 = vsyncpa [#allocation4 + $0x1], 0  ;;  %s12064_s24 = smov 0   ;;  %s12066_s25 = smov 0  }
   0x6   :  { %s12068_s26 = smov 0   ;;  %s12070_s27 = smov 0  }
   0x7 LB: > { %s12085_s28 = sadd.s32 4294967295, %s11998_s27   ;;  %s9560_s29 = sadd.s32 4294967294, %s11998_s27   ;;  %s11998_s27 = sphi %s12070_s27, %s16111_s27   ;;  %s11994_s26 = sphi %s12068_s26, %s16110_s26   ;;  %s11990_s25 = sphi %s12066_s25, %s16109_s25   ;;  %s11986_s24 = sphi %s12064_s24, %s16108_s24  }
   0x8   : > { %p45_p0 = scmp.ne.s32.totalorder %s11990_s25, %s11986_s24  ;;  %p15772_p1 = scmp.eq.s32.totalorder %s12085_s28, 0 }
   0x9   : > { %p201_p3 = scmp.eq.s32.totalorder %s9560_s29, 1  ;;  %p9561_p5 = scmp.ge.s32.totalorder %s11998_s27, 1 }
   0xa   : > { %p12094_p4 = por %p15772_p1, %p45_p0  ;;  %p208_p7 = scmp.lt.s32.totalorder %s11998_s27, 3 }
   0xb   : > { %p12099_p6 = por %p201_p3, %p45_p0  ;;  %s12000_s10 = smov [#allocation5]  }
   0xc   : > { %s15857_s30 = scalar_select %p12094_p4, 1, 0 }
   0xd   : > { %s15858_s8 = scalar_select %p12099_p6, 1, 0 }
   0xe   : > { %p12104_p8 = pnand %p9561_p5, %p208_p7  ;;  %s220_s11 = sshll.u32 %s12000_s10, 4  ;;  %s12108_s11 = int_to_ptr.vmem [resolvable:$true] %s220_s11 }
   0xf   : > { %15859 = sst [smem:[#allocation15_spill]] %s15858_s8  ;;  %s12001_s13 = smov [#allocation7]  }
  0x10   : > { %s15860_s9 = scalar_select %p12104_p8, 1, 0 }
  0x11   : > { %p11216_p9 = pneg %p12104_p8  ;;  %s236_s14 = sshll.u32 %s12001_s13, 4  ;;  %s12119_s14 = int_to_ptr.vmem [resolvable:$true] %s236_s14 }
  0x12   : > { %s12002_s15 = smov [#allocation8]   ;;  %s11810_s19 = scalar_lea.hbm %s15765_s1, 256 }
  0x13   : > { %p12115_p11 = pnand %p11216_p9, %p15772_p1  ;;  %s12121_s16 = sshll.u32 %s12002_s15, 4  ;;  %s250_s16 = int_to_ptr.vmem [resolvable:$true] %s12121_s16 }
  0x14   : > { %p11811_p12 = scmp.ne.s32.totalorder %s15765_s1, %s11810_s19  ;;  %p11817_p5 = scmp.lt.u32.totalorder %s11810_s19, %s15765_s1 }
  0x15   : > { %p12131_p13 = pneg %p12115_p11 }
  0x17   : > { %p11813_p0 = pnand %p12131_p13, %p11811_p12 }
  0x19   : > { %p11814_p3 = pneg %p11813_p0 }
  0x1b   : > { %p11819_p7 = pnand %p11817_p5, %p11814_p3 }
  0x1d   : > { %11822 = shalt.err (!%p11819_p7)
}
  0x1e   : > { %s11823_s10 = scalar_lea.vmem %s12108_s11, 256  ;;  %p11831_p2 = scmp.lt.s32.totalorder %s12108_s11, %s12108_s11 }
  0x1f   : > { %p11824_p9 = scmp.ne.s32.totalorder %s12108_s11, %s11823_s10  ;;  %p11832_p6 = scmp.lt.s32.totalorder %s11823_s10, %s11823_s10 }
  0x21   : > { %p11826_p10 = pnand %p11824_p9, %p12131_p13  ;;  %p11833_p12 = por %p11832_p6, %p11831_p2 }
  0x23   : > { %p11827_p1 = pneg %p11826_p10 }
  0x25   : > { %p11834_p0 = pnand %p11833_p12, %p11827_p1 }
  0x27   : > { %11837 = shalt.err (!%p11834_p0)
}
  0x28   : > { %s12003_s13 = smov 64   ;;  %s12004_s15 = smov 4  }
  0x29   : > { %11219 = dma.hbm_to_vmem [thread:$0]  (!%p12115_p11), %s15765_s1, 256, %s12108_s11, [#allocation6], %s12003_s13, %s12003_s13, %s12004_s15  }
  0x2a   : > { %s11838_s21 = scalar_lea.hbm %s15767_s3, 512 }
  0x2b   : > { %p11839_p1 = scmp.ne.s32.totalorder %s15767_s3, %s11838_s21  ;;  %p11845_p10 = scmp.lt.u32.totalorder %s11838_s21, %s15767_s3 }
  0x2d   : > { %p11841_p2 = pnand %p11839_p1, %p12131_p13 }
  0x2f   : > { %p11842_p6 = pneg %p11841_p2 }
  0x31   : > { %p11847_p3 = pnand %p11845_p10, %p11842_p6 }
  0x33   : > { %11850 = shalt.err (!%p11847_p3)
}
  0x34   : > { %s11851_s11 = scalar_lea.vmem %s12119_s14, 512  ;;  %p11859_p12 = scmp.lt.s32.totalorder %s12119_s14, %s12119_s14 }
  0x35   : > { %p11852_p5 = scmp.ne.s32.totalorder %s12119_s14, %s11851_s11  ;;  %p11860_p0 = scmp.lt.s32.totalorder %s11851_s11, %s11851_s11 }
  0x37   : > { %p11854_p7 = pnand %p11852_p5, %p12131_p13  ;;  %p11861_p1 = por %p11860_p0, %p11859_p12 }
  0x39   : > { %p11855_p9 = pneg %p11854_p7 }
  0x3b   : > { %p11862_p2 = pnand %p11861_p1, %p11855_p9 }
  0x3d   : > { %11865 = shalt.err (!%p11862_p2)
}
  0x3e   : > { %11222 = dma.hbm_to_vmem [thread:$0]  (!%p12115_p11), %s15767_s3, 512, %s12119_s14, [#allocation6], %s12003_s13, %s12003_s13, %s12004_s15  }
  0x3f   : > { %s11866_s20 = scalar_lea.hbm %s15768_s4, 128 }
  0x40   : > { %p11867_p6 = scmp.ne.s32.totalorder %s15768_s4, %s11866_s20  ;;  %p11873_p5 = scmp.lt.u32.totalorder %s11866_s20, %s15768_s4 }
  0x42   : > { %p11869_p10 = pnand %p11867_p6, %p12131_p13 }
  0x44   : > { %p11870_p3 = pneg %p11869_p10 }
  0x46   : > { %p11875_p7 = pnand %p11873_p5, %p11870_p3 }
  0x48   : > { %11878 = shalt.err (!%p11875_p7)
}
  0x49   : > { %s11879_s11 = scalar_lea.vmem %s250_s16, 128  ;;  %p11887_p1 = scmp.lt.s32.totalorder %s250_s16, %s250_s16 }
  0x4a   : > { %p11880_p9 = scmp.ne.s32.totalorder %s250_s16, %s11879_s11  ;;  %p11888_p2 = scmp.lt.s32.totalorder %s11879_s11, %s11879_s11 }
  0x4c   : > { %p11882_p12 = pnand %p11880_p9, %p12131_p13  ;;  %p11889_p4 = por %p11888_p2, %p11887_p1 }
  0x4e   : > { %p11883_p0 = pneg %p11882_p12 }
  0x50   : > { %p11890_p8 = pnand %p11889_p4, %p11883_p0 }
  0x52   : > { %11893 = shalt.err (!%p11890_p8)
}
  0x53   : > { %11225 = dma.hbm_to_vmem [thread:$0]  (!%p12115_p11), %s15768_s4, 128, %s250_s16, [#allocation9], %s12003_s13, %s12003_s13, %s12004_s15  }
  0x54   : > { %s12204_s22 = sadd.s32 1, %s11998_s27   ;;  %s32_s17 = sadd.s32 1, %s11994_s26 }
  0x55   : > { %s29_s12 = ssub.s32 %s11998_s27, %s12204_s22  ;;  %p39_p8 = scmp.ne.s32.totalorder %s11994_s26, %s11990_s25 }
  0x56   : > { %p30_p4 = scmp.eq.s32.totalorder %s29_s12, 0  ;;  %p40_p13 = scmp.eq.s32.totalorder %s11998_s27, 0 }
  0x57   : > { %p11237_p6 = scmp.lt.s32.totalorder %s11998_s27, 2  ;;  %p15863_p3 = scmp.eq.s32.totalorder %s12085_s28, 1 }
  0x58   : > { %s12214_s18 = scalar_select %p30_p4, %s11994_s26, %s32_s17  }
  0x59   : > { %p41_p10 = por %p40_p13, %p39_p8  ;;  %p12218_p5 = por %p15863_p3, %p39_p8 }
  0x5a   : > { %s269_s20 = sand.u32 1, %s11994_s26   ;;  %s9795_s21 = sshll.u32 %s11998_s27, 12 }
  0x5b   : > { %s9566_s16 = sshll.u32 %s269_s20, 8  ;;  %s12227_s23 = scalar_lea.hbm %s15764_s0, %s9795_s21 }
  0x5c   : > { %s273_s29 = scalar_lea.vmem [#allocation2], %s9566_s16  ;;  %p12229_p11 = pnand %p11237_p6, %p41_p10 }
  0x5d   : > { %s281_s10 = sshll.u32 %s273_s29, 4  ;;  %s12235_s14 = scalar_lea.sflag [#allocation3], %s269_s20  ;;  %s12233_s10 = int_to_ptr.vmem [resolvable:$true] %s281_s10 }
  0x5e   : > { %s11894_s8 = scalar_lea.hbm %s12227_s23, 4096  ;;  %p11896_p9 = pneg %p12229_p11 }
  0x5f   : > { %p11895_p7 = scmp.ne.s32.totalorder %s12227_s23, %s11894_s8  ;;  %s11899_s21 = scalar_lea.hbm %s15764_s0, 8192 }
  0x60   : > { %p11900_p1 = scmp.lt.u32.totalorder %s12227_s23, %s15764_s0  ;;  %p11901_p2 = scmp.lt.u32.totalorder %s11899_s21, %s11894_s8 }
  0x61   : > { %p11897_p12 = pnand %p11896_p9, %p11895_p7  ;;  %p11903_p8 = scmp.lt.u32.totalorder %s11894_s8, %s12227_s23 }
  0x62   : > { %p11902_p4 = por %p11901_p2, %p11900_p1 }
  0x63   : > { %p11898_p0 = pneg %p11897_p12 }
  0x64   : > { %p11904_p13 = por %p11903_p8, %p11902_p4 }
  0x66   : > { %p11905_p6 = pnand %p11904_p13, %p11898_p0 }
  0x68   : > { %11908 = shalt.err (!%p11905_p6)
}
  0x69   : > { %s11909_s20 = scalar_lea.vmem %s12233_s10, 4096  ;;  %s12005_s15 = smov [#allocation2]  }
  0x6a   : > { %p11910_p10 = scmp.ne.s32.totalorder %s12233_s10, %s11909_s20  ;;  %s11914_s29 = sshll.u32 %s12005_s15, 4  ;;  %s11915_s29 = int_to_ptr.vmem [resolvable:$false] %s11914_s29 }
  0x6b   : > { %s11916_s12 = scalar_lea.vmem %s11915_s29, 8192  ;;  %p11917_p12 = scmp.lt.s32.totalorder %s12233_s10, %s11915_s29 }
  0x6c   : > { %p11912_p3 = pnand %p11910_p10, %p11896_p9  ;;  %p11918_p1 = scmp.lt.s32.totalorder %s11916_s12, %s11909_s20 }
  0x6e   : > { %p11913_p7 = pneg %p11912_p3  ;;  %p11919_p2 = por %p11918_p1, %p11917_p12 }
  0x70   : > { %p11920_p4 = pnand %p11919_p2, %p11913_p7 }
  0x72   : > { %11923 = shalt.err (!%p11920_p4)
}
  0x73   : > { %s12006_s8 = smov 128   ;;  %s12007_s17 = smov 8  }
  0x74   : > { %11229 = dma.hbm_to_vmem [thread:$0]  (!%p12229_p11), %s12227_s23, 4096, %s12233_s10, %s12235_s14, %s12006_s8, %s12006_s8, %s12007_s17  }
  0x75   : > { %p15866_p9 = scmp.ne.s32.totalorder %s15860_s9, 0 }
  0x77   : > { %293 = sbr.rel (%p15866_p9) target bundleno = 3911 (0xf47), region = 48 }
  0x7e   : > { %s12266_s21 = sand.u32 1, %s11990_s25   ;;  %p15867_p0 = scmp.ne.s32.totalorder %s15857_s30, 0 }
  0x7f   : > { %s9571_s16 = sshll.u32 %s12266_s21, 8  ;;  %s296_s13 = scalar_lea.sflag [#allocation3], %s12266_s21 }
  0x80   : > { %s12272_s20 = scalar_lea.vmem [#allocation2], %s9571_s16 }
  0x81   : > { %11969 = dma.done.wait (%p15867_p0), %s296_s13, 4096  }
  0x82   : > { %11971 = vsyncadd (%p15867_p0), %s296_s13, 4294963200  ;;  %p15868_p11 = scmp.eq.s32.totalorder %s12085_s28, 0 }
  0x84   : > { %11973 = dma.done.wait (%p15868_p11), [#allocation6], 768   ;;  %p15869_p8 = pmov %p15868_p11 }
  0x86   : > { %11975 = vsyncadd (%p15869_p8), [#allocation6], 4294966528  ;;  %p15870_p13 = pmov %p15869_p8 }
  0x87   : > { %p15871_p6 = pmov %p15869_p8 }
  0x88   : > { %11977 = dma.done.wait (%p15870_p13), [#allocation9], 128  }
  0x89   : > { %11979 = vsyncadd (%p15871_p6), [#allocation9], 4294967168  ;;  %v11296_v0 = vld [vmem:[#allocation5] sm:$0xff]   ;;  %v11297_v1 = vld [vmem:[#allocation5 + $0x8] sm:$0xff]   ;;  %vm416_vm0 = vcmask 261120   ;;  %v15776_v50 = vmov 0.0  }
  0x8a   : > { %10156 = vmatprep.subr.bf16.mxu0 %v11296_v0  ;;  %v345_v2 = vld [vmem:[%s12272_s20] sm:$0xff]  ;;  %v346_v3 = vld [vmem:[%s12272_s20 + $0x8] sm:$0xff]  ;;  %11096 = vmatprep.subr.bf16.mxu1 %v11296_v0  ;;  %v347_v5 = vld [vmem:[%s12272_s20 + $0x10] sm:$0xff]  ;;  %vm12009_vm1 = vmmov 0   ;;  %s12010_s23 = smov 120   ;;  %s12011_s10 = smov 112  }
  0x8b   : > { %10157 = vmatpush3.bf16.msra.mxu0 %v11296_v0  ;;  %v377_v4 = vpack.c.bf16 %v346_v3, %v345_v2  ;;  %v348_v6 = vld [vmem:[%s12272_s20 + $0x18] sm:$0xff]  ;;  %11098 = vmatpush3.bf16.msra.mxu1 %v11296_v0  ;;  %v349_v7 = vld [vmem:[%s12272_s20 + $0x20] sm:$0xff]  ;;  %v350_v8 = vld [vmem:[%s12272_s20 + $0x28] sm:$0xff]  ;;  %s12012_s11 = smov 104   ;;  %s12013_s14 = smov 96   ;;  %vm653_vm2 = vcmask 64512  }
  0x8c   : > { %10158 = vmatprep.subr.bf16.mxu0 %v11297_v1  ;;  %11097 = vmatprep.subr.bf16.mxu1 %v11297_v1  ;;  %v361_v9 = vld [vmem:[%s12272_s20 + $0x80] sm:$0xff]  ;;  %v362_v10 = vld [vmem:[%s12272_s20 + $0x88] sm:$0xff]  ;;  %v363_v12 = vld [vmem:[%s12272_s20 + $0x90] sm:$0xff]  ;;  %v378_v14 = vpack.c.bf16 %v348_v6, %v347_v5  ;;  %v379_v17 = vpack.c.bf16 %v350_v8, %v349_v7  ;;  %vm1451_vm3 = vcmask 130048   ;;  %s12014_s15 = smov 88   ;;  %s12015_s29 = smov 72  }
  0x8d   : > { %10160 = vmatprep.mubr.msk.bf16.mxu0 %vm416_vm0, %v377_v4  ;;  %v385_v11 = vpack.c.bf16 %v362_v10, %v361_v9  ;;  %v364_v13 = vld [vmem:[%s12272_s20 + $0x98] sm:$0xff]  ;;  %v365_v16 = vld [vmem:[%s12272_s20 + $0xa0] sm:$0xff]  ;;  %v366_v18 = vld [vmem:[%s12272_s20 + $0xa8] sm:$0xff]  ;;  %s12016_s12 = smov 80   ;;  %s12017_s8 = smov 64   ;;  %vm4593_vm4 = vcmask 1043456  }
  0x8e   : > { %v386_v15 = vpack.c.bf16 %v364_v13, %v363_v12  ;;  %v387_v19 = vpack.c.bf16 %v366_v18, %v365_v16  ;;  %v351_v20 = vld [vmem:[%s12272_s20 + $0x30] sm:$0xff]  ;;  %v352_v21 = vld [vmem:[%s12272_s20 + $0x38] sm:$0xff]  ;;  %v353_v22 = vld [vmem:[%s12272_s20 + $0x40] sm:$0xff]  ;;  %s12018_s9 = smov 48   ;;  %s15617_s17 = scalar_lea.vmem [#allocation10], %s9571_s16 }
  0x8f   : > { %10159 = vmatpush3.bf16.msra.mxu0 %v11297_v1  ;;  %11099 = vmatpush3.bf16.msra.mxu1 %v11297_v1  ;;  %v367_v23 = vld [vmem:[%s12272_s20 + $0xb0] sm:$0xff]  ;;  %v368_v24 = vld [vmem:[%s12272_s20 + $0xb8] sm:$0xff]  ;;  %v354_v25 = vld [vmem:[%s12272_s20 + $0x48] sm:$0xff]  ;;  %v380_v28 = vpack.c.bf16 %v352_v21, %v351_v20  ;;  %s9797_s16 = sshll.u32 %s12085_s28, 12  ;;  %s9458_s13 = sshll.u32 %s15617_s17, 4  ;;  %s15713_s13 = int_to_ptr.vmem [resolvable:$true] %s9458_s13 }
  0x90   : > { %10176 = vmatprep.mubr.msk.bf16.mxu1 %vm416_vm0, %v385_v11  ;;  %v369_v26 = vld [vmem:[%s12272_s20 + $0xc0] sm:$0xff]  ;;  %v370_v27 = vld [vmem:[%s12272_s20 + $0xc8] sm:$0xff]  ;;  %v388_v29 = vpack.c.bf16 %v368_v24, %v367_v23  ;;  %v381_v30 = vpack.c.bf16 %v354_v25, %v353_v22  ;;  %v355_v32 = vld [vmem:[%s12272_s20 + $0x50] sm:$0xff]  ;;  %10192 = vmatprep.subr.bf16.mxu1 %v15776_v50  ;;  %s9444_s28 = scalar_lea.sflag [#allocation4], %s12266_s21 }
  0x91   : > { %v389_v31 = vpack.c.bf16 %v370_v27, %v369_v26  ;;  %v356_v33 = vld [vmem:[%s12272_s20 + $0x58] sm:$0xff]  ;;  %v357_v34 = vld [vmem:[%s12272_s20 + $0x60] sm:$0xff]  ;;  %v371_v35 = vld [vmem:[%s12272_s20 + $0xd0] sm:$0xff]  ;;  %10240 = vmatprep.subr.bf16.mxu0 %v15776_v50 }
  0x92   : > { %10161 = vmatmul.mubr.msk.bf16.vlgmr.msra.gmra.mrb[0].mxu0 %vm416_vm0, %v378_v14  ;;  %10177 = vmatmul.mubr.msk.bf16.vlgmr.msra.gmra.mrb[0].mxu1 %vm416_vm0, %v386_v15  ;;  %v372_v36 = vld [vmem:[%s12272_s20 + $0xd8] sm:$0xff]  ;;  %v358_v37 = vld [vmem:[%s12272_s20 + $0x68] sm:$0xff]  ;;  %v373_v38 = vld [vmem:[%s12272_s20 + $0xe0] sm:$0xff]  ;;  %v382_v40 = vpack.c.bf16 %v356_v33, %v355_v32 }
  0x93   : > { %10164 = vmatprep.mubr.msk.bf16.mxu0 %vm416_vm0, %v379_v17  ;;  %10180 = vmatprep.mubr.msk.bf16.mxu1 %vm416_vm0, %v387_v19  ;;  %v374_v39 = vld [vmem:[%s12272_s20 + $0xe8] sm:$0xff]  ;;  %v390_v41 = vpack.c.bf16 %v372_v36, %v371_v35  ;;  %v383_v42 = vpack.c.bf16 %v358_v37, %v357_v34  ;;  %v359_v44 = vld [vmem:[%s12272_s20 + $0x70] sm:$0xff]  ;;  %v360_v45 = vld [vmem:[%s12272_s20 + $0x78] sm:$0xff] }
  0x94   : > { %v391_v43 = vpack.c.bf16 %v374_v39, %v373_v38  ;;  %v375_v46 = vld [vmem:[%s12272_s20 + $0xf0] sm:$0xff]  ;;  %v376_v47 = vld [vmem:[%s12272_s20 + $0xf8] sm:$0xff]  ;;  %v384_v48 = vpack.c.bf16 %v360_v45, %v359_v44  ;;  %v12339_v52 = vld [vmem:[%s15766_s2] ss:$0 sm:$0xff] }
  0x95   : > { %v392_v49 = vpack.c.bf16 %v376_v47, %v375_v46 }
  0x9a   : > { %10165 = vmatmul.mubr.msk.bf16.gmra.mrb[4].mxu0 %vm416_vm0, %v380_v28  ;;  %10181 = vmatmul.mubr.msk.bf16.gmra.mrb[4].mxu1 %vm416_vm0, %v388_v29 }
  0x9b   : > { %10168 = vmatprep.mubr.msk.bf16.mxu0 %vm416_vm0, %v381_v30  ;;  %10184 = vmatprep.mubr.msk.bf16.mxu1 %vm416_vm0, %v389_v31 }
  0xa2   : > { %10169 = vmatmul.mubr.msk.bf16.gmra.mrb[8].mxu0 %vm416_vm0, %v382_v40  ;;  %10185 = vmatmul.mubr.msk.bf16.gmra.mrb[8].mxu1 %vm416_vm0, %v390_v41 }
  0xa3   : > { %10172 = vmatprep.mubr.msk.bf16.mxu0 %vm416_vm0, %v383_v42  ;;  %10188 = vmatprep.mubr.msk.bf16.mxu1 %vm416_vm0, %v391_v43 }
  0xaa   : > { %10173 = vmatmul.mubr.msk.bf16.gmra.mrb[12].mxu0 %vm416_vm0, %v384_v48  ;;  %10189 = vmatmul.mubr.msk.bf16.gmra.mrb[12].mxu1 %vm416_vm0, %v392_v49 }
  0xab   : > { %10194 = vmatprep.mubr.msk.bf16.mxu1 %vm12009_vm1, %v15776_v50  ;;  %10242 = vmatprep.mubr.msk.bf16.mxu0 %vm12009_vm1, %v15776_v50 }
 0x165   : > { %v10162_v51 = vpop.f32.mrb[0].mxu0  ;;  %v10178_v53 = vpop.f32.mrb[0].mxu1 }
 0x166   : > { %v499_v54 = vpop.f32.mrb[1].mxu0  ;;  %v572_v55 = vadd.f32 %v10178_v53, %v12339_v52  ;;  %v563_v56 = vpop.f32.mrb[1].mxu1  ;;  %v508_v60 = vadd.f32 %v10162_v51, %v12339_v52 }
 0x167   : > { %v10163_v57 = vpop.f32.mrb[2].mxu0  ;;  %v564_v58 = vadd.f32 %v12339_v52, %v563_v56  ;;  %v10179_v59 = vpop.f32.mrb[2].mxu1  ;;  %v500_v1 = vadd.f32 %v12339_v52, %v499_v54 }
 0x168   : > { %v511_v61 = vadd.f32 %v10163_v57, %v12339_v52  ;;  %v502_v62 = vpop.f32.mrb[3].mxu0  ;;  %v575_v63 = vadd.f32 %v10179_v59, %v12339_v52  ;;  %v566_v0 = vpop.f32.mrb[3].mxu1 }
 0x169   : > { %v503_v2 = vadd.f32 %v12339_v52, %v502_v62  ;;  %v567_v3 = vadd.f32 %v12339_v52, %v566_v0 }
 0x16a   : > { %v12353_v4 = vpack.c.bf16 %v511_v61, %v508_v60  ;;  %v12355_v5 = vpack.c.bf16 %v575_v63, %v572_v55 }
 0x16b   : > { %v12357_v6 = vpack.c.bf16 %v503_v2, %v500_v1  ;;  %v12359_v7 = vpack.c.bf16 %v567_v3, %v564_v58 }
 0x16c   : > { %15872 = vst [vmem:[#allocation16_spill] sm:$0xff] %v12353_v4  ;;  %15873 = vst [vmem:[#allocation17_spill] sm:$0xff] %v12355_v5 }
 0x16d   : > { %15874 = vst [vmem:[#allocation18_spill] sm:$0xff] %v12359_v7  ;;  %v10166_v8 = vpop.f32.mrb[4].mxu0  ;;  %651 = vrot.lane.b32.xlu0 %v12357_v6, %s12010_s23  ;;  %v10182_v9 = vpop.f32.mrb[4].mxu1 }
 0x16e   : > { %v515_v10 = vpop.f32.mrb[5].mxu0  ;;  %v588_v11 = vadd.f32 %v10182_v9, %v12339_v52  ;;  %v579_v12 = vpop.f32.mrb[5].mxu1  ;;  %v524_v16 = vadd.f32 %v10166_v8, %v12339_v52 }
 0x16f   : > { %v10167_v13 = vpop.f32.mrb[6].mxu0  ;;  %v580_v14 = vadd.f32 %v12339_v52, %v579_v12  ;;  %v10183_v15 = vpop.f32.mrb[6].mxu1  ;;  %v516_v21 = vadd.f32 %v12339_v52, %v515_v10 }
 0x170   : > { %v527_v17 = vadd.f32 %v10167_v13, %v12339_v52  ;;  %v518_v18 = vpop.f32.mrb[7].mxu0  ;;  %v591_v19 = vadd.f32 %v10183_v15, %v12339_v52  ;;  %v582_v20 = vpop.f32.mrb[7].mxu1 }
 0x171   : > { %v519_v22 = vadd.f32 %v12339_v52, %v518_v18  ;;  %702 = vrot.lane.b32.xlu0 %v12353_v4, %s12010_s23  ;;  %v583_v23 = vadd.f32 %v12339_v52, %v582_v20 }
 0x172   : > { %v12373_v24 = vpack.c.bf16 %v527_v17, %v524_v16  ;;  %v12375_v25 = vpack.c.bf16 %v591_v19, %v588_v11 }
 0x173   : > { %v12377_v26 = vpack.c.bf16 %v519_v22, %v516_v21  ;;  %v12379_v27 = vpack.c.bf16 %v583_v23, %v580_v14 }
 0x174   : > { %15875 = vst [vmem:[#allocation19_spill] sm:$0xff] %v12373_v24  ;;  %15876 = vst [vmem:[#allocation20_spill] sm:$0xff] %v12375_v25 }
 0x175   : > { %15877 = vst [vmem:[#allocation21_spill] sm:$0xff] %v12379_v27  ;;  %v10170_v28 = vpop.f32.mrb[8].mxu0  ;;  %752 = vrot.lane.b32.xlu1 %v12377_v26, %s12010_s23  ;;  %v10186_v29 = vpop.f32.mrb[8].mxu1 }
 0x176   : > { %v531_v30 = vpop.f32.mrb[9].mxu0  ;;  %v604_v31 = vadd.f32 %v10186_v29, %v12339_v52  ;;  %v595_v32 = vpop.f32.mrb[9].mxu1  ;;  %v540_v36 = vadd.f32 %v10170_v28, %v12339_v52 }
 0x177   : > { %v10171_v33 = vpop.f32.mrb[10].mxu0  ;;  %v596_v34 = vadd.f32 %v12339_v52, %v595_v32  ;;  %v10187_v35 = vpop.f32.mrb[10].mxu1  ;;  %v532_v41 = vadd.f32 %v12339_v52, %v531_v30 }
 0x178   : > { %v543_v37 = vadd.f32 %v10171_v33, %v12339_v52  ;;  %v534_v38 = vpop.f32.mrb[11].mxu0  ;;  %v607_v39 = vadd.f32 %v10187_v35, %v12339_v52  ;;  %v598_v40 = vpop.f32.mrb[11].mxu1 }
 0x179   : > { %v535_v42 = vadd.f32 %v12339_v52, %v534_v38  ;;  %802 = vrot.lane.b32.xlu1 %v12373_v24, %s12010_s23  ;;  %v599_v43 = vadd.f32 %v12339_v52, %v598_v40 }
 0x17a   : > { %v12393_v44 = vpack.c.bf16 %v543_v37, %v540_v36  ;;  %v12395_v45 = vpack.c.bf16 %v607_v39, %v604_v31 }
 0x17b   : > { %v12397_v46 = vpack.c.bf16 %v535_v42, %v532_v41  ;;  %v12399_v47 = vpack.c.bf16 %v599_v43, %v596_v34 }
 0x17c   : > { %15878 = vst [vmem:[#allocation22_spill] sm:$0xff] %v12393_v44  ;;  %15879 = vst [vmem:[#allocation23_spill] sm:$0xff] %v12395_v45 }
 0x17d   : > { %15880 = vst [vmem:[#allocation24_spill] sm:$0xff] %v12397_v46  ;;  %15881 = vst [vmem:[#allocation25_spill] sm:$0xff] %v12399_v47  ;;  %v10174_v48 = vpop.f32.mrb[12].mxu0  ;;  %902 = vrot.lane.b32.xlu1 %v12393_v44, %s12010_s23  ;;  %852 = vrot.lane.b32.xlu0 %v12397_v46, %s12010_s23  ;;  %v10190_v49 = vpop.f32.mrb[12].mxu1 }
 0x17e   : > { %v547_v51 = vpop.f32.mrb[13].mxu0  ;;  %v620_v53 = vadd.f32 %v10190_v49, %v12339_v52  ;;  %v611_v54 = vpop.f32.mrb[13].mxu1  ;;  %v556_v58 = vadd.f32 %v10174_v48, %v12339_v52 }
 0x17f   : > { %v10175_v55 = vpop.f32.mrb[14].mxu0  ;;  %v612_v56 = vadd.f32 %v12339_v52, %v611_v54  ;;  %v10191_v57 = vpop.f32.mrb[14].mxu1  ;;  %v548_v63 = vadd.f32 %v12339_v52, %v547_v51 }
 0x180   : > { %v559_v59 = vadd.f32 %v10175_v55, %v12339_v52  ;;  %v550_v60 = vpop.f32.mrb[15].mxu0  ;;  %v623_v61 = vadd.f32 %v10191_v57, %v12339_v52  ;;  %v614_v62 = vpop.f32.mrb[15].mxu1 }
 0x181   : > { %v551_v0 = vadd.f32 %v12339_v52, %v550_v60  ;;  %v615_v1 = vadd.f32 %v12339_v52, %v614_v62  ;;  %v9799_v60 = vld [vmem:[#allocation7] sm:$0xff]  }
 0x182   : > { %v12413_v2 = vpack.c.bf16 %v559_v59, %v556_v58  ;;  %v12415_v3 = vpack.c.bf16 %v623_v61, %v620_v53  ;;  %v12600_v61 = vunpack.c.l.bf16 %v9799_v60  ;;  %v12602_v62 = vunpack.c.h.bf16 %v9799_v60 }
 0x183   : > { %v12417_v8 = vpack.c.bf16 %v551_v0, %v548_v63  ;;  %v12419_v9 = vpack.c.bf16 %v615_v1, %v612_v56 }
 0x184   : > { %15882 = vst [vmem:[#allocation26_spill] sm:$0xff] %v12413_v2  ;;  %1002 = vrot.lane.b32.xlu1 %v12413_v2, %s12010_s23 }
 0x185   : > { %15883 = vst [vmem:[#allocation27_spill] sm:$0xff] %v12417_v8  ;;  %15884 = vst [vmem:[#allocation28_spill] sm:$0xff] %v12419_v9  ;;  %952 = vrot.lane.b32.xlu0 %v12417_v8, %s12010_s23 }
 0x188   : > { %1202 = vrot.lane.b32.xlu1 %v12375_v25, %s12010_s23 }
 0x189   : > { %1102 = vrot.lane.b32.xlu0 %v12355_v5, %s12010_s23 }
 0x18c   : > { %1402 = vrot.lane.b32.xlu1 %v12415_v3, %s12010_s23 }
 0x18d   : > { %1302 = vrot.lane.b32.xlu0 %v12395_v45, %s12010_s23 }
 0x190   : > { %1152 = vrot.lane.b32.xlu1 %v12379_v27, %s12010_s23 }
 0x191   : > { %1052 = vrot.lane.b32.xlu0 %v12359_v7, %s12010_s23 }
 0x194   : > { %1867 = vrot.lane.b32.xlu1 %v12353_v4, %s12011_s10 }
 0x195   : > { %1252 = vrot.lane.b32.xlu0 %v12399_v47, %s12010_s23 }
 0x198   : > { %2055 = vrot.lane.b32.xlu1 %v12393_v44, %s12011_s10 }
 0x199   : > { %1961 = vrot.lane.b32.xlu0 %v12373_v24, %s12011_s10 }
 0x19c   : > { %2149 = vrot.lane.b32.xlu1 %v12413_v2, %s12011_s10 }
 0x19d   : > { %2243 = vrot.lane.b32.xlu0 %v12355_v5, %s12011_s10 }
 0x1a0   : > { %2644 = vrot.lane.b32.xlu1 %v12353_v4, %s12012_s11 }
 0x1a1   : > { %2337 = vrot.lane.b32.xlu0 %v12375_v25, %s12011_s10 }
 0x1a4   : > { %2748 = vrot.lane.b32.xlu1 %v12373_v24, %s12013_s14 }
 0x1a5   : > { %2431 = vrot.lane.b32.xlu0 %v12395_v45, %s12011_s10 }
 0x1a8   : > { %2848 = vrot.lane.b32.xlu1 %v12393_v44, %s12012_s11 }
 0x1a9   : > { %2525 = vrot.lane.b32.xlu0 %v12415_v3, %s12011_s10 }
 0x1ac   : > { %2952 = vrot.lane.b32.xlu1 %v12413_v2, %s12013_s14 }
 0x1ad   : > { %2646 = vrot.lane.b32.xlu0 %v12353_v4, %s12013_s14 }
 0x1b0   : > { %3052 = vrot.lane.b32.xlu1 %v12355_v5, %s12012_s11 }
 0x1b1   : > { %2746 = vrot.lane.b32.xlu0 %v12373_v24, %s12012_s11 }
 0x1b4   : > { %3156 = vrot.lane.b32.xlu1 %v12375_v25, %s12013_s14 }
 0x1b5   : > { %2850 = vrot.lane.b32.xlu0 %v12393_v44, %s12013_s14 }
 0x1b8   : > { %1352 = vrot.lane.b32.xlu1 %v12419_v9, %s12010_s23  ;;  %s12019_s23 = smov 56  }
 0x1b9   : > { %2950 = vrot.lane.b32.xlu0 %v12413_v2, %s12012_s11 }
 0x1bd   : > { %3054 = vrot.lane.b32.xlu0 %v12355_v5, %s12013_s14 }
 0x1c1   : > { %3154 = vrot.lane.b32.xlu0 %v12375_v25, %s12012_s11 }
 0x1df   : > { %v652_v52 = vpop.permute.xlu0 %651 }
 0x1e0   : > { %v658_v10 = vsel %vm653_vm2, %v652_v52, 0 }
 0x1e1   : > { %10193 = vmatpush3.bf16.xpose.msra.mxu1 %v658_v10 }
 0x1e2   : > { %10198 = vmatprep.subr.bf16.mxu1 %v15776_v50 }
 0x1e3   : > { %v703_v11 = vpop.permute.xlu0 %702 }
 0x1e4   : > { %v708_v13 = vsel %vm653_vm2, %v703_v11, 0 }
 0x1e7   : > { %v753_v12 = vpop.permute.xlu1 %752 }
 0x1e8   : > { %10195 = vmatmul.mubr.msk.bf16.vlgmr.msra.gmra.mrb[16].mxu1 %vm653_vm2, %v12357_v6  ;;  %v758_v15 = vsel %vm653_vm2, %v753_v12, 0 }
 0x1e9   : > { %10199 = vmatpush3.bf16.xpose.msra.mxu1 %v708_v13  ;;  %10200 = vmatprep.mubr.msk.bf16.mxu1 %vm12009_vm1, %v15776_v50 }
 0x1ea   : > { %10204 = vmatprep.subr.bf16.mxu1 %v15776_v50 }
 0x1eb   : > { %v803_v14 = vpop.permute.xlu1 %802 }
 0x1ec   : > { %v808_v20 = vsel %vm653_vm2, %v803_v14, 0 }
 0x1ef   : > { %v903_v16 = vpop.permute.xlu1 %902  ;;  %v853_v17 = vpop.permute.xlu0 %852 }
 0x1f0   : > { %10201 = vmatmul.mubr.msk.bf16.vlgmr.msra.gmra.mrb[20].mxu1 %vm653_vm2, %v12353_v4  ;;  %v858_v29 = vsel %vm653_vm2, %v853_v17, 0  ;;  %v908_v34 = vsel %vm653_vm2, %v903_v16, 0 }
 0x1f1   : > { %10205 = vmatpush3.bf16.xpose.msra.mxu1 %v758_v15  ;;  %10206 = vmatprep.mubr.msk.bf16.mxu1 %vm12009_vm1, %v15776_v50 }
 0x1f2   : > { %10210 = vmatprep.subr.bf16.mxu1 %v15776_v50 }
 0x1f6   : > { %v1003_v18 = vpop.permute.xlu1 %1002 }
 0x1f7   : > { %v953_v19 = vpop.permute.xlu0 %952  ;;  %v1008_v43 = vsel %vm653_vm2, %v1003_v18, 0 }
 0x1f8   : > { %10207 = vmatmul.mubr.msk.bf16.vlgmr.msra.gmra.mrb[24].mxu1 %vm653_vm2, %v12377_v26  ;;  %v958_v38 = vsel %vm653_vm2, %v953_v19, 0 }
 0x1f9   : > { %10211 = vmatpush3.bf16.xpose.msra.mxu1 %v808_v20  ;;  %10212 = vmatprep.mubr.msk.bf16.mxu1 %vm12009_vm1, %v15776_v50 }
 0x1fa   : > { %v1203_v21 = vpop.permute.xlu1 %1202  ;;  %10216 = vmatprep.subr.bf16.mxu1 %v15776_v50 }
 0x1fb   : > { %v1103_v22 = vpop.permute.xlu0 %1102  ;;  %v1208_v55 = vsel %vm653_vm2, %v1203_v21, 0 }
 0x1fc   : > { %v1108_v51 = vsel %vm653_vm2, %v1103_v22, 0 }
 0x1fe   : > { %v12501_v23 = vpop.permute.xlu1 %1402 }
 0x1ff   : > { %v1303_v28 = vpop.permute.xlu0 %1302  ;;  %v1408_v59 = vsel %vm653_vm2, %v12501_v23, 0 }
 0x200   : > { %10213 = vmatmul.mubr.msk.bf16.vlgmr.msra.gmra.mrb[28].mxu1 %vm653_vm2, %v12373_v24  ;;  %v1308_v58 = vsel %vm653_vm2, %v1303_v28, 0 }
 0x201   : > { %10217 = vmatpush3.bf16.xpose.msra.mxu1 %v858_v29  ;;  %10218 = vmatprep.mubr.msk.bf16.mxu1 %vm12009_vm1, %v15776_v50 }
 0x202   : > { %v1153_v30 = vpop.permute.xlu1 %1152  ;;  %10222 = vmatprep.subr.bf16.mxu1 %v15776_v50 }
 0x203   : > { %v1053_v31 = vpop.permute.xlu0 %1052  ;;  %v1158_v36 = vsel %vm653_vm2, %v1153_v30, 0 }
 0x204   : > { %v1058_v32 = vsel %vm653_vm2, %v1053_v31, 0 }
 0x205   : > { %10241 = vmatpush3.bf16.xpose.msra.mxu0 %v1058_v32 }
 0x206   : > { %v12510_v33 = vpop.permute.xlu1 %1867  ;;  %10252 = vmatprep.subr.bf16.mxu0 %v15776_v50 }
 0x207   : > { %v1253_v39 = vpop.permute.xlu0 %1252 }
 0x208   : > { %10219 = vmatmul.mubr.msk.bf16.vlgmr.msra.gmra.mrb[32].mxu1 %vm653_vm2, %v12397_v46  ;;  %v1258_v41 = vsel %vm653_vm2, %v1253_v39, 0 }
 0x209   : > { %10223 = vmatpush3.bf16.xpose.msra.mxu1 %v908_v34  ;;  %10224 = vmatprep.mubr.msk.bf16.mxu1 %vm12009_vm1, %v15776_v50 }
 0x20a   : > { %v12518_v35 = vpop.permute.xlu1 %2055  ;;  %10228 = vmatprep.subr.bf16.mxu1 %v15776_v50 }
 0x20c   : > { %10243 = vmatmul.mubr.msk.bf16.vlgmr.msra.gmra.mrb[16].mxu0 %vm653_vm2, %v12359_v7 }
 0x20d   : > { %10253 = vmatpush3.bf16.xpose.msra.mxu0 %v1158_v36  ;;  %10254 = vmatprep.mubr.msk.bf16.mxu0 %vm12009_vm1, %v15776_v50 }
 0x20e   : > { %v12526_v37 = vpop.permute.xlu1 %2149  ;;  %10264 = vmatprep.subr.bf16.mxu0 %v15776_v50 }
 0x210   : > { %10225 = vmatmul.mubr.msk.bf16.vlgmr.msra.gmra.mrb[36].mxu1 %vm653_vm2, %v12393_v44 }
 0x211   : > { %10229 = vmatpush3.bf16.xpose.msra.mxu1 %v958_v38  ;;  %10230 = vmatprep.mubr.msk.bf16.mxu1 %vm12009_vm1, %v15776_v50 }
 0x212   : > { %v12534_v40 = vpop.permute.xlu1 %2644  ;;  %10234 = vmatprep.subr.bf16.mxu1 %v15776_v50 }
 0x213   : > { %15885 = vst [vmem:[#allocation29_spill] sm:$0xff] %v12534_v40 }
 0x214   : > { %10255 = vmatmul.mubr.msk.bf16.vlgmr.msra.gmra.mrb[20].mxu0 %vm653_vm2, %v12379_v27 }
 0x215   : > { %10265 = vmatpush3.bf16.xpose.msra.mxu0 %v1258_v41  ;;  %10266 = vmatprep.mubr.msk.bf16.mxu0 %vm12009_vm1, %v15776_v50 }
 0x216   : > { %v12542_v42 = vpop.permute.xlu1 %2748  ;;  %10276 = vmatprep.subr.bf16.mxu0 %v15776_v50 }
 0x217   : > { %15886 = vst [vmem:[#allocation30_spill] sm:$0xff] %v12542_v42 }
 0x218   : > { %10231 = vmatmul.mubr.msk.bf16.vlgmr.msra.gmra.mrb[40].mxu1 %vm653_vm2, %v12417_v8 }
 0x219   : > { %10235 = vmatpush3.bf16.xpose.msra.mxu1 %v1008_v43  ;;  %10236 = vmatprep.mubr.msk.bf16.mxu1 %vm12009_vm1, %v15776_v50 }
 0x21a   : > { %v12550_v48 = vpop.permute.xlu1 %2848  ;;  %10246 = vmatprep.subr.bf16.mxu1 %v15776_v50 }
 0x21b   : > { %15887 = vst [vmem:[#allocation31_spill] sm:$0xff] %v12550_v48 }
 0x21c   : > { %10267 = vmatmul.mubr.msk.bf16.vlgmr.msra.gmra.mrb[24].mxu0 %vm653_vm2, %v12399_v47 }
 0x21d   : > { %10278 = vmatprep.mubr.msk.bf16.mxu0 %vm12009_vm1, %v15776_v50 }
 0x21e   : > { %v12557_v49 = vpop.permute.xlu1 %2952 }
 0x21f   : > { %15888 = vst [vmem:[#allocation32_spill] sm:$0xff] %v12557_v49 }
 0x220   : > { %10237 = vmatmul.mubr.msk.bf16.vlgmr.msra.gmra.mrb[44].mxu1 %vm653_vm2, %v12413_v2 }
 0x221   : > { %10247 = vmatpush3.bf16.xpose.msra.mxu1 %v1108_v51  ;;  %10248 = vmatprep.mubr.msk.bf16.mxu1 %vm12009_vm1, %v15776_v50 }
 0x222   : > { %v12564_v53 = vpop.permute.xlu1 %3052  ;;  %10258 = vmatprep.subr.bf16.mxu1 %v15776_v50 }
 0x223   : > { %15889 = vst [vmem:[#allocation33_spill] sm:$0xff] %v12564_v53 }
 0x226   : > { %v12567_v54 = vpop.permute.xlu1 %3156 }
 0x227   : > { %15890 = vst [vmem:[#allocation34_spill] sm:$0xff] %v12567_v54 }
 0x228   : > { %10249 = vmatmul.mubr.msk.bf16.vlgmr.msra.gmra.mrb[48].mxu1 %vm653_vm2, %v12355_v5 }
 0x229   : > { %10259 = vmatpush3.bf16.xpose.msra.mxu1 %v1208_v55  ;;  %10260 = vmatprep.mubr.msk.bf16.mxu1 %vm12009_vm1, %v15776_v50 }
 0x22a   : > { %v1353_v56 = vpop.permute.xlu1 %1352  ;;  %10270 = vmatprep.subr.bf16.mxu1 %v15776_v50 }
 0x22b   : > { %v1358_v57 = vsel %vm653_vm2, %v1353_v56, 0 }
 0x22c   : > { %10277 = vmatpush3.bf16.xpose.msra.mxu0 %v1358_v57 }
 0x22d   : > { %10288 = vmatprep.subr.bf16.mxu0 %v15776_v50 }
 0x230   : > { %10261 = vmatmul.mubr.msk.bf16.vlgmr.msra.gmra.mrb[52].mxu1 %vm653_vm2, %v12375_v25 }
 0x231   : > { %10271 = vmatpush3.bf16.xpose.msra.mxu1 %v1308_v58  ;;  %10272 = vmatprep.mubr.msk.bf16.mxu1 %vm12009_vm1, %v15776_v50 }
 0x232   : > { %10282 = vmatprep.subr.bf16.mxu1 %v15776_v50 }
 0x233   : > { %10279 = vmatmul.mubr.msk.bf16.vlgmr.msra.gmra.mrb[28].mxu0 %vm653_vm2, %v12419_v9 }
 0x234   : > { %10290 = vmatprep.mubr.msk.bf16.mxu0 %vm12009_vm1, %v15776_v50 }
 0x238   : > { %10273 = vmatmul.mubr.msk.bf16.vlgmr.msra.gmra.mrb[56].mxu1 %vm653_vm2, %v12395_v45 }
 0x239   : > { %10283 = vmatpush3.bf16.xpose.msra.mxu1 %v1408_v59  ;;  %10284 = vmatprep.mubr.msk.bf16.mxu1 %vm12009_vm1, %v15776_v50 }
 0x23a   : > { %10294 = vmatprep.subr.bf16.mxu1 %v15776_v50 }
 0x240   : > { %10285 = vmatmul.mubr.msk.bf16.vlgmr.msra.gmra.mrb[60].mxu1 %vm653_vm2, %v12415_v3 }
 0x241   : > { %10295 = vmatpush3.bf16.msra.mxu1 %v12510_v33  ;;  %10296 = vmatprep.mubr.msk.bf16.mxu1 %vm12009_vm1, %v15776_v50 }
 0x242   : > { %10306 = vmatprep.subr.bf16.mxu1 %v15776_v50 }
 0x2bb   : > { %v694_v63 = vpop.f32.mrb[16].mxu1 }
 0x2bc   : > { %v10196_v0 = vpop.f32.mrb[17].mxu1  ;;  %v12605_v1 = vadd.f32 %v12600_v61, %v694_v63 }
 0x2bd   : > { %v697_v52 = vpop.f32.mrb[18].mxu1 }
 0x2be   : > { %v10197_v10 = vpop.f32.mrb[19].mxu1  ;;  %v1452_v11 = vsel %vm1451_vm3, %v12605_v1, -inf  ;;  %v12610_v12 = vadd.f32 %v12602_v62, %v697_v52 }
 0x2bf   : > { %1453 = vmax.xlane.f32.xlu1 %v1452_v11 }
 0x2c0   : > { %v1455_v13 = vsel %vm1451_vm3, %v12610_v12, -inf }
 0x2c1   : > { %1456 = vmax.xlane.f32.xlu0 %v1455_v13 }
 0x2c3   : > { %v744_v14 = vpop.f32.mrb[20].mxu1 }
 0x2c4   : > { %v10202_v15 = vpop.f32.mrb[21].mxu1  ;;  %v12625_v58 = vadd.f32 %v12600_v61, %v744_v14 }
 0x2c5   : > { %v747_v16 = vpop.f32.mrb[22].mxu1 }
 0x2c6   : > { %v10203_v17 = vpop.f32.mrb[23].mxu1  ;;  %v1458_v10 = vsel %vm1451_vm3, %v12625_v58, -inf }
 0x2c7   : > { %v12638_v17 = vadd.f32 %v12602_v62, %v747_v16 }
 0x2cb   : > { %v794_v18 = vpop.f32.mrb[24].mxu1 }
 0x2cc   : > { %v10208_v19 = vpop.f32.mrb[25].mxu1 }
 0x2cd   : > { %v797_v20 = vpop.f32.mrb[26].mxu1 }
 0x2ce   : > { %v10209_v21 = vpop.f32.mrb[27].mxu1 }
 0x2d3   : > { %v844_v22 = vpop.f32.mrb[28].mxu1 }
 0x2d4   : > { %v10214_v23 = vpop.f32.mrb[29].mxu1 }
 0x2d5   : > { %v847_v28 = vpop.f32.mrb[30].mxu1 }
 0x2d6   : > { %v10215_v29 = vpop.f32.mrb[31].mxu1 }
 0x2d7   : > { %v12643_v29 = vadd.f32 %v12602_v62, %v797_v20 }
 0x2db   : > { %v894_v30 = vpop.f32.mrb[32].mxu1 }
 0x2dc   : > { %v10220_v31 = vpop.f32.mrb[33].mxu1 }
 0x2dd   : > { %v897_v32 = vpop.f32.mrb[34].mxu1 }
 0x2de   : > { %v10221_v33 = vpop.f32.mrb[35].mxu1 }
 0x2df   : > { %v1094_v34 = vpop.f32.mrb[16].mxu0 }
 0x2e0   : > { %v12615_v36 = vadd.f32 %v12600_v61, %v1094_v34  ;;  %v10244_v38 = vpop.f32.mrb[17].mxu0  ;;  %v1461_v34 = vsel %vm1451_vm3, %v12638_v17, -inf }
 0x2e1   : > { %v1097_v39 = vpop.f32.mrb[18].mxu0  ;;  %v12648_v38 = vadd.f32 %v12600_v61, %v794_v18  ;;  %v12662_v18 = vadd.f32 %v12600_v61, %v894_v30 }
 0x2e2   : > { %v12618_v41 = vadd.f32 %v12602_v62, %v1097_v39  ;;  %v10245_v43 = vpop.f32.mrb[19].mxu0  ;;  %v1500_v51 = vsel %vm1451_vm3, %v12615_v36, -inf }
 0x2e3   : > { %v944_v55 = vpop.f32.mrb[36].mxu1  ;;  %1501 = vmax.xlane.f32.xlu1 %v1500_v51  ;;  %v1467_v43 = vsel %vm1451_vm3, %v12643_v29, -inf  ;;  %v12655_v51 = vadd.f32 %v12600_v61, %v844_v22 }
 0x2e4   : > { %v10226_v56 = vpop.f32.mrb[37].mxu1  ;;  %v1503_v57 = vsel %vm1451_vm3, %v12618_v41, -inf }
 0x2e5   : > { %v947_v59 = vpop.f32.mrb[38].mxu1  ;;  %1504 = vmax.xlane.f32.xlu0 %v1503_v57  ;;  %v1464_v57 = vsel %vm1451_vm3, %v12648_v38, -inf }
 0x2e6   : > { %v10227_v60 = vpop.f32.mrb[39].mxu1 }
 0x2e7   : > { %v1194_v63 = vpop.f32.mrb[20].mxu0 }
 0x2e8   : > { %v12628_v0 = vadd.f32 %v12600_v61, %v1194_v63  ;;  %v10256_v52 = vpop.f32.mrb[21].mxu0 }
 0x2e9   : > { %1459 = vmax.xlane.f32.xlu0 %v1458_v10  ;;  %v1197_v11 = vpop.f32.mrb[22].mxu0  ;;  %v1470_v52 = vsel %vm1451_vm3, %v12655_v51, -inf  ;;  %v12667_v10 = vadd.f32 %v12602_v62, %v847_v28 }
 0x2ea   : > { %v12633_v13 = vadd.f32 %v12602_v62, %v1197_v11  ;;  %v10257_v15 = vpop.f32.mrb[23].mxu0  ;;  %v1512_v14 = vsel %vm1451_vm3, %v12628_v0, -inf }
 0x2eb   : > { %v994_v19 = vpop.f32.mrb[40].mxu1  ;;  %1513 = vmax.xlane.f32.xlu1 %v1512_v14  ;;  %v1476_v15 = vsel %vm1451_vm3, %v12662_v18, -inf  ;;  %v12672_v14 = vadd.f32 %v12600_v61, %v944_v55  ;;  %v1473_v30 = vsel %vm1451_vm3, %v12667_v10, -inf }
 0x2ec   : > { %v10232_v21 = vpop.f32.mrb[41].mxu1  ;;  %v1515_v23 = vsel %vm1451_vm3, %v12633_v13, -inf }
 0x2ed   : > { %v997_v31 = vpop.f32.mrb[42].mxu1  ;;  %1516 = vmax.xlane.f32.xlu0 %v1515_v23  ;;  %v12677_v21 = vadd.f32 %v12602_v62, %v897_v32  ;;  %v1482_v28 = vsel %vm1451_vm3, %v12672_v14, -inf  ;;  %v12682_v23 = vadd.f32 %v12600_v61, %v994_v19 }
 0x2ee   : > { %v10233_v33 = vpop.f32.mrb[43].mxu1 }
 0x2ef   : > { %1462 = vmax.xlane.f32.xlu1 %v1461_v34  ;;  %v12650_v16 = vpop.f32.mrb[24].mxu0  ;;  %v1479_v55 = vsel %vm1451_vm3, %v12677_v21, -inf }
 0x2f0   : > { %v10268_v39 = vpop.f32.mrb[25].mxu0 }
 0x2f1   : > { %1468 = vmax.xlane.f32.xlu0 %v1467_v43  ;;  %v12657_v20 = vpop.f32.mrb[26].mxu0  ;;  %v12687_v39 = vadd.f32 %v12602_v62, %v947_v59 }
 0x2f2   : > { %v10269_v56 = vpop.f32.mrb[27].mxu0 }
 0x2f3   : > { %v1044_v60 = vpop.f32.mrb[44].mxu1  ;;  %1465 = vmax.xlane.f32.xlu1 %v1464_v57  ;;  %v1488_v56 = vsel %vm1451_vm3, %v12682_v23, -inf  ;;  %v1485_v19 = vsel %vm1451_vm3, %v12687_v39, -inf }
 0x2f4   : > { %v10238_v63 = vpop.f32.mrb[45].mxu1  ;;  %v12692_v57 = vadd.f32 %v12600_v61, %v1044_v60 }
 0x2f5   : > { %v1047_v22 = vpop.f32.mrb[46].mxu1  ;;  %1471 = vmax.xlane.f32.xlu0 %v1470_v52  ;;  %v12697_v63 = vadd.f32 %v12602_v62, %v997_v31 }
 0x2f6   : > { %v10239_v11 = vpop.f32.mrb[47].mxu1  ;;  %v1494_v59 = vsel %vm1451_vm3, %v12692_v57, -inf }
 0x2f7   : > { %1477 = vmax.xlane.f32.xlu1 %v1476_v15  ;;  %v1491_v60 = vsel %vm1451_vm3, %v12697_v63, -inf }
 0x2f9   : > { %1474 = vmax.xlane.f32.xlu0 %v1473_v30  ;;  %v12707_v30 = vadd.f32 %v12602_v62, %v1047_v22 }
 0x2fb   : > { %v1144_v33 = vpop.f32.mrb[48].mxu1  ;;  %1483 = vmax.xlane.f32.xlu1 %v1482_v28 }
 0x2fc   : > { %v10250_v34 = vpop.f32.mrb[49].mxu1  ;;  %v12702_v52 = vadd.f32 %v12600_v61, %v1144_v33 }
 0x2fd   : > { %v1147_v43 = vpop.f32.mrb[50].mxu1  ;;  %1480 = vmax.xlane.f32.xlu0 %v1479_v55 }
 0x2fe   : > { %v10251_v32 = vpop.f32.mrb[51].mxu1  ;;  %v1506_v55 = vsel %vm1451_vm3, %v12702_v52, -inf  ;;  %v12721_v22 = vadd.f32 %v12602_v62, %v1147_v43 }
 0x2ff   : > { %1489 = vmax.xlane.f32.xlu1 %v1488_v56 }
 0x301   : > { %1486 = vmax.xlane.f32.xlu0 %v1485_v19  ;;  %v1497_v19 = vsel %vm1451_vm3, %v12707_v30, -inf }
 0x303   : > { %v1244_v11 = vpop.f32.mrb[52].mxu1  ;;  %1495 = vmax.xlane.f32.xlu1 %v1494_v59 }
 0x304   : > { %v10262_v15 = vpop.f32.mrb[53].mxu1  ;;  %v12714_v33 = vadd.f32 %v12600_v61, %v1244_v11  ;;  %v1509_v11 = vsel %vm1451_vm3, %v12721_v22, -inf }
 0x305   : > { %v1247_v28 = vpop.f32.mrb[54].mxu1  ;;  %1492 = vmax.xlane.f32.xlu0 %v1491_v60 }
 0x306   : > { %v10263_v31 = vpop.f32.mrb[55].mxu1  ;;  %v12709_v34 = vpop.f32.mrb[28].mxu0  ;;  %v1518_v15 = vsel %vm1451_vm3, %v12714_v33, -inf }
 0x307   : > { %1507 = vmax.xlane.f32.xlu1 %v1506_v55  ;;  %v10280_v32 = vpop.f32.mrb[29].mxu0 }
 0x308   : > { %v12716_v56 = vpop.f32.mrb[30].mxu0  ;;  %v12731_v32 = vadd.f32 %v12602_v62, %v1247_v28 }
 0x309   : > { %1498 = vmax.xlane.f32.xlu0 %v1497_v19  ;;  %v10281_v59 = vpop.f32.mrb[31].mxu0 }
 0x30a   : > { %v1521_v59 = vsel %vm1451_vm3, %v12731_v32, -inf }
 0x30b   : > { %v1344_v60 = vpop.f32.mrb[56].mxu1  ;;  %1519 = vmax.xlane.f32.xlu1 %v1518_v15 }
 0x30c   : > { %v10274_v31 = vpop.f32.mrb[57].mxu1  ;;  %v12728_v55 = vadd.f32 %v12600_v61, %v1344_v60 }
 0x30d   : > { %v1347_v50 = vpop.f32.mrb[58].mxu1  ;;  %1510 = vmax.xlane.f32.xlu0 %v1509_v11 }
 0x30e   : > { %v10275_v43 = vpop.f32.mrb[59].mxu1  ;;  %v1530_v19 = vsel %vm1451_vm3, %v12728_v55, -inf  ;;  %v12738_v15 = vadd.f32 %v12602_v62, %v1347_v50 }
 0x30f   : > { %1531 = vmax.xlane.f32.xlu1 %v1530_v19  ;;  %v12747_v43 = vadd.f32 %v12600_v61, %v12650_v16  ;;  %v12760_v16 = vpop.permute.xlu0 %1961 }
 0x310   : > { %v1533_v28 = vsel %vm1451_vm3, %v12738_v15, -inf }
 0x311   : > { %1522 = vmax.xlane.f32.xlu0 %v1521_v59 }
 0x313   : > { %v1444_v31 = vpop.f32.mrb[60].mxu1 }
 0x314   : > { %v10286_v60 = vpop.f32.mrb[61].mxu1  ;;  %v12743_v5 = vadd.f32 %v12600_v61, %v1444_v31  ;;  %v1524_v31 = vsel %vm1451_vm3, %v12747_v43, -inf }
 0x315   : > { %v1447_v11 = vpop.f32.mrb[62].mxu1  ;;  %1534 = vmax.xlane.f32.xlu0 %v1533_v28  ;;  %v12764_v28 = vpop.permute.xlu0 %2243 }
 0x316   : > { %v10287_v19 = vpop.f32.mrb[63].mxu1  ;;  %v1542_v50 = vsel %vm1451_vm3, %v12743_v5, -inf  ;;  %v12752_v59 = vadd.f32 %v12602_v62, %v1447_v11 }
 0x317   : > { %1543 = vmax.xlane.f32.xlu1 %v1542_v50 }
 0x318   : > { %v1545_v60 = vsel %vm1451_vm3, %v12752_v59, -inf }
 0x319   : > { %1546 = vmax.xlane.f32.xlu0 %v1545_v60  ;;  %v12766_v11 = vpop.permute.xlu0 %2337  ;;  %v12774_v60 = vadd.f32 %v12602_v62, %v12657_v20 }
 0x31a   : > { %15891 = vst [vmem:[#allocation35_spill] sm:$0xff] %v12766_v11 }
 0x31b   : > { %1525 = vmax.xlane.f32.xlu1 %v1524_v31  ;;  %v1527_v44 = vsel %vm1451_vm3, %v12774_v60, -inf }
 0x31d   : > { %v12768_v19 = vpop.permute.xlu0 %2431 }
 0x31e   : > { %15892 = vst [vmem:[#allocation36_spill] sm:$0xff] %v12768_v19 }
 0x321   : > { %v12770_v50 = vpop.permute.xlu0 %2525 }
 0x322   : > { %15893 = vst [vmem:[#allocation37_spill] sm:$0xff] %v12770_v50 }
 0x325   : > { %v12776_v31 = vpop.permute.xlu0 %2646 }
 0x326   : > { %15894 = vst [vmem:[#allocation38_spill] sm:$0xff] %v12776_v31 }
 0x329   : > { %v12780_v53 = vpop.permute.xlu0 %2746 }
 0x32a   : > { %15895 = vst [vmem:[#allocation39_spill] sm:$0xff] %v12780_v53 }
 0x32c   : > { %3256 = vrot.lane.b32.xlu1 %v12395_v45, %s12012_s11 }
 0x32f   : > { %3258 = vrot.lane.b32.xlu0 %v12395_v45, %s12013_s14  ;;  %v12782_v45 = vpop.permute.xlu0 %2850 }
 0x330   : > { %15896 = vst [vmem:[#allocation40_spill] sm:$0xff] %v12782_v45 }
 0x333   : > { %v12784_v54 = vpop.permute.xlu0 %2950 }
 0x334   : > { %15897 = vst [vmem:[#allocation41_spill] sm:$0xff] %v12784_v54 }
 0x337   : > { %v12786_v4 = vpop.permute.xlu0 %3054 }
 0x338   : > { %15898 = vst [vmem:[#allocation42_spill] sm:$0xff] %v12786_v4 }
 0x33b   : > { %v12788_v25 = vpop.permute.xlu0 %3154 }
 0x33c   : > { %15899 = vst [vmem:[#allocation43_spill] sm:$0xff] %v12788_v25 }
 0x34c   : > { %v12792_v20 = vpop.xlane.xlu1 %1453 }
 0x34e   : > { %1528 = vmax.xlane.f32.xlu0 %v1527_v44  ;;  %v12790_v2 = vpop.xlane.xlu0 %1456 }
 0x370   : > { %v12796_v49 = vpop.xlane.xlu1 %1501 }
 0x372   : > { %v12794_v48 = vpop.xlane.xlu0 %1504 }
 0x376   : > { %v1460_v24 = vpop.xlane.xlu0 %1459 }
 0x377   : > { %v1550_v44 = vsub.f32 %v12625_v58, %v1460_v24 }
 0x378   : > { %v12799_v9 = vpop.xlane.xlu1 %1513 }
 0x379   : > { %v1584_v53 = vmul.f32 1.442695, %v1550_v44 }
 0x37a   : > { %v12801_v45 = vpop.xlane.xlu0 %1516 }
 0x37b   : > { %11298 = vpow2.f32 %v1584_v53 }
 0x37c   : > { %v1463_v54 = vpop.xlane.xlu1 %1462 }
 0x37d   : > { %v1551_v25 = vsub.f32 %v12638_v17, %v1463_v54 }
 0x37e   : > { %v12804_v4 = vpop.xlane.xlu0 %1468 }
 0x37f   : > { %v1586_v47 = vmul.f32 1.442695, %v1551_v25 }
 0x380   : > { %v12806_v27 = vpop.xlane.xlu1 %1465 }
 0x381   : > { %11300 = vpow2.f32 %v1586_v47 }
 0x382   : > { %v1472_v40 = vpop.xlane.xlu0 %1471 }
 0x383   : > { %v1554_v42 = vsub.f32 %v12655_v51, %v1472_v40 }
 0x384   : > { %v12809_v7 = vpop.xlane.xlu1 %1477 }
 0x385   : > { %v12811_v24 = vpop.eup %11298  ;;  %v1592_v58 = vmul.f32 1.442695, %v1554_v42 }
 0x386   : > { %v1475_v44 = vpop.xlane.xlu0 %1474  ;;  %v1650_v53 = vsel %vm1451_vm3, %v12811_v24, 0.0 }
 0x387   : > { %11302 = vpow2.f32 %v1592_v58  ;;  %v1555_v54 = vsub.f32 %v12667_v10, %v1475_v44  ;;  %1651 = vadd.xlane.f32.xlu1 %v1650_v53 }
 0x388   : > { %v1484_v25 = vpop.xlane.xlu1 %1483 }
 0x389   : > { %v1594_v17 = vmul.f32 1.442695, %v1555_v54  ;;  %v1558_v47 = vsub.f32 %v12672_v14, %v1484_v25 }
 0x38a   : > { %v12817_v31 = vpop.xlane.xlu0 %1480 }
 0x38b   : > { %v12819_v40 = vpop.eup %11300  ;;  %11304 = vpow2.f32 %v1594_v17  ;;  %v1600_v51 = vmul.f32 1.442695, %v1558_v47 }
 0x38c   : > { %v12821_v50 = vpop.xlane.xlu1 %1489  ;;  %v1653_v42 = vsel %vm1451_vm3, %v12819_v40, 0.0 }
 0x38d   : > { %11306 = vpow2.f32 %v1600_v51  ;;  %1654 = vadd.xlane.f32.xlu0 %v1653_v42 }
 0x38e   : > { %v1487_v58 = vpop.xlane.xlu0 %1486 }
 0x38f   : > { %v1559_v10 = vsub.f32 %v12687_v39, %v1487_v58 }
 0x390   : > { %v1496_v44 = vpop.xlane.xlu1 %1495 }
 0x391   : > { %v12826_v53 = vpop.eup %11302  ;;  %v1602_v14 = vmul.f32 1.442695, %v1559_v10  ;;  %v1562_v54 = vsub.f32 %v12692_v57, %v1496_v44 }
 0x392   : > { %v12829_v25 = vpop.xlane.xlu0 %1492  ;;  %v1662_v17 = vsel %vm1451_vm3, %v12826_v53, 0.0 }
 0x393   : > { %11308 = vpow2.f32 %v1602_v14  ;;  %v1608_v47 = vmul.f32 1.442695, %v1562_v54  ;;  %1663 = vadd.xlane.f32.xlu1 %v1662_v17 }
 0x394   : > { %v1508_v19 = vpop.xlane.xlu1 %1507 }
 0x395   : > { %v12833_v51 = vpop.eup %11304  ;;  %11310 = vpow2.f32 %v1608_v47  ;;  %v1566_v39 = vsub.f32 %v12702_v52, %v1508_v19 }
 0x396   : > { %v1499_v42 = vpop.xlane.xlu0 %1498  ;;  %v1665_v58 = vsel %vm1451_vm3, %v12833_v51, 0.0 }
 0x397   : > { %v12838_v10 = vpop.eup %11306  ;;  %v1563_v57 = vsub.f32 %v12707_v30, %v1499_v42  ;;  %1666 = vadd.xlane.f32.xlu0 %v1665_v58  ;;  %v1616_v44 = vmul.f32 1.442695, %v1566_v39 }
 0x398   : > { %v1520_v11 = vpop.xlane.xlu1 %1519  ;;  %v1674_v14 = vsel %vm1451_vm3, %v12838_v10, 0.0 }
 0x399   : > { %v1610_v54 = vmul.f32 1.442695, %v1563_v57  ;;  %v1570_v17 = vsub.f32 %v12714_v33, %v1520_v11  ;;  %1675 = vadd.xlane.f32.xlu1 %v1674_v14 }
 0x39a   : > { %v1511_v47 = vpop.xlane.xlu0 %1510 }
 0x39b   : > { %11312 = vpow2.f32 %v1610_v54  ;;  %v1624_v52 = vmul.f32 1.442695, %v1570_v17  ;;  %v1567_v19 = vsub.f32 %v12721_v22, %v1511_v47 }
 0x39c   : > { %11314 = vpow2.f32 %v1616_v44  ;;  %v1532_v22 = vpop.xlane.xlu1 %1531 }
 0x39d   : > { %v12845_v8 = vpop.eup %11308  ;;  %11316 = vpow2.f32 %v1624_v52  ;;  %v1618_v30 = vmul.f32 1.442695, %v1567_v19  ;;  %v1574_v44 = vsub.f32 %v12728_v55, %v1532_v22  ;;  %v12873_v22 = vadd.f32 %v12602_v62, %v12716_v56 }
 0x39e   : > { %v1523_v42 = vpop.xlane.xlu0 %1522  ;;  %v1677_v39 = vsel %vm1451_vm3, %v12845_v8, 0.0 }
 0x39f   : > { %v12849_v58 = vpop.eup %11310  ;;  %1678 = vadd.xlane.f32.xlu0 %v1677_v39  ;;  %11318 = vpow2.f32 %v1618_v30  ;;  %v1571_v11 = vsub.f32 %v12731_v32, %v1523_v42  ;;  %v1632_v32 = vmul.f32 1.442695, %v1574_v44 }
 0x3a0   : > { %v1686_v33 = vsel %vm1451_vm3, %v12849_v58, 0.0 }
 0x3a1   : > { %1687 = vadd.xlane.f32.xlu1 %v1686_v33  ;;  %v1626_v14 = vmul.f32 1.442695, %v1571_v11 }
 0x3a2   : > { %v1535_v17 = vpop.xlane.xlu0 %1534 }
 0x3a3   : > { %11320 = vpow2.f32 %v1626_v14  ;;  %v1575_v30 = vsub.f32 %v12738_v15, %v1535_v17  ;;  %v1539_v14 = vsel %vm1451_vm3, %v12873_v22, -inf }
 0x3a4   : > { %v1544_v42 = vpop.xlane.xlu1 %1543  ;;  %11322 = vpow2.f32 %v1632_v32 }
 0x3a5   : > { %v12854_v57 = vpop.eup %11312  ;;  %v1634_v33 = vmul.f32 1.442695, %v1575_v30  ;;  %v1578_v11 = vsub.f32 %v12743_v5, %v1544_v42 }
 0x3a6   : > { %v12857_v54 = vpop.eup %11314  ;;  %v1689_v47 = vsel %vm1451_vm3, %v12854_v57, 0.0  ;;  %v1547_v42 = vpop.xlane.xlu0 %1546 }
 0x3a7   : > { %v12861_v52 = vpop.eup %11316  ;;  %1690 = vadd.xlane.f32.xlu0 %v1689_v47  ;;  %v1698_v55 = vsel %vm1451_vm3, %v12857_v54, 0.0  ;;  %11324 = vpow2.f32 %v1634_v33  ;;  %v1640_v15 = vmul.f32 1.442695, %v1578_v11  ;;  %v1549_v33 = vsub.f32 %v12610_v12, %v12790_v2 }
 0x3a8   : > { %v1710_v19 = vsel %vm1451_vm3, %v12861_v52, 0.0  ;;  %v1556_v2 = vsub.f32 %v12662_v18, %v12809_v7  ;;  %v1560_v18 = vsub.f32 %v12682_v23, %v12821_v50  ;;  %v1565_v50 = vsub.f32 %v12618_v41, %v12794_v48 }
 0x3a9   : > { %1711 = vadd.xlane.f32.xlu1 %v1710_v19  ;;  %v12868_v39 = vpop.eup %11318  ;;  %11326 = vpow2.f32 %v1640_v15  ;;  %v1552_v15 = vsub.f32 %v12648_v38, %v12806_v27 }
 0x3aa   : > { %v1701_v44 = vsel %vm1451_vm3, %v12868_v39, 0.0 }
 0x3ab   : > { %1699 = vadd.xlane.f32.xlu0 %v1698_v55  ;;  %v1579_v55 = vsub.f32 %v12752_v59, %v1547_v42  ;;  %v1604_v42 = vmul.f32 1.442695, %v1560_v18 }
 0x3ad   : > { %v12879_v17 = vpop.eup %11320  ;;  %v1642_v11 = vmul.f32 1.442695, %v1579_v55 }
 0x3ae   : > { %v1713_v5 = vsel %vm1451_vm3, %v12879_v17, 0.0  ;;  %v12883_v47 = vpop.eup %11322 }
 0x3af   : > { %1702 = vadd.xlane.f32.xlu0 %v1701_v44  ;;  %v1722_v62 = vsel %vm1451_vm3, %v12883_v47, 0.0  ;;  %v1582_v44 = vmul.f32 1.442695, %v1549_v33  ;;  %11328 = vpow2.f32 %v1642_v11 }
 0x3b1   : > { %v12889_v56 = vpop.eup %11324  ;;  %11330 = vpow2.f32 %v1582_v44 }
 0x3b2   : > { %v1725_v19 = vsel %vm1451_vm3, %v12889_v56, 0.0 }
 0x3b3   : > { %1540 = vmax.xlane.f32.xlu0 %v1539_v14  ;;  %v12893_v32 = vpop.eup %11326  ;;  %v1553_v14 = vsub.f32 %v12643_v29, %v12804_v4  ;;  %v1596_v4 = vmul.f32 1.442695, %v1556_v2 }
 0x3b4   : > { %v1734_v30 = vsel %vm1451_vm3, %v12893_v32, 0.0 }
 0x3b5   : > { %v1590_v59 = vmul.f32 1.442695, %v1553_v14 }
 0x3b7   : > { %1714 = vadd.xlane.f32.xlu0 %v1713_v5  ;;  %v1588_v5 = vmul.f32 1.442695, %v1552_v15 }
 0x3b9   : > { %11332 = vpow2.f32 %v1588_v5  ;;  %v12914_v12 = vpop.eup %11328 }
 0x3ba   : > { %3360 = vrot.lane.b32.xlu1 %v12415_v3, %s12013_s14  ;;  %11334 = vpow2.f32 %v1590_v59  ;;  %v1737_v29 = vsel %vm1451_vm3, %v12914_v12, 0.0 }
 0x3bb   : > { %1723 = vadd.xlane.f32.xlu0 %v1722_v62  ;;  %v12906_v62 = vadd.f32 %v12600_v61, %v12709_v34  ;;  %v1557_v61 = vsub.f32 %v12677_v21, %v12817_v31  ;;  %v12920_v38 = vpop.eup %11330  ;;  %v1548_v34 = vsub.f32 %v12605_v1, %v12792_v20  ;;  %11336 = vpow2.f32 %v1596_v4 }
 0x3bc   : > { %v1564_v31 = vsub.f32 %v12615_v36, %v12796_v49  ;;  %v1561_v1 = vsub.f32 %v12697_v63, %v12829_v25  ;;  %v1614_v63 = vmul.f32 1.442695, %v1565_v50 }
 0x3bd   : > { %v1536_v27 = vsel %vm1451_vm3, %v12906_v62, -inf  ;;  %v1598_v7 = vmul.f32 1.442695, %v1557_v61  ;;  %v1580_v21 = vmul.f32 1.442695, %v1548_v34  ;;  %v12972_v34 = vpop.permute.xlu0 %3258 }
 0x3be   : > { %v1612_v23 = vmul.f32 1.442695, %v1564_v31  ;;  %v1606_v33 = vmul.f32 1.442695, %v1561_v1  ;;  %v1568_v31 = vsub.f32 %v12628_v0, %v12799_v9 }
 0x3bf   : > { %1726 = vadd.xlane.f32.xlu0 %v1725_v19  ;;  %v1647_v19 = vsel %vm1451_vm3, %v12920_v38, 0.0  ;;  %11338 = vpow2.f32 %v1598_v7 }
 0x3c0   : > { %11340 = vpow2.f32 %v1580_v21  ;;  %v1620_v1 = vmul.f32 1.442695, %v1568_v31 }
 0x3c1   : > { %11342 = vpow2.f32 %v1604_v42  ;;  %v1569_v42 = vsub.f32 %v12633_v13, %v12801_v45 }
 0x3c2   : > { %11344 = vpow2.f32 %v1612_v23 }
 0x3c3   : > { %1735 = vadd.xlane.f32.xlu0 %v1734_v30  ;;  %v12928_v30 = vpop.eup %11332  ;;  %11346 = vpow2.f32 %v1606_v33  ;;  %v1622_v33 = vmul.f32 1.442695, %v1569_v42 }
 0x3c4   : > { %v1656_v20 = vsel %vm1451_vm3, %v12928_v30, 0.0  ;;  %v12936_v55 = vpop.eup %11334  ;;  %11348 = vpow2.f32 %v1614_v63 }
 0x3c5   : > { %v1659_v49 = vsel %vm1451_vm3, %v12936_v55, 0.0  ;;  %v12942_v36 = vpop.eup %11336 }
 0x3c6   : > { %v1668_v25 = vsel %vm1451_vm3, %v12942_v36, 0.0 }
 0x3c9   : > { %v12946_v11 = vpop.eup %11338 }
 0x3ca   : > { %v12948_v48 = vpop.eup %11340  ;;  %v1671_v41 = vsel %vm1451_vm3, %v12946_v11, 0.0 }
 0x3cb   : > { %v12952_v44 = vpop.eup %11342  ;;  %v1644_v15 = vsel %vm1451_vm3, %v12948_v48, 0.0 }
 0x3cc   : > { %v12956_v14 = vpop.eup %11344  ;;  %v1680_v5 = vsel %vm1451_vm3, %v12952_v44, 0.0 }
 0x3cd   : > { %v12960_v59 = vpop.eup %11346  ;;  %v1692_v2 = vsel %vm1451_vm3, %v12956_v14, 0.0 }
 0x3ce   : > { %v1683_v4 = vsel %vm1451_vm3, %v12960_v59, 0.0 }
 0x3d9   : > { %3358 = vrot.lane.b32.xlu0 %v12415_v3, %s12012_s11 }
 0x3db   : > { %v1529_v18 = vpop.xlane.xlu0 %1528 }
 0x3dc   : > { %v1573_v9 = vsub.f32 %v12774_v60, %v1529_v18 }
 0x3de   : > { %1537 = vmax.xlane.f32.xlu1 %v1536_v27  ;;  %v12964_v27 = vpop.eup %11348  ;;  %v1630_v13 = vmul.f32 1.442695, %v1573_v9 }
 0x3df   : > { %v1695_v61 = vsel %vm1451_vm3, %v12964_v27, 0.0 }
 0x3e2   : > { %1738 = vadd.xlane.f32.xlu1 %v1737_v29  ;;  %v1526_v29 = vpop.xlane.xlu1 %1525 }
 0x3e3   : > { %v1572_v23 = vsub.f32 %v12747_v43, %v1526_v29  ;;  %v15900_v43 = vmov 0.0  }
 0x3e6   : > { %1648 = vadd.xlane.f32.xlu1 %v1647_v19  ;;  %v12974_v7 = vpop.permute.xlu1 %3256 }
 0x3ea   : > { %1657 = vadd.xlane.f32.xlu1 %v1656_v20 }
 0x3ee   : > { %1660 = vadd.xlane.f32.xlu1 %v1659_v49 }
 0x3f2   : > { %1669 = vadd.xlane.f32.xlu1 %v1668_v25  ;;  %v1628_v25 = vmul.f32 1.442695, %v1572_v23 }
 0x3f6   : > { %1672 = vadd.xlane.f32.xlu1 %v1671_v41 }
 0x3f8   : > { %1645 = vadd.xlane.f32.xlu0 %v1644_v15 }
 0x3fa   : > { %1681 = vadd.xlane.f32.xlu1 %v1680_v5 }
 0x3fc   : > { %1693 = vadd.xlane.f32.xlu0 %v1692_v2 }
 0x3fe   : > { %1684 = vadd.xlane.f32.xlu1 %v1683_v4 }
 0x400   : > { %1696 = vadd.xlane.f32.xlu0 %v1695_v61 }
 0x40f   : > { %1820 = vrot.lane.b32.xlu1 %v12357_v6, %s12011_s10 }
 0x414   : > { %v1652_v19 = vpop.xlane.xlu1 %1651 }
 0x415   : > { %11350 = vrcp.f32 %v1652_v19 }
 0x416   : > { %1914 = vrot.lane.b32.xlu0 %v12377_v26, %s12011_s10 }
 0x41a   : > { %v1655_v21 = vpop.xlane.xlu0 %1654 }
 0x41b   : > { %11352 = vrcp.f32 %v1655_v21 }
 0x41f   : > { %v11351_v50 = vpop.eup %11350 }
 0x420   : > { %v1664_v20 = vpop.xlane.xlu1 %1663  ;;  %v1774_v41 = vmul.f32 %v11351_v50, %v12811_v24 }
 0x421   : > { %11354 = vrcp.f32 %v1664_v20 }
 0x422   : > { %11356 = vpow2.f32 %v1620_v1 }
 0x424   : > { %v1667_v49 = vpop.xlane.xlu0 %1666 }
 0x425   : > { %v11353_v63 = vpop.eup %11352  ;;  %11358 = vrcp.f32 %v1667_v49 }
 0x426   : > { %v1775_v15 = vmul.f32 %v11353_v63, %v12819_v40  ;;  %11360 = vpow2.f32 %v1622_v33  ;;  %v1676_v45 = vpop.xlane.xlu1 %1675 }
 0x427   : > { %11362 = vpow2.f32 %v1628_v25 }
 0x428   : > { %v1805_v0 = vpack.c.bf16 %v1775_v15, %v1774_v41  ;;  %11364 = vrcp.f32 %v1676_v45 }
 0x42a   : > { %10297 = vmatmul.mubr.msk.bf16.vlgmr.msra.gmra.mrb[64].mxu1 %vm1451_vm3, %v1805_v0 }
 0x42b   : > { %10307 = vmatpush3.bf16.msra.mxu1 %v12760_v16  ;;  %10308 = vmatprep.mubr.msk.bf16.mxu1 %vm12009_vm1, %v15900_v43  ;;  %v11355_v24 = vpop.eup %11354 }
 0x42c   : > { %v1679_v5 = vpop.xlane.xlu0 %1678  ;;  %10318 = vmatprep.subr.bf16.mxu1 %v15900_v43  ;;  %v12991_v40 = vpop.eup %11356  ;;  %v1778_v2 = vmul.f32 %v11355_v24, %v12826_v53 }
 0x42d   : > { %11366 = vrcp.f32 %v1679_v5  ;;  %v1704_v16 = vsel %vm1451_vm3, %v12991_v40, 0.0 }
 0x42e   : > { %11368 = vpow2.f32 %v1630_v13  ;;  %v1688_v61 = vpop.xlane.xlu1 %1687  ;;  %v15901_v13 = vld [vmem:[#allocation27_spill] sm:$0xff] }
 0x42f   : > { %v11359_v60 = vpop.eup %11358  ;;  %11370 = vrcp.f32 %v1688_v61 }
 0x430   : > { %v1779_v4 = vmul.f32 %v11359_v60, %v12833_v51  ;;  %v12995_v29 = vpop.eup %11360  ;;  %v15902_v60 = vld [vmem:[#allocation35_spill] sm:$0xff] }
 0x431   : > { %v12999_v19 = vpop.eup %11362  ;;  %v1707_v31 = vsel %vm1451_vm3, %v12995_v29, 0.0 }
 0x432   : > { %v1807_v18 = vpack.c.bf16 %v1779_v4, %v1778_v2  ;;  %v11365_v53 = vpop.eup %11364  ;;  %v1716_v23 = vsel %vm1451_vm3, %v12999_v19, 0.0 }
 0x433   : > { %1705 = vadd.xlane.f32.xlu1 %v1704_v16  ;;  %v1782_v42 = vmul.f32 %v11365_v53, %v12838_v10 }
 0x434   : > { %10309 = vmatmul.mubr.msk.bf16.vlgmr.msra.gmra.mrb[68].mxu1 %vm1451_vm3, %v1807_v18  ;;  %v1691_v21 = vpop.xlane.xlu0 %1690 }
 0x435   : > { %10319 = vmatpush3.bf16.msra.mxu1 %v12518_v35  ;;  %11372 = vrcp.f32 %v1691_v21  ;;  %1708 = vadd.xlane.f32.xlu0 %v1707_v31  ;;  %v15903_v21 = vld [vmem:[#allocation36_spill] sm:$0xff] }
 0x436   : > { %10320 = vmatprep.mubr.msk.bf16.mxu1 %vm12009_vm1, %v15900_v43  ;;  %10330 = vmatprep.subr.bf16.mxu1 %v15900_v43  ;;  %v1712_v15 = vpop.xlane.xlu1 %1711 }
 0x437   : > { %v11367_v51 = vpop.eup %11366 }
 0x438   : > { %v1783_v1 = vmul.f32 %v11367_v51, %v12845_v8  ;;  %v1700_v20 = vpop.xlane.xlu0 %1699  ;;  %v13012_v50 = vpop.eup %11368 }
 0x439   : > { %1717 = vadd.xlane.f32.xlu0 %v1716_v23  ;;  %11374 = vrcp.f32 %v1700_v20  ;;  %v1719_v49 = vsel %vm1451_vm3, %v13012_v50, 0.0  ;;  %v11371_v63 = vpop.eup %11370 }
 0x43a   : > { %v1809_v35 = vpack.c.bf16 %v1783_v1, %v1782_v42  ;;  %v1786_v10 = vmul.f32 %v11371_v63, %v12849_v58  ;;  %v15904_v42 = vld [vmem:[#allocation37_spill] sm:$0xff] }
 0x43c   : > { %10321 = vmatmul.mubr.msk.bf16.vlgmr.msra.gmra.mrb[72].mxu1 %vm1451_vm3, %v1809_v35  ;;  %v1703_v33 = vpop.xlane.xlu0 %1702 }
 0x43d   : > { %10331 = vmatpush3.bf16.msra.mxu1 %v12526_v37  ;;  %11376 = vrcp.f32 %v1703_v33  ;;  %1720 = vadd.xlane.f32.xlu0 %v1719_v49 }
 0x43e   : > { %10332 = vmatprep.mubr.msk.bf16.mxu1 %vm12009_vm1, %v15900_v43  ;;  %10342 = vmatprep.subr.bf16.mxu1 %v15900_v43  ;;  %11378 = vrcp.f32 %v1712_v15 }
 0x43f   : > { %v11373_v8 = vpop.eup %11372 }
 0x440   : > { %v1787_v25 = vmul.f32 %v11373_v8, %v12854_v57  ;;  %v1541_v41 = vpop.xlane.xlu0 %1540 }
 0x441   : > { %v1577_v18 = vsub.f32 %v12873_v22, %v1541_v41  ;;  %v13054_v22 = vpop.permute.xlu1 %3360 }
 0x442   : > { %v1811_v9 = vpack.c.bf16 %v1787_v25, %v1786_v10 }
 0x443   : > { %v11375_v45 = vpop.eup %11374  ;;  %v1638_v51 = vmul.f32 1.442695, %v1577_v18 }
 0x444   : > { %2008 = vrot.lane.b32.xlu1 %v12397_v46, %s12011_s10  ;;  %10333 = vmatmul.mubr.msk.bf16.vlgmr.msra.gmra.mrb[76].mxu1 %vm1451_vm3, %v1811_v9  ;;  %v1715_v37 = vpop.xlane.xlu0 %1714  ;;  %v1790_v57 = vmul.f32 %v11375_v45, %v12857_v54 }
 0x445   : > { %10343 = vmatpush3.bf16.msra.mxu1 %v12764_v28  ;;  %10344 = vmatprep.mubr.msk.bf16.mxu1 %vm12009_vm1, %v15900_v43  ;;  %11380 = vrcp.f32 %v1715_v37 }
 0x446   : > { %10354 = vmatprep.subr.bf16.mxu1 %v15900_v43 }
 0x447   : > { %v11377_v58 = vpop.eup %11376 }
 0x448   : > { %v1791_v0 = vmul.f32 %v11377_v58, %v12868_v39  ;;  %2102 = vrot.lane.b32.xlu1 %v15901_v13, %s12011_s10  ;;  %v1724_v5 = vpop.xlane.xlu0 %1723  ;;  %v11379_v2 = vpop.eup %11378  ;;  %v15905_v58 = vld [vmem:[#allocation38_spill] sm:$0xff] }
 0x449   : > { %11382 = vrcp.f32 %v1724_v5  ;;  %v1794_v39 = vmul.f32 %v11379_v2, %v12861_v52  ;;  %v15908_v2 = vld [vmem:[#allocation29_spill] sm:$0xff] }
 0x44a   : > { %v1813_v24 = vpack.c.bf16 %v1791_v0, %v1790_v57  ;;  %v2652_v57 = vsel %vm653_vm2, %v15905_v58, 0 }
 0x44c   : > { %10345 = vmatmul.mubr.msk.bf16.vlgmr.msra.gmra.mrb[80].mxu1 %vm1451_vm3, %v1813_v24  ;;  %v1727_v28 = vpop.xlane.xlu0 %1726 }
 0x44d   : > { %10355 = vmatpush3.bf16.msra.mxu1 %v15902_v60  ;;  %11384 = vrcp.f32 %v1727_v28  ;;  %10356 = vmatprep.mubr.msk.bf16.mxu1 %vm12009_vm1, %v15900_v43  ;;  %v15907_v28 = vld [vmem:[#allocation30_spill] sm:$0xff] }
 0x44e   : > { %10366 = vmatprep.subr.bf16.mxu1 %v15900_v43  ;;  %11386 = vpow2.f32 %v1638_v51  ;;  %v2754_v60 = vsel %vm653_vm2, %v15907_v28, 0  ;;  %v15912_v51 = vld [vmem:[#allocation39_spill] sm:$0xff] }
 0x44f   : > { %v11381_v54 = vpop.eup %11380  ;;  %v15924_v28 = vld [vmem:[#allocation43_spill] sm:$0xff] }
 0x450   : > { %v1795_v4 = vmul.f32 %v11381_v54, %v12879_v17  ;;  %v15909_v54 = vld [vmem:[#allocation21_spill] sm:$0xff] }
 0x452   : > { %v1815_v61 = vpack.c.bf16 %v1795_v4, %v1794_v39 }
 0x453   : > { %v11383_v16 = vpop.eup %11382 }
 0x454   : > { %10357 = vmatmul.mubr.msk.bf16.vlgmr.msra.gmra.mrb[84].mxu1 %vm1451_vm3, %v1815_v61  ;;  %v1798_v53 = vmul.f32 %v11383_v16, %v12883_v47  ;;  %v15910_v61 = vld [vmem:[#allocation25_spill] sm:$0xff] }
 0x455   : > { %10367 = vmatpush3.bf16.msra.mxu1 %v15903_v21  ;;  %10368 = vmatprep.mubr.msk.bf16.mxu1 %vm12009_vm1, %v15900_v43 }
 0x456   : > { %10378 = vmatprep.subr.bf16.mxu1 %v15900_v43 }
 0x457   : > { %v11385_v31 = vpop.eup %11384 }
 0x458   : > { %v1799_v52 = vmul.f32 %v11385_v31, %v12889_v56  ;;  %v13056_v1 = vpop.eup %11386  ;;  %v1736_v56 = vpop.xlane.xlu0 %1735 }
 0x459   : > { %v1731_v47 = vsel %vm1451_vm3, %v13056_v1, 0.0  ;;  %11388 = vrcp.f32 %v1736_v56 }
 0x45a   : > { %v1817_v17 = vpack.c.bf16 %v1799_v52, %v1798_v53  ;;  %v15911_v53 = vld [vmem:[#allocation40_spill] sm:$0xff] }
 0x45b   : > { %v2856_v52 = vsel %vm653_vm2, %v15911_v53, 0 }
 0x45c   : > { %10369 = vmatmul.mubr.msk.bf16.vlgmr.msra.gmra.mrb[88].mxu1 %vm1451_vm3, %v1817_v17  ;;  %v13074_v0 = vpop.permute.xlu0 %3358 }
 0x45d   : > { %10379 = vmatpush3.bf16.msra.mxu1 %v15904_v42  ;;  %10380 = vmatprep.mubr.msk.bf16.mxu1 %vm12009_vm1, %v15900_v43 }
 0x45e   : > { %10390 = vmatprep.subr.bf16.mxu1 %v15900_v43 }
 0x463   : > { %v11389_v8 = vpop.eup %11388 }
 0x464   : > { %v1802_v9 = vmul.f32 %v11389_v8, %v12893_v32 }
 0x46b   : > { %v1538_v20 = vpop.xlane.xlu1 %1537 }
 0x46c   : > { %v1576_v23 = vsub.f32 %v12906_v62, %v1538_v20  ;;  %1732 = vadd.xlane.f32.xlu1 %v1731_v47  ;;  %v15913_v20 = vld [vmem:[#allocation28_spill] sm:$0xff] }
 0x46e   : > { %v1636_v35 = vmul.f32 1.442695, %v1576_v23 }
 0x46f   : > { %v1739_v33 = vpop.xlane.xlu1 %1738 }
 0x470   : > { %11390 = vpow2.f32 %v1636_v35 }
 0x471   : > { %11392 = vrcp.f32 %v1739_v33  ;;  %v15915_v33 = vld [vmem:[#allocation32_spill] sm:$0xff] }
 0x473   : > { %v1649_v49 = vpop.xlane.xlu1 %1648 }
 0x474   : > { %11394 = vrcp.f32 %v1649_v49  ;;  %v2958_v49 = vsel %vm653_vm2, %v15915_v33, 0 }
 0x477   : > { %v1658_v63 = vpop.xlane.xlu1 %1657 }
 0x47a   : > { %v13061_v10 = vpop.eup %11390 }
 0x47b   : > { %v11393_v25 = vpop.eup %11392  ;;  %v1661_v41 = vpop.xlane.xlu1 %1660  ;;  %v1728_v15 = vsel %vm1451_vm3, %v13061_v10, 0.0 }
 0x47c   : > { %v1803_v62 = vmul.f32 %v11393_v25, %v12914_v12  ;;  %1729 = vadd.xlane.f32.xlu0 %v1728_v15  ;;  %v15906_v12 = vld [vmem:[#allocation18_spill] sm:$0xff] }
 0x47d   : > { %2593 = vrot.lane.b32.xlu1 %v12357_v6, %s12012_s11  ;;  %v15917_v25 = vld [vmem:[#allocation26_spill] sm:$0xff] }
 0x47e   : > { %v1819_v37 = vpack.c.bf16 %v1803_v62, %v1802_v9  ;;  %v11395_v16 = vpop.eup %11394  ;;  %v15920_v9 = vld [vmem:[#allocation41_spill] sm:$0xff]  ;;  %v15921_v62 = vld [vmem:[#allocation16_spill] sm:$0xff] }
 0x47f   : > { %v13069_v45 = vpop.xlane.xlu1 %1669  ;;  %v1773_v17 = vmul.f32 %v11395_v16, %v12920_v38  ;;  %v15914_v38 = vld [vmem:[#allocation19_spill] sm:$0xff] }
 0x480   : > { %10381 = vmatmul.mubr.msk.bf16.vlgmr.msra.gmra.mrb[92].mxu1 %vm1451_vm3, %v1819_v37  ;;  %v15922_v37 = vld [vmem:[#allocation34_spill] sm:$0xff] }
 0x481   : > { %10391 = vmatpush3.bf16.xpose.msra.mxu1 %v2652_v57  ;;  %2901 = vrot.lane.b32.xlu1 %v15901_v13, %s12013_s14  ;;  %v3162_v58 = vsel %vm653_vm2, %v15922_v37, 0  ;;  %v15923_v57 = vld [vmem:[#allocation33_spill] sm:$0xff] }
 0x482   : > { %10392 = vmatprep.mubr.msk.bf16.mxu1 %vm12009_vm1, %v15900_v43  ;;  %10402 = vmatprep.subr.bf16.mxu1 %v15900_v43 }
 0x483   : > { %v13081_v32 = vpop.xlane.xlu1 %1672 }
 0x485   : > { %3003 = vrot.lane.b32.xlu1 %v15906_v12, %s12013_s14  ;;  %v1646_v5 = vpop.xlane.xlu0 %1645 }
 0x486   : > { %11396 = vrcp.f32 %v1646_v5  ;;  %v3264_v5 = vsel %vm653_vm2, %v12972_v34, 0  ;;  %v3366_v34 = vsel %vm653_vm2, %v13054_v22, 0 }
 0x487   : > { %v13085_v24 = vpop.xlane.xlu1 %1681  ;;  %11398 = vrcp.f32 %v1661_v41  ;;  %v15918_v41 = vld [vmem:[#allocation20_spill] sm:$0xff] }
 0x488   : > { %10393 = vmatmul.mubr.msk.bf16.vlgmr.msra.gmra.mrb[96].mxu1 %vm653_vm2, %v15908_v2  ;;  %11400 = vrcp.f32 %v1658_v63  ;;  %v15916_v63 = vld [vmem:[#allocation31_spill] sm:$0xff] }
 0x489   : > { %10403 = vmatpush3.bf16.xpose.msra.mxu1 %v2754_v60  ;;  %3105 = vrot.lane.b32.xlu1 %v15909_v54, %s12013_s14  ;;  %v13093_v39 = vpop.xlane.xlu0 %1693  ;;  %v15925_v60 = vld [vmem:[#allocation22_spill] sm:$0xff]  ;;  %11402 = vrcp.f32 %v13081_v32  ;;  %v15926_v32 = vld [vmem:[#allocation17_spill] sm:$0xff] }
 0x48a   : > { %10404 = vmatprep.mubr.msk.bf16.mxu1 %vm12009_vm1, %v15900_v43  ;;  %10414 = vmatprep.subr.bf16.mxu1 %v15900_v43  ;;  %11404 = vrcp.f32 %v13069_v45 }
 0x48b   : > { %v13098_v4 = vpop.xlane.xlu1 %1684 }
 0x48c   : > { %11406 = vrcp.f32 %v13098_v4 }
 0x48d   : > { %3207 = vrot.lane.b32.xlu1 %v15910_v61, %s12013_s14  ;;  %v13102_v18 = vpop.xlane.xlu0 %1696  ;;  %11408 = vrcp.f32 %v13085_v24 }
 0x48e   : > { %11410 = vrcp.f32 %v13102_v18 }
 0x48f   : > { %v1821_v21 = vpop.permute.xlu1 %1820  ;;  %11412 = vrcp.f32 %v13093_v39 }
 0x490   : > { %v11397_v31 = vpop.eup %11396  ;;  %10405 = vmatmul.mubr.msk.bf16.vlgmr.msra.gmra.mrb[100].mxu1 %vm653_vm2, %v15912_v51  ;;  %10289 = vmatpush3.bf16.msra.mxu0 %v1821_v21 }
 0x491   : > { %v1772_v42 = vmul.f32 %v11397_v31, %v12948_v48  ;;  %10415 = vmatpush3.bf16.xpose.msra.mxu1 %v2856_v52  ;;  %3309 = vrot.lane.b32.xlu1 %v15913_v20, %s12013_s14  ;;  %v11399_v56 = vpop.eup %11398  ;;  %v1915_v23 = vpop.permute.xlu0 %1914 }
 0x492   : > { %2196 = vrot.lane.b32.xlu0 %v15906_v12, %s12011_s10  ;;  %10300 = vmatprep.subr.bf16.mxu0 %v15900_v43  ;;  %v11401_v48 = vpop.eup %11400  ;;  %v1777_v35 = vmul.f32 %v11399_v56, %v12936_v55 }
 0x493   : > { %v1804_v47 = vpack.c.bf16 %v1773_v17, %v1772_v42  ;;  %10416 = vmatprep.mubr.msk.bf16.mxu1 %vm12009_vm1, %v15900_v43  ;;  %10426 = vmatprep.subr.bf16.mxu1 %v15900_v43  ;;  %v1776_v8 = vmul.f32 %v11401_v48, %v12928_v30  ;;  %v15919_v30 = vld [vmem:[#allocation42_spill] sm:$0xff] }
 0x494   : > { %v3060_v15 = vsel %vm653_vm2, %v15919_v30, 0 }
 0x495   : > { %3918 = vrot.lane.b32.xlu1 %v15914_v38, %s12014_s15  ;;  %10291 = vmatmul.mubr.msk.bf16.vlgmr.msra.gmra.mrb[32].mxu0 %vm1451_vm3, %v1804_v47  ;;  %v1806_v55 = vpack.c.bf16 %v1777_v35, %v1776_v8 }
 0x496   : > { %10301 = vmatpush3.bf16.msra.mxu0 %v1915_v23  ;;  %2290 = vrot.lane.b32.xlu0 %v15909_v54, %s12011_s10 }
 0x497   : > { %10302 = vmatprep.mubr.msk.bf16.mxu0 %vm12009_vm1, %v15900_v43  ;;  %10312 = vmatprep.subr.bf16.mxu0 %v15900_v43 }
 0x498   : > { %10417 = vmatmul.mubr.msk.bf16.vlgmr.msra.gmra.mrb[104].mxu1 %vm653_vm2, %v15916_v63 }
 0x499   : > { %10427 = vmatpush3.bf16.xpose.msra.mxu1 %v2958_v49  ;;  %4106 = vrot.lane.b32.xlu1 %v15917_v25, %s12014_s15 }
 0x49a   : > { %2384 = vrot.lane.b32.xlu0 %v15910_v61, %s12011_s10  ;;  %10428 = vmatprep.mubr.msk.bf16.mxu1 %vm12009_vm1, %v15900_v43 }
 0x49b   : > { %10438 = vmatprep.subr.bf16.mxu1 %v15900_v43 }
 0x49d   : > { %4294 = vrot.lane.b32.xlu1 %v15918_v41, %s12014_s15  ;;  %10303 = vmatmul.mubr.msk.bf16.vlgmr.msra.gmra.mrb[36].mxu0 %vm1451_vm3, %v1806_v55 }
 0x49e   : > { %2478 = vrot.lane.b32.xlu0 %v15913_v20, %s12011_s10  ;;  %10314 = vmatprep.mubr.msk.bf16.mxu0 %vm12009_vm1, %v15900_v43  ;;  %s12020_s10 = smov 40  }
 0x4a0   : > { %10429 = vmatmul.mubr.msk.bf16.vlgmr.msra.gmra.mrb[108].mxu1 %vm653_vm2, %v15920_v9 }
 0x4a1   : > { %10439 = vmatpush3.bf16.xpose.msra.mxu1 %v3060_v15  ;;  %5028 = vrot.lane.b32.xlu1 %v15921_v62, %s12015_s29 }
 0x4a2   : > { %2595 = vrot.lane.b32.xlu0 %v12357_v6, %s12013_s14  ;;  %10440 = vmatprep.mubr.msk.bf16.mxu1 %vm12009_vm1, %v15900_v43 }
 0x4a3   : > { %10450 = vmatprep.subr.bf16.mxu1 %v15900_v43 }
 0x4a5   : > { %5079 = vrot.lane.b32.xlu1 %v12377_v26, %s12015_s29 }
 0x4a6   : > { %2697 = vrot.lane.b32.xlu0 %v12377_v26, %s12013_s14 }
 0x4a8   : > { %10441 = vmatmul.mubr.msk.bf16.vlgmr.msra.gmra.mrb[112].mxu1 %vm653_vm2, %v15923_v57 }
 0x4a9   : > { %10451 = vmatpush3.bf16.xpose.msra.mxu1 %v3162_v58  ;;  %5130 = vrot.lane.b32.xlu1 %v15914_v38, %s12015_s29 }
 0x4aa   : > { %2695 = vrot.lane.b32.xlu0 %v12377_v26, %s12012_s11  ;;  %10452 = vmatprep.mubr.msk.bf16.mxu1 %vm12009_vm1, %v15900_v43 }
 0x4ab   : > { %10462 = vmatprep.subr.bf16.mxu1 %v15900_v43 }
 0x4ad   : > { %5181 = vrot.lane.b32.xlu1 %v12397_v46, %s12015_s29 }
 0x4ae   : > { %2799 = vrot.lane.b32.xlu0 %v12397_v46, %s12013_s14 }
 0x4b0   : > { %10453 = vmatmul.mubr.msk.bf16.vlgmr.msra.gmra.mrb[116].mxu1 %vm653_vm2, %v15924_v28 }
 0x4b1   : > { %10463 = vmatpush3.bf16.xpose.msra.mxu1 %v3264_v5  ;;  %5232 = vrot.lane.b32.xlu1 %v15925_v60, %s12015_s29 }
 0x4b2   : > { %2797 = vrot.lane.b32.xlu0 %v12397_v46, %s12012_s11  ;;  %10464 = vmatprep.mubr.msk.bf16.mxu1 %vm12009_vm1, %v15900_v43 }
 0x4b3   : > { %10474 = vmatprep.subr.bf16.mxu1 %v15900_v43 }
 0x4b5   : > { %5283 = vrot.lane.b32.xlu1 %v15901_v13, %s12015_s29 }
 0x4b6   : > { %2899 = vrot.lane.b32.xlu0 %v15901_v13, %s12012_s11 }
 0x4b8   : > { %10465 = vmatmul.mubr.msk.bf16.vlgmr.msra.gmra.mrb[120].mxu1 %vm653_vm2, %v12974_v7  ;;  %v11403_v7 = vpop.eup %11402 }
 0x4b9   : > { %10475 = vmatpush3.bf16.xpose.msra.mxu1 %v3366_v34  ;;  %5334 = vrot.lane.b32.xlu1 %v15917_v25, %s12015_s29  ;;  %v11405_v45 = vpop.eup %11404  ;;  %v1781_v2 = vmul.f32 %v11403_v7, %v12946_v11 }
 0x4ba   : > { %3001 = vrot.lane.b32.xlu0 %v15906_v12, %s12012_s11  ;;  %10476 = vmatprep.mubr.msk.bf16.mxu1 %vm12009_vm1, %v15900_v43  ;;  %v1780_v4 = vmul.f32 %v11405_v45, %v12942_v36  ;;  %v11407_v24 = vpop.eup %11406 }
 0x4bb   : > { %10486 = vmatprep.subr.bf16.mxu1 %v15900_v43  ;;  %v11409_v11 = vpop.eup %11408  ;;  %v1785_v36 = vmul.f32 %v11407_v24, %v12960_v59  ;;  %v15927_v59 = vld [vmem:[#allocation23_spill] sm:$0xff] }
 0x4bc   : > { %v1784_v31 = vmul.f32 %v11409_v11, %v12952_v44  ;;  %v11411_v35 = vpop.eup %11410  ;;  %v9803_v11 = vld [vmem:[#allocation7 + $0x8] sm:$0xff]  }
 0x4bd   : > { %5385 = vrot.lane.b32.xlu1 %v15906_v12, %s12015_s29  ;;  %v11413_v8 = vpop.eup %11412  ;;  %v1789_v55 = vmul.f32 %v11411_v35, %v12964_v27 }
 0x4be   : > { %3103 = vrot.lane.b32.xlu0 %v15909_v54, %s12012_s11  ;;  %v1810_v53 = vpack.c.bf16 %v1785_v36, %v1784_v31  ;;  %v1788_v30 = vmul.f32 %v11413_v8, %v12956_v14 }
 0x4c0   : > { %10477 = vmatmul.mubr.msk.bf16.vlgmr.msra.gmra.mrb[124].mxu1 %vm653_vm2, %v13074_v0  ;;  %v1706_v22 = vpop.xlane.xlu1 %1705  ;;  %v1808_v0 = vpack.c.bf16 %v1781_v2, %v1780_v4  ;;  %v1812_v58 = vpack.c.bf16 %v1789_v55, %v1788_v30 }
 0x4c1   : > { %5436 = vrot.lane.b32.xlu1 %v15926_v32, %s12015_s29  ;;  %10488 = vmatprep.mubr.msk.bf16.mxu1 %vm12009_vm1, %v15900_v43 }
 0x4c2   : > { %3205 = vrot.lane.b32.xlu0 %v15910_v61, %s12012_s11  ;;  %v1709_v44 = vpop.xlane.xlu0 %1708 }
 0x4c3   : > { %11414 = vrcp.f32 %v1709_v44 }
 0x4c4   : > { %v2009_v16 = vpop.permute.xlu1 %2008  ;;  %11416 = vrcp.f32 %v1706_v22 }
 0x4c5   : > { %5487 = vrot.lane.b32.xlu1 %v15909_v54, %s12015_s29  ;;  %10313 = vmatpush3.bf16.msra.mxu0 %v2009_v16 }
 0x4c6   : > { %3307 = vrot.lane.b32.xlu0 %v15913_v20, %s12012_s11  ;;  %10324 = vmatprep.subr.bf16.mxu0 %v15900_v43  ;;  %v1718_v42 = vpop.xlane.xlu0 %1717 }
 0x4c8   : > { %v2103_v21 = vpop.permute.xlu1 %2102  ;;  %10315 = vmatmul.mubr.msk.bf16.vlgmr.msra.gmra.mrb[40].mxu0 %vm1451_vm3, %v1808_v0 }
 0x4c9   : > { %5538 = vrot.lane.b32.xlu1 %v15918_v41, %s12015_s29  ;;  %10325 = vmatpush3.bf16.msra.mxu0 %v2103_v21 }
 0x4ca   : > { %3824 = vrot.lane.b32.xlu0 %v15921_v62, %s12014_s15  ;;  %10326 = vmatprep.mubr.msk.bf16.mxu0 %vm12009_vm1, %v15900_v43  ;;  %v1721_v23 = vpop.xlane.xlu0 %1720 }
 0x4cb   : > { %10336 = vmatprep.subr.bf16.mxu0 %v15900_v43  ;;  %11418 = vrcp.f32 %v1721_v23 }
 0x4cc   : > { %11420 = vrcp.f32 %v1718_v42 }
 0x4cd   : > { %5589 = vrot.lane.b32.xlu1 %v15910_v61, %s12015_s29  ;;  %v11415_v57 = vpop.eup %11414 }
 0x4ce   : > { %4012 = vrot.lane.b32.xlu0 %v15925_v60, %s12014_s15  ;;  %v11417_v34 = vpop.eup %11416  ;;  %v1793_v7 = vmul.f32 %v11415_v57, %v12995_v29 }
 0x4cf   : > { %v1792_v22 = vmul.f32 %v11417_v34, %v12991_v40 }
 0x4d0   : > { %10327 = vmatmul.mubr.msk.bf16.vlgmr.msra.gmra.mrb[44].mxu0 %vm1451_vm3, %v1810_v53 }
 0x4d1   : > { %5640 = vrot.lane.b32.xlu1 %v15927_v59, %s12015_s29  ;;  %10338 = vmatprep.mubr.msk.bf16.mxu0 %vm12009_vm1, %v15900_v43  ;;  %v1814_v0 = vpack.c.bf16 %v1793_v7, %v1792_v22 }
 0x4d2   : > { %4200 = vrot.lane.b32.xlu0 %v15926_v32, %s12014_s15 }
 0x4d5   : > { %v11419_v24 = vpop.eup %11418 }
 0x4d6   : > { %4388 = vrot.lane.b32.xlu0 %v15927_v59, %s12014_s15  ;;  %v11421_v31 = vpop.eup %11420  ;;  %v1797_v40 = vmul.f32 %v11419_v24, %v13012_v50 }
 0x4d7   : > { %v1796_v53 = vmul.f32 %v11421_v31, %v12999_v19 }
 0x4da   : > { %4482 = vrot.lane.b32.xlu0 %v12415_v3, %s12014_s15 }
 0x4de   : > { %4977 = vrot.lane.b32.xlu0 %v12357_v6, %s12015_s29 }
 0x4e2   : > { %4975 = vrot.lane.b32.xlu0 %v12357_v6, %s12016_s12 }
 0x4e6   : > { %5026 = vrot.lane.b32.xlu0 %v15921_v62, %s12016_s12 }
 0x4ea   : > { %5077 = vrot.lane.b32.xlu0 %v12377_v26, %s12016_s12 }
 0x4ee   : > { %5128 = vrot.lane.b32.xlu0 %v15914_v38, %s12016_s12 }
 0x4f2   : > { %5179 = vrot.lane.b32.xlu0 %v12397_v46, %s12016_s12 }
 0x4f6   : > { %5230 = vrot.lane.b32.xlu0 %v15925_v60, %s12016_s12 }
 0x4f9   : > { %v1733_v45 = vpop.xlane.xlu1 %1732 }
 0x4fa   : > { %5281 = vrot.lane.b32.xlu0 %v15901_v13, %s12016_s12 }
 0x4fd   : > { %v13266_v52 = vpop.f32.mrb[64].mxu1  ;;  %v2594_v7 = vpop.permute.xlu1 %2593 }
 0x4fe   : > { %15928 = vst [vmem:[#allocation35_spill] sm:$0xff] %v13266_v52  ;;  %5332 = vrot.lane.b32.xlu0 %v15917_v25, %s12016_s12  ;;  %v10298_v51 = vpop.f32.mrb[65].mxu1 }
 0x4ff   : > { %v13271_v17 = vpop.f32.mrb[66].mxu1 }
 0x500   : > { %15929 = vst [vmem:[#allocation36_spill] sm:$0xff] %v13271_v17  ;;  %v10299_v56 = vpop.f32.mrb[67].mxu1 }
 0x501   : > { %v1816_v56 = vpack.c.bf16 %v1797_v40, %v1796_v53  ;;  %v2902_v53 = vpop.permute.xlu1 %2901 }
 0x502   : > { %5383 = vrot.lane.b32.xlu0 %v15906_v12, %s12016_s12 }
 0x506   : > { %5434 = vrot.lane.b32.xlu0 %v15926_v32, %s12016_s12 }
 0x507   : > { %v13280_v48 = vpop.f32.mrb[68].mxu1 }
 0x508   : > { %15930 = vst [vmem:[#allocation37_spill] sm:$0xff] %v13280_v48  ;;  %v10310_v18 = vpop.f32.mrb[69].mxu1 }
 0x509   : > { %v13282_v33 = vpop.f32.mrb[70].mxu1  ;;  %v1730_v63 = vpop.xlane.xlu0 %1729 }
 0x50a   : > { %15931 = vst [vmem:[#allocation38_spill] sm:$0xff] %v13282_v33  ;;  %v10311_v39 = vpop.f32.mrb[71].mxu1  ;;  %5485 = vrot.lane.b32.xlu0 %v15909_v54, %s12016_s12  ;;  %11422 = vrcp.f32 %v1730_v63 }
 0x50b   : > { %11424 = vrcp.f32 %v1733_v45 }
 0x50d   : > { %v2197_v15 = vpop.permute.xlu0 %2196 }
 0x50e   : > { %5536 = vrot.lane.b32.xlu0 %v15918_v41, %s12016_s12  ;;  %10337 = vmatpush3.bf16.msra.mxu0 %v2197_v15 }
 0x50f   : > { %v13292_v9 = vpop.f32.mrb[72].mxu1  ;;  %10348 = vmatprep.subr.bf16.mxu0 %v15900_v43 }
 0x510   : > { %15932 = vst [vmem:[#allocation30_spill] sm:$0xff] %v13292_v9  ;;  %v10322_v37 = vpop.f32.mrb[73].mxu1 }
 0x511   : > { %v13295_v5 = vpop.f32.mrb[74].mxu1  ;;  %10339 = vmatmul.mubr.msk.bf16.vlgmr.msra.gmra.mrb[48].mxu0 %vm1451_vm3, %v1812_v58  ;;  %v2291_v14 = vpop.permute.xlu0 %2290 }
 0x512   : > { %15933 = vst [vmem:[#allocation29_spill] sm:$0xff] %v13295_v5  ;;  %v10323_v28 = vpop.f32.mrb[75].mxu1  ;;  %5587 = vrot.lane.b32.xlu0 %v15910_v61, %s12016_s12  ;;  %10349 = vmatpush3.bf16.msra.mxu0 %v2291_v14 }
 0x513   : > { %10350 = vmatprep.mubr.msk.bf16.mxu0 %vm12009_vm1, %v15900_v43  ;;  %10360 = vmatprep.subr.bf16.mxu0 %v15900_v43 }
 0x514   : > { %v11423_v23 = vpop.eup %11422 }
 0x515   : > { %v2385_v2 = vpop.permute.xlu0 %2384  ;;  %v11425_v50 = vpop.eup %11424  ;;  %v1800_v19 = vmul.f32 %v11423_v23, %v13061_v10 }
 0x516   : > { %v1801_v8 = vmul.f32 %v11425_v50, %v13056_v1  ;;  %v3004_v23 = vpop.permute.xlu1 %3003 }
 0x517   : > { %v13307_v4 = vpop.f32.mrb[76].mxu1 }
 0x518   : > { %15934 = vst [vmem:[#allocation40_spill] sm:$0xff] %v13307_v4  ;;  %v10334_v16 = vpop.f32.mrb[77].mxu1  ;;  %v1818_v15 = vpack.c.bf16 %v1801_v8, %v1800_v19 }
 0x519   : > { %v13309_v21 = vpop.f32.mrb[78].mxu1  ;;  %10351 = vmatmul.mubr.msk.bf16.vlgmr.msra.gmra.mrb[52].mxu0 %vm1451_vm3, %v1814_v0  ;;  %v2479_v29 = vpop.permute.xlu0 %2478 }
 0x51a   : > { %15935 = vst [vmem:[#allocation39_spill] sm:$0xff] %v13309_v21  ;;  %v10335_v36 = vpop.f32.mrb[79].mxu1  ;;  %10361 = vmatpush3.bf16.msra.mxu0 %v2385_v2  ;;  %10362 = vmatprep.mubr.msk.bf16.mxu0 %vm12009_vm1, %v15900_v43 }
 0x51b   : > { %10372 = vmatprep.subr.bf16.mxu0 %v15900_v43 }
 0x51d   : > { %v2596_v44 = vpop.permute.xlu0 %2595 }
 0x51e   : > { %v2601_v14 = vsel %vm653_vm2, %v2596_v44, 0 }
 0x51f   : > { %v13319_v51 = vpop.f32.mrb[80].mxu1 }
 0x520   : > { %15936 = vst [vmem:[#allocation28_spill] sm:$0xff] %v13319_v51  ;;  %v10346_v42 = vpop.f32.mrb[81].mxu1 }
 0x521   : > { %v13321_v18 = vpop.f32.mrb[82].mxu1  ;;  %10363 = vmatmul.mubr.msk.bf16.vlgmr.msra.gmra.mrb[56].mxu0 %vm1451_vm3, %v1816_v56  ;;  %v2698_v63 = vpop.permute.xlu0 %2697  ;;  %v2907_v42 = vsel %vm653_vm2, %v2902_v53, 0 }
 0x522   : > { %15937 = vst [vmem:[#allocation32_spill] sm:$0xff] %v13321_v18  ;;  %v10347_v39 = vpop.f32.mrb[83].mxu1  ;;  %10373 = vmatpush3.bf16.msra.mxu0 %v2479_v29  ;;  %10374 = vmatprep.mubr.msk.bf16.mxu0 %vm12009_vm1, %v15900_v43  ;;  %v2703_v16 = vsel %vm653_vm2, %v2698_v63, 0  ;;  %v3009_v63 = vsel %vm653_vm2, %v3004_v23, 0 }
 0x523   : > { %10384 = vmatprep.subr.bf16.mxu0 %v15900_v43  ;;  %v3106_v39 = vpop.permute.xlu1 %3105 }
 0x524   : > { %v3111_v50 = vsel %vm653_vm2, %v3106_v39, 0 }
 0x525   : > { %v2696_v55 = vpop.permute.xlu0 %2695 }
 0x527   : > { %v13331_v30 = vpop.f32.mrb[84].mxu1 }
 0x528   : > { %15938 = vst [vmem:[#allocation31_spill] sm:$0xff] %v13331_v30  ;;  %v10358_v37 = vpop.f32.mrb[85].mxu1 }
 0x529   : > { %v13333_v58 = vpop.f32.mrb[86].mxu1  ;;  %10375 = vmatmul.mubr.msk.bf16.vlgmr.msra.gmra.mrb[60].mxu0 %vm1451_vm3, %v1818_v15  ;;  %v2800_v57 = vpop.permute.xlu0 %2799 }
 0x52a   : > { %15939 = vst [vmem:[#allocation42_spill] sm:$0xff] %v13333_v58  ;;  %v10359_v10 = vpop.f32.mrb[87].mxu1  ;;  %10386 = vmatprep.mubr.msk.bf16.mxu0 %vm12009_vm1, %v15900_v43  ;;  %v2805_v31 = vsel %vm653_vm2, %v2800_v57, 0  ;;  %v3208_v57 = vpop.permute.xlu1 %3207 }
 0x52b   : > { %10385 = vmatpush3.bf16.xpose.msra.mxu0 %v2601_v14  ;;  %v3213_v14 = vsel %vm653_vm2, %v3208_v57, 0 }
 0x52c   : > { %10396 = vmatprep.subr.bf16.mxu0 %v15900_v43 }
 0x52d   : > { %v2798_v1 = vpop.permute.xlu0 %2797 }
 0x52f   : > { %v13342_v34 = vpop.f32.mrb[88].mxu1 }
 0x530   : > { %15940 = vst [vmem:[#allocation41_spill] sm:$0xff] %v13342_v34  ;;  %v10370_v22 = vpop.f32.mrb[89].mxu1 }
 0x531   : > { %v13344_v45 = vpop.f32.mrb[90].mxu1  ;;  %v2900_v2 = vpop.permute.xlu0 %2899 }
 0x532   : > { %15941 = vst [vmem:[#allocation34_spill] sm:$0xff] %v13344_v45  ;;  %10387 = vmatmul.mubr.msk.bf16.vlgmr.msra.gmra.mrb[64].mxu0 %vm653_vm2, %v2594_v7  ;;  %v10371_v24 = vpop.f32.mrb[91].mxu1 }
 0x533   : > { %10397 = vmatpush3.bf16.xpose.msra.mxu0 %v2703_v16  ;;  %10398 = vmatprep.mubr.msk.bf16.mxu0 %vm12009_vm1, %v15900_v43 }
 0x534   : > { %10408 = vmatprep.subr.bf16.mxu0 %v15900_v43 }
 0x535   : > { %v3002_v29 = vpop.permute.xlu0 %3001 }
 0x539   : > { %v3104_v36 = vpop.permute.xlu0 %3103 }
 0x53a   : > { %10399 = vmatmul.mubr.msk.bf16.vlgmr.msra.gmra.mrb[68].mxu0 %vm653_vm2, %v2696_v55 }
 0x53b   : > { %10409 = vmatpush3.bf16.xpose.msra.mxu0 %v2805_v31  ;;  %10410 = vmatprep.mubr.msk.bf16.mxu0 %vm12009_vm1, %v15900_v43 }
 0x53c   : > { %10420 = vmatprep.subr.bf16.mxu0 %v15900_v43 }
 0x53d   : > { %v3206_v40 = vpop.permute.xlu0 %3205 }
 0x541   : > { %v3308_v44 = vpop.permute.xlu0 %3307 }
 0x542   : > { %10411 = vmatmul.mubr.msk.bf16.vlgmr.msra.gmra.mrb[72].mxu0 %vm653_vm2, %v2798_v1 }
 0x543   : > { %10421 = vmatpush3.bf16.xpose.msra.mxu0 %v2907_v42  ;;  %10422 = vmatprep.mubr.msk.bf16.mxu0 %vm12009_vm1, %v15900_v43 }
 0x544   : > { %10432 = vmatprep.subr.bf16.mxu0 %v15900_v43 }
 0x545   : > { %v3825_v56 = vpop.permute.xlu0 %3824 }
 0x546   : > { %10487 = vmatpush3.bf16.msra.mxu1 %v3825_v56 }
 0x547   : > { %10498 = vmatprep.subr.bf16.mxu1 %v15900_v43 }
 0x54a   : > { %10423 = vmatmul.mubr.msk.bf16.vlgmr.msra.gmra.mrb[76].mxu0 %vm653_vm2, %v2900_v2  ;;  %v3310_v2 = vpop.permute.xlu1 %3309 }
 0x54b   : > { %10433 = vmatpush3.bf16.xpose.msra.mxu0 %v3009_v63  ;;  %10434 = vmatprep.mubr.msk.bf16.mxu0 %vm12009_vm1, %v15900_v43  ;;  %v3315_v16 = vsel %vm653_vm2, %v3310_v2, 0 }
 0x54c   : > { %10444 = vmatprep.subr.bf16.mxu0 %v15900_v43 }
 0x552   : > { %10435 = vmatmul.mubr.msk.bf16.vlgmr.msra.gmra.mrb[80].mxu0 %vm653_vm2, %v3002_v29 }
 0x553   : > { %v13371_v19 = vpop.f32.mrb[92].mxu1  ;;  %10445 = vmatpush3.bf16.xpose.msra.mxu0 %v3111_v50  ;;  %10446 = vmatprep.mubr.msk.bf16.mxu0 %vm12009_vm1, %v15900_v43 }
 0x554   : > { %15942 = vst [vmem:[#allocation33_spill] sm:$0xff] %v13371_v19  ;;  %v10382_v8 = vpop.f32.mrb[93].mxu1  ;;  %10456 = vmatprep.subr.bf16.mxu0 %v15900_v43 }
 0x555   : > { %v13375_v55 = vpop.f32.mrb[94].mxu1 }
 0x556   : > { %15943 = vst [vmem:[#allocation43_spill] sm:$0xff] %v13375_v55  ;;  %v10383_v37 = vpop.f32.mrb[95].mxu1 }
 0x55a   : > { %10447 = vmatmul.mubr.msk.bf16.vlgmr.msra.gmra.mrb[84].mxu0 %vm653_vm2, %v3104_v36 }
 0x55b   : > { %v13382_v10 = vpop.f32.mrb[96].mxu1  ;;  %10457 = vmatpush3.bf16.xpose.msra.mxu0 %v3213_v14  ;;  %10458 = vmatprep.mubr.msk.bf16.mxu0 %vm12009_vm1, %v15900_v43 }
 0x55c   : > { %v10394_v1 = vpop.f32.mrb[97].mxu1  ;;  %10468 = vmatprep.subr.bf16.mxu0 %v15900_v43 }
 0x55d   : > { %v13386_v7 = vpop.f32.mrb[98].mxu1 }
 0x55e   : > { %v10395_v22 = vpop.f32.mrb[99].mxu1 }
 0x562   : > { %10459 = vmatmul.mubr.msk.bf16.vlgmr.msra.gmra.mrb[88].mxu0 %vm653_vm2, %v3206_v40 }
 0x563   : > { %v13391_v24 = vpop.f32.mrb[100].mxu1  ;;  %10469 = vmatpush3.bf16.xpose.msra.mxu0 %v3315_v16  ;;  %10470 = vmatprep.mubr.msk.bf16.mxu0 %vm12009_vm1, %v15900_v43 }
 0x564   : > { %v10406_v29 = vpop.f32.mrb[101].mxu1  ;;  %10480 = vmatprep.subr.bf16.mxu0 %v15900_v43 }
 0x565   : > { %v13395_v36 = vpop.f32.mrb[102].mxu1 }
 0x566   : > { %v10407_v31 = vpop.f32.mrb[103].mxu1 }
 0x568   : > { %v13398_v53 = vpop.f32.mrb[32].mxu0 }
 0x569   : > { %15944 = vst [vmem:[#allocation44_spill] sm:$0xff] %v13398_v53  ;;  %v10292_v42 = vpop.f32.mrb[33].mxu0 }
 0x56a   : > { %v13400_v56 = vpop.f32.mrb[34].mxu0  ;;  %10471 = vmatmul.mubr.msk.bf16.vlgmr.msra.gmra.mrb[92].mxu0 %vm653_vm2, %v3308_v44 }
 0x56b   : > { %15945 = vst [vmem:[#allocation45_spill] sm:$0xff] %v13400_v56  ;;  %v13405_v23 = vpop.f32.mrb[104].mxu1  ;;  %v10293_v63 = vpop.f32.mrb[35].mxu0  ;;  %10482 = vmatprep.mubr.msk.bf16.mxu0 %vm12009_vm1, %v15900_v43 }
 0x56c   : > { %v10418_v39 = vpop.f32.mrb[105].mxu1 }
 0x56d   : > { %v13409_v50 = vpop.f32.mrb[106].mxu1 }
 0x56e   : > { %v10419_v8 = vpop.f32.mrb[107].mxu1 }
 0x570   : > { %v13411_v37 = vpop.f32.mrb[36].mxu0 }
 0x571   : > { %15946 = vst [vmem:[#allocation46_spill] sm:$0xff] %v13411_v37  ;;  %v10304_v57 = vpop.f32.mrb[37].mxu0 }
 0x572   : > { %v13413_v14 = vpop.f32.mrb[38].mxu0 }
 0x573   : > { %15947 = vst [vmem:[#allocation47_spill] sm:$0xff] %v13413_v14  ;;  %v13417_v1 = vpop.f32.mrb[108].mxu1  ;;  %v10305_v22 = vpop.f32.mrb[39].mxu0 }
 0x574   : > { %v10430_v2 = vpop.f32.mrb[109].mxu1 }
 0x575   : > { %v13419_v16 = vpop.f32.mrb[110].mxu1 }
 0x576   : > { %v10431_v29 = vpop.f32.mrb[111].mxu1 }
 0x577   : > { %v13433_v29 = vunpack.c.l.bf16 %v9803_v11 }
 0x57b   : > { %v13421_v31 = vpop.f32.mrb[112].mxu1 }
 0x57c   : > { %v10442_v42 = vpop.f32.mrb[113].mxu1 }
 0x57d   : > { %v13423_v63 = vpop.f32.mrb[114].mxu1 }
 0x57e   : > { %v10443_v39 = vpop.f32.mrb[115].mxu1 }
 0x583   : > { %v13425_v8 = vpop.f32.mrb[116].mxu1 }
 0x584   : > { %v10454_v57 = vpop.f32.mrb[117].mxu1 }
 0x585   : > { %v13427_v15 = vpop.f32.mrb[118].mxu1 }
 0x586   : > { %v10455_v0 = vpop.f32.mrb[119].mxu1 }
 0x58b   : > { %v13429_v28 = vpop.f32.mrb[120].mxu1 }
 0x58c   : > { %v10466_v35 = vpop.f32.mrb[121].mxu1 }
 0x58d   : > { %v13431_v22 = vpop.f32.mrb[122].mxu1 }
 0x58e   : > { %v10467_v2 = vpop.f32.mrb[123].mxu1 }
 0x593   : > { %v3402_v27 = vpop.f32.mrb[124].mxu1 }
 0x594   : > { %v13436_v42 = vadd.f32 %v13433_v29, %v3402_v27  ;;  %v10478_v39 = vpop.f32.mrb[125].mxu1 }
 0x595   : > { %v13438_v49 = vpop.f32.mrb[126].mxu1 }
 0x596   : > { %v10479_v57 = vpop.f32.mrb[127].mxu1 }
 0x59b   : > { %v13440_v44 = vpop.f32.mrb[40].mxu0 }
 0x59c   : > { %15948 = vst [vmem:[#allocation48_spill] sm:$0xff] %v13440_v44  ;;  %v10316_v0 = vpop.f32.mrb[41].mxu0 }
 0x59d   : > { %v13442_v47 = vpop.f32.mrb[42].mxu0 }
 0x59e   : > { %15949 = vst [vmem:[#allocation49_spill] sm:$0xff] %v13442_v47  ;;  %v10317_v2 = vpop.f32.mrb[43].mxu0 }
 0x5a3   : > { %v13446_v40 = vpop.f32.mrb[44].mxu0 }
 0x5a4   : > { %15950 = vst [vmem:[#allocation50_spill] sm:$0xff] %v13446_v40  ;;  %v10328_v19 = vpop.f32.mrb[45].mxu0 }
 0x5a5   : > { %v13448_v55 = vpop.f32.mrb[46].mxu0 }
 0x5a6   : > { %15951 = vst [vmem:[#allocation51_spill] sm:$0xff] %v13448_v55  ;;  %v10329_v39 = vpop.f32.mrb[47].mxu0 }
 0x5e4   : > { %v13452_v34 = vpop.f32.mrb[48].mxu0 }
 0x5e5   : > { %15952 = vst [vmem:[#allocation52_spill] sm:$0xff] %v13452_v34  ;;  %v10340_v57 = vpop.f32.mrb[49].mxu0 }
 0x5e6   : > { %v13454_v45 = vpop.f32.mrb[50].mxu0 }
 0x5e7   : > { %15953 = vst [vmem:[#allocation53_spill] sm:$0xff] %v13454_v45  ;;  %v10341_v30 = vpop.f32.mrb[51].mxu0 }
 0x5ec   : > { %v13458_v35 = vpop.f32.mrb[52].mxu0 }
 0x5ed   : > { %15954 = vst [vmem:[#allocation54_spill] sm:$0xff] %v13458_v35  ;;  %v10352_v2 = vpop.f32.mrb[53].mxu0 }
 0x5ee   : > { %v13460_v58 = vpop.f32.mrb[54].mxu0  ;;  %v13488_v2 = vadd.f32 %v13433_v29, %v13382_v10 }
 0x5ef   : > { %15955 = vst [vmem:[#allocation55_spill] sm:$0xff] %v13460_v58  ;;  %v10353_v51 = vpop.f32.mrb[55].mxu0 }
 0x5f0   : > { %v13476_v51 = vunpack.c.h.bf16 %v9803_v11 }
 0x5f4   : > { %v13464_v27 = vpop.f32.mrb[56].mxu0 }
 0x5f5   : > { %15956 = vst [vmem:[#allocation56_spill] sm:$0xff] %v13464_v27  ;;  %v10364_v39 = vpop.f32.mrb[57].mxu0 }
 0x5f6   : > { %v13466_v18 = vpop.f32.mrb[58].mxu0 }
 0x5f7   : > { %15957 = vst [vmem:[#allocation57_spill] sm:$0xff] %v13466_v18  ;;  %v10365_v4 = vpop.f32.mrb[59].mxu0 }
 0x5fc   : > { %v13470_v0 = vpop.f32.mrb[60].mxu0 }
 0x5fd   : > { %15958 = vst [vmem:[#allocation58_spill] sm:$0xff] %v13470_v0  ;;  %v10376_v30 = vpop.f32.mrb[61].mxu0 }
 0x5fe   : > { %v13472_v34 = vpop.f32.mrb[62].mxu0 }
 0x5ff   : > { %15959 = vst [vmem:[#allocation59_spill] sm:$0xff] %v13472_v34  ;;  %v10377_v45 = vpop.f32.mrb[63].mxu0 }
 0x605   : > { %v2637_v19 = vpop.f32.mrb[64].mxu0 }
 0x606   : > { %v13479_v39 = vadd.f32 %v13433_v29, %v2637_v19  ;;  %v10388_v35 = vpop.f32.mrb[65].mxu0 }
 0x607   : > { %v2640_v58 = vpop.f32.mrb[66].mxu0 }
 0x608   : > { %v13482_v57 = vadd.f32 %v13476_v51, %v2640_v58  ;;  %v10389_v4 = vpop.f32.mrb[67].mxu0  ;;  %v3409_v30 = vsel %vm1451_vm3, %v13479_v39, -inf  ;;  %v3415_v58 = vsel %vm1451_vm3, %v13488_v2, -inf }
 0x609   : > { %3410 = vmax.xlane.f32.xlu0 %v3409_v30  ;;  %v13499_v30 = vadd.f32 %v13476_v51, %v13386_v7  ;;  %v13514_v7 = vadd.f32 %v13433_v29, %v13391_v24 }
 0x60a   : > { %v3412_v11 = vsel %vm1451_vm3, %v13482_v57, -inf }
 0x60b   : > { %3413 = vmax.xlane.f32.xlu1 %v3412_v11  ;;  %v3427_v24 = vsel %vm1451_vm3, %v13514_v7, -inf }
 0x60d   : > { %v2739_v45 = vpop.f32.mrb[68].mxu0 }
 0x60e   : > { %v13493_v35 = vadd.f32 %v13433_v29, %v2739_v45  ;;  %v10400_v19 = vpop.f32.mrb[69].mxu0  ;;  %v13508_v45 = vadd.f32 %v13476_v51, %v13395_v36 }
 0x60f   : > { %3416 = vmax.xlane.f32.xlu1 %v3415_v58  ;;  %v2742_v4 = vpop.f32.mrb[70].mxu0  ;;  %v3418_v58 = vsel %vm1451_vm3, %v13499_v30, -inf }
 0x610   : > { %v13502_v10 = vadd.f32 %v13476_v51, %v2742_v4  ;;  %v10401_v0 = vpop.f32.mrb[71].mxu0  ;;  %v3421_v11 = vsel %vm1451_vm3, %v13493_v35, -inf }
 0x611   : > { %3422 = vmax.xlane.f32.xlu0 %v3421_v11  ;;  %v3430_v11 = vsel %vm1451_vm3, %v13508_v45, -inf }
 0x612   : > { %v3424_v19 = vsel %vm1451_vm3, %v13502_v10, -inf }
 0x613   : > { %3425 = vmax.xlane.f32.xlu1 %v3424_v19 }
 0x615   : > { %3419 = vmax.xlane.f32.xlu0 %v3418_v58  ;;  %v2841_v0 = vpop.f32.mrb[72].mxu0  ;;  %v13530_v58 = vadd.f32 %v13476_v51, %v13409_v50 }
 0x616   : > { %v10412_v4 = vpop.f32.mrb[73].mxu0  ;;  %v13521_v34 = vadd.f32 %v13433_v29, %v2841_v0  ;;  %v13536_v0 = vadd.f32 %v13433_v29, %v13405_v23 }
 0x617   : > { %3431 = vmax.xlane.f32.xlu1 %v3430_v11  ;;  %v2844_v36 = vpop.f32.mrb[74].mxu0 }
 0x618   : > { %v13524_v19 = vadd.f32 %v13476_v51, %v2844_v36  ;;  %v10413_v27 = vpop.f32.mrb[75].mxu0  ;;  %v3433_v11 = vsel %vm1451_vm3, %v13521_v34, -inf  ;;  %v3439_v23 = vsel %vm1451_vm3, %v13536_v0, -inf }
 0x619   : > { %3428 = vmax.xlane.f32.xlu0 %v3427_v24  ;;  %v3442_v24 = vsel %vm1451_vm3, %v13530_v58, -inf }
 0x61a   : > { %v3436_v4 = vsel %vm1451_vm3, %v13524_v19, -inf }
 0x61b   : > { %3437 = vmax.xlane.f32.xlu1 %v3436_v4 }
 0x61d   : > { %3434 = vmax.xlane.f32.xlu0 %v3433_v11  ;;  %v2943_v27 = vpop.f32.mrb[76].mxu0  ;;  %v13552_v11 = vadd.f32 %v13476_v51, %v13419_v16 }
 0x61e   : > { %v10424_v36 = vpop.f32.mrb[77].mxu0  ;;  %v13543_v18 = vadd.f32 %v13433_v29, %v2943_v27  ;;  %v13558_v27 = vadd.f32 %v13433_v29, %v13417_v1 }
 0x61f   : > { %3443 = vmax.xlane.f32.xlu1 %v3442_v24  ;;  %v2946_v50 = vpop.f32.mrb[78].mxu0 }
 0x620   : > { %v13546_v4 = vadd.f32 %v13476_v51, %v2946_v50  ;;  %v10425_v21 = vpop.f32.mrb[79].mxu0  ;;  %v3445_v24 = vsel %vm1451_vm3, %v13543_v18, -inf  ;;  %v3451_v1 = vsel %vm1451_vm3, %v13558_v27, -inf }
 0x621   : > { %3440 = vmax.xlane.f32.xlu0 %v3439_v23  ;;  %v3454_v23 = vsel %vm1451_vm3, %v13552_v11, -inf }
 0x622   : > { %v3448_v36 = vsel %vm1451_vm3, %v13546_v4, -inf }
 0x623   : > { %3449 = vmax.xlane.f32.xlu1 %v3448_v36 }
 0x625   : > { %3446 = vmax.xlane.f32.xlu0 %v3445_v24  ;;  %v3045_v21 = vpop.f32.mrb[80].mxu0  ;;  %v13574_v24 = vadd.f32 %v13476_v51, %v13423_v63 }
 0x626   : > { %v10436_v50 = vpop.f32.mrb[81].mxu0  ;;  %v13565_v40 = vadd.f32 %v13433_v29, %v3045_v21  ;;  %v13582_v21 = vadd.f32 %v13433_v29, %v13421_v31 }
 0x627   : > { %3455 = vmax.xlane.f32.xlu1 %v3454_v23  ;;  %v3048_v16 = vpop.f32.mrb[82].mxu0  ;;  %v13578_v23 = vpop.permute.xlu0 %4012  ;;  %v3466_v63 = vsel %vm1451_vm3, %v13574_v24, -inf }
 0x628   : > { %v13568_v36 = vadd.f32 %v13476_v51, %v3048_v16  ;;  %v10437_v55 = vpop.f32.mrb[83].mxu0  ;;  %v3463_v31 = vsel %vm1451_vm3, %v13582_v21, -inf }
 0x629   : > { %3452 = vmax.xlane.f32.xlu0 %v3451_v1  ;;  %v3457_v55 = vsel %vm1451_vm3, %v13565_v40, -inf }
 0x62a   : > { %v3460_v50 = vsel %vm1451_vm3, %v13568_v36, -inf }
 0x62b   : > { %3461 = vmax.xlane.f32.xlu1 %v3460_v50  ;;  %v13596_v47 = vpop.permute.xlu0 %4200 }
 0x62d   : > { %3458 = vmax.xlane.f32.xlu0 %v3457_v55  ;;  %v3147_v16 = vpop.f32.mrb[84].mxu0  ;;  %v13600_v55 = vadd.f32 %v13476_v51, %v13427_v15 }
 0x62e   : > { %v10448_v1 = vpop.f32.mrb[85].mxu0  ;;  %v13589_v5 = vadd.f32 %v13433_v29, %v3147_v16  ;;  %v13606_v16 = vadd.f32 %v13433_v29, %v13425_v8 }
 0x62f   : > { %3467 = vmax.xlane.f32.xlu1 %v3466_v63  ;;  %v3150_v9 = vpop.f32.mrb[86].mxu0  ;;  %v13612_v48 = vpop.permute.xlu0 %4388 }
 0x630   : > { %v13592_v50 = vadd.f32 %v13476_v51, %v3150_v9  ;;  %v10449_v44 = vpop.f32.mrb[87].mxu0  ;;  %v3469_v9 = vsel %vm1451_vm3, %v13589_v5, -inf  ;;  %v3475_v37 = vsel %vm1451_vm3, %v13606_v16, -inf }
 0x631   : > { %3464 = vmax.xlane.f32.xlu0 %v3463_v31  ;;  %v3478_v31 = vsel %vm1451_vm3, %v13600_v55, -inf }
 0x632   : > { %v3472_v1 = vsel %vm1451_vm3, %v13592_v50, -inf }
 0x633   : > { %3473 = vmax.xlane.f32.xlu1 %v3472_v1 }
 0x635   : > { %3470 = vmax.xlane.f32.xlu0 %v3469_v9  ;;  %v3249_v44 = vpop.f32.mrb[88].mxu0  ;;  %v13622_v9 = vpop.permute.xlu1 %3918 }
 0x636   : > { %v10460_v63 = vpop.f32.mrb[89].mxu0  ;;  %v13615_v33 = vadd.f32 %v13433_v29, %v3249_v44  ;;  %v13632_v44 = vadd.f32 %v13433_v29, %v13429_v28 }
 0x637   : > { %3479 = vmax.xlane.f32.xlu1 %v3478_v31  ;;  %v3252_v15 = vpop.f32.mrb[90].mxu0  ;;  %v13626_v63 = vadd.f32 %v13476_v51, %v13431_v22 }
 0x638   : > { %v13618_v1 = vadd.f32 %v13476_v51, %v3252_v15  ;;  %v10461_v8 = vpop.f32.mrb[91].mxu0  ;;  %v3481_v15 = vsel %vm1451_vm3, %v13615_v33, -inf }
 0x639   : > { %3476 = vmax.xlane.f32.xlu0 %v3475_v37  ;;  %v13636_v37 = vpop.permute.xlu0 %4482  ;;  %v3490_v22 = vsel %vm1451_vm3, %v13626_v63, -inf  ;;  %v13640_v17 = vpop.permute.xlu1 %4106 }
 0x63a   : > { %v3484_v31 = vsel %vm1451_vm3, %v13618_v1, -inf }
 0x63b   : > { %3485 = vmax.xlane.f32.xlu1 %v3484_v31 }
 0x63d   : > { %3482 = vmax.xlane.f32.xlu0 %v3481_v15  ;;  %v3351_v8 = vpop.f32.mrb[92].mxu0  ;;  %v3487_v15 = vsel %vm1451_vm3, %v13632_v44, -inf  ;;  %v13656_v56 = vpop.permute.xlu0 %4977 }
 0x63e   : > { %v10472_v14 = vpop.f32.mrb[93].mxu0  ;;  %v13643_v31 = vadd.f32 %v13433_v29, %v3351_v8 }
 0x63f   : > { %3491 = vmax.xlane.f32.xlu1 %v3490_v22  ;;  %v3354_v52 = vpop.f32.mrb[94].mxu0  ;;  %v13652_v14 = vadd.f32 %v13476_v51, %v13438_v49  ;;  %v3499_v49 = vsel %vm1451_vm3, %v13436_v42, -inf }
 0x640   : > { %15960 = vst [vmem:[#allocation60_spill] sm:$0xff] %v13643_v31  ;;  %v13646_v28 = vadd.f32 %v13476_v51, %v3354_v52  ;;  %v10473_v53 = vpop.f32.mrb[95].mxu0  ;;  %v3493_v29 = vsel %vm1451_vm3, %v13643_v31, -inf  ;;  %v13660_v52 = vpop.permute.xlu1 %4294 }
 0x641   : > { %3488 = vmax.xlane.f32.xlu0 %v3487_v15  ;;  %v3502_v53 = vsel %vm1451_vm3, %v13652_v14, -inf  ;;  %v13666_v51 = vpop.permute.xlu0 %4975 }
 0x642   : > { %15961 = vst [vmem:[#allocation61_spill] sm:$0xff] %v13646_v28  ;;  %v3496_v22 = vsel %vm1451_vm3, %v13646_v28, -inf }
 0x643   : > { %3497 = vmax.xlane.f32.xlu1 %v3496_v22 }
 0x644   : > { %v13668_v8 = vpop.permute.xlu1 %5028 }
 0x645   : > { %3494 = vmax.xlane.f32.xlu0 %v3493_v29  ;;  %v13670_v15 = vpop.permute.xlu0 %5026 }
 0x647   : > { %3503 = vmax.xlane.f32.xlu1 %v3502_v53 }
 0x648   : > { %v13672_v22 = vpop.permute.xlu1 %5079 }
 0x649   : > { %3500 = vmax.xlane.f32.xlu0 %v3499_v49  ;;  %v13674_v41 = vpop.permute.xlu0 %5077 }
 0x64a   : > { %15962 = vst [vmem:[#allocation62_spill] sm:$0xff] %v13674_v41 }
 0x64c   : > { %v13676_v29 = vpop.permute.xlu1 %5130 }
 0x64d   : > { %15963 = vst [vmem:[#allocation63_spill] sm:$0xff] %v13676_v29  ;;  %v13678_v32 = vpop.permute.xlu0 %5128 }
 0x64e   : > { %15964 = vst [vmem:[#allocation64_spill] sm:$0xff] %v13678_v32 }
 0x650   : > { %v13680_v25 = vpop.permute.xlu1 %5181 }
 0x651   : > { %15965 = vst [vmem:[#allocation65_spill] sm:$0xff] %v13680_v25  ;;  %v13682_v53 = vpop.permute.xlu0 %5179 }
 0x652   : > { %15966 = vst [vmem:[#allocation66_spill] sm:$0xff] %v13682_v53 }
 0x654   : > { %v13684_v60 = vpop.permute.xlu1 %5232 }
 0x655   : > { %15967 = vst [vmem:[#allocation67_spill] sm:$0xff] %v13684_v60  ;;  %v13686_v49 = vpop.permute.xlu0 %5230 }
 0x656   : > { %15968 = vst [vmem:[#allocation68_spill] sm:$0xff] %v13686_v49 }
 0x658   : > { %v13688_v38 = vpop.permute.xlu1 %5283 }
 0x659   : > { %15969 = vst [vmem:[#allocation69_spill] sm:$0xff] %v13688_v38  ;;  %v13690_v61 = vpop.permute.xlu0 %5281 }
 0x65a   : > { %15970 = vst [vmem:[#allocation70_spill] sm:$0xff] %v13690_v61 }
 0x65c   : > { %v13692_v62 = vpop.permute.xlu1 %5334 }
 0x65d   : > { %15971 = vst [vmem:[#allocation71_spill] sm:$0xff] %v13692_v62  ;;  %v13694_v12 = vpop.permute.xlu0 %5332 }
 0x65e   : > { %15972 = vst [vmem:[#allocation72_spill] sm:$0xff] %v13694_v12 }
 0x660   : > { %v13696_v54 = vpop.permute.xlu1 %5385 }
 0x661   : > { %15973 = vst [vmem:[#allocation73_spill] sm:$0xff] %v13696_v54  ;;  %v13698_v28 = vpop.permute.xlu0 %5383 }
 0x662   : > { %15974 = vst [vmem:[#allocation74_spill] sm:$0xff] %v13698_v28 }
 0x664   : > { %v13700_v31 = vpop.permute.xlu1 %5436 }
 0x665   : > { %15975 = vst [vmem:[#allocation75_spill] sm:$0xff] %v13700_v31  ;;  %v13702_v32 = vpop.permute.xlu0 %5434 }
 0x666   : > { %15976 = vst [vmem:[#allocation76_spill] sm:$0xff] %v13702_v32 }
 0x668   : > { %v13704_v53 = vpop.permute.xlu1 %5487 }
 0x669   : > { %15977 = vst [vmem:[#allocation77_spill] sm:$0xff] %v13704_v53  ;;  %v13706_v60 = vpop.permute.xlu0 %5485 }
 0x66a   : > { %15978 = vst [vmem:[#allocation78_spill] sm:$0xff] %v13706_v60 }
 0x66c   : > { %v13708_v49 = vpop.permute.xlu1 %5538 }
 0x66d   : > { %15979 = vst [vmem:[#allocation79_spill] sm:$0xff] %v13708_v49  ;;  %v13710_v38 = vpop.permute.xlu0 %5536 }
 0x66e   : > { %15980 = vst [vmem:[#allocation80_spill] sm:$0xff] %v13710_v38 }
 0x670   : > { %v13712_v61 = vpop.permute.xlu1 %5589 }
 0x671   : > { %15981 = vst [vmem:[#allocation81_spill] sm:$0xff] %v13712_v61  ;;  %v13714_v62 = vpop.permute.xlu0 %5587 }
 0x672   : > { %15982 = vst [vmem:[#allocation82_spill] sm:$0xff] %v13714_v62 }
 0x674   : > { %v13716_v12 = vpop.permute.xlu1 %5640 }
 0x675   : > { %15983 = vst [vmem:[#allocation83_spill] sm:$0xff] %v13716_v12 }
 0x696   : > { %v3411_v54 = vpop.xlane.xlu0 %3410 }
 0x697   : > { %v3505_v28 = vsub.f32 %v13479_v39, %v3411_v54 }
 0x698   : > { %v3414_v31 = vpop.xlane.xlu1 %3413 }
 0x699   : > { %v3537_v25 = vmul.f32 1.442695, %v3505_v28  ;;  %v3506_v32 = vsub.f32 %v13482_v57, %v3414_v31 }
 0x69b   : > { %11426 = vpow2.f32 %v3537_v25  ;;  %v3539_v53 = vmul.f32 1.442695, %v3506_v32 }
 0x69c   : > { %v3417_v60 = vpop.xlane.xlu1 %3416 }
 0x69d   : > { %11428 = vpow2.f32 %v3539_v53  ;;  %v3507_v49 = vsub.f32 %v13488_v2, %v3417_v60 }
 0x69e   : > { %v3423_v38 = vpop.xlane.xlu0 %3422 }
 0x69f   : > { %v3541_v46 = vmul.f32 1.442695, %v3507_v49  ;;  %v3509_v61 = vsub.f32 %v13493_v35, %v3423_v38 }
 0x6a0   : > { %v3426_v62 = vpop.xlane.xlu1 %3425 }
 0x6a1   : > { %11430 = vpow2.f32 %v3541_v46  ;;  %v3545_v12 = vmul.f32 1.442695, %v3509_v61  ;;  %v3510_v13 = vsub.f32 %v13502_v10, %v3426_v62 }
 0x6a2   : > { %v3420_v54 = vpop.xlane.xlu0 %3419 }
 0x6a3   : > { %11432 = vpow2.f32 %v3545_v12  ;;  %v3508_v39 = vsub.f32 %v13499_v30, %v3420_v54  ;;  %v3547_v32 = vmul.f32 1.442695, %v3510_v13 }
 0x6a4   : > { %v3432_v57 = vpop.xlane.xlu1 %3431 }
 0x6a5   : > { %v13724_v25 = vpop.eup %11426  ;;  %v3543_v31 = vmul.f32 1.442695, %v3508_v39  ;;  %v3512_v60 = vsub.f32 %v13508_v45, %v3432_v57 }
 0x6a6   : > { %15984 = vst [vmem:[#allocation84_spill] sm:$0xff] %v13724_v25  ;;  %v3429_v2 = vpop.xlane.xlu0 %3428  ;;  %v3601_v38 = vsel %vm1451_vm3, %v13724_v25, 0.0 }
 0x6a7   : > { %v13729_v35 = vpop.eup %11428  ;;  %11434 = vpow2.f32 %v3543_v31  ;;  %v3511_v46 = vsub.f32 %v13514_v7, %v3429_v2  ;;  %3602 = vadd.xlane.f32.xlu0 %v3601_v38  ;;  %v3551_v13 = vmul.f32 1.442695, %v3512_v60 }
 0x6a8   : > { %15985 = vst [vmem:[#allocation85_spill] sm:$0xff] %v13729_v35  ;;  %v13732_v12 = vpop.xlane.xlu1 %3437  ;;  %v3604_v61 = vsel %vm1451_vm3, %v13729_v35, 0.0  ;;  %11436 = vpow2.f32 %v3547_v32 }
 0x6a9   : > { %v3549_v62 = vmul.f32 1.442695, %v3511_v46  ;;  %3605 = vadd.xlane.f32.xlu1 %v3604_v61 }
 0x6aa   : > { %v13736_v30 = vpop.xlane.xlu0 %3434 }
 0x6ab   : > { %v13738_v10 = vpop.eup %11430  ;;  %11438 = vpow2.f32 %v3549_v62 }
 0x6ac   : > { %v3444_v45 = vpop.xlane.xlu1 %3443  ;;  %v3607_v28 = vsel %vm1451_vm3, %v13738_v10, 0.0  ;;  %11440 = vpow2.f32 %v3551_v13 }
 0x6ad   : > { %v13742_v7 = vpop.eup %11432  ;;  %v3516_v53 = vsub.f32 %v13530_v58, %v3444_v45  ;;  %3608 = vadd.xlane.f32.xlu0 %v3607_v28 }
 0x6ae   : > { %15986 = vst [vmem:[#allocation86_spill] sm:$0xff] %v13742_v7  ;;  %v3441_v49 = vpop.xlane.xlu0 %3440  ;;  %v3613_v32 = vsel %vm1451_vm3, %v13742_v7, 0.0 }
 0x6af   : > { %v3559_v54 = vmul.f32 1.442695, %v3516_v53  ;;  %v3515_v39 = vsub.f32 %v13536_v0, %v3441_v49 }
 0x6b0   : > { %v13746_v57 = vpop.xlane.xlu1 %3449 }
 0x6b1   : > { %v13750_v31 = vpop.eup %11434  ;;  %11442 = vpow2.f32 %v3559_v54  ;;  %v3557_v60 = vmul.f32 1.442695, %v3515_v39  ;;  %3614 = vadd.xlane.f32.xlu0 %v3613_v32 }
 0x6b2   : > { %v13752_v2 = vpop.xlane.xlu0 %3446  ;;  %v3610_v58 = vsel %vm1451_vm3, %v13750_v31, 0.0  ;;  %v13756_v38 = vpop.eup %11436 }
 0x6b3   : > { %15987 = vst [vmem:[#allocation87_spill] sm:$0xff] %v13756_v38  ;;  %11444 = vpow2.f32 %v3557_v60  ;;  %3611 = vadd.xlane.f32.xlu1 %v3610_v58  ;;  %v3616_v62 = vsel %vm1451_vm3, %v13756_v38, 0.0 }
 0x6b4   : > { %v3456_v0 = vpop.xlane.xlu1 %3455 }
 0x6b5   : > { %v13758_v46 = vpop.eup %11438  ;;  %v3520_v61 = vsub.f32 %v13552_v11, %v3456_v0 }
 0x6b6   : > { %v3453_v13 = vpop.xlane.xlu0 %3452  ;;  %v3619_v45 = vsel %vm1451_vm3, %v13758_v46, 0.0  ;;  %v13765_v28 = vpop.eup %11440 }
 0x6b7   : > { %v3567_v53 = vmul.f32 1.442695, %v3520_v61  ;;  %v3519_v49 = vsub.f32 %v13558_v27, %v3453_v13  ;;  %3617 = vadd.xlane.f32.xlu1 %v3616_v62  ;;  %3620 = vadd.xlane.f32.xlu0 %v3619_v45  ;;  %v3622_v11 = vsel %vm1451_vm3, %v13765_v28, 0.0 }
 0x6b8   : > { %v13768_v54 = vpop.xlane.xlu1 %3461 }
 0x6b9   : > { %11446 = vpow2.f32 %v3567_v53  ;;  %v3565_v39 = vmul.f32 1.442695, %v3519_v49 }
 0x6ba   : > { %v13770_v32 = vpop.xlane.xlu0 %3458 }
 0x6bb   : > { %v13774_v60 = vpop.eup %11442  ;;  %11448 = vpow2.f32 %v3565_v39  ;;  %3623 = vadd.xlane.f32.xlu1 %v3622_v11 }
 0x6bc   : > { %v3468_v58 = vpop.xlane.xlu1 %3467  ;;  %v3634_v13 = vsel %vm1451_vm3, %v13774_v60, 0.0 }
 0x6bd   : > { %v13776_v0 = vpop.eup %11444  ;;  %v3524_v27 = vsub.f32 %v13574_v24, %v3468_v58 }
 0x6be   : > { %v3465_v61 = vpop.xlane.xlu0 %3464  ;;  %v3631_v62 = vsel %vm1451_vm3, %v13776_v0, 0.0 }
 0x6bf   : > { %v3523_v45 = vsub.f32 %v13582_v21, %v3465_v61  ;;  %3635 = vadd.xlane.f32.xlu1 %v3634_v13  ;;  %3632 = vadd.xlane.f32.xlu0 %v3631_v62  ;;  %v3575_v49 = vmul.f32 1.442695, %v3524_v27 }
 0x6c0   : > { %v13784_v53 = vpop.xlane.xlu1 %3473 }
 0x6c1   : > { %v3573_v39 = vmul.f32 1.442695, %v3523_v45 }
 0x6c2   : > { %v13786_v11 = vpop.xlane.xlu0 %3470 }
 0x6c3   : > { %v13788_v7 = vpop.eup %11446  ;;  %11450 = vpow2.f32 %v3573_v39 }
 0x6c4   : > { %v3480_v24 = vpop.xlane.xlu1 %3479  ;;  %v3646_v58 = vsel %vm1451_vm3, %v13788_v7, 0.0  ;;  %11452 = vpow2.f32 %v3575_v49 }
 0x6c5   : > { %v13792_v38 = vpop.eup %11448  ;;  %v3528_v21 = vsub.f32 %v13600_v55, %v3480_v24  ;;  %3647 = vadd.xlane.f32.xlu1 %v3646_v58 }
 0x6c6   : > { %v3477_v61 = vpop.xlane.xlu0 %3476  ;;  %v3643_v27 = vsel %vm1451_vm3, %v13792_v38, 0.0 }
 0x6c7   : > { %v3583_v13 = vmul.f32 1.442695, %v3528_v21  ;;  %v3527_v62 = vsub.f32 %v13606_v16, %v3477_v61  ;;  %3644 = vadd.xlane.f32.xlu0 %v3643_v27 }
 0x6c8   : > { %v13798_v45 = vpop.xlane.xlu1 %3485 }
 0x6c9   : > { %11454 = vpow2.f32 %v3583_v13  ;;  %v3581_v39 = vmul.f32 1.442695, %v3527_v62 }
 0x6ca   : > { %v13800_v25 = vpop.xlane.xlu0 %3482 }
 0x6cb   : > { %11456 = vpow2.f32 %v3581_v39 }
 0x6cc   : > { %v3492_v35 = vpop.xlane.xlu1 %3491 }
 0x6cd   : > { %v13802_v49 = vpop.eup %11450  ;;  %v3532_v55 = vsub.f32 %v13626_v63, %v3492_v35  ;;  %v3514_v63 = vsub.f32 %v13524_v19, %v13732_v12 }
 0x6ce   : > { %v3489_v24 = vpop.xlane.xlu0 %3488  ;;  %v3655_v58 = vsel %vm1451_vm3, %v13802_v49, 0.0  ;;  %v13807_v21 = vpop.eup %11452 }
 0x6cf   : > { %v3531_v16 = vsub.f32 %v13632_v44, %v3489_v24  ;;  %3656 = vadd.xlane.f32.xlu1 %v3655_v58  ;;  %v3591_v27 = vmul.f32 1.442695, %v3532_v55  ;;  %v3658_v39 = vsel %vm1451_vm3, %v13807_v21, 0.0  ;;  %v3513_v44 = vsub.f32 %v13521_v34, %v13736_v30 }
 0x6d0   : > { %v13810_v61 = vpop.xlane.xlu1 %3497  ;;  %v3555_v19 = vmul.f32 1.442695, %v3514_v63 }
 0x6d1   : > { %15988 = vst [vmem:[#allocation88_spill] sm:$0xff] %v13810_v61  ;;  %v3589_v13 = vmul.f32 1.442695, %v3531_v16  ;;  %v3553_v12 = vmul.f32 1.442695, %v3513_v44 }
 0x6d2   : > { %v13812_v62 = vpop.xlane.xlu0 %3494 }
 0x6d3   : > { %v13816_v41 = vpop.eup %11454  ;;  %11458 = vpow2.f32 %v3589_v13  ;;  %3659 = vadd.xlane.f32.xlu1 %v3658_v39 }
 0x6d4   : > { %v3504_v35 = vpop.xlane.xlu1 %3503  ;;  %11460 = vpow2.f32 %v3591_v27  ;;  %v3670_v58 = vsel %vm1451_vm3, %v13816_v41, 0.0 }
 0x6d5   : > { %v13820_v29 = vpop.eup %11456  ;;  %v3536_v55 = vsub.f32 %v13652_v14, %v3504_v35 }
 0x6d6   : > { %v3501_v24 = vpop.xlane.xlu0 %3500  ;;  %v3667_v16 = vsel %vm1451_vm3, %v13820_v29, 0.0 }
 0x6d7   : > { %v3599_v13 = vmul.f32 1.442695, %v3536_v55  ;;  %v3535_v39 = vsub.f32 %v13436_v42, %v3501_v24  ;;  %3671 = vadd.xlane.f32.xlu1 %v3670_v58  ;;  %3668 = vadd.xlane.f32.xlu0 %v3667_v16  ;;  %v3518_v16 = vsub.f32 %v13546_v4, %v13746_v57 }
 0x6d9   : > { %11462 = vpow2.f32 %v3599_v13  ;;  %v3597_v61 = vmul.f32 1.442695, %v3535_v39  ;;  %v3517_v13 = vsub.f32 %v13543_v18, %v13752_v2  ;;  %v3563_v39 = vmul.f32 1.442695, %v3518_v16 }
 0x6da   : > { %v3521_v2 = vsub.f32 %v13565_v40, %v13770_v32  ;;  %v3522_v16 = vsub.f32 %v13568_v36, %v13768_v54 }
 0x6db   : > { %11464 = vpow2.f32 %v3597_v61 }
 0x6dc   : > { %11466 = vpow2.f32 %v3555_v19  ;;  %v3561_v19 = vmul.f32 1.442695, %v3517_v13 }
 0x6dd   : > { %v13830_v34 = vpop.eup %11458  ;;  %11468 = vpow2.f32 %v3553_v12 }
 0x6de   : > { %v3679_v14 = vsel %vm1451_vm3, %v13830_v34, 0.0  ;;  %v13834_v30 = vpop.eup %11460  ;;  %11470 = vpow2.f32 %v3563_v39 }
 0x6df   : > { %3680 = vadd.xlane.f32.xlu1 %v3679_v14  ;;  %v3682_v42 = vsel %vm1451_vm3, %v13834_v30, 0.0  ;;  %11472 = vpow2.f32 %v3561_v19  ;;  %v3571_v19 = vmul.f32 1.442695, %v3522_v16 }
 0x6e3   : > { %v13838_v27 = vpop.eup %11462  ;;  %3683 = vadd.xlane.f32.xlu1 %v3682_v42 }
 0x6e4   : > { %v3694_v61 = vsel %vm1451_vm3, %v13838_v27, 0.0 }
 0x6e5   : > { %v13840_v63 = vpop.eup %11464 }
 0x6e6   : > { %v13842_v35 = vpop.eup %11466  ;;  %v3691_v44 = vsel %vm1451_vm3, %v13840_v63, 0.0 }
 0x6e7   : > { %v13848_v55 = vpop.eup %11468  ;;  %3695 = vadd.xlane.f32.xlu1 %v3694_v61  ;;  %3692 = vadd.xlane.f32.xlu0 %v3691_v44  ;;  %v3628_v24 = vsel %vm1451_vm3, %v13842_v35, 0.0 }
 0x6e8   : > { %v3625_v58 = vsel %vm1451_vm3, %v13848_v55, 0.0  ;;  %v13862_v12 = vpop.eup %11470 }
 0x6e9   : > { %v13864_v14 = vpop.eup %11472  ;;  %v3640_v42 = vsel %vm1451_vm3, %v13862_v12, 0.0 }
 0x6ea   : > { %v3637_v61 = vsel %vm1451_vm3, %v13864_v14, 0.0 }
 0x6eb   : > { %3629 = vadd.xlane.f32.xlu1 %v3628_v24  ;;  %3626 = vadd.xlane.f32.xlu0 %v3625_v58  ;;  %v3569_v58 = vmul.f32 1.442695, %v3521_v2 }
 0x6fc   : > { %5691 = vrot.lane.b32.xlu1 %v15913_v20, %s12015_s29 }
 0x701   : > { %5638 = vrot.lane.b32.xlu0 %v15927_v59, %s12016_s12 }
 0x720   : > { %3641 = vadd.xlane.f32.xlu1 %v3640_v42  ;;  %3638 = vadd.xlane.f32.xlu0 %v3637_v61 }
 0x731   : > { %5689 = vrot.lane.b32.xlu1 %v15913_v20, %s12016_s12 }
 0x734   : > { %v13872_v18 = vpop.xlane.xlu0 %3602 }
 0x736   : > { %3777 = vrot.lane.b32.xlu0 %v12357_v6, %s12014_s15  ;;  %v13878_v57 = vpop.xlane.xlu1 %3605 }
 0x73a   : > { %5742 = vrot.lane.b32.xlu0 %v12415_v3, %s12015_s29  ;;  %v3609_v4 = vpop.xlane.xlu0 %3608 }
 0x73b   : > { %11474 = vrcp.f32 %v3609_v4 }
 0x73e   : > { %v13882_v44 = vpop.xlane.xlu0 %3614 }
 0x740   : > { %v3612_v24 = vpop.xlane.xlu1 %3611 }
 0x741   : > { %11476 = vrcp.f32 %v3612_v24 }
 0x742   : > { %11478 = vpow2.f32 %v3569_v58 }
 0x744   : > { %v13886_v13 = vpop.xlane.xlu1 %3617  ;;  %v3621_v39 = vpop.xlane.xlu0 %3620 }
 0x745   : > { %11480 = vrcp.f32 %v3621_v39  ;;  %v11475_v61 = vpop.eup %11474 }
 0x746   : > { %v3731_v40 = vmul.f32 %v11475_v61, %v13738_v10 }
 0x748   : > { %v3624_v42 = vpop.xlane.xlu1 %3623 }
 0x749   : > { %11482 = vrcp.f32 %v3624_v42 }
 0x74a   : > { %11484 = vpow2.f32 %v3571_v19 }
 0x74b   : > { %v11477_v59 = vpop.eup %11476 }
 0x74c   : > { %v3732_v32 = vmul.f32 %v11477_v59, %v13750_v31  ;;  %v3636_v4 = vpop.xlane.xlu1 %3635  ;;  %v3633_v2 = vpop.xlane.xlu0 %3632 }
 0x74d   : > { %11486 = vrcp.f32 %v3636_v4  ;;  %v13890_v54 = vpop.eup %11478 }
 0x74e   : > { %11488 = vrcp.f32 %v3633_v2  ;;  %v3762_v36 = vpack.c.bf16 %v3732_v32, %v3731_v40  ;;  %v3649_v39 = vsel %vm1451_vm3, %v13890_v54, 0.0 }
 0x74f   : > { %v11481_v24 = vpop.eup %11480 }
 0x750   : > { %10489 = vmatmul.mubr.msk.bf16.vlgmr.msra.gmra.mrb[128].mxu1 %vm1451_vm3, %v3762_v36  ;;  %v3735_v59 = vmul.f32 %v11481_v24, %v13758_v46 }
 0x751   : > { %10499 = vmatpush3.bf16.msra.mxu1 %v13622_v9  ;;  %10500 = vmatprep.mubr.msk.bf16.mxu1 %vm12009_vm1, %v15900_v43 }
 0x752   : > { %10510 = vmatprep.subr.bf16.mxu1 %v15900_v43  ;;  %v3648_v58 = vpop.xlane.xlu1 %3647 }
 0x753   : > { %v11483_v10 = vpop.eup %11482 }
 0x754   : > { %v3736_v31 = vmul.f32 %v11483_v10, %v13765_v28  ;;  %v3645_v16 = vpop.xlane.xlu0 %3644  ;;  %v13901_v19 = vpop.eup %11484 }
 0x755   : > { %11490 = vrcp.f32 %v3645_v16  ;;  %3650 = vadd.xlane.f32.xlu1 %v3649_v39  ;;  %v3652_v46 = vsel %vm1451_vm3, %v13901_v19, 0.0 }
 0x756   : > { %v3764_v9 = vpack.c.bf16 %v3736_v31, %v3735_v59  ;;  %11492 = vrcp.f32 %v3648_v58 }
 0x757   : > { %v11487_v42 = vpop.eup %11486 }
 0x758   : > { %v11489_v61 = vpop.eup %11488  ;;  %10501 = vmatmul.mubr.msk.bf16.vlgmr.msra.gmra.mrb[132].mxu1 %vm1451_vm3, %v3764_v9  ;;  %v3740_v28 = vmul.f32 %v11487_v42, %v13774_v60 }
 0x759   : > { %10511 = vmatpush3.bf16.msra.mxu1 %v13578_v23  ;;  %3653 = vadd.xlane.f32.xlu0 %v3652_v46  ;;  %v3739_v40 = vmul.f32 %v11489_v61, %v13776_v0 }
 0x75a   : > { %10512 = vmatprep.mubr.msk.bf16.mxu1 %vm12009_vm1, %v15900_v43  ;;  %10522 = vmatprep.subr.bf16.mxu1 %v15900_v43 }
 0x75b   : > { %v3766_v4 = vpack.c.bf16 %v3740_v28, %v3739_v40 }
 0x75c   : > { %v3657_v32 = vpop.xlane.xlu1 %3656 }
 0x75d   : > { %11494 = vrcp.f32 %v3657_v32  ;;  %v3529_v32 = vsub.f32 %v13615_v33, %v13800_v25 }
 0x75f   : > { %v11491_v2 = vpop.eup %11490 }
 0x760   : > { %v3660_v36 = vpop.xlane.xlu1 %3659  ;;  %10513 = vmatmul.mubr.msk.bf16.vlgmr.msra.gmra.mrb[136].mxu1 %vm1451_vm3, %v3766_v4  ;;  %v11493_v24 = vpop.eup %11492  ;;  %v3743_v23 = vmul.f32 %v11491_v2, %v13792_v38 }
 0x761   : > { %11496 = vrcp.f32 %v3660_v36  ;;  %10523 = vmatpush3.bf16.msra.mxu1 %v13640_v17  ;;  %10524 = vmatprep.mubr.msk.bf16.mxu1 %vm12009_vm1, %v15900_v43  ;;  %v3744_v60 = vmul.f32 %v11493_v24, %v13788_v7 }
 0x762   : > { %10534 = vmatprep.subr.bf16.mxu1 %v15900_v43 }
 0x763   : > { %v3768_v59 = vpack.c.bf16 %v3744_v60, %v3743_v23 }
 0x764   : > { %v3672_v0 = vpop.xlane.xlu1 %3671  ;;  %v3669_v10 = vpop.xlane.xlu0 %3668 }
 0x765   : > { %11498 = vrcp.f32 %v3672_v0 }
 0x766   : > { %11500 = vrcp.f32 %v3669_v10  ;;  %5740 = vrot.lane.b32.xlu1 %v12415_v3, %s12016_s12  ;;  %v5085_v10 = vsel %vm653_vm2, %v13672_v22, 0 }
 0x767   : > { %v11495_v17 = vpop.eup %11494 }
 0x768   : > { %10525 = vmatmul.mubr.msk.bf16.vlgmr.msra.gmra.mrb[140].mxu1 %vm1451_vm3, %v3768_v59  ;;  %v3747_v7 = vmul.f32 %v11495_v17, %v13802_v49  ;;  %v15990_v59 = vld [vmem:[#allocation62_spill] sm:$0xff]  ;;  %v15992_v17 = vld [vmem:[#allocation24_spill] sm:$0xff] }
 0x769   : > { %10535 = vmatpush3.bf16.msra.mxu1 %v13596_v47  ;;  %10536 = vmatprep.mubr.msk.bf16.mxu1 %vm12009_vm1, %v15900_v43 }
 0x76a   : > { %10546 = vmatprep.subr.bf16.mxu1 %v15900_v43 }
 0x76b   : > { %v11497_v38 = vpop.eup %11496 }
 0x76c   : > { %v3748_v31 = vmul.f32 %v11497_v38, %v13807_v21  ;;  %v3681_v58 = vpop.xlane.xlu1 %3680  ;;  %v3525_v21 = vsub.f32 %v13589_v5, %v13786_v11  ;;  %v15993_v38 = vld [vmem:[#allocation65_spill] sm:$0xff] }
 0x76d   : > { %11502 = vrcp.f32 %v3681_v58 }
 0x76e   : > { %v3770_v16 = vpack.c.bf16 %v3748_v31, %v3747_v7  ;;  %v3577_v40 = vmul.f32 1.442695, %v3525_v21  ;;  %v5187_v7 = vsel %vm653_vm2, %v15993_v38, 0  ;;  %v15994_v31 = vld [vmem:[#allocation64_spill] sm:$0xff] }
 0x76f   : > { %v11499_v39 = vpop.eup %11498  ;;  %3871 = vrot.lane.b32.xlu0 %v12377_v26, %s12014_s15  ;;  %v16014_v38 = vld [vmem:[#allocation16_spill] sm:$0xff] }
 0x770   : > { %v11501_v9 = vpop.eup %11500  ;;  %v3684_v42 = vpop.xlane.xlu1 %3683  ;;  %10537 = vmatmul.mubr.msk.bf16.vlgmr.msra.gmra.mrb[144].mxu1 %vm1451_vm3, %v3770_v16  ;;  %v3752_v47 = vmul.f32 %v11499_v39, %v13816_v41 }
 0x771   : > { %11504 = vrcp.f32 %v3684_v42  ;;  %10547 = vmatpush3.bf16.msra.mxu1 %v13660_v52  ;;  %10548 = vmatprep.mubr.msk.bf16.mxu1 %vm12009_vm1, %v15900_v43  ;;  %v3751_v49 = vmul.f32 %v11501_v9, %v13820_v29  ;;  %v3526_v52 = vsub.f32 %v13592_v50, %v13784_v53  ;;  %v3530_v50 = vsub.f32 %v13618_v1, %v13798_v45  ;;  %v15996_v42 = vld [vmem:[#allocation85_spill] sm:$0xff] }
 0x772   : > { %10558 = vmatprep.subr.bf16.mxu1 %v15900_v43  ;;  %v3585_v53 = vmul.f32 1.442695, %v3529_v32 }
 0x773   : > { %v3772_v28 = vpack.c.bf16 %v3752_v47, %v3751_v49  ;;  %v3579_v29 = vmul.f32 1.442695, %v3526_v52  ;;  %v3587_v2 = vmul.f32 1.442695, %v3530_v50  ;;  %v15997_v49 = vld [vmem:[#allocation67_spill] sm:$0xff]  ;;  %v16002_v50 = vld [vmem:[#allocation69_spill] sm:$0xff] }
 0x774   : > { %v3696_v61 = vpop.xlane.xlu1 %3695  ;;  %v3693_v46 = vpop.xlane.xlu0 %3692  ;;  %v5238_v21 = vsel %vm653_vm2, %v15997_v49, 0  ;;  %v16020_v49 = vld [vmem:[#allocation87_spill] sm:$0xff] }
 0x775   : > { %11506 = vrcp.f32 %v3696_v61  ;;  %v15998_v61 = vld [vmem:[#allocation88_spill] sm:$0xff] }
 0x776   : > { %11508 = vrcp.f32 %v3693_v46  ;;  %v15999_v46 = vld [vmem:[#allocation61_spill] sm:$0xff] }
 0x777   : > { %v11503_v41 = vpop.eup %11502  ;;  %11510 = vpow2.f32 %v3577_v40  ;;  %v16000_v40 = vld [vmem:[#allocation84_spill] sm:$0xff] }
 0x778   : > { %10549 = vmatmul.mubr.msk.bf16.vlgmr.msra.gmra.mrb[148].mxu1 %vm1451_vm3, %v3772_v28  ;;  %v3755_v11 = vmul.f32 %v11503_v41, %v13830_v34  ;;  %11512 = vpow2.f32 %v3579_v29  ;;  %v14002_v22 = vpop.xlane.xlu0 %3626  ;;  %v3534_v28 = vsub.f32 %v15999_v46, %v15998_v61  ;;  %v16001_v41 = vld [vmem:[#allocation66_spill] sm:$0xff]  ;;  %v16022_v46 = vld [vmem:[#allocation81_spill] sm:$0xff] }
 0x779   : > { %10559 = vmatpush3.bf16.msra.mxu1 %v13612_v48  ;;  %10560 = vmatprep.mubr.msk.bf16.mxu1 %vm12009_vm1, %v15900_v43  ;;  %11514 = vpow2.f32 %v3585_v53  ;;  %v5289_v53 = vsel %vm653_vm2, %v16002_v50, 0  ;;  %v16021_v61 = vld [vmem:[#allocation26_spill] sm:$0xff] }
 0x77a   : > { %10570 = vmatprep.subr.bf16.mxu1 %v15900_v43  ;;  %11516 = vpow2.f32 %v3587_v2  ;;  %v3595_v29 = vmul.f32 1.442695, %v3534_v28  ;;  %v5595_v28 = vsel %vm653_vm2, %v16022_v46, 0 }
 0x77b   : > { %v11505_v5 = vpop.eup %11504  ;;  %11518 = vrcp.f32 %v13878_v57 }
 0x77c   : > { %v3756_v33 = vmul.f32 %v11505_v5, %v13834_v30  ;;  %11520 = vrcp.f32 %v13872_v18  ;;  %v14012_v57 = vpop.permute.xlu0 %5638  ;;  %v15995_v18 = vld [vmem:[#allocation60_spill] sm:$0xff] }
 0x77d   : > { %v3533_v16 = vsub.f32 %v15995_v18, %v13812_v62 }
 0x77e   : > { %v3774_v25 = vpack.c.bf16 %v3756_v33, %v3755_v11  ;;  %v16003_v11 = vld [vmem:[#allocation68_spill] sm:$0xff] }
 0x77f   : > { %v11507_v4 = vpop.eup %11506  ;;  %v3593_v52 = vmul.f32 1.442695, %v3533_v16  ;;  %v16018_v16 = vld [vmem:[#allocation78_spill] sm:$0xff] }
 0x780   : > { %v11509_v48 = vpop.eup %11508  ;;  %10561 = vmatmul.mubr.msk.bf16.vlgmr.msra.gmra.mrb[152].mxu1 %vm1451_vm3, %v3774_v25  ;;  %v3760_v1 = vmul.f32 %v11507_v4, %v13838_v27  ;;  %v16004_v25 = vld [vmem:[#allocation71_spill] sm:$0xff] }
 0x781   : > { %10571 = vmatpush3.bf16.msra.mxu1 %v13636_v37  ;;  %10572 = vmatprep.mubr.msk.bf16.mxu1 %vm12009_vm1, %v15900_v43  ;;  %v3759_v45 = vmul.f32 %v11509_v48, %v13840_v63  ;;  %v13959_v34 = vpop.eup %11510  ;;  %v4983_v37 = vsel %vm653_vm2, %v13656_v56, 0  ;;  %v5034_v56 = vsel %vm653_vm2, %v13668_v8, 0  ;;  %11522 = vpow2.f32 %v3593_v52  ;;  %v16005_v48 = vld [vmem:[#allocation70_spill] sm:$0xff]  ;;  %v16023_v52 = vld [vmem:[#allocation80_spill] sm:$0xff] }
 0x782   : > { %10644 = vmatprep.subr.bf16.mxu1 %v15900_v43  ;;  %v13962_v36 = vpop.eup %11512  ;;  %v3661_v24 = vsel %vm1451_vm3, %v13959_v34, 0.0  ;;  %11524 = vpow2.f32 %v3595_v29  ;;  %v5340_v4 = vsel %vm653_vm2, %v16004_v25, 0  ;;  %v16025_v29 = vld [vmem:[#allocation83_spill] sm:$0xff] }
 0x783   : > { %v3776_v30 = vpack.c.bf16 %v3760_v1, %v3759_v45  ;;  %v13970_v27 = vpop.eup %11514  ;;  %v3664_v23 = vsel %vm1451_vm3, %v13962_v36, 0.0  ;;  %11526 = vrcp.f32 %v13886_v13  ;;  %v5646_v50 = vsel %vm653_vm2, %v16025_v29, 0 }
 0x784   : > { %v3673_v63 = vsel %vm1451_vm3, %v13970_v27, 0.0  ;;  %v13977_v60 = vpop.eup %11516  ;;  %11528 = vrcp.f32 %v13882_v44  ;;  %v16019_v44 = vld [vmem:[#allocation22_spill] sm:$0xff] }
 0x785   : > { %v3676_v0 = vsel %vm1451_vm3, %v13977_v60, 0.0  ;;  %v11519_v58 = vpop.eup %11518 }
 0x786   : > { %v11521_v9 = vpop.eup %11520  ;;  %v3730_v47 = vmul.f32 %v11519_v58, %v15996_v42  ;;  %v16017_v58 = vld [vmem:[#allocation79_spill] sm:$0xff] }
 0x787   : > { %v3729_v32 = vmul.f32 %v11521_v9, %v16000_v40  ;;  %v5544_v18 = vsel %vm653_vm2, %v16017_v58, 0  ;;  %v16024_v40 = vld [vmem:[#allocation86_spill] sm:$0xff] }
 0x788   : > { %10573 = vmatmul.mubr.msk.bf16.vlgmr.msra.gmra.mrb[156].mxu1 %vm1451_vm3, %v3776_v30  ;;  %v16006_v30 = vld [vmem:[#allocation73_spill] sm:$0xff] }
 0x789   : > { %10646 = vmatprep.mubr.msk.bf16.mxu1 %vm12009_vm1, %v15900_v43  ;;  %v3761_v62 = vpack.c.bf16 %v3730_v47, %v3729_v32 }
 0x78a   : > { %10645 = vmatpush3.bf16.xpose.msra.mxu1 %v4983_v37  ;;  %3662 = vadd.xlane.f32.xlu1 %v3661_v24  ;;  %v5391_v37 = vsel %vm653_vm2, %v16006_v30, 0  ;;  %v16007_v24 = vld [vmem:[#allocation72_spill] sm:$0xff] }
 0x78b   : > { %10650 = vmatprep.subr.bf16.mxu1 %v15900_v43  ;;  %v14045_v33 = vpop.eup %11522 }
 0x78c   : > { %v3685_v2 = vsel %vm1451_vm3, %v14045_v33, 0.0  ;;  %v14055_v1 = vpop.eup %11524 }
 0x78d   : > { %v3688_v45 = vsel %vm1451_vm3, %v14055_v1, 0.0  ;;  %v11527_v9 = vpop.eup %11526 }
 0x78e   : > { %3674 = vadd.xlane.f32.xlu1 %v3673_v63  ;;  %3665 = vadd.xlane.f32.xlu0 %v3664_v23  ;;  %v16008_v63 = vld [vmem:[#allocation75_spill] sm:$0xff]  ;;  %v11529_v47 = vpop.eup %11528 }
 0x78f   : > { %v5442_v23 = vsel %vm653_vm2, %v16008_v63, 0  ;;  %v3733_v32 = vmul.f32 %v11529_v47, %v16024_v40 }
 0x791   : > { %10647 = vmatmul.mubr.msk.bf16.vlgmr.msra.gmra.mrb[160].mxu1 %vm653_vm2, %v13666_v51  ;;  %v15989_v51 = vld [vmem:[#allocation63_spill] sm:$0xff] }
 0x792   : > { %10651 = vmatpush3.bf16.xpose.msra.mxu1 %v5034_v56  ;;  %3677 = vadd.xlane.f32.xlu1 %v3676_v0  ;;  %v5136_v8 = vsel %vm653_vm2, %v15989_v51, 0  ;;  %v16009_v56 = vld [vmem:[#allocation74_spill] sm:$0xff]  ;;  %v16010_v0 = vld [vmem:[#allocation21_spill] sm:$0xff] }
 0x793   : > { %10652 = vmatprep.mubr.msk.bf16.mxu1 %vm12009_vm1, %v15900_v43  ;;  %10656 = vmatprep.subr.bf16.mxu1 %v15900_v43 }
 0x799   : > { %10653 = vmatmul.mubr.msk.bf16.vlgmr.msra.gmra.mrb[164].mxu1 %vm653_vm2, %v13670_v15  ;;  %v15991_v15 = vld [vmem:[#allocation27_spill] sm:$0xff] }
 0x79a   : > { %10657 = vmatpush3.bf16.xpose.msra.mxu1 %v5085_v10  ;;  %10658 = vmatprep.mubr.msk.bf16.mxu1 %vm12009_vm1, %v15900_v43  ;;  %v16011_v10 = vld [vmem:[#allocation77_spill] sm:$0xff] }
 0x79b   : > { %10662 = vmatprep.subr.bf16.mxu1 %v15900_v43  ;;  %v5493_v51 = vsel %vm653_vm2, %v16011_v10, 0 }
 0x7a1   : > { %10659 = vmatmul.mubr.msk.bf16.vlgmr.msra.gmra.mrb[168].mxu1 %vm653_vm2, %v15990_v59  ;;  %v16013_v59 = vld [vmem:[#allocation18_spill] sm:$0xff] }
 0x7a2   : > { %10663 = vmatpush3.bf16.xpose.msra.mxu1 %v5136_v8  ;;  %10664 = vmatprep.mubr.msk.bf16.mxu1 %vm12009_vm1, %v15900_v43  ;;  %v16012_v8 = vld [vmem:[#allocation76_spill] sm:$0xff] }
 0x7a3   : > { %4059 = vrot.lane.b32.xlu1 %v15991_v15, %s12014_s15  ;;  %10668 = vmatprep.subr.bf16.mxu1 %v15900_v43 }
 0x7a4   : > { %3965 = vrot.lane.b32.xlu0 %v15992_v17, %s12014_s15 }
 0x7a9   : > { %10665 = vmatmul.mubr.msk.bf16.vlgmr.msra.gmra.mrb[172].mxu1 %vm653_vm2, %v15994_v31  ;;  %v16016_v31 = vld [vmem:[#allocation19_spill] sm:$0xff] }
 0x7aa   : > { %10669 = vmatpush3.bf16.xpose.msra.mxu1 %v5187_v7  ;;  %10670 = vmatprep.mubr.msk.bf16.mxu1 %vm12009_vm1, %v15900_v43  ;;  %v16015_v7 = vld [vmem:[#allocation25_spill] sm:$0xff] }
 0x7ab   : > { %10674 = vmatprep.subr.bf16.mxu1 %v15900_v43 }
 0x7ad   : > { %v14021_v39 = vpop.xlane.xlu0 %3638 }
 0x7b1   : > { %10671 = vmatmul.mubr.msk.bf16.vlgmr.msra.gmra.mrb[176].mxu1 %vm653_vm2, %v16001_v41  ;;  %v3778_v5 = vpop.permute.xlu0 %3777 }
 0x7b2   : > { %10675 = vmatpush3.bf16.xpose.msra.mxu1 %v5238_v21  ;;  %10481 = vmatpush3.bf16.msra.mxu0 %v3778_v5  ;;  %v3734_v21 = vmul.f32 %v11527_v9, %v16020_v49 }
 0x7b3   : > { %10676 = vmatprep.mubr.msk.bf16.mxu1 %vm12009_vm1, %v15900_v43  ;;  %10680 = vmatprep.subr.bf16.mxu1 %v15900_v43 }
 0x7b4   : > { %10492 = vmatprep.subr.bf16.mxu0 %v15900_v43  ;;  %v3763_v5 = vpack.c.bf16 %v3734_v21, %v3733_v32 }
 0x7b5   : > { %10483 = vmatmul.mubr.msk.bf16.vlgmr.msra.gmra.mrb[96].mxu0 %vm1451_vm3, %v3761_v62  ;;  %v5743_v13 = vpop.permute.xlu0 %5742  ;;  %v3630_v62 = vpop.xlane.xlu1 %3629 }
 0x7b6   : > { %10494 = vmatprep.mubr.msk.bf16.mxu0 %vm12009_vm1, %v15900_v43  ;;  %11530 = vrcp.f32 %v3630_v62 }
 0x7b7   : > { %11532 = vrcp.f32 %v14002_v22 }
 0x7b9   : > { %10677 = vmatmul.mubr.msk.bf16.vlgmr.msra.gmra.mrb[180].mxu1 %vm653_vm2, %v16003_v11  ;;  %v5692_v11 = vpop.permute.xlu1 %5691 }
 0x7ba   : > { %10681 = vmatpush3.bf16.xpose.msra.mxu1 %v5289_v53  ;;  %10682 = vmatprep.mubr.msk.bf16.mxu1 %vm12009_vm1, %v15900_v43  ;;  %v16026_v53 = vld [vmem:[#allocation82_spill] sm:$0xff] }
 0x7bb   : > { %10686 = vmatprep.subr.bf16.mxu1 %v15900_v43 }
 0x7bd   : > { %v3642_v25 = vpop.xlane.xlu1 %3641 }
 0x7be   : > { %11534 = vrcp.f32 %v3642_v25 }
 0x7bf   : > { %11536 = vrcp.f32 %v14021_v39 }
 0x7c1   : > { %10683 = vmatmul.mubr.msk.bf16.vlgmr.msra.gmra.mrb[184].mxu1 %vm653_vm2, %v16005_v48  ;;  %v5690_v48 = vpop.permute.xlu1 %5689 }
 0x7c2   : > { %10687 = vmatpush3.bf16.xpose.msra.mxu1 %v5340_v4  ;;  %10688 = vmatprep.mubr.msk.bf16.mxu1 %vm12009_vm1, %v15900_v43  ;;  %v5697_v4 = vsel %vm653_vm2, %v5692_v11, 0 }
 0x7c3   : > { %3686 = vadd.xlane.f32.xlu0 %v3685_v2  ;;  %10692 = vmatprep.subr.bf16.mxu1 %v15900_v43  ;;  %v5748_v2 = vsel %vm653_vm2, %v5743_v13, 0 }
 0x7c7   : > { %3689 = vadd.xlane.f32.xlu1 %v3688_v45 }
 0x7c9   : > { %10689 = vmatmul.mubr.msk.bf16.vlgmr.msra.gmra.mrb[188].mxu1 %vm653_vm2, %v16007_v24 }
 0x7ca   : > { %10693 = vmatpush3.bf16.xpose.msra.mxu1 %v5391_v37  ;;  %10694 = vmatprep.mubr.msk.bf16.mxu1 %vm12009_vm1, %v15900_v43  ;;  %v11531_v37 = vpop.eup %11530 }
 0x7cb   : > { %10698 = vmatprep.subr.bf16.mxu1 %v15900_v43  ;;  %v11533_v24 = vpop.eup %11532 }
 0x7cc   : > { %v3737_v10 = vmul.f32 %v11533_v24, %v13848_v55  ;;  %v11535_v58 = vpop.eup %11534 }
 0x7cd   : > { %v11537_v22 = vpop.eup %11536 }
 0x7ce   : > { %v3741_v55 = vmul.f32 %v11537_v22, %v13864_v14  ;;  %v16028_v14 = vld [vmem:[#allocation20_spill] sm:$0xff] }
 0x7d1   : > { %10695 = vmatmul.mubr.msk.bf16.vlgmr.msra.gmra.mrb[192].mxu1 %vm653_vm2, %v16009_v56  ;;  %v3738_v56 = vmul.f32 %v11531_v37, %v13842_v35  ;;  %v3742_v35 = vmul.f32 %v11535_v58, %v13862_v12 }
 0x7d2   : > { %10699 = vmatpush3.bf16.xpose.msra.mxu1 %v5442_v23  ;;  %10700 = vmatprep.mubr.msk.bf16.mxu1 %vm12009_vm1, %v15900_v43 }
 0x7d3   : > { %10704 = vmatprep.subr.bf16.mxu1 %v15900_v43  ;;  %v3767_v21 = vpack.c.bf16 %v3742_v35, %v3741_v55 }
 0x7d8   : > { %4247 = vrot.lane.b32.xlu1 %v16010_v0, %s12014_s15 }
 0x7d9   : > { %10701 = vmatmul.mubr.msk.bf16.vlgmr.msra.gmra.mrb[196].mxu1 %vm653_vm2, %v16012_v8  ;;  %4153 = vrot.lane.b32.xlu0 %v16013_v59, %s12014_s15 }
 0x7da   : > { %10705 = vmatpush3.bf16.xpose.msra.mxu1 %v5493_v51  ;;  %10706 = vmatprep.mubr.msk.bf16.mxu1 %vm12009_vm1, %v15900_v43 }
 0x7db   : > { %10710 = vmatprep.subr.bf16.mxu1 %v15900_v43 }
 0x7dc   : > { %6206 = vrot.lane.b32.xlu1 %v16014_v38, %s12017_s8 }
 0x7dd   : > { %4341 = vrot.lane.b32.xlu0 %v16015_v7, %s12014_s15 }
 0x7e0   : > { %6300 = vrot.lane.b32.xlu1 %v16016_v31, %s12017_s8 }
 0x7e1   : > { %10707 = vmatmul.mubr.msk.bf16.vlgmr.msra.gmra.mrb[200].mxu1 %vm653_vm2, %v16018_v16  ;;  %4435 = vrot.lane.b32.xlu0 %v15913_v20, %s12014_s15 }
 0x7e2   : > { %10711 = vmatpush3.bf16.xpose.msra.mxu1 %v5544_v18  ;;  %10712 = vmatprep.mubr.msk.bf16.mxu1 %vm12009_vm1, %v15900_v43  ;;  %v3651_v45 = vpop.xlane.xlu1 %3650  ;;  %v3765_v18 = vpack.c.bf16 %v3738_v56, %v3737_v10 }
 0x7e3   : > { %10716 = vmatprep.subr.bf16.mxu1 %v15900_v43 }
 0x7e4   : > { %6394 = vrot.lane.b32.xlu1 %v16019_v44, %s12017_s8 }
 0x7e5   : > { %6159 = vrot.lane.b32.xlu0 %v12357_v6, %s12017_s8 }
 0x7e6   : > { %v14106_v42 = vpop.xlane.xlu0 %3653  ;;  %v5741_v30 = vpop.permute.xlu1 %5740 }
 0x7e7   : > { %11538 = vrcp.f32 %v14106_v42 }
 0x7e8   : > { %6488 = vrot.lane.b32.xlu1 %v16021_v61, %s12017_s8  ;;  %11540 = vrcp.f32 %v3651_v45 }
 0x7e9   : > { %10713 = vmatmul.mubr.msk.bf16.vlgmr.msra.gmra.mrb[204].mxu1 %vm653_vm2, %v16023_v52  ;;  %6253 = vrot.lane.b32.xlu0 %v12377_v26, %s12017_s8 }
 0x7ea   : > { %10717 = vmatpush3.bf16.xpose.msra.mxu1 %v5595_v28  ;;  %v3872_v41 = vpop.permute.xlu0 %3871  ;;  %10718 = vmatprep.mubr.msk.bf16.mxu1 %vm12009_vm1, %v15900_v43 }
 0x7eb   : > { %10493 = vmatpush3.bf16.msra.mxu0 %v3872_v41  ;;  %10722 = vmatprep.subr.bf16.mxu1 %v15900_v43 }
 0x7ec   : > { %10504 = vmatprep.subr.bf16.mxu0 %v15900_v43 }
 0x7ed   : > { %6347 = vrot.lane.b32.xlu0 %v15992_v17, %s12017_s8 }
 0x7ee   : > { %10495 = vmatmul.mubr.msk.bf16.vlgmr.msra.gmra.mrb[100].mxu0 %vm1451_vm3, %v3763_v5 }
 0x7ef   : > { %10506 = vmatprep.mubr.msk.bf16.mxu0 %vm12009_vm1, %v15900_v43 }
 0x7f1   : > { %10719 = vmatmul.mubr.msk.bf16.vlgmr.msra.gmra.mrb[208].mxu1 %vm653_vm2, %v16026_v53  ;;  %6441 = vrot.lane.b32.xlu0 %v15991_v15, %s12017_s8 }
 0x7f2   : > { %10723 = vmatpush3.bf16.xpose.msra.mxu1 %v5646_v50  ;;  %10724 = vmatprep.mubr.msk.bf16.mxu1 %vm12009_vm1, %v15900_v43 }
 0x7f3   : > { %10728 = vmatprep.subr.bf16.mxu1 %v15900_v43 }
 0x7f9   : > { %10725 = vmatmul.mubr.msk.bf16.vlgmr.msra.gmra.mrb[212].mxu1 %vm653_vm2, %v14012_v57 }
 0x7fa   : > { %10729 = vmatpush3.bf16.xpose.msra.mxu1 %v5697_v4  ;;  %10730 = vmatprep.mubr.msk.bf16.mxu1 %vm12009_vm1, %v15900_v43 }
 0x7fb   : > { %10734 = vmatprep.subr.bf16.mxu1 %v15900_v43 }
 0x801   : > { %10731 = vmatmul.mubr.msk.bf16.vlgmr.msra.gmra.mrb[216].mxu1 %vm653_vm2, %v5690_v48 }
 0x802   : > { %10735 = vmatpush3.bf16.xpose.msra.mxu1 %v5748_v2  ;;  %10736 = vmatprep.mubr.msk.bf16.mxu1 %vm12009_vm1, %v15900_v43 }
 0x803   : > { %10746 = vmatprep.subr.bf16.mxu1 %v15900_v43 }
 0x809   : > { %10737 = vmatmul.mubr.msk.bf16.vlgmr.msra.gmra.mrb[220].mxu1 %vm653_vm2, %v5741_v30 }
 0x80a   : > { %10748 = vmatprep.mubr.msk.bf16.mxu1 %vm12009_vm1, %v15900_v43 }
 0x817   : > { %v3663_v57 = vpop.xlane.xlu1 %3662 }
 0x81b   : > { %v14152_v63 = vpop.xlane.xlu1 %3674  ;;  %v3666_v23 = vpop.xlane.xlu0 %3665 }
 0x81c   : > { %11542 = vrcp.f32 %v3666_v23 }
 0x81d   : > { %11544 = vrcp.f32 %v3663_v57 }
 0x81f   : > { %v3678_v51 = vpop.xlane.xlu1 %3677  ;;  %v3966_v8 = vpop.permute.xlu0 %3965 }
 0x820   : > { %10505 = vmatpush3.bf16.msra.mxu0 %v3966_v8  ;;  %11546 = vrcp.f32 %v3678_v51 }
 0x821   : > { %10516 = vmatprep.subr.bf16.mxu0 %v15900_v43  ;;  %11548 = vrcp.f32 %v14152_v63 }
 0x823   : > { %v4060_v16 = vpop.permute.xlu1 %4059  ;;  %v14157_v13 = vpop.f32.mrb[128].mxu1  ;;  %10507 = vmatmul.mubr.msk.bf16.vlgmr.msra.gmra.mrb[104].mxu0 %vm1451_vm3, %v3765_v18 }
 0x824   : > { %v10490_v39 = vpop.f32.mrb[129].mxu1  ;;  %10517 = vmatpush3.bf16.msra.mxu0 %v4060_v16  ;;  %10518 = vmatprep.mubr.msk.bf16.mxu0 %vm12009_vm1, %v15900_v43  ;;  %v11539_v18 = vpop.eup %11538 }
 0x825   : > { %v14164_v9 = vpop.f32.mrb[130].mxu1  ;;  %10528 = vmatprep.subr.bf16.mxu0 %v15900_v43  ;;  %v11541_v16 = vpop.eup %11540  ;;  %v3746_v42 = vmul.f32 %v11539_v18, %v13901_v19 }
 0x826   : > { %v4530_v47 = vpack.c.bf16 %v14164_v9, %v14157_v13  ;;  %v10491_v49 = vpop.f32.mrb[131].mxu1  ;;  %v3745_v55 = vmul.f32 %v11541_v16, %v13890_v54 }
 0x828   : > { %v3769_v57 = vpack.c.bf16 %v3746_v42, %v3745_v55 }
 0x82b   : > { %v14169_v46 = vpop.f32.mrb[132].mxu1  ;;  %10519 = vmatmul.mubr.msk.bf16.vlgmr.msra.gmra.mrb[108].mxu0 %vm1451_vm3, %v3767_v21 }
 0x82c   : > { %v10502_v28 = vpop.f32.mrb[133].mxu1  ;;  %10530 = vmatprep.mubr.msk.bf16.mxu0 %vm12009_vm1, %v15900_v43 }
 0x82d   : > { %v14174_v12 = vpop.f32.mrb[134].mxu1 }
 0x82e   : > { %v10503_v52 = vpop.f32.mrb[135].mxu1 }
 0x82f   : > { %v11543_v52 = vpop.eup %11542 }
 0x830   : > { %v3750_v54 = vmul.f32 %v11543_v52, %v13962_v36 }
 0x833   : > { %v14178_v40 = vpop.f32.mrb[136].mxu1 }
 0x834   : > { %v10514_v32 = vpop.f32.mrb[137].mxu1 }
 0x835   : > { %v14180_v41 = vpop.f32.mrb[138].mxu1  ;;  %v11545_v32 = vpop.eup %11544 }
 0x836   : > { %v10515_v62 = vpop.f32.mrb[139].mxu1 }
 0x83b   : > { %v14184_v29 = vpop.f32.mrb[140].mxu1 }
 0x83c   : > { %v10526_v50 = vpop.f32.mrb[141].mxu1 }
 0x83d   : > { %v14186_v53 = vpop.f32.mrb[142].mxu1 }
 0x83e   : > { %v10527_v25 = vpop.f32.mrb[143].mxu1 }
 0x83f   : > { %v3749_v25 = vmul.f32 %v11545_v32, %v13959_v34 }
 0x841   : > { %v3771_v36 = vpack.c.bf16 %v3750_v54, %v3749_v25  ;;  %v627_v54 = vld [vmem:[%s15769_s5 + $0x4] sm:$0xf] }
 0x843   : > { %v14190_v4 = vpop.f32.mrb[144].mxu1 }
 0x844   : > { %v10538_v48 = vpop.f32.mrb[145].mxu1 }
 0x845   : > { %v14192_v2 = vpop.f32.mrb[146].mxu1 }
 0x846   : > { %v10539_v37 = vpop.f32.mrb[147].mxu1 }
 0x84b   : > { %v14197_v24 = vpop.f32.mrb[148].mxu1 }
 0x84c   : > { %v10550_v56 = vpop.f32.mrb[149].mxu1 }
 0x84d   : > { %v14199_v10 = vpop.f32.mrb[150].mxu1  ;;  %v9807_v56 = vld [vmem:[#allocation7 + $0x10] sm:$0xff]  }
 0x84e   : > { %v10551_v58 = vpop.f32.mrb[151].mxu1  ;;  %v14227_v16 = vunpack.c.l.bf16 %v9807_v56 }
 0x84f   : > { %v11547_v58 = vpop.eup %11546 }
 0x850   : > { %v3687_v22 = vpop.xlane.xlu0 %3686  ;;  %v11549_v34 = vpop.eup %11548  ;;  %v3754_v42 = vmul.f32 %v11547_v58, %v13977_v60 }
 0x851   : > { %v3753_v55 = vmul.f32 %v11549_v34, %v13970_v27 }
 0x853   : > { %v14204_v39 = vpop.f32.mrb[152].mxu1  ;;  %v3773_v60 = vpack.c.bf16 %v3754_v42, %v3753_v55  ;;  %v4595_v55 = vsel %vm4593_vm4, %v627_v54, 0 }
 0x854   : > { %v3690_v35 = vpop.xlane.xlu1 %3689  ;;  %v10562_v45 = vpop.f32.mrb[153].mxu1 }
 0x855   : > { %v4154_v49 = vpop.permute.xlu0 %4153  ;;  %v14207_v21 = vpop.f32.mrb[154].mxu1  ;;  %11550 = vrcp.f32 %v3690_v35  ;;  %v14232_v35 = vunpack.c.h.bf16 %v9807_v56 }
 0x856   : > { %10529 = vmatpush3.bf16.msra.mxu0 %v4154_v49  ;;  %v10563_v28 = vpop.f32.mrb[155].mxu1  ;;  %11552 = vrcp.f32 %v3687_v22 }
 0x857   : > { %10540 = vmatprep.subr.bf16.mxu0 %v15900_v43 }
 0x858   : > { %v4248_v19 = vpop.permute.xlu1 %4247 }
 0x859   : > { %10531 = vmatmul.mubr.msk.bf16.vlgmr.msra.gmra.mrb[112].mxu0 %vm1451_vm3, %v3769_v57  ;;  %v4342_v18 = vpop.permute.xlu0 %4341 }
 0x85a   : > { %10541 = vmatpush3.bf16.msra.mxu0 %v4248_v19  ;;  %10542 = vmatprep.mubr.msk.bf16.mxu0 %vm12009_vm1, %v15900_v43 }
 0x85b   : > { %v14217_v51 = vpop.f32.mrb[156].mxu1  ;;  %10552 = vmatprep.subr.bf16.mxu0 %v15900_v43 }
 0x85c   : > { %v6207_v62 = vpop.permute.xlu1 %6206  ;;  %v10574_v50 = vpop.f32.mrb[157].mxu1 }
 0x85d   : > { %v14221_v48 = vpop.f32.mrb[158].mxu1  ;;  %10747 = vmatpush3.bf16.msra.mxu1 %v6207_v62  ;;  %v4436_v27 = vpop.permute.xlu0 %4435 }
 0x85e   : > { %v10575_v37 = vpop.f32.mrb[159].mxu1  ;;  %10758 = vmatprep.subr.bf16.mxu1 %v15900_v43 }
 0x85f   : > { %v11551_v32 = vpop.eup %11550 }
 0x860   : > { %v11553_v50 = vpop.eup %11552  ;;  %v3758_v25 = vmul.f32 %v11551_v32, %v14055_v1 }
 0x861   : > { %10543 = vmatmul.mubr.msk.bf16.vlgmr.msra.gmra.mrb[116].mxu0 %vm1451_vm3, %v3771_v36  ;;  %v3757_v56 = vmul.f32 %v11553_v50, %v14045_v33 }
 0x862   : > { %10553 = vmatpush3.bf16.msra.mxu0 %v4342_v18  ;;  %10554 = vmatprep.mubr.msk.bf16.mxu0 %vm12009_vm1, %v15900_v43 }
 0x863   : > { %10564 = vmatprep.subr.bf16.mxu0 %v15900_v43 }
 0x864   : > { %v5019_v45 = vpop.f32.mrb[160].mxu1 }
 0x865   : > { %v14237_v22 = vadd.f32 %v14227_v16, %v5019_v45  ;;  %v10648_v49 = vpop.f32.mrb[161].mxu1  ;;  %v3775_v45 = vpack.c.bf16 %v3758_v25, %v3757_v56  ;;  %v16027_v25 = vld [vmem:[#allocation17_spill] sm:$0xff] }
 0x866   : > { %v5022_v28 = vpop.f32.mrb[162].mxu1 }
 0x867   : > { %v14240_v57 = vadd.f32 %v14232_v35, %v5022_v28  ;;  %v10649_v52 = vpop.f32.mrb[163].mxu1  ;;  %v5791_v19 = vsel %vm1451_vm3, %v14237_v22, -inf }
 0x868   : > { %5792 = vmax.xlane.f32.xlu1 %v5791_v19 }
 0x869   : > { %10555 = vmatmul.mubr.msk.bf16.vlgmr.msra.gmra.mrb[120].mxu0 %vm1451_vm3, %v3773_v60  ;;  %v5794_v62 = vsel %vm1451_vm3, %v14240_v57, -inf }
 0x86a   : > { %10565 = vmatpush3.bf16.msra.mxu0 %v4436_v27  ;;  %5795 = vmax.xlane.f32.xlu0 %v5794_v62 }
 0x86b   : > { %10566 = vmatprep.mubr.msk.bf16.mxu0 %vm12009_vm1, %v15900_v43  ;;  %11196 = vmatprep.subr.msk.bf16.mxu0 %vm4593_vm4, %v627_v54 }
 0x86c   : > { %v5070_v37 = vpop.f32.mrb[164].mxu1 }
 0x86d   : > { %v14256_v36 = vadd.f32 %v14227_v16, %v5070_v37  ;;  %v10654_v58 = vpop.f32.mrb[165].mxu1 }
 0x86e   : > { %v5073_v18 = vpop.f32.mrb[166].mxu1 }
 0x86f   : > { %v14259_v34 = vadd.f32 %v14232_v35, %v5073_v18  ;;  %v10655_v42 = vpop.f32.mrb[167].mxu1  ;;  %v5797_v1 = vsel %vm1451_vm3, %v14256_v36, -inf }
 0x870   : > { %5798 = vmax.xlane.f32.xlu0 %v5797_v1 }
 0x871   : > { %10567 = vmatmul.mubr.msk.bf16.vlgmr.msra.gmra.mrb[124].mxu0 %vm1451_vm3, %v3775_v45  ;;  %v5800_v33 = vsel %vm1451_vm3, %v14259_v34, -inf }
 0x872   : > { %5801 = vmax.xlane.f32.xlu1 %v5800_v33  ;;  %10577 = vmatpush3.bf16.msra.mxu0 %v4595_v55 }
 0x874   : > { %v5121_v49 = vpop.f32.mrb[168].mxu1 }
 0x875   : > { %v14268_v28 = vadd.f32 %v14227_v16, %v5121_v49  ;;  %v10660_v52 = vpop.f32.mrb[169].mxu1 }
 0x876   : > { %v5124_v19 = vpop.f32.mrb[170].mxu1 }
 0x877   : > { %v10661_v60 = vpop.f32.mrb[171].mxu1  ;;  %v5803_v32 = vsel %vm1451_vm3, %v14268_v28, -inf  ;;  %v14294_v63 = vadd.f32 %v14232_v35, %v5124_v19 }
 0x878   : > { %5804 = vmax.xlane.f32.xlu0 %v5803_v32 }
 0x87c   : > { %v5172_v54 = vpop.f32.mrb[172].mxu1 }
 0x87d   : > { %v10666_v27 = vpop.f32.mrb[173].mxu1 }
 0x87e   : > { %v5175_v62 = vpop.f32.mrb[174].mxu1 }
 0x87f   : > { %v10667_v50 = vpop.f32.mrb[175].mxu1 }
 0x883   : > { %6582 = vrot.lane.b32.xlu1 %v16027_v25, %s12017_s8 }
 0x884   : > { %v14274_v37 = vpop.f32.mrb[176].mxu1 }
 0x885   : > { %v10672_v56 = vpop.f32.mrb[177].mxu1 }
 0x886   : > { %v5226_v58 = vpop.f32.mrb[178].mxu1 }
 0x887   : > { %6629 = vrot.lane.b32.xlu1 %v16010_v0, %s12017_s8  ;;  %v10673_v18 = vpop.f32.mrb[179].mxu1 }
 0x888   : > { %v3817_v42 = vpop.f32.mrb[96].mxu0 }
 0x889   : > { %v10484_v1 = vpop.f32.mrb[97].mxu0 }
 0x88a   : > { %v3820_v45 = vpop.f32.mrb[98].mxu0 }
 0x88b   : > { %v4529_v55 = vpack.c.bf16 %v3820_v45, %v3817_v42  ;;  %v10485_v33 = vpop.f32.mrb[99].mxu0 }
 0x88c   : > { %v14278_v49 = vpop.f32.mrb[180].mxu1 }
 0x88d   : > { %v10678_v52 = vpop.f32.mrb[181].mxu1  ;;  %10578 = vmatprep.mubr.msk.bf16.mxu0 %vm653_vm2, %v4529_v55 }
 0x88e   : > { %6535 = vrot.lane.b32.xlu0 %v16013_v59, %s12017_s8  ;;  %v5277_v60 = vpop.f32.mrb[182].mxu1  ;;  %10579 = vmatmul.mubr.msk.bf16.vlgmr.msra.gmra.mrb[128].mxu0 %vm653_vm2, %v4530_v47  ;;  %v14297_v47 = vadd.f32 %v14227_v16, %v5172_v54 }
 0x88f   : > { %v10679_v32 = vpop.f32.mrb[183].mxu1 }
 0x890   : > { %v14300_v32 = vadd.f32 %v14232_v35, %v5175_v62 }
 0x892   : > { %v5812_v54 = vsel %vm1451_vm3, %v14300_v32, -inf }
 0x894   : > { %v14287_v27 = vpop.f32.mrb[184].mxu1 }
 0x895   : > { %v10684_v50 = vpop.f32.mrb[185].mxu1 }
 0x896   : > { %v5328_v56 = vpop.f32.mrb[186].mxu1  ;;  %v5806_v50 = vsel %vm1451_vm3, %v14294_v63, -inf }
 0x897   : > { %v10685_v18 = vpop.f32.mrb[187].mxu1 }
 0x89c   : > { %v14289_v42 = vpop.f32.mrb[188].mxu1 }
 0x89d   : > { %v10690_v1 = vpop.f32.mrb[189].mxu1 }
 0x89e   : > { %v5379_v45 = vpop.f32.mrb[190].mxu1  ;;  %v5809_v1 = vsel %vm1451_vm3, %v14297_v47, -inf }
 0x89f   : > { %v10691_v55 = vpop.f32.mrb[191].mxu1 }
 0x8a0   : > { %v14309_v55 = vadd.f32 %v14232_v35, %v5226_v58 }
 0x8a4   : > { %v14291_v33 = vpop.f32.mrb[192].mxu1 }
 0x8a5   : > { %v10696_v52 = vpop.f32.mrb[193].mxu1 }
 0x8a6   : > { %v5430_v13 = vpop.f32.mrb[194].mxu1 }
 0x8a7   : > { %v10697_v9 = vpop.f32.mrb[195].mxu1 }
 0x8a8   : > { %v14314_v9 = vadd.f32 %v14232_v35, %v5277_v60 }
 0x8aa   : > { %v5824_v8 = vsel %vm1451_vm3, %v14314_v9, -inf }
 0x8ab   : > { %5807 = vmax.xlane.f32.xlu1 %v5806_v50  ;;  %v5818_v50 = vsel %vm1451_vm3, %v14309_v55, -inf }
 0x8ac   : > { %v14304_v18 = vpop.f32.mrb[196].mxu1 }
 0x8ad   : > { %5810 = vmax.xlane.f32.xlu0 %v5809_v1  ;;  %v10702_v19 = vpop.f32.mrb[197].mxu1 }
 0x8ae   : > { %v5481_v52 = vpop.f32.mrb[198].mxu1  ;;  %v14321_v19 = vadd.f32 %v14232_v35, %v5328_v56 }
 0x8af   : > { %5813 = vmax.xlane.f32.xlu1 %v5812_v54  ;;  %v10703_v62 = vpop.f32.mrb[199].mxu1 }
 0x8b0   : > { %v14326_v62 = vadd.f32 %v14232_v35, %v5379_v45  ;;  %v5830_v60 = vsel %vm1451_vm3, %v14321_v19, -inf  ;;  %v14338_v45 = vadd.f32 %v14232_v35, %v5481_v52 }
 0x8b2   : > { %v5836_v11 = vsel %vm1451_vm3, %v14326_v62, -inf  ;;  %v5848_v52 = vsel %vm1451_vm3, %v14338_v45, -inf }
 0x8b3   : > { %5819 = vmax.xlane.f32.xlu1 %v5818_v50 }
 0x8b4   : > { %v14318_v23 = vpop.f32.mrb[200].mxu1 }
 0x8b5   : > { %v10708_v1 = vpop.f32.mrb[201].mxu1 }
 0x8b6   : > { %v5532_v58 = vpop.f32.mrb[202].mxu1  ;;  %v14333_v1 = vadd.f32 %v14232_v35, %v5430_v13 }
 0x8b7   : > { %5825 = vmax.xlane.f32.xlu1 %v5824_v8  ;;  %v10709_v54 = vpop.f32.mrb[203].mxu1 }
 0x8b8   : > { %v5842_v5 = vsel %vm1451_vm3, %v14333_v1, -inf }
 0x8bb   : > { %5831 = vmax.xlane.f32.xlu1 %v5830_v60 }
 0x8bc   : > { %v14330_v50 = vpop.f32.mrb[204].mxu1 }
 0x8bd   : > { %v10714_v30 = vpop.f32.mrb[205].mxu1 }
 0x8be   : > { %v5583_v56 = vpop.f32.mrb[206].mxu1 }
 0x8bf   : > { %5837 = vmax.xlane.f32.xlu1 %v5836_v11  ;;  %v10715_v8 = vpop.f32.mrb[207].mxu1  ;;  %v14347_v11 = vadd.f32 %v14232_v35, %v5532_v58 }
 0x8c1   : > { %v3911_v54 = vpop.f32.mrb[100].mxu0 }
 0x8c2   : > { %v10496_v60 = vpop.f32.mrb[101].mxu0 }
 0x8c3   : > { %6676 = vrot.lane.b32.xlu0 %v16028_v14, %s12017_s8  ;;  %5843 = vmax.xlane.f32.xlu1 %v5842_v5  ;;  %v3914_v30 = vpop.f32.mrb[102].mxu0  ;;  %v16029_v5 = vpack.c.bf16 %v14174_v12, %v14169_v46 }
 0x8c4   : > { %v4531_v13 = vpack.c.bf16 %v3914_v30, %v3911_v54  ;;  %v14344_v0 = vpop.f32.mrb[208].mxu1  ;;  %v10497_v25 = vpop.f32.mrb[103].mxu0  ;;  %v14357_v54 = vadd.f32 %v14232_v35, %v5583_v56  ;;  %v626_v30 = vld [vmem:[%s15769_s5] sm:$0xf] }
 0x8c5   : > { %v10720_v59 = vpop.f32.mrb[209].mxu1  ;;  %11197 = vmatprep.subr.msk.bf16.mxu0 %vm4593_vm4, %v626_v30  ;;  %v4807_v56 = vsel %vm4593_vm4, %v626_v30, 0 }
 0x8c6   : > { %v5634_v8 = vpop.f32.mrb[210].mxu1  ;;  %10582 = vmatprep.mubr.msk.bf16.mxu0 %vm653_vm2, %v4531_v13  ;;  %v5854_v59 = vsel %vm1451_vm3, %v14347_v11, -inf  ;;  %v5860_v12 = vsel %vm1451_vm3, %v14357_v54, -inf  ;;  %10611 = vmatpush3.bf16.msra.mxu0 %v4807_v56 }
 0x8c7   : > { %5849 = vmax.xlane.f32.xlu1 %v5848_v52  ;;  %v10721_v60 = vpop.f32.mrb[211].mxu1  ;;  %10583 = vmatmul.mubr.msk.bf16.gmra.mrb[132].mxu0 %vm653_vm2, %v16029_v5  ;;  %v14367_v13 = vadd.f32 %v14232_v35, %v5634_v8 }
 0x8c8   : > { %10740 = vmatprep.subr.bf16.mxu0 %v15900_v43 }
 0x8c9   : > { %v5866_v8 = vsel %vm1451_vm3, %v14367_v13, -inf }
 0x8cb   : > { %5855 = vmax.xlane.f32.xlu1 %v5854_v59 }
 0x8cc   : > { %v14361_v25 = vpop.f32.mrb[212].mxu1 }
 0x8cd   : > { %v10726_v58 = vpop.f32.mrb[213].mxu1 }
 0x8ce   : > { %v5685_v46 = vpop.f32.mrb[214].mxu1 }
 0x8cf   : > { %5861 = vmax.xlane.f32.xlu1 %v5860_v12  ;;  %v10727_v52 = vpop.f32.mrb[215].mxu1  ;;  %v14375_v60 = vadd.f32 %v14232_v35, %v5685_v46 }
 0x8d0   : > { %v14392_v52 = vadd.f32 %v14227_v16, %v14274_v37  ;;  %v14407_v37 = vadd.f32 %v14227_v16, %v14287_v27  ;;  %v14423_v27 = vadd.f32 %v14227_v16, %v14291_v33 }
 0x8d1   : > { %v5872_v14 = vsel %vm1451_vm3, %v14375_v60, -inf }
 0x8d3   : > { %5867 = vmax.xlane.f32.xlu1 %v5866_v8 }
 0x8d4   : > { %v14379_v5 = vpop.f32.mrb[216].mxu1 }
 0x8d5   : > { %v10732_v59 = vpop.f32.mrb[217].mxu1 }
 0x8d6   : > { %v5736_v58 = vpop.f32.mrb[218].mxu1 }
 0x8d7   : > { %v14384_v30 = vadd.f32 %v14232_v35, %v5736_v58  ;;  %5873 = vmax.xlane.f32.xlu1 %v5872_v14  ;;  %v10733_v12 = vpop.f32.mrb[219].mxu1  ;;  %v14399_v14 = vadd.f32 %v14227_v16, %v14278_v49  ;;  %v5815_v58 = vsel %vm1451_vm3, %v14392_v52, -inf  ;;  %v14415_v49 = vadd.f32 %v14227_v16, %v14289_v42 }
 0x8d8   : > { %v14431_v42 = vadd.f32 %v14227_v16, %v14304_v18 }
 0x8d9   : > { %v5878_v46 = vsel %vm1451_vm3, %v14384_v30, -inf }
 0x8db   : > { %5879 = vmax.xlane.f32.xlu1 %v5878_v46  ;;  %v5827_v46 = vsel %vm1451_vm3, %v14407_v37, -inf }
 0x8dc   : > { %v14388_v56 = vpop.f32.mrb[220].mxu1 }
 0x8dd   : > { %v10738_v8 = vpop.f32.mrb[221].mxu1 }
 0x8de   : > { %v5787_v59 = vpop.f32.mrb[222].mxu1  ;;  %v14419_v8 = vpop.permute.xlu1 %6300 }
 0x8df   : > { %v14395_v61 = vadd.f32 %v14232_v35, %v5787_v59  ;;  %v10739_v15 = vpop.f32.mrb[223].mxu1  ;;  %v5821_v35 = vsel %vm1451_vm3, %v14399_v14, -inf  ;;  %16030 = vst [vmem:[#allocation63_spill] sm:$0xff] %v14419_v8  ;;  %v5833_v59 = vsel %vm1451_vm3, %v14415_v49, -inf }
 0x8e0   : > { %v14411_v15 = vpop.permute.xlu0 %6159 }
 0x8e1   : > { %v5884_v12 = vsel %vm1451_vm3, %v14395_v61, -inf }
 0x8e2   : > { %5816 = vmax.xlane.f32.xlu0 %v5815_v58  ;;  %5885 = vmax.xlane.f32.xlu1 %v5884_v12  ;;  %v5839_v12 = vsel %vm1451_vm3, %v14423_v27, -inf }
 0x8e4   : > { %v14427_v58 = vpop.permute.xlu0 %6253 }
 0x8e5   : > { %16031 = vst [vmem:[#allocation62_spill] sm:$0xff] %v14427_v58 }
 0x8e6   : > { %5822 = vmax.xlane.f32.xlu0 %v5821_v35  ;;  %v14435_v35 = vpop.permute.xlu1 %6394 }
 0x8e7   : > { %16032 = vst [vmem:[#allocation24_spill] sm:$0xff] %v14435_v35 }
 0x8e8   : > { %v14439_v33 = vpop.permute.xlu0 %6347 }
 0x8e9   : > { %16033 = vst [vmem:[#allocation65_spill] sm:$0xff] %v14439_v33 }
 0x8ea   : > { %5828 = vmax.xlane.f32.xlu0 %v5827_v46  ;;  %v14443_v46 = vadd.f32 %v14227_v16, %v14318_v23  ;;  %v14447_v44 = vpop.permute.xlu1 %6488 }
 0x8eb   : > { %16034 = vst [vmem:[#allocation64_spill] sm:$0xff] %v14447_v44 }
 0x8ec   : > { %v5851_v35 = vsel %vm1451_vm3, %v14443_v46, -inf  ;;  %v14455_v23 = vpop.permute.xlu0 %6441 }
 0x8ed   : > { %16035 = vst [vmem:[#allocation60_spill] sm:$0xff] %v14455_v23 }
 0x8ee   : > { %5834 = vmax.xlane.f32.xlu0 %v5833_v59  ;;  %v5845_v59 = vsel %vm1451_vm3, %v14431_v42, -inf }
 0x8f2   : > { %5840 = vmax.xlane.f32.xlu0 %v5839_v12  ;;  %v14451_v12 = vadd.f32 %v14227_v16, %v14330_v50 }
 0x8f3   : > { %6723 = vrot.lane.b32.xlu1 %v16015_v7, %s12017_s8 }
 0x8f5   : > { %v5793_v50 = vpop.xlane.xlu1 %5792 }
 0x8f6   : > { %5846 = vmax.xlane.f32.xlu0 %v5845_v59  ;;  %v4005_v18 = vpop.f32.mrb[104].mxu0  ;;  %v14464_v59 = vadd.f32 %v14227_v16, %v14344_v0 }
 0x8f7   : > { %v10508_v8 = vpop.f32.mrb[105].mxu0 }
 0x8f8   : > { %v4008_v58 = vpop.f32.mrb[106].mxu0  ;;  %v16036_v8 = vpack.c.bf16 %v14180_v41, %v14178_v40  ;;  %v5863_v0 = vsel %vm1451_vm3, %v14464_v59, -inf }
 0x8f9   : > { %v4533_v7 = vpack.c.bf16 %v4008_v58, %v4005_v18  ;;  %v10509_v33 = vpop.f32.mrb[107].mxu0  ;;  %v5857_v58 = vsel %vm1451_vm3, %v14451_v12, -inf  ;;  %v5796_v18 = vpop.xlane.xlu0 %5795 }
 0x8fa   : > { %5852 = vmax.xlane.f32.xlu0 %v5851_v35  ;;  %v5888_v40 = vsub.f32 %v14240_v57, %v5796_v18 }
 0x8fb   : > { %10586 = vmatprep.mubr.msk.bf16.mxu0 %vm653_vm2, %v4533_v7  ;;  %v14470_v7 = vadd.f32 %v14227_v16, %v14361_v25 }
 0x8fc   : > { %10587 = vmatmul.mubr.msk.bf16.gmra.mrb[136].mxu0 %vm653_vm2, %v16036_v8  ;;  %v5921_v25 = vmul.f32 1.442695, %v5888_v40 }
 0x8fd   : > { %v5869_v18 = vsel %vm1451_vm3, %v14470_v7, -inf  ;;  %v5799_v40 = vpop.xlane.xlu0 %5798 }
 0x8fe   : > { %5858 = vmax.xlane.f32.xlu0 %v5857_v58  ;;  %v4099_v33 = vpop.f32.mrb[108].mxu0  ;;  %v16037_v58 = vpack.c.bf16 %v14186_v53, %v14184_v29  ;;  %11554 = vpow2.f32 %v5921_v25 }
 0x8ff   : > { %v10520_v44 = vpop.f32.mrb[109].mxu0  ;;  %v5802_v23 = vpop.xlane.xlu1 %5801 }
 0x900   : > { %v4102_v35 = vpop.f32.mrb[110].mxu0  ;;  %v14482_v44 = vadd.f32 %v14227_v16, %v14379_v5  ;;  %v5890_v57 = vsub.f32 %v14259_v34, %v5802_v23 }
 0x901   : > { %v4535_v41 = vpack.c.bf16 %v4102_v35, %v4099_v33  ;;  %v10521_v8 = vpop.f32.mrb[111].mxu0  ;;  %v14489_v33 = vadd.f32 %v14227_v16, %v14388_v56  ;;  %v16038_v56 = vld [vmem:[#allocation23_spill] sm:$0xff] }
 0x902   : > { %5864 = vmax.xlane.f32.xlu0 %v5863_v0  ;;  %v5925_v35 = vmul.f32 1.442695, %v5890_v57  ;;  %v5875_v29 = vsel %vm1451_vm3, %v14482_v44, -inf  ;;  %v5887_v0 = vsub.f32 %v14237_v22, %v5793_v50 }
 0x903   : > { %10590 = vmatprep.mubr.msk.bf16.mxu0 %vm653_vm2, %v4535_v41  ;;  %v5881_v53 = vsel %vm1451_vm3, %v14489_v33, -inf }
 0x904   : > { %10591 = vmatmul.mubr.msk.bf16.gmra.mrb[140].mxu0 %vm653_vm2, %v16037_v58  ;;  %11556 = vpow2.f32 %v5925_v35  ;;  %v14506_v58 = vpop.permute.xlu1 %6582 }
 0x905   : > { %v5805_v35 = vpop.xlane.xlu0 %5804 }
 0x906   : > { %5870 = vmax.xlane.f32.xlu0 %v5869_v18 }
 0x908   : > { %v14495_v34 = vpop.eup %11554  ;;  %v14515_v22 = vpop.permute.xlu1 %6629 }
 0x909   : > { %v5986_v5 = vsel %vm1451_vm3, %v14495_v34, 0.0 }
 0x90a   : > { %5876 = vmax.xlane.f32.xlu0 %v5875_v29  ;;  %v5919_v29 = vmul.f32 1.442695, %v5887_v0 }
 0x90c   : > { %11558 = vpow2.f32 %v5919_v29 }
 0x90e   : > { %5882 = vmax.xlane.f32.xlu0 %v5881_v53  ;;  %v14499_v23 = vpop.eup %11556  ;;  %v5889_v53 = vsub.f32 %v14256_v36, %v5799_v40 }
 0x90f   : > { %v5992_v16 = vsel %vm1451_vm3, %v14499_v23, 0.0 }
 0x917   : > { %5987 = vadd.xlane.f32.xlu1 %v5986_v5  ;;  %v16039_v5 = vpack.c.bf16 %v14192_v2, %v14190_v4  ;;  %v16040_v2 = vpack.c.bf16 %v14199_v10, %v14197_v24 }
 0x91b   : > { %5993 = vadd.xlane.f32.xlu1 %v5992_v16  ;;  %v5891_v16 = vsub.f32 %v14268_v28, %v5805_v35 }
 0x91d   : > { %v5927_v40 = vmul.f32 1.442695, %v5891_v16 }
 0x924   : > { %6770 = vrot.lane.b32.xlu0 %v16038_v56, %s12017_s8 }
 0x92c   : > { %v4193_v41 = vpop.f32.mrb[112].mxu0 }
 0x92d   : > { %v10532_v8 = vpop.f32.mrb[113].mxu0 }
 0x92e   : > { %v4196_v25 = vpop.f32.mrb[114].mxu0  ;;  %v5923_v8 = vmul.f32 1.442695, %v5889_v53 }
 0x92f   : > { %v4537_v57 = vpack.c.bf16 %v4196_v25, %v4193_v41  ;;  %v10533_v18 = vpop.f32.mrb[115].mxu0  ;;  %v14517_v25 = vpop.permute.xlu0 %6535 }
 0x930   : > { %11560 = vpow2.f32 %v5923_v8 }
 0x931   : > { %10594 = vmatprep.mubr.msk.bf16.mxu0 %vm653_vm2, %v4537_v57  ;;  %11562 = vpow2.f32 %v5927_v40 }
 0x932   : > { %10595 = vmatmul.mubr.msk.bf16.gmra.mrb[144].mxu0 %vm653_vm2, %v16039_v5 }
 0x934   : > { %v4287_v50 = vpop.f32.mrb[116].mxu0 }
 0x935   : > { %v10544_v41 = vpop.f32.mrb[117].mxu0 }
 0x936   : > { %v4290_v0 = vpop.f32.mrb[118].mxu0  ;;  %v14527_v41 = vpop.eup %11558 }
 0x937   : > { %v4539_v18 = vpack.c.bf16 %v4290_v0, %v4287_v50  ;;  %v10545_v36 = vpop.f32.mrb[119].mxu0 }
 0x938   : > { %v5808_v57 = vpop.xlane.xlu1 %5807 }
 0x939   : > { %v5892_v4 = vsub.f32 %v14294_v63, %v5808_v57  ;;  %10598 = vmatprep.mubr.msk.bf16.mxu0 %vm653_vm2, %v4539_v18 }
 0x93a   : > { %10599 = vmatmul.mubr.msk.bf16.gmra.mrb[148].mxu0 %vm653_vm2, %v16040_v2  ;;  %v5811_v28 = vpop.xlane.xlu0 %5810  ;;  %v14537_v40 = vpop.eup %11560 }
 0x93b   : > { %v5929_v35 = vmul.f32 1.442695, %v5892_v4  ;;  %v5893_v29 = vsub.f32 %v14297_v47, %v5811_v28  ;;  %v16041_v47 = vpack.c.bf16 %v14207_v21, %v14204_v39  ;;  %v5989_v39 = vsel %vm1451_vm3, %v14537_v40, 0.0 }
 0x93c   : > { %v5814_v53 = vpop.xlane.xlu1 %5813  ;;  %v4381_v5 = vpop.f32.mrb[120].mxu0 }
 0x93d   : > { %11564 = vpow2.f32 %v5929_v35  ;;  %v5931_v16 = vmul.f32 1.442695, %v5893_v29  ;;  %v5894_v50 = vsub.f32 %v14300_v32, %v5814_v53  ;;  %v10556_v8 = vpop.f32.mrb[121].mxu0  ;;  %v5983_v32 = vsel %vm1451_vm3, %v14527_v41, 0.0  ;;  %v14540_v35 = vpop.eup %11562 }
 0x93e   : > { %v4384_v63 = vpop.f32.mrb[122].mxu0 }
 0x93f   : > { %v5933_v0 = vmul.f32 1.442695, %v5894_v50  ;;  %v4541_v18 = vpack.c.bf16 %v4384_v63, %v4381_v5  ;;  %v10557_v24 = vpop.f32.mrb[123].mxu0  ;;  %11566 = vpow2.f32 %v5931_v16 }
 0x940   : > { %v5820_v10 = vpop.xlane.xlu1 %5819 }
 0x941   : > { %11568 = vpow2.f32 %v5933_v0  ;;  %v5896_v36 = vsub.f32 %v14309_v55, %v5820_v10  ;;  %10602 = vmatprep.mubr.msk.bf16.mxu0 %vm653_vm2, %v4541_v18  ;;  %v16042_v0 = vpack.c.bf16 %v14221_v48, %v14217_v51  ;;  %v5995_v18 = vsel %vm1451_vm3, %v14540_v35, 0.0 }
 0x942   : > { %10603 = vmatmul.mubr.msk.bf16.gmra.mrb[152].mxu0 %vm653_vm2, %v16041_v47  ;;  %v16044_v47 = vld [vmem:[#allocation44_spill] sm:$0xff] }
 0x943   : > { %v5937_v57 = vmul.f32 1.442695, %v5896_v36  ;;  %5984 = vadd.xlane.f32.xlu0 %v5983_v32  ;;  %v16043_v36 = vld [vmem:[#allocation45_spill] sm:$0xff] }
 0x944   : > { %v5826_v4 = vpop.xlane.xlu1 %5825  ;;  %v4475_v2 = vpop.f32.mrb[124].mxu0  ;;  %v16045_v32 = vpack.c.bf16 %v16043_v36, %v16044_v47  ;;  %v16055_v36 = vld [vmem:[#allocation49_spill] sm:$0xff]  ;;  %v16056_v47 = vld [vmem:[#allocation48_spill] sm:$0xff] }
 0x945   : > { %11570 = vpow2.f32 %v5937_v57  ;;  %v5898_v28 = vsub.f32 %v14314_v9, %v5826_v4  ;;  %v10568_v55 = vpop.f32.mrb[125].mxu0 }
 0x946   : > { %v4478_v29 = vpop.f32.mrb[126].mxu0  ;;  %v16046_v55 = vld [vmem:[#allocation36_spill] sm:$0xff] }
 0x947   : > { %v14544_v21 = vpop.eup %11564  ;;  %v5941_v53 = vmul.f32 1.442695, %v5898_v28  ;;  %v4543_v5 = vpack.c.bf16 %v4478_v29, %v4475_v2  ;;  %v10569_v16 = vpop.f32.mrb[127].mxu0  ;;  %5990 = vadd.xlane.f32.xlu0 %v5989_v39  ;;  %v16047_v29 = vld [vmem:[#allocation35_spill] sm:$0xff] }
 0x948   : > { %v5832_v50 = vpop.xlane.xlu1 %5831  ;;  %v5998_v8 = vsel %vm1451_vm3, %v14544_v21, 0.0  ;;  %v16048_v39 = vpack.c.bf16 %v16046_v55, %v16047_v29  ;;  %v16064_v29 = vld [vmem:[#allocation39_spill] sm:$0xff] }
 0x949   : > { %11572 = vpow2.f32 %v5941_v53  ;;  %v5900_v9 = vsub.f32 %v14321_v19, %v5832_v50  ;;  %10606 = vmatprep.mubr.msk.bf16.mxu0 %vm653_vm2, %v4543_v5  ;;  %5999 = vadd.xlane.f32.xlu1 %v5998_v8  ;;  %v14550_v63 = vpop.eup %11566  ;;  %v16050_v5 = vld [vmem:[#allocation46_spill] sm:$0xff] }
 0x94a   : > { %10607 = vmatmul.mubr.msk.bf16.gmra.mrb[156].mxu0 %vm653_vm2, %v16042_v0  ;;  %v6001_v48 = vsel %vm1451_vm3, %v14550_v63, 0.0  ;;  %v16052_v0 = vld [vmem:[#allocation38_spill] sm:$0xff] }
 0x94b   : > { %v14558_v24 = vpop.eup %11568  ;;  %v5945_v10 = vmul.f32 1.442695, %v5900_v9  ;;  %10612 = vmatprep.mubr.msk.bf16.mxu0 %vm653_vm2, %v16045_v32  ;;  %5996 = vadd.xlane.f32.xlu0 %v5995_v18  ;;  %v16053_v18 = vld [vmem:[#allocation37_spill] sm:$0xff]  ;;  %v16057_v32 = vpack.c.bf16 %v16055_v36, %v16056_v47 }
 0x94c   : > { %v5838_v19 = vpop.xlane.xlu1 %5837  ;;  %v6004_v57 = vsel %vm1451_vm3, %v14558_v24, 0.0 }
 0x94d   : > { %11574 = vpow2.f32 %v5945_v10  ;;  %v5902_v51 = vsub.f32 %v14326_v62, %v5838_v19  ;;  %6005 = vadd.xlane.f32.xlu1 %v6004_v57  ;;  %v16049_v62 = vld [vmem:[#allocation47_spill] sm:$0xff]  ;;  %v16058_v57 = vld [vmem:[#allocation29_spill] sm:$0xff] }
 0x94e   : > { %v16051_v16 = vpack.c.bf16 %v16049_v62, %v16050_v5  ;;  %v14615_v5 = vpop.permute.xlu0 %6676 }
 0x94f   : > { %v14569_v4 = vpop.eup %11570  ;;  %v5949_v2 = vmul.f32 1.442695, %v5902_v51  ;;  %6002 = vadd.xlane.f32.xlu0 %v6001_v48  ;;  %v16059_v51 = vld [vmem:[#allocation30_spill] sm:$0xff] }
 0x950   : > { %v6010_v28 = vsel %vm1451_vm3, %v14569_v4, 0.0  ;;  %v16060_v48 = vpack.c.bf16 %v16058_v57, %v16059_v51  ;;  %v16073_v51 = vld [vmem:[#allocation55_spill] sm:$0xff] }
 0x951   : > { %11576 = vpow2.f32 %v5949_v2  ;;  %6011 = vadd.xlane.f32.xlu1 %v6010_v28  ;;  %v16061_v2 = vld [vmem:[#allocation51_spill] sm:$0xff]  ;;  %v16062_v28 = vld [vmem:[#allocation50_spill] sm:$0xff] }
 0x952   : > { %10613 = vmatmul.mubr.msk.bf16.vlgmr.msra.gmra.mrb[128].mxu0 %vm653_vm2, %v16048_v39  ;;  %v16063_v55 = vpack.c.bf16 %v16061_v2, %v16062_v28  ;;  %v16065_v39 = vld [vmem:[#allocation40_spill] sm:$0xff] }
 0x953   : > { %v14577_v53 = vpop.eup %11572  ;;  %10741 = vmatpush3.bf16.msra.mxu0 %v14411_v15  ;;  %10616 = vmatprep.mubr.msk.bf16.mxu0 %vm653_vm2, %v16051_v16  ;;  %v16054_v15 = vpack.c.bf16 %v16052_v0, %v16053_v18  ;;  %v16066_v62 = vpack.c.bf16 %v16064_v29, %v16065_v39  ;;  %v5844_v16 = vpop.xlane.xlu1 %5843 }
 0x954   : > { %v6016_v50 = vsel %vm1451_vm3, %v14577_v53, 0.0  ;;  %10752 = vmatprep.subr.bf16.mxu0 %v15900_v43 }
 0x955   : > { %6017 = vadd.xlane.f32.xlu1 %v6016_v50  ;;  %v16067_v50 = vld [vmem:[#allocation53_spill] sm:$0xff] }
 0x957   : > { %v14587_v8 = vpop.eup %11574  ;;  %v5850_v36 = vpop.xlane.xlu1 %5849 }
 0x958   : > { %v6022_v9 = vsel %vm1451_vm3, %v14587_v8, 0.0 }
 0x959   : > { %6023 = vadd.xlane.f32.xlu1 %v6022_v9  ;;  %v16068_v9 = vld [vmem:[#allocation52_spill] sm:$0xff] }
 0x95a   : > { %10617 = vmatmul.mubr.msk.bf16.gmra.mrb[132].mxu0 %vm653_vm2, %v16054_v15  ;;  %v16069_v0 = vpack.c.bf16 %v16067_v50, %v16068_v9  ;;  %v16076_v9 = vld [vmem:[#allocation42_spill] sm:$0xff] }
 0x95b   : > { %v14595_v10 = vpop.eup %11576  ;;  %10620 = vmatprep.mubr.msk.bf16.mxu0 %vm653_vm2, %v16057_v32  ;;  %v16070_v32 = vld [vmem:[#allocation32_spill] sm:$0xff]  ;;  %v5856_v39 = vpop.xlane.xlu1 %5855 }
 0x95c   : > { %v6028_v19 = vsel %vm1451_vm3, %v14595_v10, 0.0 }
 0x95d   : > { %6029 = vadd.xlane.f32.xlu1 %v6028_v19  ;;  %v16071_v19 = vld [vmem:[#allocation28_spill] sm:$0xff] }
 0x95e   : > { %v16072_v57 = vpack.c.bf16 %v16070_v32, %v16071_v19  ;;  %v16079_v32 = vld [vmem:[#allocation57_spill] sm:$0xff]  ;;  %v16080_v19 = vld [vmem:[#allocation56_spill] sm:$0xff] }
 0x962   : > { %10621 = vmatmul.mubr.msk.bf16.gmra.mrb[136].mxu0 %vm653_vm2, %v16060_v48  ;;  %v16074_v48 = vld [vmem:[#allocation54_spill] sm:$0xff] }
 0x963   : > { %10624 = vmatprep.mubr.msk.bf16.mxu0 %vm653_vm2, %v16063_v55  ;;  %v16075_v2 = vpack.c.bf16 %v16073_v51, %v16074_v48  ;;  %v5862_v51 = vpop.xlane.xlu1 %5861 }
 0x96a   : > { %10625 = vmatmul.mubr.msk.bf16.gmra.mrb[140].mxu0 %vm653_vm2, %v16066_v62 }
 0x96b   : > { %10628 = vmatprep.mubr.msk.bf16.mxu0 %vm653_vm2, %v16069_v0  ;;  %v16077_v0 = vld [vmem:[#allocation31_spill] sm:$0xff] }
 0x96f   : > { %v5817_v18 = vpop.xlane.xlu0 %5816 }
 0x970   : > { %v5895_v15 = vsub.f32 %v14392_v52, %v5817_v18  ;;  %v16078_v18 = vpack.c.bf16 %v16076_v9, %v16077_v0  ;;  %v16085_v0 = vld [vmem:[#allocation59_spill] sm:$0xff] }
 0x972   : > { %v5935_v47 = vmul.f32 1.442695, %v5895_v15  ;;  %10629 = vmatmul.mubr.msk.bf16.gmra.mrb[144].mxu0 %vm653_vm2, %v16072_v57  ;;  %v5904_v15 = vsub.f32 %v14333_v1, %v5844_v16  ;;  %v16081_v57 = vpack.c.bf16 %v16079_v32, %v16080_v19 }
 0x973   : > { %10632 = vmatprep.mubr.msk.bf16.mxu0 %vm653_vm2, %v16075_v2  ;;  %v5823_v28 = vpop.xlane.xlu0 %5822 }
 0x974   : > { %v5897_v55 = vsub.f32 %v14399_v14, %v5823_v28  ;;  %11578 = vpow2.f32 %v5935_v47  ;;  %v5953_v28 = vmul.f32 1.442695, %v5904_v15 }
 0x976   : > { %v5939_v29 = vmul.f32 1.442695, %v5897_v55 }
 0x977   : > { %v5829_v62 = vpop.xlane.xlu0 %5828 }
 0x978   : > { %11580 = vpow2.f32 %v5939_v29  ;;  %v5899_v52 = vsub.f32 %v14407_v37, %v5829_v62  ;;  %v5906_v37 = vsub.f32 %v14338_v45, %v5850_v36  ;;  %v5908_v45 = vsub.f32 %v14347_v11, %v5856_v39  ;;  %v5868_v36 = vpop.xlane.xlu1 %5867 }
 0x97a   : > { %v5943_v50 = vmul.f32 1.442695, %v5899_v52  ;;  %10633 = vmatmul.mubr.msk.bf16.gmra.mrb[148].mxu0 %vm653_vm2, %v16078_v18  ;;  %v5957_v62 = vmul.f32 1.442695, %v5906_v37  ;;  %v16086_v18 = vld [vmem:[#allocation58_spill] sm:$0xff] }
 0x97b   : > { %10636 = vmatprep.mubr.msk.bf16.mxu0 %vm653_vm2, %v16081_v57  ;;  %v5835_v14 = vpop.xlane.xlu0 %5834  ;;  %v5961_v39 = vmul.f32 1.442695, %v5908_v45 }
 0x97c   : > { %11582 = vpow2.f32 %v5943_v50  ;;  %v5901_v47 = vsub.f32 %v14415_v49, %v5835_v14  ;;  %v16082_v49 = vld [vmem:[#allocation34_spill] sm:$0xff]  ;;  %v16083_v50 = vld [vmem:[#allocation41_spill] sm:$0xff]  ;;  %v5910_v14 = vsub.f32 %v14357_v54, %v5862_v51  ;;  %v5912_v54 = vsub.f32 %v14367_v13, %v5868_v36 }
 0x97d   : > { %v16084_v9 = vpack.c.bf16 %v16082_v49, %v16083_v50 }
 0x97e   : > { %v5947_v48 = vmul.f32 1.442695, %v5901_v47  ;;  %v14643_v2 = vpop.eup %11578  ;;  %v5969_v13 = vmul.f32 1.442695, %v5912_v54 }
 0x97f   : > { %v5841_v55 = vpop.xlane.xlu0 %5840  ;;  %v6007_v16 = vsel %vm1451_vm3, %v14643_v2, 0.0 }
 0x980   : > { %11584 = vpow2.f32 %v5947_v48  ;;  %v5903_v1 = vsub.f32 %v14423_v27, %v5841_v55  ;;  %6008 = vadd.xlane.f32.xlu0 %v6007_v16  ;;  %v16087_v27 = vpack.c.bf16 %v16085_v0, %v16086_v18  ;;  %v16088_v16 = vld [vmem:[#allocation43_spill] sm:$0xff] }
 0x981   : > { %11586 = vpow2.f32 %v5953_v28  ;;  %v5874_v28 = vpop.xlane.xlu1 %5873 }
 0x982   : > { %v14648_v29 = vpop.eup %11580  ;;  %v5951_v52 = vmul.f32 1.442695, %v5903_v1  ;;  %10637 = vmatmul.mubr.msk.bf16.gmra.mrb[152].mxu0 %vm653_vm2, %v16084_v9  ;;  %v5914_v45 = vsub.f32 %v14375_v60, %v5874_v28 }
 0x983   : > { %10640 = vmatprep.mubr.msk.bf16.mxu0 %vm653_vm2, %v16087_v27  ;;  %v5847_v15 = vpop.xlane.xlu0 %5846  ;;  %v6013_v32 = vsel %vm1451_vm3, %v14648_v29, 0.0 }
 0x984   : > { %11588 = vpow2.f32 %v5951_v52  ;;  %v5905_v19 = vsub.f32 %v14431_v42, %v5847_v15  ;;  %6014 = vadd.xlane.f32.xlu0 %v6013_v32  ;;  %v5965_v42 = vmul.f32 1.442695, %v5910_v14  ;;  %v16089_v52 = vld [vmem:[#allocation33_spill] sm:$0xff]  ;;  %v5973_v60 = vmul.f32 1.442695, %v5914_v45 }
 0x985   : > { %11590 = vpow2.f32 %v5957_v62  ;;  %v16090_v62 = vpack.c.bf16 %v16088_v16, %v16089_v52  ;;  %v5880_v36 = vpop.xlane.xlu1 %5879 }
 0x986   : > { %v14662_v57 = vpop.eup %11582  ;;  %v5955_v11 = vmul.f32 1.442695, %v5905_v19 }
 0x987   : > { %v5853_v47 = vpop.xlane.xlu0 %5852  ;;  %v6019_v37 = vsel %vm1451_vm3, %v14662_v57, 0.0 }
 0x988   : > { %11592 = vpow2.f32 %v5955_v11  ;;  %v5907_v48 = vsub.f32 %v14443_v46, %v5853_v47  ;;  %6020 = vadd.xlane.f32.xlu0 %v6019_v37  ;;  %v5916_v11 = vsub.f32 %v14384_v30, %v5880_v36 }
 0x989   : > { %11594 = vpow2.f32 %v5961_v39  ;;  %v5886_v39 = vpop.xlane.xlu1 %5885 }
 0x98a   : > { %v14668_v55 = vpop.eup %11584  ;;  %v5959_v1 = vmul.f32 1.442695, %v5907_v48  ;;  %10641 = vmatmul.mubr.msk.bf16.gmra.mrb[156].mxu0 %vm653_vm2, %v16090_v62  ;;  %v5918_v30 = vsub.f32 %v14395_v61, %v5886_v39  ;;  %v5977_v16 = vmul.f32 1.442695, %v5916_v11 }
 0x98b   : > { %v5859_v51 = vpop.xlane.xlu0 %5858  ;;  %v6025_v49 = vsel %vm1451_vm3, %v14668_v55, 0.0  ;;  %10742 = vmatprep.mubr.msk.bf16.mxu0 %vm12009_vm1, %v15900_v43  ;;  %v14680_v50 = vpop.eup %11586 }
 0x98c   : > { %11596 = vpow2.f32 %v5959_v1  ;;  %v5909_v46 = vsub.f32 %v14451_v12, %v5859_v51  ;;  %6026 = vadd.xlane.f32.xlu0 %v6025_v49  ;;  %v6034_v32 = vsel %vm1451_vm3, %v14680_v50, 0.0 }
 0x98d   : > { %11598 = vpow2.f32 %v5965_v42 }
 0x98e   : > { %v14682_v9 = vpop.eup %11588  ;;  %v5963_v0 = vmul.f32 1.442695, %v5909_v46  ;;  %v5981_v46 = vmul.f32 1.442695, %v5918_v30 }
 0x98f   : > { %v5865_v18 = vpop.xlane.xlu0 %5864  ;;  %v6031_v27 = vsel %vm1451_vm3, %v14682_v9, 0.0  ;;  %v14687_v15 = vpop.eup %11590 }
 0x990   : > { %11600 = vpow2.f32 %v5963_v0  ;;  %v5911_v12 = vsub.f32 %v14464_v59, %v5865_v18  ;;  %6032 = vadd.xlane.f32.xlu1 %v6031_v27  ;;  %6035 = vadd.xlane.f32.xlu0 %v6034_v32  ;;  %v6040_v37 = vsel %vm1451_vm3, %v14687_v15, 0.0 }
 0x991   : > { %11602 = vpow2.f32 %v5969_v13 }
 0x992   : > { %v14692_v19 = vpop.eup %11592  ;;  %v5967_v14 = vmul.f32 1.442695, %v5911_v12 }
 0x993   : > { %v5871_v47 = vpop.xlane.xlu0 %5870  ;;  %v6037_v59 = vsel %vm1451_vm3, %v14692_v19, 0.0  ;;  %v14700_v28 = vpop.eup %11594 }
 0x994   : > { %11604 = vpow2.f32 %v5967_v14  ;;  %v5913_v48 = vsub.f32 %v14470_v7, %v5871_v47  ;;  %6041 = vadd.xlane.f32.xlu1 %v6040_v37  ;;  %6038 = vadd.xlane.f32.xlu0 %v6037_v59  ;;  %v6046_v51 = vsel %vm1451_vm3, %v14700_v28, 0.0 }
 0x995   : > { %11606 = vpow2.f32 %v5973_v60 }
 0x996   : > { %v14702_v42 = vpop.eup %11596  ;;  %v5971_v1 = vmul.f32 1.442695, %v5913_v48 }
 0x997   : > { %v5877_v52 = vpop.xlane.xlu0 %5876  ;;  %v6043_v62 = vsel %vm1451_vm3, %v14702_v42, 0.0  ;;  %v14707_v54 = vpop.eup %11598 }
 0x998   : > { %11608 = vpow2.f32 %v5971_v1  ;;  %v5915_v7 = vsub.f32 %v14482_v44, %v5877_v52  ;;  %6044 = vadd.xlane.f32.xlu1 %v6043_v62  ;;  %6047 = vadd.xlane.f32.xlu0 %v6046_v51  ;;  %v6052_v0 = vsel %vm1451_vm3, %v14707_v54, 0.0  ;;  %v14759_v52 = vpop.permute.xlu1 %6723 }
 0x999   : > { %11610 = vpow2.f32 %v5977_v16 }
 0x99a   : > { %v14712_v49 = vpop.eup %11600  ;;  %v5975_v61 = vmul.f32 1.442695, %v5915_v7 }
 0x99b   : > { %v5883_v45 = vpop.xlane.xlu0 %5882  ;;  %v6049_v13 = vsel %vm1451_vm3, %v14712_v49, 0.0  ;;  %v14719_v36 = vpop.eup %11602 }
 0x99c   : > { %11612 = vpow2.f32 %v5975_v61  ;;  %v5917_v44 = vsub.f32 %v14489_v33, %v5883_v45  ;;  %6053 = vadd.xlane.f32.xlu1 %v6052_v0  ;;  %6050 = vadd.xlane.f32.xlu0 %v6049_v13  ;;  %v6058_v60 = vsel %vm1451_vm3, %v14719_v36, 0.0  ;;  %v16091_v45 = vld [vmem:[#allocation22_spill] sm:$0xff] }
 0x99d   : > { %11614 = vpow2.f32 %v5981_v46 }
 0x99e   : > { %v14721_v18 = vpop.eup %11604  ;;  %v5979_v27 = vmul.f32 1.442695, %v5917_v44 }
 0x99f   : > { %v6055_v12 = vsel %vm1451_vm3, %v14721_v18, 0.0  ;;  %v14725_v32 = vpop.eup %11606  ;;  %v14767_v7 = vpop.permute.xlu0 %6770 }
 0x9a0   : > { %11616 = vpow2.f32 %v5979_v27  ;;  %6056 = vadd.xlane.f32.xlu1 %v6055_v12  ;;  %6059 = vadd.xlane.f32.xlu0 %v6058_v60  ;;  %v6064_v14 = vsel %vm1451_vm3, %v14725_v32, 0.0  ;;  %v16092_v27 = vld [vmem:[#allocation27_spill] sm:$0xff] }
 0x9a2   : > { %v14729_v33 = vpop.eup %11608 }
 0x9a3   : > { %v6061_v11 = vsel %vm1451_vm3, %v14729_v33, 0.0  ;;  %v14735_v39 = vpop.eup %11610 }
 0x9a4   : > { %6065 = vadd.xlane.f32.xlu1 %v6064_v14  ;;  %6062 = vadd.xlane.f32.xlu0 %v6061_v11  ;;  %v6070_v48 = vsel %vm1451_vm3, %v14735_v39, 0.0  ;;  %v5988_v62 = vpop.xlane.xlu1 %5987 }
 0x9a5   : > { %11618 = vrcp.f32 %v5988_v62 }
 0x9a6   : > { %v14737_v47 = vpop.eup %11612 }
 0x9a7   : > { %v6067_v37 = vsel %vm1451_vm3, %v14737_v47, 0.0  ;;  %v14741_v59 = vpop.eup %11614 }
 0x9a8   : > { %6068 = vadd.xlane.f32.xlu1 %v6067_v37  ;;  %6071 = vadd.xlane.f32.xlu0 %v6070_v48  ;;  %v6076_v1 = vsel %vm1451_vm3, %v14741_v59, 0.0  ;;  %v5994_v51 = vpop.xlane.xlu1 %5993 }
 0x9aa   : > { %v14745_v30 = vpop.eup %11616 }
 0x9ab   : > { %v6073_v16 = vsel %vm1451_vm3, %v14745_v30, 0.0 }
 0x9ac   : > { %6077 = vadd.xlane.f32.xlu1 %v6076_v1  ;;  %6074 = vadd.xlane.f32.xlu0 %v6073_v16  ;;  %v16093_v1 = vld [vmem:[#allocation26_spill] sm:$0xff] }
 0x9af   : > { %v11619_v44 = vpop.eup %11618 }
 0x9b0   : > { %v6112_v14 = vmul.f32 %v11619_v44, %v14495_v34 }
 0x9bd   : > { %6817 = vrot.lane.b32.xlu1 %v15913_v20, %s12017_s8 }
 0x9c1   : > { %7178 = vrot.lane.b32.xlu1 %v12357_v6, %s12018_s9 }
 0x9c2   : > { %6864 = vrot.lane.b32.xlu0 %v12415_v3, %s12017_s8 }
 0x9c5   : > { %7229 = vrot.lane.b32.xlu1 %v16014_v38, %s12018_s9 }
 0x9c6   : > { %7176 = vrot.lane.b32.xlu0 %v12357_v6, %s12019_s23 }
 0x9c9   : > { %7280 = vrot.lane.b32.xlu1 %v12377_v26, %s12018_s9 }
 0x9ca   : > { %7227 = vrot.lane.b32.xlu0 %v16014_v38, %s12019_s23 }
 0x9cd   : > { %7331 = vrot.lane.b32.xlu1 %v16016_v31, %s12018_s9 }
 0x9ce   : > { %7278 = vrot.lane.b32.xlu0 %v12377_v26, %s12019_s23 }
 0x9d0   : > { %v5985_v46 = vpop.xlane.xlu0 %5984 }
 0x9d1   : > { %11620 = vrcp.f32 %v5985_v46  ;;  %7382 = vrot.lane.b32.xlu1 %v15992_v17, %s12018_s9 }
 0x9d2   : > { %11622 = vrcp.f32 %v5994_v51  ;;  %7329 = vrot.lane.b32.xlu0 %v16016_v31, %s12019_s23 }
 0x9d4   : > { %v5991_v61 = vpop.xlane.xlu0 %5990 }
 0x9d5   : > { %11624 = vrcp.f32 %v5991_v61  ;;  %7433 = vrot.lane.b32.xlu1 %v16091_v45, %s12018_s9  ;;  %v16094_v61 = vld [vmem:[#allocation62_spill] sm:$0xff] }
 0x9d6   : > { %v6000_v0 = vpop.xlane.xlu1 %5999  ;;  %7380 = vrot.lane.b32.xlu0 %v15992_v17, %s12019_s23 }
 0x9d7   : > { %11626 = vrcp.f32 %v6000_v0 }
 0x9d8   : > { %v5997_v13 = vpop.xlane.xlu0 %5996 }
 0x9d9   : > { %11628 = vrcp.f32 %v5997_v13  ;;  %7484 = vrot.lane.b32.xlu1 %v16092_v27, %s12018_s9  ;;  %v16095_v13 = vld [vmem:[#allocation18_spill] sm:$0xff] }
 0x9da   : > { %v6006_v12 = vpop.xlane.xlu1 %6005  ;;  %7431 = vrot.lane.b32.xlu0 %v16091_v45, %s12019_s23 }
 0x9db   : > { %v11621_v60 = vpop.eup %11620  ;;  %11630 = vrcp.f32 %v6006_v12  ;;  %v16096_v12 = vld [vmem:[#allocation63_spill] sm:$0xff] }
 0x9dc   : > { %v6111_v11 = vmul.f32 %v11621_v60, %v14527_v41  ;;  %v6003_v37 = vpop.xlane.xlu0 %6002  ;;  %v11623_v48 = vpop.eup %11622 }
 0x9dd   : > { %11632 = vrcp.f32 %v6003_v37  ;;  %7535 = vrot.lane.b32.xlu1 %v16093_v1, %s12018_s9  ;;  %v6114_v51 = vmul.f32 %v11623_v48, %v14499_v23  ;;  %v16098_v37 = vld [vmem:[#allocation65_spill] sm:$0xff] }
 0x9de   : > { %v6143_v16 = vpack.c.bf16 %v6112_v14, %v6111_v11  ;;  %7482 = vrot.lane.b32.xlu0 %v16092_v27, %s12019_s23  ;;  %v16097_v11 = vld [vmem:[#allocation17_spill] sm:$0xff] }
 0x9df   : > { %v11625_v62 = vpop.eup %11624 }
 0x9e0   : > { %v6113_v46 = vmul.f32 %v11625_v62, %v14537_v40  ;;  %10743 = vmatmul.mubr.msk.bf16.vlgmr.msra.gmra.mrb[160].mxu0 %vm1451_vm3, %v6143_v16  ;;  %v16099_v16 = vld [vmem:[#allocation21_spill] sm:$0xff] }
 0x9e1   : > { %v11627_v34 = vpop.eup %11626  ;;  %10753 = vmatpush3.bf16.msra.mxu0 %v16094_v61  ;;  %7533 = vrot.lane.b32.xlu1 %v16093_v1, %s12019_s23  ;;  %v16102_v62 = vld [vmem:[#allocation25_spill] sm:$0xff] }
 0x9e2   : > { %v6144_v41 = vpack.c.bf16 %v6114_v51, %v6113_v46  ;;  %10754 = vmatprep.mubr.msk.bf16.mxu0 %vm12009_vm1, %v15900_v43  ;;  %10764 = vmatprep.subr.bf16.mxu0 %v15900_v43  ;;  %v6116_v23 = vmul.f32 %v11627_v34, %v14544_v21  ;;  %v6012_v51 = vpop.xlane.xlu1 %6011 }
 0x9e3   : > { %v11629_v0 = vpop.eup %11628  ;;  %7586 = vrot.lane.b32.xlu0 %v16095_v13, %s12018_s9  ;;  %11634 = vrcp.f32 %v6012_v51 }
 0x9e4   : > { %v6115_v40 = vmul.f32 %v11629_v0, %v14540_v35  ;;  %10749 = vmatmul.mubr.msk.bf16.vlgmr.msra.gmra.mrb[224].mxu1 %vm1451_vm3, %v6144_v41 }
 0x9e5   : > { %v11631_v44 = vpop.eup %11630  ;;  %10759 = vmatpush3.bf16.msra.mxu1 %v16096_v12  ;;  %7584 = vrot.lane.b32.xlu1 %v16095_v13, %s12019_s23 }
 0x9e6   : > { %v6145_v60 = vpack.c.bf16 %v6116_v23, %v6115_v40  ;;  %10760 = vmatprep.mubr.msk.bf16.mxu1 %vm12009_vm1, %v15900_v43  ;;  %10770 = vmatprep.subr.bf16.mxu1 %v15900_v43  ;;  %v6118_v35 = vmul.f32 %v11631_v44, %v14558_v24  ;;  %v16100_v24 = vld [vmem:[#allocation24_spill] sm:$0xff]  ;;  %v6018_v46 = vpop.xlane.xlu1 %6017 }
 0x9e7   : > { %v11633_v14 = vpop.eup %11632  ;;  %7637 = vrot.lane.b32.xlu0 %v16097_v11, %s12018_s9 }
 0x9e8   : > { %v6117_v21 = vmul.f32 %v11633_v14, %v14550_v63  ;;  %10755 = vmatmul.mubr.msk.bf16.vlgmr.msra.gmra.mrb[164].mxu0 %vm1451_vm3, %v6145_v60  ;;  %v16101_v63 = vld [vmem:[#allocation20_spill] sm:$0xff] }
 0x9e9   : > { %10765 = vmatpush3.bf16.msra.mxu0 %v16098_v37  ;;  %7635 = vrot.lane.b32.xlu1 %v16097_v11, %s12019_s23  ;;  %v16103_v14 = vld [vmem:[#allocation60_spill] sm:$0xff] }
 0x9ea   : > { %v6146_v48 = vpack.c.bf16 %v6118_v35, %v6117_v21  ;;  %10766 = vmatprep.mubr.msk.bf16.mxu0 %vm12009_vm1, %v15900_v43  ;;  %10776 = vmatprep.subr.bf16.mxu0 %v15900_v43  ;;  %v16104_v37 = vld [vmem:[#allocation64_spill] sm:$0xff] }
 0x9eb   : > { %7688 = vrot.lane.b32.xlu0 %v16099_v16, %s12018_s9 }
 0x9ec   : > { %10761 = vmatmul.mubr.msk.bf16.vlgmr.msra.gmra.mrb[228].mxu1 %vm1451_vm3, %v6146_v48 }
 0x9ed   : > { %10771 = vmatpush3.bf16.msra.mxu1 %v16100_v24  ;;  %7686 = vrot.lane.b32.xlu1 %v16099_v16, %s12019_s23  ;;  %v11635_v34 = vpop.eup %11634 }
 0x9ee   : > { %10772 = vmatprep.mubr.msk.bf16.mxu1 %vm12009_vm1, %v15900_v43  ;;  %10782 = vmatprep.subr.bf16.mxu1 %v15900_v43 }
 0x9ef   : > { %7739 = vrot.lane.b32.xlu0 %v16101_v63, %s12018_s9 }
 0x9f1   : > { %7737 = vrot.lane.b32.xlu1 %v16101_v63, %s12019_s23 }
 0x9f3   : > { %7790 = vrot.lane.b32.xlu0 %v16102_v62, %s12018_s9 }
 0x9f5   : > { %7788 = vrot.lane.b32.xlu1 %v16102_v62, %s12019_s23 }
 0x9f7   : > { %7841 = vrot.lane.b32.xlu0 %v16038_v56, %s12018_s9 }
 0x9f9   : > { %7839 = vrot.lane.b32.xlu1 %v16038_v56, %s12019_s23 }
 0x9fb   : > { %7892 = vrot.lane.b32.xlu0 %v15913_v20, %s12018_s9 }
 0x9fd   : > { %7890 = vrot.lane.b32.xlu1 %v15913_v20, %s12019_s23 }
 0x9ff   : > { %7943 = vrot.lane.b32.xlu0 %v12415_v3, %s12018_s9  ;;  %s15711_s9 = scalar_lea.hbm %s15771_s7, %s9797_s16 }
 0xa01   : > { %8407 = vrot.lane.b32.xlu1 %v16014_v38, %s12020_s10 }
 0xa03   : > { %7941 = vrot.lane.b32.xlu0 %v12415_v3, %s12019_s23  ;;  %s11924_s23 = scalar_lea.vmem %s15713_s13, 4096 }
 0xa04   : > { %p11925_p10 = scmp.ne.s32.totalorder %s15713_s13, %s11924_s23 }
 0xa05   : > { %8501 = vrot.lane.b32.xlu1 %v16016_v31, %s12020_s10  ;;  %v6024_v31 = vpop.xlane.xlu1 %6023 }
 0xa06   : > { %p11926_p3 = pnand %p11925_p10, %p12218_p5 }
 0xa07   : > { %8360 = vrot.lane.b32.xlu0 %v12357_v6, %s12020_s10 }
 0xa08   : > { %p11927_p7 = pneg %p11926_p3 }
 0xa09   : > { %8595 = vrot.lane.b32.xlu1 %v16091_v45, %s12020_s10 }
 0xa0b   : > { %8454 = vrot.lane.b32.xlu0 %v12377_v26, %s12020_s10  ;;  %v6030_v26 = vpop.xlane.xlu1 %6029 }
 0xa0d   : > { %8689 = vrot.lane.b32.xlu1 %v16093_v1, %s12020_s10  ;;  %v6009_v38 = vpop.xlane.xlu0 %6008 }
 0xa0e   : > { %11636 = vrcp.f32 %v6009_v38 }
 0xa0f   : > { %8548 = vrot.lane.b32.xlu0 %v15992_v17, %s12020_s10  ;;  %11638 = vrcp.f32 %v6018_v46  ;;  %v6120_v17 = vmul.f32 %v11635_v34, %v14569_v4 }
 0xa11   : > { %8783 = vrot.lane.b32.xlu1 %v16097_v11, %s12020_s10  ;;  %v6015_v6 = vpop.xlane.xlu0 %6014 }
 0xa12   : > { %11640 = vrcp.f32 %v6015_v6 }
 0xa13   : > { %8642 = vrot.lane.b32.xlu0 %v16092_v27, %s12020_s10  ;;  %11642 = vrcp.f32 %v6024_v31 }
 0xa15   : > { %v6021_v45 = vpop.xlane.xlu0 %6020 }
 0xa16   : > { %11644 = vrcp.f32 %v6021_v45 }
 0xa17   : > { %8736 = vrot.lane.b32.xlu0 %v16095_v13, %s12020_s10  ;;  %11646 = vrcp.f32 %v6030_v26 }
 0xa18   : > { %v11637_v1 = vpop.eup %11636 }
 0xa19   : > { %v6119_v61 = vmul.f32 %v11637_v1, %v14643_v2  ;;  %v6027_v41 = vpop.xlane.xlu0 %6026  ;;  %v11639_v0 = vpop.eup %11638 }
 0xa1a   : > { %11648 = vrcp.f32 %v6027_v41  ;;  %v6122_v44 = vmul.f32 %v11639_v0, %v14577_v53 }
 0xa1b   : > { %v6147_v23 = vpack.c.bf16 %v6120_v17, %v6119_v61 }
 0xa1c   : > { %v11641_v40 = vpop.eup %11640 }
 0xa1d   : > { %v6033_v27 = vpop.xlane.xlu1 %6032  ;;  %v6121_v12 = vmul.f32 %v11641_v40, %v14648_v29  ;;  %10767 = vmatmul.mubr.msk.bf16.vlgmr.msra.gmra.mrb[168].mxu0 %vm1451_vm3, %v6147_v23  ;;  %v6036_v13 = vpop.xlane.xlu0 %6035 }
 0xa1e   : > { %11650 = vrcp.f32 %v6033_v27  ;;  %v11643_v60 = vpop.eup %11642  ;;  %10777 = vmatpush3.bf16.msra.mxu0 %v16103_v14  ;;  %10778 = vmatprep.mubr.msk.bf16.mxu0 %vm12009_vm1, %v15900_v43 }
 0xa1f   : > { %11652 = vrcp.f32 %v6036_v13  ;;  %v6148_v4 = vpack.c.bf16 %v6122_v44, %v6121_v12  ;;  %10788 = vmatprep.subr.bf16.mxu0 %v15900_v43  ;;  %v6124_v53 = vmul.f32 %v11643_v60, %v14587_v8 }
 0xa20   : > { %v11645_v2 = vpop.eup %11644 }
 0xa21   : > { %v6042_v11 = vpop.xlane.xlu1 %6041  ;;  %v6123_v29 = vmul.f32 %v11645_v2, %v14662_v57  ;;  %10773 = vmatmul.mubr.msk.bf16.vlgmr.msra.gmra.mrb[232].mxu1 %vm1451_vm3, %v6148_v4  ;;  %v6039_v35 = vpop.xlane.xlu0 %6038 }
 0xa22   : > { %11654 = vrcp.f32 %v6042_v11  ;;  %v11647_v21 = vpop.eup %11646  ;;  %10783 = vmatpush3.bf16.msra.mxu1 %v16104_v37  ;;  %10784 = vmatprep.mubr.msk.bf16.mxu1 %vm12009_vm1, %v15900_v43 }
 0xa23   : > { %11656 = vrcp.f32 %v6039_v35  ;;  %v6149_v48 = vpack.c.bf16 %v6124_v53, %v6123_v29  ;;  %10794 = vmatprep.subr.bf16.mxu1 %v15900_v43  ;;  %v6126_v8 = vmul.f32 %v11647_v21, %v14595_v10 }
 0xa24   : > { %v11649_v24 = vpop.eup %11648 }
 0xa25   : > { %v6045_v51 = vpop.xlane.xlu1 %6044  ;;  %v6125_v57 = vmul.f32 %v11649_v24, %v14668_v55  ;;  %10779 = vmatmul.mubr.msk.bf16.vlgmr.msra.gmra.mrb[172].mxu0 %vm1451_vm3, %v6149_v48  ;;  %v6048_v46 = vpop.xlane.xlu0 %6047 }
 0xa26   : > { %11658 = vrcp.f32 %v6045_v51  ;;  %10789 = vmatpush3.bf16.msra.mxu0 %v14517_v25  ;;  %10790 = vmatprep.mubr.msk.bf16.mxu0 %vm12009_vm1, %v15900_v43 }
 0xa27   : > { %11660 = vrcp.f32 %v6048_v46  ;;  %v6150_v31 = vpack.c.bf16 %v6126_v8, %v6125_v57  ;;  %10800 = vmatprep.subr.bf16.mxu0 %v15900_v43 }
 0xa28   : > { %v11651_v38 = vpop.eup %11650 }
 0xa29   : > { %v11653_v6 = vpop.eup %11652  ;;  %v6127_v26 = vmul.f32 %v11651_v38, %v14682_v9  ;;  %v6054_v10 = vpop.xlane.xlu1 %6053  ;;  %10785 = vmatmul.mubr.msk.bf16.vlgmr.msra.gmra.mrb[236].mxu1 %vm1451_vm3, %v6150_v31 }
 0xa2a   : > { %v6128_v55 = vmul.f32 %v11653_v6, %v14680_v50  ;;  %11662 = vrcp.f32 %v6054_v10  ;;  %v6051_v45 = vpop.xlane.xlu0 %6050  ;;  %10795 = vmatpush3.bf16.msra.mxu1 %v14506_v58  ;;  %10796 = vmatprep.mubr.msk.bf16.mxu1 %vm12009_vm1, %v15900_v43 }
 0xa2b   : > { %11664 = vrcp.f32 %v6051_v45  ;;  %10806 = vmatprep.subr.bf16.mxu1 %v15900_v43 }
 0xa2c   : > { %v11655_v25 = vpop.eup %11654  ;;  %v6151_v34 = vpack.c.bf16 %v6128_v55, %v6127_v26 }
 0xa2d   : > { %v11657_v1 = vpop.eup %11656  ;;  %v6130_v9 = vmul.f32 %v11655_v25, %v14687_v15  ;;  %v6057_v17 = vpop.xlane.xlu1 %6056 }
 0xa2e   : > { %v6129_v50 = vmul.f32 %v11657_v1, %v14692_v19  ;;  %11666 = vrcp.f32 %v6057_v17  ;;  %10791 = vmatmul.mubr.msk.bf16.vlgmr.msra.gmra.mrb[176].mxu0 %vm1451_vm3, %v6151_v34  ;;  %v6060_v61 = vpop.xlane.xlu0 %6059 }
 0xa2f   : > { %10801 = vmatpush3.bf16.msra.mxu0 %v14515_v22  ;;  %11668 = vrcp.f32 %v6060_v61  ;;  %10802 = vmatprep.mubr.msk.bf16.mxu0 %vm12009_vm1, %v15900_v43 }
 0xa30   : > { %v11659_v58 = vpop.eup %11658  ;;  %v6152_v41 = vpack.c.bf16 %v6130_v9, %v6129_v50  ;;  %10812 = vmatprep.subr.bf16.mxu0 %v15900_v43 }
 0xa31   : > { %v11661_v0 = vpop.eup %11660  ;;  %v6131_v15 = vmul.f32 %v11659_v58, %v14702_v42  ;;  %v6066_v23 = vpop.xlane.xlu1 %6065 }
 0xa32   : > { %v6132_v19 = vmul.f32 %v11661_v0, %v14700_v28  ;;  %11670 = vrcp.f32 %v6066_v23  ;;  %10797 = vmatmul.mubr.msk.bf16.vlgmr.msra.gmra.mrb[240].mxu1 %vm1451_vm3, %v6152_v41  ;;  %v6063_v40 = vpop.xlane.xlu0 %6062 }
 0xa33   : > { %10807 = vmatpush3.bf16.msra.mxu1 %v14615_v5  ;;  %11672 = vrcp.f32 %v6063_v40  ;;  %10808 = vmatprep.mubr.msk.bf16.mxu1 %vm12009_vm1, %v15900_v43 }
 0xa34   : > { %v11663_v22 = vpop.eup %11662  ;;  %v6153_v27 = vpack.c.bf16 %v6132_v19, %v6131_v15  ;;  %10818 = vmatprep.subr.bf16.mxu1 %v15900_v43 }
 0xa35   : > { %v11665_v44 = vpop.eup %11664  ;;  %v6134_v42 = vmul.f32 %v11663_v22, %v14707_v54  ;;  %v6069_v12 = vpop.xlane.xlu1 %6068 }
 0xa36   : > { %v6133_v28 = vmul.f32 %v11665_v44, %v14712_v49  ;;  %11674 = vrcp.f32 %v6069_v12  ;;  %10803 = vmatmul.mubr.msk.bf16.vlgmr.msra.gmra.mrb[180].mxu0 %vm1451_vm3, %v6153_v27  ;;  %v6072_v13 = vpop.xlane.xlu0 %6071 }
 0xa37   : > { %10813 = vmatpush3.bf16.msra.mxu0 %v14759_v52  ;;  %11676 = vrcp.f32 %v6072_v13  ;;  %10814 = vmatprep.mubr.msk.bf16.mxu0 %vm12009_vm1, %v15900_v43 }
 0xa38   : > { %v11667_v5 = vpop.eup %11666  ;;  %v6154_v60 = vpack.c.bf16 %v6134_v42, %v6133_v28  ;;  %10824 = vmatprep.subr.bf16.mxu0 %v15900_v43 }
 0xa39   : > { %v11669_v14 = vpop.eup %11668  ;;  %v6135_v54 = vmul.f32 %v11667_v5, %v14721_v18  ;;  %v6078_v4 = vpop.xlane.xlu1 %6077 }
 0xa3a   : > { %v6136_v49 = vmul.f32 %v11669_v14, %v14719_v36  ;;  %11678 = vrcp.f32 %v6078_v4  ;;  %10809 = vmatmul.mubr.msk.bf16.vlgmr.msra.gmra.mrb[244].mxu1 %vm1451_vm3, %v6154_v60  ;;  %v6075_v2 = vpop.xlane.xlu0 %6074  ;;  %v628_v36 = vld [vmem:[%s15769_s5 + $0x8] sm:$0xf] }
 0xa3b   : > { %10819 = vmatpush3.bf16.msra.mxu1 %v14767_v7  ;;  %11680 = vrcp.f32 %v6075_v2  ;;  %10820 = vmatprep.mubr.msk.bf16.mxu1 %vm12009_vm1, %v15900_v43  ;;  %v6976_v8 = vsel %vm4593_vm4, %v628_v36, 0 }
 0xa3c   : > { %v11671_v52 = vpop.eup %11670  ;;  %v6155_v11 = vpack.c.bf16 %v6136_v49, %v6135_v54  ;;  %10830 = vmatprep.subr.bf16.mxu1 %v15900_v43 }
 0xa3d   : > { %v11673_v53 = vpop.eup %11672  ;;  %v6138_v18 = vmul.f32 %v11671_v52, %v14725_v32  ;;  %v6818_v29 = vpop.permute.xlu1 %6817 }
 0xa3e   : > { %v6137_v35 = vmul.f32 %v11673_v53, %v14729_v33  ;;  %10815 = vmatmul.mubr.msk.bf16.vlgmr.msra.gmra.mrb[184].mxu0 %vm1451_vm3, %v6155_v11  ;;  %v6865_v24 = vpop.permute.xlu0 %6864 }
 0xa3f   : > { %10825 = vmatpush3.bf16.msra.mxu0 %v6818_v29  ;;  %10826 = vmatprep.mubr.msk.bf16.mxu0 %vm12009_vm1, %v15900_v43 }
 0xa40   : > { %v11675_v7 = vpop.eup %11674  ;;  %v6156_v21 = vpack.c.bf16 %v6138_v18, %v6137_v35  ;;  %11198 = vmatprep.subr.msk.bf16.mxu0 %vm4593_vm4, %v628_v36 }
 0xa41   : > { %v11677_v37 = vpop.eup %11676  ;;  %v6139_v32 = vmul.f32 %v11675_v7, %v14737_v47 }
 0xa42   : > { %v6140_v48 = vmul.f32 %v11677_v37, %v14735_v39  ;;  %10821 = vmatmul.mubr.msk.bf16.vlgmr.msra.gmra.mrb[248].mxu1 %vm1451_vm3, %v6156_v21  ;;  %v7179_v39 = vpop.permute.xlu1 %7178  ;;  %v7177_v6 = vpop.permute.xlu0 %7176 }
 0xa43   : > { %10831 = vmatpush3.bf16.msra.mxu1 %v6865_v24  ;;  %10832 = vmatprep.mubr.msk.bf16.mxu1 %vm12009_vm1, %v15900_v43  ;;  %v7184_v31 = vsel %vm653_vm2, %v7179_v39, 0 }
 0xa44   : > { %v11679_v33 = vpop.eup %11678  ;;  %v6157_v51 = vpack.c.bf16 %v6140_v48, %v6139_v32  ;;  %10870 = vmatprep.subr.bf16.mxu1 %v15900_v43 }
 0xa45   : > { %v11681_v57 = vpop.eup %11680  ;;  %v6142_v46 = vmul.f32 %v11679_v33, %v14741_v59 }
 0xa46   : > { %v6141_v47 = vmul.f32 %v11681_v57, %v14745_v30  ;;  %10827 = vmatmul.mubr.msk.bf16.vlgmr.msra.gmra.mrb[188].mxu0 %vm1451_vm3, %v6157_v51  ;;  %v7230_v59 = vpop.permute.xlu1 %7229  ;;  %v7228_v30 = vpop.permute.xlu0 %7227 }
 0xa47   : > { %10837 = vmatpush3.bf16.msra.mxu0 %v6976_v8  ;;  %v7235_v26 = vsel %vm653_vm2, %v7230_v59, 0 }
 0xa48   : > { %v6158_v38 = vpack.c.bf16 %v6142_v46, %v6141_v47  ;;  %10918 = vmatprep.subr.bf16.mxu0 %v15900_v43 }
 0xa4a   : > { %10833 = vmatmul.mubr.msk.bf16.vlgmr.msra.gmra.mrb[252].mxu1 %vm1451_vm3, %v6158_v38  ;;  %v7281_v10 = vpop.permute.xlu1 %7280  ;;  %v7279_v55 = vpop.permute.xlu0 %7278 }
 0xa4b   : > { %10872 = vmatprep.mubr.msk.bf16.mxu1 %vm12009_vm1, %v15900_v43  ;;  %v7286_v45 = vsel %vm653_vm2, %v7281_v10, 0 }
 0xa4c   : > { %10871 = vmatpush3.bf16.xpose.msra.mxu1 %v7184_v31 }
 0xa4d   : > { %10876 = vmatprep.subr.bf16.mxu1 %v15900_v43 }
 0xa4e   : > { %v7332_v25 = vpop.permute.xlu1 %7331  ;;  %v7330_v34 = vpop.permute.xlu0 %7329 }
 0xa4f   : > { %v7337_v1 = vsel %vm653_vm2, %v7332_v25, 0 }
 0xa52   : > { %v7383_v9 = vpop.permute.xlu1 %7382  ;;  %v7381_v17 = vpop.permute.xlu0 %7380 }
 0xa53   : > { %10873 = vmatmul.mubr.msk.bf16.vlgmr.msra.gmra.mrb[0].mxu1 %vm653_vm2, %v7177_v6  ;;  %v7388_v58 = vsel %vm653_vm2, %v7383_v9, 0 }
 0xa54   : > { %10877 = vmatpush3.bf16.xpose.msra.mxu1 %v7235_v26  ;;  %10878 = vmatprep.mubr.msk.bf16.mxu1 %vm12009_vm1, %v15900_v43 }
 0xa55   : > { %10882 = vmatprep.subr.bf16.mxu1 %v15900_v43 }
 0xa56   : > { %v7434_v50 = vpop.permute.xlu1 %7433  ;;  %v7432_v61 = vpop.permute.xlu0 %7431 }
 0xa57   : > { %v7439_v15 = vsel %vm653_vm2, %v7434_v50, 0 }
 0xa5a   : > { %v7485_v41 = vpop.permute.xlu1 %7484  ;;  %v7483_v0 = vpop.permute.xlu0 %7482 }
 0xa5b   : > { %10879 = vmatmul.mubr.msk.bf16.vlgmr.msra.gmra.mrb[4].mxu1 %vm653_vm2, %v7228_v30  ;;  %v7490_v40 = vsel %vm653_vm2, %v7485_v41, 0 }
 0xa5c   : > { %10883 = vmatpush3.bf16.xpose.msra.mxu1 %v7286_v45  ;;  %10884 = vmatprep.mubr.msk.bf16.mxu1 %vm12009_vm1, %v15900_v43 }
 0xa5d   : > { %10888 = vmatprep.subr.bf16.mxu1 %v15900_v43 }
 0xa5e   : > { %v7536_v23 = vpop.permute.xlu1 %7535  ;;  %v14979_v19 = vpop.permute.xlu0 %7586 }
 0xa5f   : > { %v7541_v12 = vsel %vm653_vm2, %v7536_v23, 0  ;;  %v7592_v39 = vsel %vm653_vm2, %v14979_v19, 0 }
 0xa62   : > { %v7534_v22 = vpop.permute.xlu1 %7533  ;;  %v7638_v27 = vpop.permute.xlu0 %7637 }
 0xa63   : > { %10885 = vmatmul.mubr.msk.bf16.vlgmr.msra.gmra.mrb[8].mxu1 %vm653_vm2, %v7279_v55  ;;  %v7643_v5 = vsel %vm653_vm2, %v7638_v27, 0 }
 0xa64   : > { %10889 = vmatpush3.bf16.xpose.msra.mxu1 %v7337_v1  ;;  %10890 = vmatprep.mubr.msk.bf16.mxu1 %vm12009_vm1, %v15900_v43 }
 0xa65   : > { %10894 = vmatprep.subr.bf16.mxu1 %v15900_v43 }
 0xa66   : > { %v14986_v44 = vpop.permute.xlu1 %7584  ;;  %v14988_v42 = vpop.permute.xlu0 %7688 }
 0xa6a   : > { %v7636_v28 = vpop.permute.xlu1 %7635  ;;  %v7740_v13 = vpop.permute.xlu0 %7739 }
 0xa6b   : > { %10891 = vmatmul.mubr.msk.bf16.vlgmr.msra.gmra.mrb[12].mxu1 %vm653_vm2, %v7330_v34  ;;  %v7745_v54 = vsel %vm653_vm2, %v7740_v13, 0 }
 0xa6c   : > { %10895 = vmatpush3.bf16.xpose.msra.mxu1 %v7388_v58  ;;  %10896 = vmatprep.mubr.msk.bf16.mxu1 %vm12009_vm1, %v15900_v43 }
 0xa6d   : > { %10900 = vmatprep.subr.bf16.mxu1 %v15900_v43 }
 0xa6e   : > { %v14999_v60 = vpop.permute.xlu1 %7686  ;;  %v15002_v14 = vpop.permute.xlu0 %7790 }
 0xa72   : > { %v7738_v4 = vpop.permute.xlu1 %7737  ;;  %v7842_v49 = vpop.permute.xlu0 %7841 }
 0xa73   : > { %10897 = vmatmul.mubr.msk.bf16.vlgmr.msra.gmra.mrb[16].mxu1 %vm653_vm2, %v7381_v17  ;;  %v7847_v11 = vsel %vm653_vm2, %v7842_v49, 0 }
 0xa74   : > { %10901 = vmatpush3.bf16.xpose.msra.mxu1 %v7439_v15  ;;  %10902 = vmatprep.mubr.msk.bf16.mxu1 %vm12009_vm1, %v15900_v43 }
 0xa75   : > { %10906 = vmatprep.subr.bf16.mxu1 %v15900_v43 }
 0xa76   : > { %v15009_v2 = vpop.permute.xlu1 %7788  ;;  %v15011_v52 = vpop.permute.xlu0 %7892 }
 0xa7a   : > { %v7840_v53 = vpop.permute.xlu1 %7839  ;;  %v7944_v18 = vpop.permute.xlu0 %7943 }
 0xa7b   : > { %10903 = vmatmul.mubr.msk.bf16.vlgmr.msra.gmra.mrb[20].mxu1 %vm653_vm2, %v7432_v61  ;;  %v7949_v29 = vsel %vm653_vm2, %v7944_v18, 0 }
 0xa7c   : > { %10907 = vmatpush3.bf16.xpose.msra.mxu1 %v7490_v40  ;;  %10908 = vmatprep.mubr.msk.bf16.mxu1 %vm12009_vm1, %v15900_v43 }
 0xa7d   : > { %10912 = vmatprep.subr.bf16.mxu1 %v15900_v43 }
 0xa7e   : > { %v15022_v36 = vpop.permute.xlu1 %7890  ;;  %v7942_v35 = vpop.permute.xlu0 %7941 }
 0xa82   : > { %v8408_v7 = vpop.permute.xlu1 %8407 }
 0xa83   : > { %10909 = vmatmul.mubr.msk.bf16.vlgmr.msra.gmra.mrb[24].mxu1 %vm653_vm2, %v7483_v0 }
 0xa84   : > { %10913 = vmatpush3.bf16.xpose.msra.mxu1 %v7541_v12  ;;  %10914 = vmatprep.mubr.msk.bf16.mxu1 %vm12009_vm1, %v15900_v43 }
 0xa85   : > { %10924 = vmatprep.subr.bf16.mxu1 %v15900_v43 }
 0xa8b   : > { %10915 = vmatmul.mubr.msk.bf16.vlgmr.msra.gmra.mrb[28].mxu1 %vm653_vm2, %v7534_v22 }
 0xa8c   : > { %10925 = vmatpush3.bf16.xpose.msra.mxu1 %v7643_v5  ;;  %10926 = vmatprep.mubr.msk.bf16.mxu1 %vm12009_vm1, %v15900_v43 }
 0xa8d   : > { %10936 = vmatprep.subr.bf16.mxu1 %v15900_v43 }
 0xa93   : > { %10927 = vmatmul.mubr.msk.bf16.vlgmr.msra.gmra.mrb[32].mxu1 %vm653_vm2, %v7636_v28 }
 0xa94   : > { %10937 = vmatpush3.bf16.xpose.msra.mxu1 %v7745_v54  ;;  %10938 = vmatprep.mubr.msk.bf16.mxu1 %vm12009_vm1, %v15900_v43 }
 0xa95   : > { %10948 = vmatprep.subr.bf16.mxu1 %v15900_v43 }
 0xa9b   : > { %10939 = vmatmul.mubr.msk.bf16.vlgmr.msra.gmra.mrb[36].mxu1 %vm653_vm2, %v7738_v4 }
 0xa9c   : > { %10949 = vmatpush3.bf16.xpose.msra.mxu1 %v7847_v11  ;;  %10950 = vmatprep.mubr.msk.bf16.mxu1 %vm12009_vm1, %v15900_v43 }
 0xa9d   : > { %10960 = vmatprep.subr.bf16.mxu1 %v15900_v43 }
 0xaa3   : > { %10951 = vmatmul.mubr.msk.bf16.vlgmr.msra.gmra.mrb[40].mxu1 %vm653_vm2, %v7840_v53 }
 0xaa4   : > { %10961 = vmatpush3.bf16.xpose.msra.mxu1 %v7949_v29  ;;  %10962 = vmatprep.mubr.msk.bf16.mxu1 %vm12009_vm1, %v15900_v43 }
 0xaa5   : > { %10972 = vmatprep.subr.bf16.mxu1 %v15900_v43 }
 0xaab   : > { %10963 = vmatmul.mubr.msk.bf16.vlgmr.msra.gmra.mrb[44].mxu1 %vm653_vm2, %v7942_v35 }
 0xaac   : > { %10973 = vmatpush3.bf16.msra.mxu1 %v8408_v7  ;;  %10974 = vmatprep.mubr.msk.bf16.mxu1 %vm12009_vm1, %v15900_v43 }
 0xaad   : > { %10984 = vmatprep.subr.bf16.mxu1 %v15900_v43 }
 0xab3   : > { %v6199_v21 = vpop.f32.mrb[160].mxu0 }
 0xab4   : > { %v10744_v37 = vpop.f32.mrb[161].mxu0 }
 0xab5   : > { %v6202_v32 = vpop.f32.mrb[162].mxu0 }
 0xab6   : > { %v6911_v48 = vpack.c.bf16 %v6202_v32, %v6199_v21  ;;  %v10745_v24 = vpop.f32.mrb[163].mxu0 }
 0xab7   : > { %v6246_v33 = vpop.f32.mrb[224].mxu1 }
 0xab8   : > { %v10750_v51 = vpop.f32.mrb[225].mxu1  ;;  %10838 = vmatprep.mubr.msk.bf16.mxu0 %vm653_vm2, %v6911_v48 }
 0xab9   : > { %v6249_v8 = vpop.f32.mrb[226].mxu1 }
 0xaba   : > { %v6912_v57 = vpack.c.bf16 %v6249_v8, %v6246_v33  ;;  %v10751_v46 = vpop.f32.mrb[227].mxu1 }
 0xabb   : > { %v6293_v47 = vpop.f32.mrb[164].mxu0 }
 0xabc   : > { %v10756_v38 = vpop.f32.mrb[165].mxu0  ;;  %10839 = vmatmul.mubr.msk.bf16.vlgmr.msra.gmra.mrb[128].mxu0 %vm653_vm2, %v6912_v57 }
 0xabd   : > { %10919 = vmatpush3.bf16.xpose.msra.mxu0 %v7592_v39  ;;  %v6296_v31 = vpop.f32.mrb[166].mxu0 }
 0xabe   : > { %v6913_v6 = vpack.c.bf16 %v6296_v31, %v6293_v47  ;;  %v10757_v59 = vpop.f32.mrb[167].mxu0  ;;  %10930 = vmatprep.subr.bf16.mxu0 %v15900_v43 }
 0xabf   : > { %v6340_v30 = vpop.f32.mrb[228].mxu1 }
 0xac0   : > { %v10762_v26 = vpop.f32.mrb[229].mxu1  ;;  %10842 = vmatprep.mubr.msk.bf16.mxu0 %vm653_vm2, %v6913_v6 }
 0xac1   : > { %v6343_v10 = vpop.f32.mrb[230].mxu1 }
 0xac2   : > { %v6914_v55 = vpack.c.bf16 %v6343_v10, %v6340_v30  ;;  %v10763_v45 = vpop.f32.mrb[231].mxu1 }
 0xac4   : > { %10843 = vmatmul.mubr.msk.bf16.gmra.mrb[132].mxu0 %vm653_vm2, %v6914_v55 }
 0xaf0   : > { %v6387_v25 = vpop.f32.mrb[168].mxu0 }
 0xaf1   : > { %v10768_v34 = vpop.f32.mrb[169].mxu0 }
 0xaf2   : > { %v6390_v1 = vpop.f32.mrb[170].mxu0 }
 0xaf3   : > { %v6915_v9 = vpack.c.bf16 %v6390_v1, %v6387_v25  ;;  %v10769_v17 = vpop.f32.mrb[171].mxu0 }
 0xaf4   : > { %v6434_v50 = vpop.f32.mrb[232].mxu1 }
 0xaf5   : > { %v10774_v61 = vpop.f32.mrb[233].mxu1  ;;  %10846 = vmatprep.mubr.msk.bf16.mxu0 %vm653_vm2, %v6915_v9 }
 0xaf6   : > { %v6437_v58 = vpop.f32.mrb[234].mxu1 }
 0xaf7   : > { %v6916_v41 = vpack.c.bf16 %v6437_v58, %v6434_v50  ;;  %v10775_v0 = vpop.f32.mrb[235].mxu1 }
 0xaf8   : > { %v6481_v15 = vpop.f32.mrb[172].mxu0 }
 0xaf9   : > { %v10780_v23 = vpop.f32.mrb[173].mxu0  ;;  %10847 = vmatmul.mubr.msk.bf16.gmra.mrb[136].mxu0 %vm653_vm2, %v6916_v41 }
 0xafa   : > { %v6484_v19 = vpop.f32.mrb[174].mxu0 }
 0xafb   : > { %v6917_v40 = vpack.c.bf16 %v6484_v19, %v6481_v15  ;;  %v10781_v22 = vpop.f32.mrb[175].mxu0  ;;  %v9811_v15 = vld [vmem:[#allocation7 + $0x18] sm:$0xff]  }
 0xafc   : > { %v6528_v27 = vpop.f32.mrb[236].mxu1  ;;  %v15048_v23 = vunpack.c.l.bf16 %v9811_v15  ;;  %v15052_v19 = vunpack.c.h.bf16 %v9811_v15 }
 0xafd   : > { %v10786_v12 = vpop.f32.mrb[237].mxu1  ;;  %10850 = vmatprep.mubr.msk.bf16.mxu0 %vm653_vm2, %v6917_v40 }
 0xafe   : > { %v6531_v28 = vpop.f32.mrb[238].mxu1 }
 0xaff   : > { %v6918_v13 = vpack.c.bf16 %v6531_v28, %v6528_v27  ;;  %v10787_v5 = vpop.f32.mrb[239].mxu1 }
 0xb01   : > { %v6575_v54 = vpop.f32.mrb[176].mxu0  ;;  %10851 = vmatmul.mubr.msk.bf16.gmra.mrb[140].mxu0 %vm653_vm2, %v6918_v13 }
 0xb02   : > { %v10792_v4 = vpop.f32.mrb[177].mxu0 }
 0xb03   : > { %v6578_v49 = vpop.f32.mrb[178].mxu0 }
 0xb04   : > { %v6919_v11 = vpack.c.bf16 %v6578_v49, %v6575_v54  ;;  %v10793_v53 = vpop.f32.mrb[179].mxu0  ;;  %v7694_v54 = vsel %vm653_vm2, %v14988_v42, 0 }
 0xb05   : > { %v6622_v18 = vpop.f32.mrb[240].mxu1 }
 0xb06   : > { %v10798_v29 = vpop.f32.mrb[241].mxu1  ;;  %10854 = vmatprep.mubr.msk.bf16.mxu0 %vm653_vm2, %v6919_v11 }
 0xb07   : > { %v6625_v35 = vpop.f32.mrb[242].mxu1 }
 0xb08   : > { %v6920_v7 = vpack.c.bf16 %v6625_v35, %v6622_v18  ;;  %v10799_v21 = vpop.f32.mrb[243].mxu1  ;;  %v7796_v35 = vsel %vm653_vm2, %v15002_v14, 0 }
 0xb09   : > { %v6669_v37 = vpop.f32.mrb[180].mxu0 }
 0xb0a   : > { %v10804_v32 = vpop.f32.mrb[181].mxu0  ;;  %10855 = vmatmul.mubr.msk.bf16.gmra.mrb[144].mxu0 %vm653_vm2, %v6920_v7 }
 0xb0b   : > { %v6672_v48 = vpop.f32.mrb[182].mxu0 }
 0xb0c   : > { %v6921_v24 = vpack.c.bf16 %v6672_v48, %v6669_v37  ;;  %v10805_v33 = vpop.f32.mrb[183].mxu0 }
 0xb0d   : > { %v6716_v51 = vpop.f32.mrb[244].mxu1  ;;  %v7898_v33 = vsel %vm653_vm2, %v15011_v52, 0 }
 0xb0e   : > { %v10810_v8 = vpop.f32.mrb[245].mxu1  ;;  %10858 = vmatprep.mubr.msk.bf16.mxu0 %vm653_vm2, %v6921_v24 }
 0xb0f   : > { %v6719_v57 = vpop.f32.mrb[246].mxu1 }
 0xb10   : > { %v6922_v46 = vpack.c.bf16 %v6719_v57, %v6716_v51  ;;  %v10811_v47 = vpop.f32.mrb[247].mxu1 }
 0xb11   : > { %v6763_v39 = vpop.f32.mrb[184].mxu0 }
 0xb12   : > { %v10816_v38 = vpop.f32.mrb[185].mxu0  ;;  %10859 = vmatmul.mubr.msk.bf16.gmra.mrb[148].mxu0 %vm653_vm2, %v6922_v46 }
 0xb13   : > { %v6766_v31 = vpop.f32.mrb[186].mxu0  ;;  %v8361_v38 = vpop.permute.xlu0 %8360 }
 0xb14   : > { %v6923_v6 = vpack.c.bf16 %v6766_v31, %v6763_v39  ;;  %v10817_v59 = vpop.f32.mrb[187].mxu0 }
 0xb15   : > { %v6810_v30 = vpop.f32.mrb[248].mxu1 }
 0xb16   : > { %v10822_v26 = vpop.f32.mrb[249].mxu1  ;;  %10862 = vmatprep.mubr.msk.bf16.mxu0 %vm653_vm2, %v6923_v6 }
 0xb17   : > { %v6813_v10 = vpop.f32.mrb[250].mxu1 }
 0xb18   : > { %v6924_v55 = vpack.c.bf16 %v6813_v10, %v6810_v30  ;;  %v10823_v45 = vpop.f32.mrb[251].mxu1 }
 0xb19   : > { %v6857_v25 = vpop.f32.mrb[188].mxu0 }
 0xb1a   : > { %v10828_v34 = vpop.f32.mrb[189].mxu0  ;;  %10863 = vmatmul.mubr.msk.bf16.gmra.mrb[152].mxu0 %vm653_vm2, %v6924_v55 }
 0xb1b   : > { %v6860_v1 = vpop.f32.mrb[190].mxu0 }
 0xb1c   : > { %v6925_v9 = vpack.c.bf16 %v6860_v1, %v6857_v25  ;;  %v10829_v17 = vpop.f32.mrb[191].mxu0 }
 0xb1d   : > { %v6904_v50 = vpop.f32.mrb[252].mxu1 }
 0xb1e   : > { %v10834_v61 = vpop.f32.mrb[253].mxu1  ;;  %10866 = vmatprep.mubr.msk.bf16.mxu0 %vm653_vm2, %v6925_v9 }
 0xb1f   : > { %v6907_v58 = vpop.f32.mrb[254].mxu1 }
 0xb20   : > { %v6926_v41 = vpack.c.bf16 %v6907_v58, %v6904_v50  ;;  %v10835_v0 = vpop.f32.mrb[255].mxu1 }
 0xb22   : > { %10867 = vmatmul.mubr.msk.bf16.gmra.mrb[156].mxu0 %vm653_vm2, %v6926_v41 }
 0xb23   : > { %10920 = vmatprep.mubr.msk.bf16.mxu0 %vm12009_vm1, %v15900_v43 }
 0xb26   : > { %v7220_v40 = vpop.f32.mrb[0].mxu1 }
 0xb27   : > { %v15055_v22 = vadd.f32 %v15048_v23, %v7220_v40  ;;  %v10874_v27 = vpop.f32.mrb[1].mxu1 }
 0xb28   : > { %v7223_v12 = vpop.f32.mrb[2].mxu1 }
 0xb29   : > { %v15058_v28 = vadd.f32 %v15052_v19, %v7223_v12  ;;  %v10875_v13 = vpop.f32.mrb[3].mxu1  ;;  %v7992_v5 = vsel %vm1451_vm3, %v15055_v22, -inf }
 0xb2a   : > { %7993 = vmax.xlane.f32.xlu1 %v7992_v5  ;;  %10921 = vmatmul.mubr.msk.bf16.vlgmr.msra.gmra.mrb[192].mxu0 %vm653_vm2, %v14986_v44 }
 0xb2b   : > { %10931 = vmatpush3.bf16.xpose.msra.mxu0 %v7694_v54  ;;  %v7995_v4 = vsel %vm1451_vm3, %v15058_v28, -inf  ;;  %10932 = vmatprep.mubr.msk.bf16.mxu0 %vm12009_vm1, %v15900_v43 }
 0xb2c   : > { %7996 = vmax.xlane.f32.xlu0 %v7995_v4  ;;  %10942 = vmatprep.subr.bf16.mxu0 %v15900_v43 }
 0xb2e   : > { %v7271_v49 = vpop.f32.mrb[4].mxu1 }
 0xb2f   : > { %v15072_v11 = vadd.f32 %v15048_v23, %v7271_v49  ;;  %v10880_v53 = vpop.f32.mrb[5].mxu1 }
 0xb30   : > { %v7274_v42 = vpop.f32.mrb[6].mxu1 }
 0xb31   : > { %v15075_v18 = vadd.f32 %v15052_v19, %v7274_v42  ;;  %v10881_v44 = vpop.f32.mrb[7].mxu1  ;;  %v7998_v29 = vsel %vm1451_vm3, %v15072_v11, -inf }
 0xb32   : > { %7999 = vmax.xlane.f32.xlu0 %v7998_v29  ;;  %10933 = vmatmul.mubr.msk.bf16.vlgmr.msra.gmra.mrb[196].mxu0 %vm653_vm2, %v14999_v60 }
 0xb33   : > { %10943 = vmatpush3.bf16.xpose.msra.mxu0 %v7796_v35  ;;  %v8001_v7 = vsel %vm1451_vm3, %v15075_v18, -inf  ;;  %10944 = vmatprep.mubr.msk.bf16.mxu0 %vm12009_vm1, %v15900_v43 }
 0xb34   : > { %8002 = vmax.xlane.f32.xlu1 %v8001_v7  ;;  %10954 = vmatprep.subr.bf16.mxu0 %v15900_v43 }
 0xb36   : > { %v7322_v21 = vpop.f32.mrb[8].mxu1 }
 0xb37   : > { %v15089_v37 = vadd.f32 %v15048_v23, %v7322_v21  ;;  %v10886_v32 = vpop.f32.mrb[9].mxu1 }
 0xb38   : > { %v7325_v14 = vpop.f32.mrb[10].mxu1 }
 0xb39   : > { %v15092_v48 = vadd.f32 %v15052_v19, %v7325_v14  ;;  %v10887_v60 = vpop.f32.mrb[11].mxu1  ;;  %v8004_v24 = vsel %vm1451_vm3, %v15089_v37, -inf }
 0xb3a   : > { %8005 = vmax.xlane.f32.xlu0 %v8004_v24  ;;  %10945 = vmatmul.mubr.msk.bf16.vlgmr.msra.gmra.mrb[200].mxu0 %vm653_vm2, %v15009_v2 }
 0xb3b   : > { %10955 = vmatpush3.bf16.xpose.msra.mxu0 %v7898_v33  ;;  %v8007_v51 = vsel %vm1451_vm3, %v15092_v48, -inf  ;;  %10956 = vmatprep.mubr.msk.bf16.mxu0 %vm12009_vm1, %v15900_v43 }
 0xb3c   : > { %8008 = vmax.xlane.f32.xlu1 %v8007_v51  ;;  %10966 = vmatprep.subr.bf16.mxu0 %v15900_v43 }
 0xb3e   : > { %v7373_v8 = vpop.f32.mrb[12].mxu1 }
 0xb3f   : > { %v15106_v57 = vadd.f32 %v15048_v23, %v7373_v8  ;;  %v10892_v46 = vpop.f32.mrb[13].mxu1 }
 0xb40   : > { %v7376_v52 = vpop.f32.mrb[14].mxu1 }
 0xb41   : > { %v15109_v47 = vadd.f32 %v15052_v19, %v7376_v52  ;;  %v10893_v2 = vpop.f32.mrb[15].mxu1  ;;  %v8010_v39 = vsel %vm1451_vm3, %v15106_v57, -inf }
 0xb42   : > { %8011 = vmax.xlane.f32.xlu0 %v8010_v39  ;;  %10957 = vmatmul.mubr.msk.bf16.vlgmr.msra.gmra.mrb[204].mxu0 %vm653_vm2, %v15022_v36 }
 0xb43   : > { %10967 = vmatpush3.bf16.msra.mxu0 %v8361_v38  ;;  %v8013_v31 = vsel %vm1451_vm3, %v15109_v47, -inf  ;;  %10968 = vmatprep.mubr.msk.bf16.mxu0 %vm12009_vm1, %v15900_v43 }
 0xb44   : > { %8014 = vmax.xlane.f32.xlu1 %v8013_v31  ;;  %10978 = vmatprep.subr.bf16.mxu0 %v15900_v43 }
 0xb46   : > { %v7424_v6 = vpop.f32.mrb[16].mxu1 }
 0xb47   : > { %v15121_v59 = vadd.f32 %v15048_v23, %v7424_v6  ;;  %v10898_v30 = vpop.f32.mrb[17].mxu1 }
 0xb48   : > { %v7427_v26 = vpop.f32.mrb[18].mxu1 }
 0xb49   : > { %v15124_v10 = vadd.f32 %v15052_v19, %v7427_v26  ;;  %v10899_v36 = vpop.f32.mrb[19].mxu1  ;;  %v8016_v55 = vsel %vm1451_vm3, %v15121_v59, -inf }
 0xb4a   : > { %8017 = vmax.xlane.f32.xlu0 %v8016_v55 }
 0xb4b   : > { %v8019_v45 = vsel %vm1451_vm3, %v15124_v10, -inf }
 0xb4c   : > { %8020 = vmax.xlane.f32.xlu1 %v8019_v45 }
 0xb4e   : > { %v7475_v25 = vpop.f32.mrb[20].mxu1 }
 0xb4f   : > { %v15131_v34 = vadd.f32 %v15048_v23, %v7475_v25  ;;  %v10904_v1 = vpop.f32.mrb[21].mxu1 }
 0xb50   : > { %v7478_v9 = vpop.f32.mrb[22].mxu1 }
 0xb51   : > { %v15134_v17 = vadd.f32 %v15052_v19, %v7478_v9  ;;  %v10905_v50 = vpop.f32.mrb[23].mxu1  ;;  %v8022_v61 = vsel %vm1451_vm3, %v15131_v34, -inf }
 0xb52   : > { %8023 = vmax.xlane.f32.xlu0 %v8022_v61 }
 0xb53   : > { %v8025_v58 = vsel %vm1451_vm3, %v15134_v17, -inf }
 0xb54   : > { %8026 = vmax.xlane.f32.xlu1 %v8025_v58 }
 0xb56   : > { %v7526_v41 = vpop.f32.mrb[24].mxu1 }
 0xb57   : > { %v15141_v0 = vadd.f32 %v15048_v23, %v7526_v41  ;;  %v10910_v15 = vpop.f32.mrb[25].mxu1 }
 0xb58   : > { %v7529_v40 = vpop.f32.mrb[26].mxu1 }
 0xb59   : > { %v15144_v27 = vadd.f32 %v15052_v19, %v7529_v40  ;;  %v10911_v12 = vpop.f32.mrb[27].mxu1  ;;  %v8028_v13 = vsel %vm1451_vm3, %v15141_v0, -inf }
 0xb5a   : > { %8029 = vmax.xlane.f32.xlu0 %v8028_v13 }
 0xb5b   : > { %v8031_v5 = vsel %vm1451_vm3, %v15144_v27, -inf }
 0xb5c   : > { %8032 = vmax.xlane.f32.xlu1 %v8031_v5  ;;  %v15200_v5 = vpop.permute.xlu1 %8501 }
 0xb5e   : > { %v7577_v54 = vpop.f32.mrb[28].mxu1 }
 0xb5f   : > { %v15151_v4 = vadd.f32 %v15048_v23, %v7577_v54  ;;  %v10916_v49 = vpop.f32.mrb[29].mxu1  ;;  %v15202_v54 = vpop.permute.xlu0 %8454 }
 0xb60   : > { %v7580_v53 = vpop.f32.mrb[30].mxu1  ;;  %v15204_v49 = vpop.permute.xlu1 %8595 }
 0xb61   : > { %v15154_v42 = vadd.f32 %v15052_v19, %v7580_v53  ;;  %v10917_v44 = vpop.f32.mrb[31].mxu1  ;;  %v8034_v29 = vsel %vm1451_vm3, %v15151_v4, -inf }
 0xb62   : > { %8035 = vmax.xlane.f32.xlu0 %v8034_v29 }
 0xb63   : > { %v8037_v35 = vsel %vm1451_vm3, %v15154_v42, -inf  ;;  %v15206_v53 = vpop.permute.xlu0 %8548 }
 0xb64   : > { %8038 = vmax.xlane.f32.xlu1 %v8037_v35  ;;  %v15208_v44 = vpop.permute.xlu1 %8689 }
 0xb66   : > { %v7679_v7 = vpop.f32.mrb[32].mxu1 }
 0xb67   : > { %v15161_v21 = vadd.f32 %v15048_v23, %v7679_v7  ;;  %v10928_v32 = vpop.f32.mrb[33].mxu1  ;;  %v15210_v29 = vpop.permute.xlu0 %8642 }
 0xb68   : > { %v7682_v14 = vpop.f32.mrb[34].mxu1  ;;  %v15212_v35 = vpop.permute.xlu1 %8783 }
 0xb69   : > { %v15164_v60 = vadd.f32 %v15052_v19, %v7682_v14  ;;  %v10929_v24 = vpop.f32.mrb[35].mxu1  ;;  %v8046_v33 = vsel %vm1451_vm3, %v15161_v21, -inf }
 0xb6a   : > { %8047 = vmax.xlane.f32.xlu0 %v8046_v33 }
 0xb6b   : > { %v8049_v51 = vsel %vm1451_vm3, %v15164_v60, -inf  ;;  %v15214_v7 = vpop.permute.xlu0 %8736 }
 0xb6c   : > { %8050 = vmax.xlane.f32.xlu1 %v8049_v51 }
 0xb6e   : > { %v7781_v8 = vpop.f32.mrb[36].mxu1 }
 0xb6f   : > { %v15171_v46 = vadd.f32 %v15048_v23, %v7781_v8  ;;  %v10940_v52 = vpop.f32.mrb[37].mxu1 }
 0xb70   : > { %v7784_v2 = vpop.f32.mrb[38].mxu1 }
 0xb71   : > { %v15174_v39 = vadd.f32 %v15052_v19, %v7784_v2  ;;  %v10941_v38 = vpop.f32.mrb[39].mxu1  ;;  %v8058_v31 = vsel %vm1451_vm3, %v15171_v46, -inf }
 0xb72   : > { %8059 = vmax.xlane.f32.xlu0 %v8058_v31 }
 0xb73   : > { %v8061_v6 = vsel %vm1451_vm3, %v15174_v39, -inf }
 0xb74   : > { %8062 = vmax.xlane.f32.xlu1 %v8061_v6 }
 0xb76   : > { %v7883_v30 = vpop.f32.mrb[40].mxu1 }
 0xb77   : > { %v15181_v26 = vadd.f32 %v15048_v23, %v7883_v30  ;;  %v10952_v36 = vpop.f32.mrb[41].mxu1 }
 0xb78   : > { %v7886_v55 = vpop.f32.mrb[42].mxu1 }
 0xb79   : > { %v15184_v45 = vadd.f32 %v15052_v19, %v7886_v55  ;;  %v10953_v25 = vpop.f32.mrb[43].mxu1  ;;  %v8070_v1 = vsel %vm1451_vm3, %v15181_v26, -inf }
 0xb7a   : > { %8071 = vmax.xlane.f32.xlu0 %v8070_v1 }
 0xb7b   : > { %v8073_v9 = vsel %vm1451_vm3, %v15184_v45, -inf }
 0xb7c   : > { %8074 = vmax.xlane.f32.xlu1 %v8073_v9 }
 0xb7e   : > { %v7985_v50 = vpop.f32.mrb[44].mxu1 }
 0xb7f   : > { %v15191_v61 = vadd.f32 %v15048_v23, %v7985_v50  ;;  %v10964_v58 = vpop.f32.mrb[45].mxu1 }
 0xb80   : > { %v7988_v41 = vpop.f32.mrb[46].mxu1 }
 0xb81   : > { %v15194_v15 = vadd.f32 %v15052_v19, %v7988_v41  ;;  %v10965_v40 = vpop.f32.mrb[47].mxu1  ;;  %v8082_v12 = vsel %vm1451_vm3, %v15191_v61, -inf }
 0xb82   : > { %8083 = vmax.xlane.f32.xlu0 %v8082_v12 }
 0xb83   : > { %v8085_v13 = vsel %vm1451_vm3, %v15194_v15, -inf }
 0xb84   : > { %8086 = vmax.xlane.f32.xlu1 %v8085_v13 }
 0xbb7   : > { %v7994_v32 = vpop.xlane.xlu1 %7993 }
 0xbb8   : > { %v8088_v14 = vsub.f32 %v15055_v22, %v7994_v32 }
 0xbb9   : > { %v7997_v24 = vpop.xlane.xlu0 %7996 }
 0xbba   : > { %v8120_v33 = vmul.f32 1.442695, %v8088_v14  ;;  %v8089_v51 = vsub.f32 %v15058_v28, %v7997_v24 }
 0xbbc   : > { %11682 = vpow2.f32 %v8120_v33  ;;  %v8122_v8 = vmul.f32 1.442695, %v8089_v51 }
 0xbbe   : > { %11684 = vpow2.f32 %v8122_v8 }
 0xbbf   : > { %v8000_v52 = vpop.xlane.xlu0 %7999 }
 0xbc0   : > { %v8090_v2 = vsub.f32 %v15072_v11, %v8000_v52 }
 0xbc1   : > { %v8003_v38 = vpop.xlane.xlu1 %8002 }
 0xbc2   : > { %v8124_v31 = vmul.f32 1.442695, %v8090_v2  ;;  %v8091_v6 = vsub.f32 %v15075_v18, %v8003_v38 }
 0xbc4   : > { %11686 = vpow2.f32 %v8124_v31  ;;  %v8126_v30 = vmul.f32 1.442695, %v8091_v6 }
 0xbc6   : > { %v15220_v36 = vpop.eup %11682  ;;  %11688 = vpow2.f32 %v8126_v30 }
 0xbc7   : > { %v8006_v22 = vpop.xlane.xlu0 %8005  ;;  %v8184_v55 = vsel %vm1451_vm3, %v15220_v36, 0.0 }
 0xbc8   : > { %v15224_v28 = vpop.eup %11684  ;;  %v8092_v25 = vsub.f32 %v15089_v37, %v8006_v22  ;;  %8185 = vadd.xlane.f32.xlu0 %v8184_v55 }
 0xbc9   : > { %v8009_v1 = vpop.xlane.xlu1 %8008  ;;  %v8187_v11 = vsel %vm1451_vm3, %v15224_v28, 0.0 }
 0xbca   : > { %v8128_v9 = vmul.f32 1.442695, %v8092_v25  ;;  %v8093_v18 = vsub.f32 %v15092_v48, %v8009_v1  ;;  %8188 = vadd.xlane.f32.xlu1 %v8187_v11 }
 0xbcc   : > { %11690 = vpow2.f32 %v8128_v9  ;;  %v8130_v50 = vmul.f32 1.442695, %v8093_v18 }
 0xbce   : > { %v15230_v58 = vpop.eup %11686  ;;  %11692 = vpow2.f32 %v8130_v50 }
 0xbcf   : > { %v8012_v41 = vpop.xlane.xlu0 %8011  ;;  %v8190_v40 = vsel %vm1451_vm3, %v15230_v58, 0.0 }
 0xbd0   : > { %v15234_v12 = vpop.eup %11688  ;;  %v8094_v37 = vsub.f32 %v15106_v57, %v8012_v41  ;;  %8191 = vadd.xlane.f32.xlu0 %v8190_v40 }
 0xbd1   : > { %v8015_v13 = vpop.xlane.xlu1 %8014  ;;  %v8193_v32 = vsel %vm1451_vm3, %v15234_v12, 0.0 }
 0xbd2   : > { %v8132_v48 = vmul.f32 1.442695, %v8094_v37  ;;  %v8095_v14 = vsub.f32 %v15109_v47, %v8015_v13  ;;  %8194 = vadd.xlane.f32.xlu1 %v8193_v32 }
 0xbd4   : > { %11694 = vpow2.f32 %v8132_v48  ;;  %v8134_v24 = vmul.f32 1.442695, %v8095_v14 }
 0xbd6   : > { %v15240_v33 = vpop.eup %11690  ;;  %11696 = vpow2.f32 %v8134_v24 }
 0xbd7   : > { %v8018_v51 = vpop.xlane.xlu0 %8017  ;;  %v8196_v8 = vsel %vm1451_vm3, %v15240_v33, 0.0 }
 0xbd8   : > { %v15244_v52 = vpop.eup %11692  ;;  %v8096_v57 = vsub.f32 %v15121_v59, %v8018_v51  ;;  %8197 = vadd.xlane.f32.xlu0 %v8196_v8 }
 0xbd9   : > { %v8021_v2 = vpop.xlane.xlu1 %8020  ;;  %v8199_v38 = vsel %vm1451_vm3, %v15244_v52, 0.0 }
 0xbda   : > { %v8136_v47 = vmul.f32 1.442695, %v8096_v57  ;;  %v8097_v31 = vsub.f32 %v15124_v10, %v8021_v2  ;;  %8200 = vadd.xlane.f32.xlu1 %v8199_v38 }
 0xbdc   : > { %11698 = vpow2.f32 %v8136_v47  ;;  %v8138_v6 = vmul.f32 1.442695, %v8097_v31 }
 0xbde   : > { %v15250_v30 = vpop.eup %11694  ;;  %11700 = vpow2.f32 %v8138_v6 }
 0xbdf   : > { %v8024_v22 = vpop.xlane.xlu0 %8023  ;;  %v8202_v55 = vsel %vm1451_vm3, %v15250_v30, 0.0 }
 0xbe0   : > { %v15254_v25 = vpop.eup %11696  ;;  %v8098_v59 = vsub.f32 %v15131_v34, %v8024_v22  ;;  %8203 = vadd.xlane.f32.xlu0 %v8202_v55 }
 0xbe1   : > { %v8027_v1 = vpop.xlane.xlu1 %8026  ;;  %v8205_v11 = vsel %vm1451_vm3, %v15254_v25, 0.0 }
 0xbe2   : > { %v8140_v10 = vmul.f32 1.442695, %v8098_v59  ;;  %v8099_v9 = vsub.f32 %v15134_v17, %v8027_v1  ;;  %8206 = vadd.xlane.f32.xlu1 %v8205_v11 }
 0xbe4   : > { %11702 = vpow2.f32 %v8140_v10  ;;  %v8142_v18 = vmul.f32 1.442695, %v8099_v9 }
 0xbe6   : > { %v15260_v50 = vpop.eup %11698  ;;  %11704 = vpow2.f32 %v8142_v18 }
 0xbe7   : > { %v8030_v41 = vpop.xlane.xlu0 %8029  ;;  %v8208_v40 = vsel %vm1451_vm3, %v15260_v50, 0.0 }
 0xbe8   : > { %v15264_v37 = vpop.eup %11700  ;;  %v8100_v34 = vsub.f32 %v15141_v0, %v8030_v41  ;;  %8209 = vadd.xlane.f32.xlu0 %v8208_v40 }
 0xbe9   : > { %v8033_v13 = vpop.xlane.xlu1 %8032  ;;  %v8211_v32 = vsel %vm1451_vm3, %v15264_v37, 0.0 }
 0xbea   : > { %v8144_v17 = vmul.f32 1.442695, %v8100_v34  ;;  %v8101_v48 = vsub.f32 %v15144_v27, %v8033_v13  ;;  %8212 = vadd.xlane.f32.xlu1 %v8211_v32 }
 0xbec   : > { %11706 = vpow2.f32 %v8144_v17  ;;  %v8146_v14 = vmul.f32 1.442695, %v8101_v48 }
 0xbee   : > { %v15270_v24 = vpop.eup %11702  ;;  %11708 = vpow2.f32 %v8146_v14 }
 0xbef   : > { %v8036_v51 = vpop.xlane.xlu0 %8035  ;;  %v8214_v8 = vsel %vm1451_vm3, %v15270_v24, 0.0 }
 0xbf0   : > { %v15274_v57 = vpop.eup %11704  ;;  %v8102_v0 = vsub.f32 %v15151_v4, %v8036_v51  ;;  %8215 = vadd.xlane.f32.xlu0 %v8214_v8 }
 0xbf1   : > { %v8039_v2 = vpop.xlane.xlu1 %8038  ;;  %v8217_v38 = vsel %vm1451_vm3, %v15274_v57, 0.0 }
 0xbf2   : > { %v8148_v27 = vmul.f32 1.442695, %v8102_v0  ;;  %v8103_v47 = vsub.f32 %v15154_v42, %v8039_v2  ;;  %8218 = vadd.xlane.f32.xlu1 %v8217_v38 }
 0xbf4   : > { %11710 = vpow2.f32 %v8148_v27  ;;  %v8150_v31 = vmul.f32 1.442695, %v8103_v47 }
 0xbf6   : > { %v15280_v6 = vpop.eup %11706  ;;  %11712 = vpow2.f32 %v8150_v31 }
 0xbf7   : > { %v8048_v22 = vpop.xlane.xlu0 %8047  ;;  %v8220_v55 = vsel %vm1451_vm3, %v15280_v6, 0.0 }
 0xbf8   : > { %v15284_v59 = vpop.eup %11708  ;;  %v8106_v4 = vsub.f32 %v15161_v21, %v8048_v22  ;;  %8221 = vadd.xlane.f32.xlu0 %v8220_v55 }
 0xbf9   : > { %v8051_v1 = vpop.xlane.xlu1 %8050  ;;  %v8223_v11 = vsel %vm1451_vm3, %v15284_v59, 0.0 }
 0xbfa   : > { %v8156_v42 = vmul.f32 1.442695, %v8106_v4  ;;  %v8107_v10 = vsub.f32 %v15164_v60, %v8051_v1  ;;  %8224 = vadd.xlane.f32.xlu1 %v8223_v11 }
 0xbfc   : > { %11714 = vpow2.f32 %v8156_v42  ;;  %v8158_v9 = vmul.f32 1.442695, %v8107_v10 }
 0xbfd   : > { %v7628_v18 = vpop.f32.mrb[192].mxu0 }
 0xbfe   : > { %v15290_v41 = vpop.eup %11710  ;;  %11716 = vpow2.f32 %v8158_v9  ;;  %v10922_v40 = vpop.f32.mrb[193].mxu0  ;;  %v15293_v34 = vadd.f32 %v15048_v23, %v7628_v18 }
 0xbff   : > { %v8060_v21 = vpop.xlane.xlu0 %8059  ;;  %v7631_v13 = vpop.f32.mrb[194].mxu0  ;;  %v8226_v32 = vsel %vm1451_vm3, %v15290_v41, 0.0 }
 0xc00   : > { %v15297_v17 = vpop.eup %11712  ;;  %v8110_v60 = vsub.f32 %v15171_v46, %v8060_v21  ;;  %8227 = vadd.xlane.f32.xlu0 %v8226_v32  ;;  %v10923_v48 = vpop.f32.mrb[195].mxu0  ;;  %v15301_v14 = vadd.f32 %v15052_v19, %v7631_v13  ;;  %v8040_v38 = vsel %vm1451_vm3, %v15293_v34, -inf }
 0xc01   : > { %v8063_v51 = vpop.xlane.xlu1 %8062  ;;  %v8229_v8 = vsel %vm1451_vm3, %v15297_v17, 0.0 }
 0xc02   : > { %v8164_v0 = vmul.f32 1.442695, %v8110_v60  ;;  %v8111_v2 = vsub.f32 %v15174_v39, %v8063_v51  ;;  %8230 = vadd.xlane.f32.xlu1 %v8229_v8  ;;  %v8043_v47 = vsel %vm1451_vm3, %v15301_v14, -inf }
 0xc04   : > { %11718 = vpow2.f32 %v8164_v0  ;;  %v8166_v27 = vmul.f32 1.442695, %v8111_v2  ;;  %8041 = vmax.xlane.f32.xlu0 %v8040_v38 }
 0xc05   : > { %v7730_v46 = vpop.f32.mrb[196].mxu0 }
 0xc06   : > { %v15310_v31 = vpop.eup %11714  ;;  %11720 = vpow2.f32 %v8166_v27  ;;  %8044 = vmax.xlane.f32.xlu1 %v8043_v47  ;;  %v10934_v22 = vpop.f32.mrb[197].mxu0  ;;  %v15313_v55 = vadd.f32 %v15048_v23, %v7730_v46 }
 0xc07   : > { %v8072_v39 = vpop.xlane.xlu0 %8071  ;;  %v7733_v4 = vpop.f32.mrb[198].mxu0  ;;  %v8238_v1 = vsel %vm1451_vm3, %v15310_v31, 0.0 }
 0xc08   : > { %v15317_v11 = vpop.eup %11716  ;;  %v8114_v42 = vsub.f32 %v15181_v26, %v8072_v39  ;;  %8239 = vadd.xlane.f32.xlu0 %v8238_v1  ;;  %v10935_v10 = vpop.f32.mrb[199].mxu0  ;;  %v15321_v9 = vadd.f32 %v15052_v19, %v7733_v4  ;;  %v8052_v32 = vsel %vm1451_vm3, %v15313_v55, -inf }
 0xc09   : > { %v8075_v18 = vpop.xlane.xlu1 %8074  ;;  %v8241_v40 = vsel %vm1451_vm3, %v15317_v11, 0.0 }
 0xc0a   : > { %v8172_v21 = vmul.f32 1.442695, %v8114_v42  ;;  %v8115_v13 = vsub.f32 %v15184_v45, %v8075_v18  ;;  %8242 = vadd.xlane.f32.xlu1 %v8241_v40  ;;  %v8055_v48 = vsel %vm1451_vm3, %v15321_v9, -inf }
 0xc0c   : > { %11722 = vpow2.f32 %v8172_v21  ;;  %v8174_v60 = vmul.f32 1.442695, %v8115_v13  ;;  %8053 = vmax.xlane.f32.xlu0 %v8052_v32 }
 0xc0d   : > { %v7832_v26 = vpop.f32.mrb[200].mxu0 }
 0xc0e   : > { %v15330_v51 = vpop.eup %11718  ;;  %11724 = vpow2.f32 %v8174_v60  ;;  %8056 = vmax.xlane.f32.xlu1 %v8055_v48  ;;  %v10946_v8 = vpop.f32.mrb[201].mxu0  ;;  %v15333_v0 = vadd.f32 %v15048_v23, %v7832_v26 }
 0xc0f   : > { %v7835_v45 = vpop.f32.mrb[202].mxu0  ;;  %v8250_v2 = vsel %vm1451_vm3, %v15330_v51, 0.0 }
 0xc10   : > { %v15337_v38 = vpop.eup %11720  ;;  %8251 = vadd.xlane.f32.xlu0 %v8250_v2  ;;  %v10947_v27 = vpop.f32.mrb[203].mxu0  ;;  %v15340_v46 = vadd.f32 %v15052_v19, %v7835_v45  ;;  %v8064_v22 = vsel %vm1451_vm3, %v15333_v0, -inf }
 0xc11   : > { %v8253_v47 = vsel %vm1451_vm3, %v15337_v38, 0.0  ;;  %v8087_v48 = vpop.xlane.xlu1 %8086 }
 0xc12   : > { %8254 = vadd.xlane.f32.xlu1 %v8253_v47  ;;  %v8067_v4 = vsel %vm1451_vm3, %v15340_v46, -inf  ;;  %v8119_v45 = vsub.f32 %v15194_v15, %v8087_v48 }
 0xc14   : > { %8065 = vmax.xlane.f32.xlu0 %v8064_v22  ;;  %v8182_v27 = vmul.f32 1.442695, %v8119_v45 }
 0xc15   : > { %v7934_v39 = vpop.f32.mrb[204].mxu0 }
 0xc16   : > { %v15348_v1 = vpop.eup %11722  ;;  %8068 = vmax.xlane.f32.xlu1 %v8067_v4  ;;  %v10958_v42 = vpop.f32.mrb[205].mxu0  ;;  %v15351_v10 = vadd.f32 %v15048_v23, %v7934_v39 }
 0xc17   : > { %v7937_v18 = vpop.f32.mrb[206].mxu0  ;;  %v8262_v40 = vsel %vm1451_vm3, %v15348_v1, 0.0 }
 0xc18   : > { %v15355_v21 = vpop.eup %11724  ;;  %8263 = vadd.xlane.f32.xlu0 %v8262_v40  ;;  %v10959_v13 = vpop.f32.mrb[207].mxu0  ;;  %v15358_v32 = vadd.f32 %v15052_v19, %v7937_v18  ;;  %v8076_v26 = vsel %vm1451_vm3, %v15351_v10, -inf }
 0xc19   : > { %v8265_v60 = vsel %vm1451_vm3, %v15355_v21, 0.0  ;;  %v8084_v19 = vpop.xlane.xlu0 %8083 }
 0xc1a   : > { %8266 = vadd.xlane.f32.xlu1 %v8265_v60  ;;  %v8079_v23 = vsel %vm1451_vm3, %v15358_v32, -inf  ;;  %v8118_v8 = vsub.f32 %v15191_v61, %v8084_v19 }
 0xc1c   : > { %8077 = vmax.xlane.f32.xlu0 %v8076_v26  ;;  %v8180_v2 = vmul.f32 1.442695, %v8118_v8 }
 0xc1e   : > { %8080 = vmax.xlane.f32.xlu1 %v8079_v23  ;;  %11726 = vpow2.f32 %v8180_v2 }
 0xc1f   : > { %11728 = vpow2.f32 %v8182_v27 }
 0xc28   : > { %v15372_v47 = vpop.eup %11726 }
 0xc29   : > { %v15374_v22 = vpop.eup %11728 }
 0xc2f   : > { %8830 = vrot.lane.b32.xlu1 %v16099_v16, %s12020_s10  ;;  %v8274_v16 = vsel %vm1451_vm3, %v15372_v47, 0.0 }
 0xc32   : > { %8877 = vrot.lane.b32.xlu0 %v16101_v63, %s12020_s10  ;;  %v8277_v63 = vsel %vm1451_vm3, %v15374_v22, 0.0 }
 0xc51   : > { %8275 = vadd.xlane.f32.xlu0 %v8274_v16 }
 0xc53   : > { %8278 = vadd.xlane.f32.xlu1 %v8277_v63 }
 0xc55   : > { %v8186_v39 = vpop.xlane.xlu0 %8185 }
 0xc56   : > { %11730 = vrcp.f32 %v8186_v39 }
 0xc57   : > { %v8189_v61 = vpop.xlane.xlu1 %8188 }
 0xc58   : > { %11732 = vrcp.f32 %v8189_v61 }
 0xc5d   : > { %v8192_v15 = vpop.xlane.xlu0 %8191 }
 0xc5e   : > { %11734 = vrcp.f32 %v8192_v15 }
 0xc5f   : > { %v8195_v4 = vpop.xlane.xlu1 %8194 }
 0xc60   : > { %v11731_v42 = vpop.eup %11730  ;;  %11736 = vrcp.f32 %v8195_v4 }
 0xc61   : > { %v8312_v40 = vmul.f32 %v11731_v42, %v15220_v36 }
 0xc62   : > { %v11733_v18 = vpop.eup %11732 }
 0xc63   : > { %v8313_v13 = vmul.f32 %v11733_v18, %v15224_v28 }
 0xc65   : > { %v8198_v60 = vpop.xlane.xlu0 %8197  ;;  %v8344_v26 = vpack.c.bf16 %v8313_v13, %v8312_v40 }
 0xc66   : > { %11738 = vrcp.f32 %v8198_v60 }
 0xc67   : > { %v8201_v23 = vpop.xlane.xlu1 %8200  ;;  %10969 = vmatmul.mubr.msk.bf16.vlgmr.msra.gmra.mrb[208].mxu0 %vm1451_vm3, %v8344_v26 }
 0xc68   : > { %v11735_v19 = vpop.eup %11734  ;;  %11740 = vrcp.f32 %v8201_v23  ;;  %10979 = vmatpush3.bf16.msra.mxu0 %v15202_v54  ;;  %10980 = vmatprep.mubr.msk.bf16.mxu0 %vm12009_vm1, %v15900_v43 }
 0xc69   : > { %10990 = vmatprep.subr.bf16.mxu0 %v15900_v43  ;;  %v8314_v36 = vmul.f32 %v11735_v19, %v15230_v58 }
 0xc6a   : > { %v11737_v48 = vpop.eup %11736 }
 0xc6b   : > { %v8315_v28 = vmul.f32 %v11737_v48, %v15234_v12 }
 0xc6d   : > { %v8345_v8 = vpack.c.bf16 %v8315_v28, %v8314_v36  ;;  %v8204_v45 = vpop.xlane.xlu0 %8203 }
 0xc6e   : > { %11742 = vrcp.f32 %v8204_v45 }
 0xc6f   : > { %v8207_v2 = vpop.xlane.xlu1 %8206  ;;  %10975 = vmatmul.mubr.msk.bf16.vlgmr.msra.gmra.mrb[48].mxu1 %vm1451_vm3, %v8345_v8 }
 0xc70   : > { %v11739_v27 = vpop.eup %11738  ;;  %11744 = vrcp.f32 %v8207_v2  ;;  %10985 = vmatpush3.bf16.msra.mxu1 %v15200_v5  ;;  %10986 = vmatprep.mubr.msk.bf16.mxu1 %vm12009_vm1, %v15900_v43 }
 0xc71   : > { %10996 = vmatprep.subr.bf16.mxu1 %v15900_v43  ;;  %v8316_v58 = vmul.f32 %v11739_v27, %v15240_v33 }
 0xc72   : > { %v11741_v54 = vpop.eup %11740 }
 0xc73   : > { %v8317_v12 = vmul.f32 %v11741_v54, %v15244_v52 }
 0xc75   : > { %v8210_v16 = vpop.xlane.xlu0 %8209  ;;  %v8346_v63 = vpack.c.bf16 %v8317_v12, %v8316_v58 }
 0xc76   : > { %11746 = vrcp.f32 %v8210_v16 }
 0xc77   : > { %v8213_v39 = vpop.xlane.xlu1 %8212  ;;  %10981 = vmatmul.mubr.msk.bf16.vlgmr.msra.gmra.mrb[212].mxu0 %vm1451_vm3, %v8346_v63 }
 0xc78   : > { %v11743_v61 = vpop.eup %11742  ;;  %11748 = vrcp.f32 %v8213_v39  ;;  %10991 = vmatpush3.bf16.msra.mxu0 %v15206_v53  ;;  %10992 = vmatprep.mubr.msk.bf16.mxu0 %vm12009_vm1, %v15900_v43 }
 0xc79   : > { %11002 = vmatprep.subr.bf16.mxu0 %v15900_v43  ;;  %v8318_v33 = vmul.f32 %v11743_v61, %v15250_v30 }
 0xc7a   : > { %v11745_v5 = vpop.eup %11744 }
 0xc7b   : > { %v8319_v52 = vmul.f32 %v11745_v5, %v15254_v25 }
 0xc7d   : > { %v8347_v15 = vpack.c.bf16 %v8319_v52, %v8318_v33  ;;  %v8216_v4 = vpop.xlane.xlu0 %8215 }
 0xc7e   : > { %11750 = vrcp.f32 %v8216_v4 }
 0xc7f   : > { %v8219_v42 = vpop.xlane.xlu1 %8218  ;;  %10987 = vmatmul.mubr.msk.bf16.vlgmr.msra.gmra.mrb[52].mxu1 %vm1451_vm3, %v8347_v15 }
 0xc80   : > { %v11747_v18 = vpop.eup %11746  ;;  %11752 = vrcp.f32 %v8219_v42  ;;  %10997 = vmatpush3.bf16.msra.mxu1 %v15204_v49  ;;  %10998 = vmatprep.mubr.msk.bf16.mxu1 %vm12009_vm1, %v15900_v43 }
 0xc81   : > { %11008 = vmatprep.subr.bf16.mxu1 %v15900_v43  ;;  %v8320_v30 = vmul.f32 %v11747_v18, %v15260_v50 }
 0xc82   : > { %v11749_v53 = vpop.eup %11748 }
 0xc83   : > { %v8321_v25 = vmul.f32 %v11749_v53, %v15264_v37 }
 0xc85   : > { %v8222_v40 = vpop.xlane.xlu0 %8221  ;;  %v8348_v13 = vpack.c.bf16 %v8321_v25, %v8320_v30 }
 0xc86   : > { %11754 = vrcp.f32 %v8222_v40 }
 0xc87   : > { %v8225_v60 = vpop.xlane.xlu1 %8224  ;;  %10993 = vmatmul.mubr.msk.bf16.vlgmr.msra.gmra.mrb[216].mxu0 %vm1451_vm3, %v8348_v13 }
 0xc88   : > { %v11751_v26 = vpop.eup %11750  ;;  %11756 = vrcp.f32 %v8225_v60  ;;  %11003 = vmatpush3.bf16.msra.mxu0 %v15210_v29  ;;  %11004 = vmatprep.mubr.msk.bf16.mxu0 %vm12009_vm1, %v15900_v43 }
 0xc89   : > { %11014 = vmatprep.subr.bf16.mxu0 %v15900_v43  ;;  %v8322_v50 = vmul.f32 %v11751_v26, %v15270_v24 }
 0xc8a   : > { %v11753_v49 = vpop.eup %11752 }
 0xc8b   : > { %v8323_v37 = vmul.f32 %v11753_v49, %v15274_v57 }
 0xc8d   : > { %v8349_v23 = vpack.c.bf16 %v8323_v37, %v8322_v50  ;;  %v8228_v19 = vpop.xlane.xlu0 %8227 }
 0xc8e   : > { %11758 = vrcp.f32 %v8228_v19 }
 0xc8f   : > { %v8231_v48 = vpop.xlane.xlu1 %8230  ;;  %10999 = vmatmul.mubr.msk.bf16.vlgmr.msra.gmra.mrb[56].mxu1 %vm1451_vm3, %v8349_v23 }
 0xc90   : > { %v11755_v36 = vpop.eup %11754  ;;  %11760 = vrcp.f32 %v8231_v48  ;;  %11009 = vmatpush3.bf16.msra.mxu1 %v15208_v44  ;;  %11010 = vmatprep.mubr.msk.bf16.mxu1 %vm12009_vm1, %v15900_v43 }
 0xc91   : > { %v8042_v29 = vpop.xlane.xlu0 %8041  ;;  %11020 = vmatprep.subr.bf16.mxu1 %v15900_v43  ;;  %v8324_v57 = vmul.f32 %v11755_v36, %v15280_v6 }
 0xc92   : > { %v11757_v28 = vpop.eup %11756  ;;  %v8104_v24 = vsub.f32 %v15293_v34, %v8042_v29 }
 0xc93   : > { %v8325_v8 = vmul.f32 %v11757_v28, %v15284_v59  ;;  %v8045_v45 = vpop.xlane.xlu1 %8044 }
 0xc94   : > { %v8152_v2 = vmul.f32 1.442695, %v8104_v24  ;;  %v8105_v27 = vsub.f32 %v15301_v14, %v8045_v45 }
 0xc95   : > { %v8240_v54 = vpop.xlane.xlu0 %8239  ;;  %v8350_v58 = vpack.c.bf16 %v8325_v8, %v8324_v57 }
 0xc96   : > { %11762 = vpow2.f32 %v8152_v2  ;;  %v8154_v44 = vmul.f32 1.442695, %v8105_v27 }
 0xc97   : > { %11764 = vrcp.f32 %v8240_v54  ;;  %v8243_v12 = vpop.xlane.xlu1 %8242  ;;  %11005 = vmatmul.mubr.msk.bf16.vlgmr.msra.gmra.mrb[220].mxu0 %vm1451_vm3, %v8350_v58 }
 0xc98   : > { %v11759_v16 = vpop.eup %11758  ;;  %11766 = vpow2.f32 %v8154_v44  ;;  %11015 = vmatpush3.bf16.msra.mxu0 %v15214_v7  ;;  %11016 = vmatprep.mubr.msk.bf16.mxu0 %vm12009_vm1, %v15900_v43 }
 0xc99   : > { %11768 = vrcp.f32 %v8243_v12  ;;  %v8054_v6 = vpop.xlane.xlu0 %8053  ;;  %11026 = vmatprep.subr.bf16.mxu0 %v15900_v43  ;;  %v8326_v34 = vmul.f32 %v11759_v16, %v15290_v41 }
 0xc9a   : > { %v11761_v59 = vpop.eup %11760  ;;  %v8108_v29 = vsub.f32 %v15313_v55, %v8054_v6 }
 0xc9b   : > { %v8327_v14 = vmul.f32 %v11761_v59, %v15297_v17  ;;  %v8057_v63 = vpop.xlane.xlu1 %8056 }
 0xc9c   : > { %v8109_v39 = vsub.f32 %v15321_v9, %v8057_v63  ;;  %v8160_v28 = vmul.f32 1.442695, %v8108_v29 }
 0xc9d   : > { %v8351_v61 = vpack.c.bf16 %v8327_v14, %v8326_v34  ;;  %v8252_v5 = vpop.xlane.xlu0 %8251 }
 0xc9e   : > { %v8162_v33 = vmul.f32 1.442695, %v8109_v39  ;;  %11770 = vrcp.f32 %v8252_v5 }
 0xc9f   : > { %v8255_v7 = vpop.xlane.xlu1 %8254  ;;  %11011 = vmatmul.mubr.msk.bf16.vlgmr.msra.gmra.mrb[60].mxu1 %vm1451_vm3, %v8351_v61 }
 0xca0   : > { %v15435_v52 = vpop.eup %11762  ;;  %11772 = vpow2.f32 %v8162_v33  ;;  %11021 = vmatpush3.bf16.msra.mxu1 %v15212_v35  ;;  %11022 = vmatprep.mubr.msk.bf16.mxu1 %vm12009_vm1, %v15900_v43 }
 0xca1   : > { %v11765_v41 = vpop.eup %11764  ;;  %11774 = vrcp.f32 %v8255_v7  ;;  %v8066_v17 = vpop.xlane.xlu0 %8065  ;;  %v8232_v9 = vsel %vm1451_vm3, %v15435_v52, 0.0  ;;  %11032 = vmatprep.subr.bf16.mxu1 %v15900_v43 }
 0xca2   : > { %v15443_v15 = vpop.eup %11766  ;;  %8233 = vadd.xlane.f32.xlu1 %v8232_v9  ;;  %v8330_v35 = vmul.f32 %v11765_v41, %v15310_v31  ;;  %v8112_v24 = vsub.f32 %v15333_v0, %v8066_v17 }
 0xca3   : > { %v11769_v4 = vpop.eup %11768  ;;  %v8069_v42 = vpop.xlane.xlu1 %8068  ;;  %v8235_v18 = vsel %vm1451_vm3, %v15443_v15, 0.0 }
 0xca4   : > { %v8331_v53 = vmul.f32 %v11769_v4, %v15317_v11  ;;  %8236 = vadd.xlane.f32.xlu0 %v8235_v18  ;;  %v8168_v57 = vmul.f32 1.442695, %v8112_v24  ;;  %v8113_v45 = vsub.f32 %v15340_v46, %v8069_v42 }
 0xca5   : > { %v8264_v30 = vpop.xlane.xlu0 %8263 }
 0xca6   : > { %v8353_v25 = vpack.c.bf16 %v8331_v53, %v8330_v35  ;;  %11776 = vrcp.f32 %v8264_v30  ;;  %v8170_v2 = vmul.f32 1.442695, %v8113_v45 }
 0xca7   : > { %v8267_v40 = vpop.xlane.xlu1 %8266 }
 0xca8   : > { %11023 = vmatmul.mubr.msk.bf16.vlgmr.msra.gmra.mrb[64].mxu1 %vm1451_vm3, %v8353_v25  ;;  %v11771_v13 = vpop.eup %11770  ;;  %11778 = vrcp.f32 %v8267_v40 }
 0xca9   : > { %v8078_v60 = vpop.xlane.xlu0 %8077  ;;  %11034 = vmatprep.mubr.msk.bf16.mxu1 %vm12009_vm1, %v15900_v43  ;;  %v8334_v50 = vmul.f32 %v11771_v13, %v15330_v51  ;;  %11780 = vpow2.f32 %v8160_v28 }
 0xcaa   : > { %v15452_v26 = vpop.eup %11772  ;;  %v8116_v8 = vsub.f32 %v15351_v10, %v8078_v60  ;;  %11782 = vpow2.f32 %v8168_v57 }
 0xcab   : > { %v11775_v49 = vpop.eup %11774  ;;  %v8247_v31 = vsel %vm1451_vm3, %v15452_v26, 0.0 }
 0xcac   : > { %v8335_v11 = vmul.f32 %v11775_v49, %v15337_v38  ;;  %8248 = vadd.xlane.f32.xlu0 %v8247_v31 }
 0xcad   : > { %v8878_v37 = vpop.permute.xlu0 %8877 }
 0xcae   : > { %11033 = vmatpush3.bf16.msra.mxu1 %v8878_v37  ;;  %v8355_v23 = vpack.c.bf16 %v8335_v11, %v8334_v50 }
 0xcaf   : > { %11044 = vmatprep.subr.bf16.mxu1 %v15900_v43 }
 0xcb0   : > { %v11777_v19 = vpop.eup %11776 }
 0xcb1   : > { %11035 = vmatmul.mubr.msk.bf16.vlgmr.msra.gmra.mrb[68].mxu1 %vm1451_vm3, %v8355_v23  ;;  %v8338_v38 = vmul.f32 %v11777_v19, %v15348_v1  ;;  %v8176_v1 = vmul.f32 1.442695, %v8116_v8 }
 0xcb2   : > { %11046 = vmatprep.mubr.msk.bf16.mxu1 %vm12009_vm1, %v15900_v43  ;;  %v11779_v48 = vpop.eup %11778 }
 0xcb3   : > { %8924 = vrot.lane.b32.xlu1 %v16102_v62, %s12020_s10  ;;  %v8339_v36 = vmul.f32 %v11779_v48, %v15355_v21  ;;  %v8081_v62 = vpop.xlane.xlu1 %8080  ;;  %11784 = vpow2.f32 %v8176_v1  ;;  %v15473_v55 = vpop.eup %11780 }
 0xcb4   : > { %v8117_v21 = vsub.f32 %v15358_v32, %v8081_v62  ;;  %11786 = vpow2.f32 %v8170_v2  ;;  %v8244_v0 = vsel %vm1451_vm3, %v15473_v55, 0.0  ;;  %v15477_v27 = vpop.eup %11782 }
 0xcb5   : > { %v8357_v51 = vpack.c.bf16 %v8339_v36, %v8338_v38  ;;  %v8256_v46 = vsel %vm1451_vm3, %v15477_v27, 0.0 }
 0xcb7   : > { %v8831_v16 = vpop.permute.xlu1 %8830 }
 0xcbd   : > { %v15481_v10 = vpop.eup %11784 }
 0xcbe   : > { %v15483_v54 = vpop.eup %11786  ;;  %v8268_v32 = vsel %vm1451_vm3, %v15481_v10, 0.0 }
 0xcbf   : > { %v8259_v58 = vsel %vm1451_vm3, %v15483_v54, 0.0 }
 0xcc2   : > { %8971 = vrot.lane.b32.xlu0 %v16038_v56, %s12020_s10  ;;  %v8178_v56 = vmul.f32 1.442695, %v8117_v21 }
 0xcc4   : > { %11788 = vpow2.f32 %v8178_v56 }
 0xcce   : > { %v15489_v44 = vpop.eup %11788 }
 0xccf   : > { %v8271_v12 = vsel %vm1451_vm3, %v15489_v44, 0.0 }
 0xcd7   : > { %8245 = vadd.xlane.f32.xlu1 %v8244_v0 }
 0xcdb   : > { %8257 = vadd.xlane.f32.xlu1 %v8256_v46 }
 0xcde   : > { %v8276_v59 = vpop.xlane.xlu0 %8275 }
 0xcdf   : > { %8269 = vadd.xlane.f32.xlu1 %v8268_v32 }
 0xce0   : > { %v8279_v6 = vpop.xlane.xlu1 %8278 }
 0xce1   : > { %8260 = vadd.xlane.f32.xlu0 %v8259_v58 }
 0xce5   : > { %8272 = vadd.xlane.f32.xlu0 %v8271_v12 }
 0xcf0   : > { %9018 = vrot.lane.b32.xlu1 %v15913_v20, %s12020_s10 }
 0xcfb   : > { %9065 = vrot.lane.b32.xlu0 %v12415_v3, %s12020_s10  ;;  %s12021_s10 = smov [#allocation10]  }
 0xcfc   : > { %s11928_s11 = sshll.u32 %s12021_s10, 4  ;;  %s11929_s11 = int_to_ptr.vmem [resolvable:$false] %s11928_s11 }
 0xcfd   : > { %s11930_s14 = scalar_lea.vmem %s11929_s11, 8192  ;;  %p11931_p12 = scmp.lt.s32.totalorder %s15713_s13, %s11929_s11 }
 0xcfe   : > { %p11932_p1 = scmp.lt.s32.totalorder %s11930_s14, %s11924_s23 }
 0xd00   : > { %p11933_p2 = por %p11932_p1, %p11931_p12 }
 0xd02   : > { %p11934_p4 = pnand %p11933_p2, %p11927_p7 }
 0xd2f   : > { %v8234_v34 = vpop.xlane.xlu1 %8233 }
 0xd30   : > { %11790 = vrcp.f32 %v8234_v34 }
 0xd31   : > { %v8237_v14 = vpop.xlane.xlu0 %8236 }
 0xd32   : > { %11792 = vrcp.f32 %v8237_v14 }
 0xd33   : > { %v8925_v36 = vpop.permute.xlu1 %8924 }
 0xd39   : > { %v8249_v63 = vpop.xlane.xlu0 %8248 }
 0xd3a   : > { %v11791_v39 = vpop.eup %11790  ;;  %v15497_v61 = vpop.f32.mrb[208].mxu0  ;;  %11794 = vrcp.f32 %v8249_v63 }
 0xd3b   : > { %v10970_v5 = vpop.f32.mrb[209].mxu0  ;;  %v8328_v20 = vmul.f32 %v11791_v39, %v15435_v52 }
 0xd3c   : > { %v11793_v33 = vpop.eup %11792  ;;  %v15499_v7 = vpop.f32.mrb[210].mxu0 }
 0xd3d   : > { %v8329_v41 = vmul.f32 %v11793_v33, %v15443_v15  ;;  %v9112_v3 = vpack.c.bf16 %v15499_v7, %v15497_v61  ;;  %v10971_v17 = vpop.f32.mrb[211].mxu0  ;;  %v8972_v9 = vpop.permute.xlu0 %8971 }
 0xd3e   : > { %11045 = vmatpush3.bf16.msra.mxu1 %v8972_v9 }
 0xd3f   : > { %v8352_v4 = vpack.c.bf16 %v8329_v41, %v8328_v20  ;;  %11056 = vmatprep.subr.bf16.mxu1 %v15900_v43 }
 0xd41   : > { %11017 = vmatmul.mubr.msk.bf16.vlgmr.msra.gmra.mrb[224].mxu0 %vm1451_vm3, %v8352_v4  ;;  %11047 = vmatmul.mubr.msk.bf16.vlgmr.msra.gmra.mrb[72].mxu1 %vm1451_vm3, %v8357_v51 }
 0xd42   : > { %11027 = vmatpush3.bf16.msra.mxu0 %v8831_v16  ;;  %v15508_v42 = vpop.f32.mrb[48].mxu1  ;;  %11028 = vmatprep.mubr.msk.bf16.mxu0 %vm12009_vm1, %v15900_v43 }
 0xd43   : > { %v10976_v52 = vpop.f32.mrb[49].mxu1  ;;  %11038 = vmatprep.subr.bf16.mxu0 %v15900_v43  ;;  %11058 = vmatprep.mubr.msk.bf16.mxu1 %vm12009_vm1, %v15900_v43 }
 0xd44   : > { %v15515_v15 = vpop.f32.mrb[50].mxu1  ;;  %v11795_v21 = vpop.eup %11794 }
 0xd45   : > { %v9113_v18 = vpack.c.bf16 %v15515_v15, %v15508_v42  ;;  %v10977_v35 = vpop.f32.mrb[51].mxu1  ;;  %v8333_v58 = vmul.f32 %v11795_v21, %v15452_v26 }
 0xd4a   : > { %v15519_v53 = vpop.f32.mrb[212].mxu0 }
 0xd4b   : > { %v10982_v30 = vpop.f32.mrb[213].mxu0 }
 0xd4c   : > { %v15521_v25 = vpop.f32.mrb[214].mxu0 }
 0xd4d   : > { %v9114_v40 = vpack.c.bf16 %v15521_v25, %v15519_v53  ;;  %v10983_v13 = vpop.f32.mrb[215].mxu0 }
 0xd52   : > { %v15525_v60 = vpop.f32.mrb[52].mxu1 }
 0xd53   : > { %v10988_v49 = vpop.f32.mrb[53].mxu1 }
 0xd54   : > { %v15527_v31 = vpop.f32.mrb[54].mxu1 }
 0xd55   : > { %v9115_v11 = vpack.c.bf16 %v15527_v31, %v15525_v60  ;;  %v10989_v50 = vpop.f32.mrb[55].mxu1 }
 0xd5a   : > { %v15531_v37 = vpop.f32.mrb[216].mxu0 }
 0xd5b   : > { %v10994_v23 = vpop.f32.mrb[217].mxu0 }
 0xd5c   : > { %v15533_v19 = vpop.f32.mrb[218].mxu0 }
 0xd5d   : > { %v9116_v48 = vpack.c.bf16 %v15533_v19, %v15531_v37  ;;  %v10995_v38 = vpop.f32.mrb[219].mxu0 }
 0xd62   : > { %v15537_v51 = vpop.f32.mrb[56].mxu1 }
 0xd63   : > { %v11000_v29 = vpop.f32.mrb[57].mxu1 }
 0xd64   : > { %v15539_v28 = vpop.f32.mrb[58].mxu1  ;;  %v8246_v24 = vpop.xlane.xlu1 %8245 }
 0xd65   : > { %v9117_v57 = vpack.c.bf16 %v15539_v28, %v15537_v51  ;;  %11796 = vrcp.f32 %v8246_v24  ;;  %v11001_v8 = vpop.f32.mrb[59].mxu1 }
 0xd66   : > { %11798 = vrcp.f32 %v8279_v6 }
 0xd67   : > { %11800 = vrcp.f32 %v8276_v59 }
 0xd68   : > { %v8258_v45 = vpop.xlane.xlu1 %8257 }
 0xd69   : > { %11802 = vrcp.f32 %v8258_v45 }
 0xd6a   : > { %v15543_v62 = vpop.f32.mrb[220].mxu0 }
 0xd6b   : > { %v11006_v1 = vpop.f32.mrb[221].mxu0 }
 0xd6c   : > { %v15545_v2 = vpop.f32.mrb[222].mxu0  ;;  %v8270_v6 = vpop.xlane.xlu1 %8269 }
 0xd6d   : > { %v9118_v56 = vpack.c.bf16 %v15545_v2, %v15543_v62  ;;  %v11007_v0 = vpop.f32.mrb[223].mxu0 }
 0xd6e   : > { %v8261_v46 = vpop.xlane.xlu0 %8260 }
 0xd6f   : > { %v11797_v32 = vpop.eup %11796  ;;  %11804 = vrcp.f32 %v8261_v46 }
 0xd70   : > { %v8332_v12 = vmul.f32 %v11797_v32, %v15473_v55  ;;  %v11799_v16 = vpop.eup %11798  ;;  %v9019_v23 = vpop.permute.xlu1 %9018 }
 0xd71   : > { %v11801_v63 = vpop.eup %11800  ;;  %v8343_v5 = vmul.f32 %v11799_v16, %v15374_v22 }
 0xd72   : > { %v8729_v59 = vpop.f32.mrb[60].mxu1  ;;  %v8273_v34 = vpop.xlane.xlu0 %8272  ;;  %v8354_v14 = vpack.c.bf16 %v8333_v58, %v8332_v12  ;;  %v8342_v26 = vmul.f32 %v11801_v63, %v15372_v47  ;;  %v629_v47 = vld [vmem:[%s15769_s5 + $0xc] sm:$0xf] }
 0xd73   : > { %11806 = vrcp.f32 %v8273_v34  ;;  %v11012_v39 = vpop.f32.mrb[61].mxu1  ;;  %v11803_v17 = vpop.eup %11802  ;;  %v9177_v45 = vsel %vm4593_vm4, %v629_v47, 0  ;;  %v15611_v34 = vld [vmem:[%s15770_s6] ss:$0 sm:$0xff] }
 0xd74   : > { %v8732_v33 = vpop.f32.mrb[62].mxu1  ;;  %11029 = vmatmul.mubr.msk.bf16.vlgmr.msra.gmra.mrb[228].mxu0 %vm1451_vm3, %v8354_v14  ;;  %11808 = vrcp.f32 %v8270_v6  ;;  %v8359_v9 = vpack.c.bf16 %v8343_v5, %v8342_v26  ;;  %v8336_v22 = vmul.f32 %v11803_v17, %v15477_v27 }
 0xd75   : > { %v9119_v20 = vpack.c.bf16 %v8732_v33, %v8729_v59  ;;  %11039 = vmatpush3.bf16.msra.mxu0 %v8925_v36  ;;  %v11013_v41 = vpop.f32.mrb[63].mxu1  ;;  %11040 = vmatprep.mubr.msk.bf16.mxu0 %vm12009_vm1, %v15900_v43 }
 0xd76   : > { %v9066_v55 = vpop.permute.xlu0 %9065  ;;  %11050 = vmatprep.subr.bf16.mxu0 %v15900_v43 }
 0xd77   : > { %11057 = vmatpush3.bf16.msra.mxu1 %v9066_v55 }
 0xd79   : > { %v11805_v4 = vpop.eup %11804 }
 0xd7a   : > { %v8337_v52 = vmul.f32 %v11805_v4, %v15483_v54  ;;  %11059 = vmatmul.mubr.msk.bf16.vlgmr.msra.gmra.mrb[76].mxu1 %vm1451_vm3, %v8359_v9 }
 0xd7b   : > { %v8823_v35 = vpop.f32.mrb[64].mxu1 }
 0xd7c   : > { %v11024_v30 = vpop.f32.mrb[65].mxu1  ;;  %v8356_v13 = vpack.c.bf16 %v8337_v52, %v8336_v22 }
 0xd7d   : > { %v11807_v49 = vpop.eup %11806  ;;  %v8826_v50 = vpop.f32.mrb[66].mxu1 }
 0xd7e   : > { %v9121_v38 = vpack.c.bf16 %v8826_v50, %v8823_v35  ;;  %v11025_v36 = vpop.f32.mrb[67].mxu1  ;;  %11041 = vmatmul.mubr.msk.bf16.vlgmr.msra.gmra.mrb[232].mxu0 %vm1451_vm3, %v8356_v13  ;;  %v11809_v29 = vpop.eup %11808  ;;  %v8341_v27 = vmul.f32 %v11807_v49, %v15489_v44 }
 0xd7f   : > { %11051 = vmatpush3.bf16.msra.mxu0 %v9019_v23  ;;  %11052 = vmatprep.mubr.msk.bf16.mxu0 %vm12009_vm1, %v15900_v43  ;;  %v8340_v54 = vmul.f32 %v11809_v29, %v15481_v10 }
 0xd80   : > { %11199 = vmatprep.subr.msk.bf16.mxu0 %vm4593_vm4, %v629_v47 }
 0xd81   : > { %v8358_v8 = vpack.c.bf16 %v8341_v27, %v8340_v54 }
 0xd84   : > { %v8917_v24 = vpop.f32.mrb[68].mxu1 }
 0xd85   : > { %v11036_v1 = vpop.f32.mrb[69].mxu1 }
 0xd86   : > { %v8920_v21 = vpop.f32.mrb[70].mxu1  ;;  %11053 = vmatmul.mubr.msk.bf16.vlgmr.msra.gmra.mrb[236].mxu0 %vm1451_vm3, %v8358_v8 }
 0xd87   : > { %v9123_v0 = vpack.c.bf16 %v8920_v21, %v8917_v24  ;;  %v11037_v46 = vpop.f32.mrb[71].mxu1  ;;  %11064 = vmatprep.mubr.msk.bf16.mxu0 %vm653_vm2, %v9112_v3  ;;  %11063 = vmatpush3.bf16.msra.mxu0 %v9177_v45 }
 0xd8e   : > { %11065 = vmatmul.mubr.msk.bf16.vlgmr.msra.gmra.mrb[128].mxu0 %vm653_vm2, %v9113_v18 }
 0xd8f   : > { %11068 = vmatprep.mubr.msk.bf16.mxu0 %vm653_vm2, %v9114_v40 }
 0xd96   : > { %11069 = vmatmul.mubr.msk.bf16.gmra.mrb[132].mxu0 %vm653_vm2, %v9115_v11 }
 0xd97   : > { %11072 = vmatprep.mubr.msk.bf16.mxu0 %vm653_vm2, %v9116_v48 }
 0xd9e   : > { %11073 = vmatmul.mubr.msk.bf16.gmra.mrb[136].mxu0 %vm653_vm2, %v9117_v57 }
 0xd9f   : > { %11076 = vmatprep.mubr.msk.bf16.mxu0 %vm653_vm2, %v9118_v56 }
 0xda6   : > { %11077 = vmatmul.mubr.msk.bf16.gmra.mrb[140].mxu0 %vm653_vm2, %v9119_v20 }
 0xe14   : > { %v8776_v43 = vpop.f32.mrb[224].mxu0  ;;  %v9011_v10 = vpop.f32.mrb[72].mxu1 }
 0xe15   : > { %v11018_v44 = vpop.f32.mrb[225].mxu0  ;;  %v11048_v61 = vpop.f32.mrb[73].mxu1 }
 0xe16   : > { %v8779_v7 = vpop.f32.mrb[226].mxu0  ;;  %v9014_v3 = vpop.f32.mrb[74].mxu1 }
 0xe17   : > { %v9120_v42 = vpack.c.bf16 %v8779_v7, %v8776_v43  ;;  %v9125_v15 = vpack.c.bf16 %v9014_v3, %v9011_v10  ;;  %v11019_v18 = vpop.f32.mrb[227].mxu0  ;;  %v11049_v53 = vpop.f32.mrb[75].mxu1 }
 0xe19   : > { %11080 = vmatprep.mubr.msk.bf16.mxu0 %vm653_vm2, %v9120_v42 }
 0xe1a   : > { %11081 = vmatmul.mubr.msk.bf16.gmra.mrb[144].mxu0 %vm653_vm2, %v9121_v38 }
 0xe47   : > { %v8870_v25 = vpop.f32.mrb[228].mxu0 }
 0xe48   : > { %v11030_v40 = vpop.f32.mrb[229].mxu0 }
 0xe49   : > { %v8873_v60 = vpop.f32.mrb[230].mxu0 }
 0xe4a   : > { %v9122_v31 = vpack.c.bf16 %v8873_v60, %v8870_v25  ;;  %v11031_v11 = vpop.f32.mrb[231].mxu0 }
 0xe4c   : > { %11084 = vmatprep.mubr.msk.bf16.mxu0 %vm653_vm2, %v9122_v31 }
 0xe4d   : > { %v9105_v37 = vpop.f32.mrb[76].mxu1  ;;  %11085 = vmatmul.mubr.msk.bf16.gmra.mrb[148].mxu0 %vm653_vm2, %v9123_v0 }
 0xe4e   : > { %v11060_v19 = vpop.f32.mrb[77].mxu1 }
 0xe4f   : > { %v9108_v48 = vpop.f32.mrb[78].mxu1 }
 0xe50   : > { %v9127_v51 = vpack.c.bf16 %v9108_v48, %v9105_v37  ;;  %v11061_v28 = vpop.f32.mrb[79].mxu1 }
 0xe51   : > { %v8964_v57 = vpop.f32.mrb[232].mxu0 }
 0xe52   : > { %v11042_v62 = vpop.f32.mrb[233].mxu0 }
 0xe53   : > { %v8967_v2 = vpop.f32.mrb[234].mxu0 }
 0xe54   : > { %v9124_v56 = vpack.c.bf16 %v8967_v2, %v8964_v57  ;;  %v11043_v32 = vpop.f32.mrb[235].mxu0 }
 0xe56   : > { %11088 = vmatprep.mubr.msk.bf16.mxu0 %vm653_vm2, %v9124_v56 }
 0xe57   : > { %11089 = vmatmul.mubr.msk.bf16.gmra.mrb[152].mxu0 %vm653_vm2, %v9125_v15 }
 0xe59   : > { %v9058_v58 = vpop.f32.mrb[236].mxu0 }
 0xe5a   : > { %v11054_v12 = vpop.f32.mrb[237].mxu0 }
 0xe5b   : > { %v9061_v16 = vpop.f32.mrb[238].mxu0 }
 0xe5c   : > { %v9126_v6 = vpack.c.bf16 %v9061_v16, %v9058_v58  ;;  %v11055_v59 = vpop.f32.mrb[239].mxu0 }
 0xe5e   : > { %11092 = vmatprep.mubr.msk.bf16.mxu0 %vm653_vm2, %v9126_v6 }
 0xe5f   : > { %11093 = vmatmul.mubr.msk.bf16.gmra.mrb[156].mxu0 %vm653_vm2, %v9127_v51 }
 0xe61   : > { %v11066_v14 = vpop.f32.mrb[128].mxu0 }
 0xe62   : > { %v9381_v63 = vadd.f32 %v11066_v14, %v15611_v34  ;;  %v9213_v39 = vpop.f32.mrb[129].mxu0 }
 0xe63   : > { %v9379_v5 = vadd.f32 %v15611_v34, %v9213_v39  ;;  %v11067_v33 = vpop.f32.mrb[130].mxu0 }
 0xe64   : > { %9413 = vst.msk [vmem:[%s15617_s17 + $0x10] sm:$0xff] %vm416_vm0, %v9381_v63  ;;  %v9382_v20 = vadd.f32 %v11067_v33, %v15611_v34  ;;  %v9216_v41 = vpop.f32.mrb[131].mxu0 }
 0xe65   : > { %9411 = vst.msk [vmem:[%s15617_s17] sm:$0xff] %vm416_vm0, %v9379_v5  ;;  %v9380_v26 = vadd.f32 %v15611_v34, %v9216_v41 }
 0xe66   : > { %9414 = vst.msk [vmem:[%s15617_s17 + $0x18] sm:$0xff] %vm416_vm0, %v9382_v20 }
 0xe67   : > { %9412 = vst.msk [vmem:[%s15617_s17 + $0x8] sm:$0xff] %vm416_vm0, %v9380_v26 }
 0xe69   : > { %v11070_v55 = vpop.f32.mrb[132].mxu0 }
 0xe6a   : > { %v9385_v17 = vadd.f32 %v11070_v55, %v15611_v34  ;;  %v9229_v9 = vpop.f32.mrb[133].mxu0 }
 0xe6b   : > { %v9383_v4 = vadd.f32 %v15611_v34, %v9229_v9  ;;  %v11071_v22 = vpop.f32.mrb[134].mxu0 }
 0xe6c   : > { %9417 = vst.msk [vmem:[%s15617_s17 + $0x30] sm:$0xff] %vm416_vm0, %v9385_v17  ;;  %v9386_v52 = vadd.f32 %v11071_v22, %v15611_v34  ;;  %v9232_v35 = vpop.f32.mrb[135].mxu0 }
 0xe6d   : > { %9415 = vst.msk [vmem:[%s15617_s17 + $0x20] sm:$0xff] %vm416_vm0, %v9383_v4  ;;  %v9384_v30 = vadd.f32 %v15611_v34, %v9232_v35 }
 0xe6e   : > { %9418 = vst.msk [vmem:[%s15617_s17 + $0x38] sm:$0xff] %vm416_vm0, %v9386_v52 }
 0xe6f   : > { %9416 = vst.msk [vmem:[%s15617_s17 + $0x28] sm:$0xff] %vm416_vm0, %v9384_v30 }
 0xe71   : > { %v11074_v13 = vpop.f32.mrb[136].mxu0 }
 0xe72   : > { %v9389_v49 = vadd.f32 %v11074_v13, %v15611_v34  ;;  %v9245_v50 = vpop.f32.mrb[137].mxu0 }
 0xe73   : > { %v9387_v47 = vadd.f32 %v15611_v34, %v9245_v50  ;;  %v11075_v23 = vpop.f32.mrb[138].mxu0 }
 0xe74   : > { %9421 = vst.msk [vmem:[%s15617_s17 + $0x50] sm:$0xff] %vm416_vm0, %v9389_v49  ;;  %v9390_v38 = vadd.f32 %v11075_v23, %v15611_v34  ;;  %v9248_v36 = vpop.f32.mrb[139].mxu0 }
 0xe75   : > { %9419 = vst.msk [vmem:[%s15617_s17 + $0x40] sm:$0xff] %vm416_vm0, %v9387_v47  ;;  %v9388_v29 = vadd.f32 %v15611_v34, %v9248_v36 }
 0xe76   : > { %9422 = vst.msk [vmem:[%s15617_s17 + $0x58] sm:$0xff] %vm416_vm0, %v9390_v38 }
 0xe77   : > { %9420 = vst.msk [vmem:[%s15617_s17 + $0x48] sm:$0xff] %vm416_vm0, %v9388_v29 }
 0xe79   : > { %v11078_v27 = vpop.f32.mrb[140].mxu0 }
 0xe7a   : > { %v9393_v54 = vadd.f32 %v11078_v27, %v15611_v34  ;;  %v9261_v24 = vpop.f32.mrb[141].mxu0 }
 0xe7b   : > { %v9391_v8 = vadd.f32 %v15611_v34, %v9261_v24  ;;  %v11079_v45 = vpop.f32.mrb[142].mxu0 }
 0xe7c   : > { %9425 = vst.msk [vmem:[%s15617_s17 + $0x70] sm:$0xff] %vm416_vm0, %v9393_v54  ;;  %v9394_v1 = vadd.f32 %v11079_v45, %v15611_v34  ;;  %v9264_v21 = vpop.f32.mrb[143].mxu0 }
 0xe7d   : > { %9423 = vst.msk [vmem:[%s15617_s17 + $0x60] sm:$0xff] %vm416_vm0, %v9391_v8  ;;  %v9392_v0 = vadd.f32 %v15611_v34, %v9264_v21 }
 0xe7e   : > { %9426 = vst.msk [vmem:[%s15617_s17 + $0x78] sm:$0xff] %vm416_vm0, %v9394_v1 }
 0xe7f   : > { %9424 = vst.msk [vmem:[%s15617_s17 + $0x68] sm:$0xff] %vm416_vm0, %v9392_v0 }
 0xeed   : > { %v11082_v46 = vpop.f32.mrb[144].mxu0 }
 0xeee   : > { %v9397_v43 = vadd.f32 %v11082_v46, %v15611_v34  ;;  %v9277_v10 = vpop.f32.mrb[145].mxu0 }
 0xeef   : > { %v9395_v44 = vadd.f32 %v15611_v34, %v9277_v10  ;;  %v11083_v61 = vpop.f32.mrb[146].mxu0 }
 0xef0   : > { %9429 = vst.msk [vmem:[%s15617_s17 + $0x90] sm:$0xff] %vm416_vm0, %v9397_v43  ;;  %v9398_v7 = vadd.f32 %v11083_v61, %v15611_v34  ;;  %v9280_v3 = vpop.f32.mrb[147].mxu0 }
 0xef1   : > { %9427 = vst.msk [vmem:[%s15617_s17 + $0x80] sm:$0xff] %vm416_vm0, %v9395_v44  ;;  %v9396_v42 = vadd.f32 %v15611_v34, %v9280_v3 }
 0xef2   : > { %9430 = vst.msk [vmem:[%s15617_s17 + $0x98] sm:$0xff] %vm416_vm0, %v9398_v7 }
 0xef3   : > { %9428 = vst.msk [vmem:[%s15617_s17 + $0x88] sm:$0xff] %vm416_vm0, %v9396_v42 }
 0xf20   : > { %v11086_v15 = vpop.f32.mrb[148].mxu0 }
 0xf21   : > { %v9401_v18 = vadd.f32 %v11086_v15, %v15611_v34  ;;  %v9293_v53 = vpop.f32.mrb[149].mxu0 }
 0xf22   : > { %v9399_v25 = vadd.f32 %v15611_v34, %v9293_v53  ;;  %v11087_v40 = vpop.f32.mrb[150].mxu0 }
 0xf23   : > { %9433 = vst.msk [vmem:[%s15617_s17 + $0xb0] sm:$0xff] %vm416_vm0, %v9401_v18  ;;  %v9402_v60 = vadd.f32 %v11087_v40, %v15611_v34  ;;  %v9296_v31 = vpop.f32.mrb[151].mxu0 }
 0xf24   : > { %9431 = vst.msk [vmem:[%s15617_s17 + $0xa0] sm:$0xff] %vm416_vm0, %v9399_v25  ;;  %v9400_v11 = vadd.f32 %v15611_v34, %v9296_v31 }
 0xf25   : > { %9434 = vst.msk [vmem:[%s15617_s17 + $0xb8] sm:$0xff] %vm416_vm0, %v9402_v60 }
 0xf26   : > { %9432 = vst.msk [vmem:[%s15617_s17 + $0xa8] sm:$0xff] %vm416_vm0, %v9400_v11 }
 0xf2a   : > { %v11090_v37 = vpop.f32.mrb[152].mxu0 }
 0xf2b   : > { %v9405_v19 = vadd.f32 %v11090_v37, %v15611_v34  ;;  %v9309_v48 = vpop.f32.mrb[153].mxu0 }
 0xf2c   : > { %v9403_v51 = vadd.f32 %v15611_v34, %v9309_v48  ;;  %v11091_v28 = vpop.f32.mrb[154].mxu0 }
 0xf2d   : > { %9437 = vst.msk [vmem:[%s15617_s17 + $0xd0] sm:$0xff] %vm416_vm0, %v9405_v19  ;;  %v9406_v57 = vadd.f32 %v11091_v28, %v15611_v34  ;;  %v9312_v62 = vpop.f32.mrb[155].mxu0 }
 0xf2e   : > { %9435 = vst.msk [vmem:[%s15617_s17 + $0xc0] sm:$0xff] %vm416_vm0, %v9403_v51  ;;  %v9404_v2 = vadd.f32 %v15611_v34, %v9312_v62 }
 0xf2f   : > { %9438 = vst.msk [vmem:[%s15617_s17 + $0xd8] sm:$0xff] %vm416_vm0, %v9406_v57 }
 0xf30   : > { %9436 = vst.msk [vmem:[%s15617_s17 + $0xc8] sm:$0xff] %vm416_vm0, %v9404_v2 }
 0xf32   : > { %v11094_v56 = vpop.f32.mrb[156].mxu0 }
 0xf33   : > { %v9409_v32 = vadd.f32 %v11094_v56, %v15611_v34  ;;  %v9325_v58 = vpop.f32.mrb[157].mxu0 }
 0xf34   : > { %v9407_v12 = vadd.f32 %v15611_v34, %v9325_v58  ;;  %v11095_v16 = vpop.f32.mrb[158].mxu0 }
 0xf35   : > { %9441 = vst.msk [vmem:[%s15617_s17 + $0xf0] sm:$0xff] %vm416_vm0, %v9409_v32  ;;  %v9410_v6 = vadd.f32 %v11095_v16, %v15611_v34  ;;  %v9328_v59 = vpop.f32.mrb[159].mxu0 }
 0xf36   : > { %9439 = vst.msk [vmem:[%s15617_s17 + $0xe0] sm:$0xff] %vm416_vm0, %v9407_v12  ;;  %v9408_v14 = vadd.f32 %v15611_v34, %v9328_v59 }
 0xf37   : > { %9442 = vst.msk [vmem:[%s15617_s17 + $0xf8] sm:$0xff] %vm416_vm0, %v9410_v6 }
 0xf38   : > { %9440 = vst.msk [vmem:[%s15617_s17 + $0xe8] sm:$0xff] %vm416_vm0, %v9408_v14 }
 0xf39   : > { %11937 = shalt.err (!%p11934_p4)
}
 0xf3a   : > { %s11938_s15 = scalar_lea.hbm %s15711_s9, 4096  ;;  %s11942_s8 = scalar_lea.hbm %s15771_s7, 8192 }
 0xf3b   : > { %p11939_p9 = scmp.ne.s32.totalorder %s15711_s9, %s11938_s15  ;;  %p11943_p8 = scmp.lt.u32.totalorder %s15711_s9, %s15771_s7 }
 0xf3c   : > { %p11944_p13 = scmp.lt.u32.totalorder %s11942_s8, %s11938_s15  ;;  %p11946_p10 = scmp.lt.u32.totalorder %s11938_s15, %s15711_s9 }
 0xf3d   : > { %p11940_p0 = pnand %p11939_p9, %p12218_p5 }
 0xf3e   : > { %p11945_p6 = por %p11944_p13, %p11943_p8 }
 0xf3f   : > { %p11941_p11 = pneg %p11940_p0 }
 0xf40   : > { %p11947_p3 = por %p11946_p10, %p11945_p6 }
 0xf42   : > { %p11948_p7 = pnand %p11947_p3, %p11941_p11 }
 0xf44   : > { %11951 = shalt.err (!%p11948_p7)
}
 0xf45   : > { %s12022_s20 = smov 128   ;;  %s12023_s30 = smov 8  }
 0xf46   : > { %11214 = dma.vmem_to_hbm [thread:$0]  (%p12218_p5), %s15713_s13, 4096, %s15711_s9, %s9444_s28, %s12022_s20, %s12022_s20, %s12023_s30  }
 0xf47 PF: > { %s16105_s23 = sld [smem:[#allocation15_spill]]  ;;  %s9473_s10 = sand.u32 1, %s11986_s24  }
 0xf48   : > { %p16107_p1 = scmp.ge.s32.totalorder %s11998_s27, 2  ;;  %s9474_s11 = scalar_lea.sflag [#allocation4], %s9473_s10 }
 0xf4d   : > { %p16106_p12 = scmp.ne.s32.totalorder %s16105_s23, 0 }
 0xf4f   : > { %p11231_p2 = pnand %p16107_p1, %p16106_p12 }
 0xf51   : > { %11981 = dma.done.wait (!%p11231_p2), %s9474_s11, 4096  }
 0xf52   : > { %11983 = vsyncadd (!%p11231_p2), %s9474_s11, 4294963200  ;;  %p22_p4 = scmp.ge.s32.totalorder %s12204_s22, 4   ;;  %s16108_s24 = smov %s11990_s25 }
 0xf53   : > { %s16109_s25 = smov %s11994_s26  ;;  %s16110_s26 = smov %s12214_s18 }
 0xf54   : > { %s16111_s27 = smov %s12204_s22  ;;  %24 = sbr.rel (!%p22_p4) target bundleno = 7 (0x7), region = 108 }
 0xf5b   :  { %9479 = vsyncpa [#allocation3], 1 }
 0xf5c   :  { %9481 = vsyncpa [#allocation3 + $0x1], 1 }
 0xf5d   :  { %9482 = vsyncpa [#allocation6], 1 }
 0xf5e   :  { %9483 = vsyncpa [#allocation9], 1 }
 0xf5f   :  { %9484 = vsyncpa [#allocation4], 1 }
 0xf60   :  { %9486 = vsyncpa [#allocation4 + $0x1], 1 }

</bundles_post_ra>
